<compile_context>
chip_gen: v7x
topology: tpu7x:2x2x1
jax: 0.10.0
libtpu: 0.0.40
codegen_flags: <defaults>
</compile_context>

<pallas_src>
import jax
import jax.numpy as jnp
from jax.experimental import pallas as pl
from jax.experimental.pallas import tpu as pltpu

IN_CH = 6
OUT_CH = 6
KSIZE = 51
L_IN = 300
L_OUT = L_IN - KSIZE + 1          # 250
FC_IN = OUT_CH * L_OUT            # 1500
FC_OUT = 500
X_FLAT = IN_CH * L_IN             # 1800


def _round_up(x, m):
    return ((x + m - 1) // m) * m


FC_IN_PAD = _round_up(FC_IN, 128)     # 1536 (lane-dense conv output / FC contraction)
FC_OUT_PAD = _round_up(FC_OUT, 128)   # 512  (lane-dense output stores)


def rpeak_kernel(x_ref, wconv_ref, bconv_ref, wfc_ref, bfc_ref, out_ref):
    # x_ref    : (B, 1800)    f32/bf16  flattened raw input (ci*300 + p)
    # wconv_ref: (1800, 1536) bf16      Toeplitz conv matrix (cols >=1500 zero)
    # bconv_ref: (1, 1536)    f32       conv bias broadcast over t (cols >=1500 zero)
    # wfc_ref  : (1536, 512)  bf16      fc weight (rows >=1500 and cols >=500 zero)
    # bfc_ref  : (1, 512)     f32
    # out_ref  : (B, 512)     f32
    xb = x_ref[...].astype(jnp.bfloat16)
    # Conv1d (valid, stride 1) as one full-width MXU matmul; output is already
    # in torch.flatten order: column index = c*250 + t.
    conv = jnp.dot(xb, wconv_ref[...], preferred_element_type=jnp.float32)
    conv = conv + bconv_ref[...]
    s = jax.nn.sigmoid(conv).astype(jnp.bfloat16)            # (B, 1536)
    # Fully-connected layer as a single (B,1536)@(1536,512) matmul.
    out = jnp.dot(s, wfc_ref[...], preferred_element_type=jnp.float32)
    out_ref[...] = out + bfc_ref[...]


def prepare_rpeak_params(w_conv, b_conv, w_fc, b_fc):
    """One-time weight preprocessing (hoisted out of the per-call path).

    Returns (wbig, bconv_row, wf, bf) ready for rpeak_classifier.
    """
    # Toeplitz conv matrix: Wbig[ci*300+p, c*250+t] = w_conv[c, ci, p-t] if 0<=p-t<51.
    p = jnp.arange(L_IN)
    t = jnp.arange(L_OUT)
    k = p[:, None] - t[None, :]                               # (300, 250)
    valid = (k >= 0) & (k < KSIZE)
    kc = jnp.clip(k, 0, KSIZE - 1)
    taps = w_conv[:, :, kc]                                   # (6, 6, 300, 250) [c,ci,p,t]
    taps = jnp.where(valid[None, None], taps, 0.0)
    wbig = taps.transpose(1, 2, 0, 3).reshape(X_FLAT, FC_IN)  # (1800, 1500)
    wbig = jnp.pad(wbig, ((0, 0), (0, FC_IN_PAD - FC_IN))).astype(jnp.bfloat16)

    bconv_row = jnp.pad(jnp.repeat(b_conv, L_OUT), (0, FC_IN_PAD - FC_IN))
    bconv_row = bconv_row.reshape(1, FC_IN_PAD).astype(jnp.float32)

    # FC weight in (k, o) layout; zero pad rows 1500:1536 (so sigmoid(0)=0.5 on
    # the conv pad columns contributes nothing) and cols 500:512 (sliced off).
    wf = jnp.pad(w_fc.T, ((0, FC_IN_PAD - FC_IN), (0, FC_OUT_PAD - FC_OUT)))
    wf = wf.astype(jnp.bfloat16)
    bf = jnp.pad(b_fc, (0, FC_OUT_PAD - FC_OUT)).reshape(1, FC_OUT_PAD)
    bf = bf.astype(jnp.float32)
    return wbig, bconv_row, wf, bf


def rpeak_classifier(x, params, *, block_b=512):
    """x: (N, 6, 300) float32 or bfloat16. params from prepare_rpeak_params.

    Returns (N, 500) float32.
    """
    wbig, bconv_row, wf, bf = params
    N = x.shape[0]

    # Input reshape is free (contiguous); keep the caller's dtype (f32 or bf16),
    # the kernel casts to bf16 on the fly (no standalone HBM cast pass).
    x_flat = x.reshape(N, X_FLAT)

    # Batch-tile selection:
    #   * large N  -> B = block_b (amortize per-step overhead, full MXU tiles)
    #   * medium N -> split into >= 2 grid steps so "parallel" can use both
    #                 v7x TensorCores
    #   * tiny N   -> one 8-row tile
    if N <= 8:
        B = 8
    elif N < 2 * block_b:
        B = min(block_b, max(8, _round_up(-(-N // 2), 8)))
    else:
        B = block_b
    N_pad = _round_up(N, B)
    if N_pad != N:
        x_flat = jnp.pad(x_flat, ((0, N_pad - N), (0, 0)))

    grid = (N_pad // B,)

    x_bytes = N_pad * X_FLAT * x_flat.dtype.itemsize
    w_bytes = (X_FLAT * FC_IN_PAD + FC_IN_PAD * FC_OUT_PAD) * 2 \
        + (FC_IN_PAD + FC_OUT_PAD) * 4
    out_bytes = N_pad * FC_OUT_PAD * 4
    cost = pl.CostEstimate(
        flops=2 * N_pad * (X_FLAT * FC_IN_PAD + FC_IN_PAD * FC_OUT_PAD),
        transcendentals=N_pad * FC_IN_PAD,
        bytes_accessed=x_bytes + w_bytes + out_bytes,
    )

    # Constant-index weight/bias blocks: single-buffer them (no overlap to gain,
    # halves their VMEM footprint -> fits v5e's 16 MiB default scoped limit too,
    # but we also set the limit explicitly).
    const_buf = pl.Buffered(1)

    out = pl.pallas_call(
        rpeak_kernel,
        out_shape=jax.ShapeDtypeStruct((N_pad, FC_OUT_PAD), jnp.float32),
        grid_spec=pltpu.PrefetchScalarGridSpec(
            num_scalar_prefetch=0,
            grid=grid,
            in_specs=[
                pl.BlockSpec((B, X_FLAT), lambda i: (i, 0)),
                pl.BlockSpec((X_FLAT, FC_IN_PAD), lambda i: (0, 0),
                             pipeline_mode=const_buf),
                pl.BlockSpec((1, FC_IN_PAD), lambda i: (0, 0),
                             pipeline_mode=const_buf),
                pl.BlockSpec((FC_IN_PAD, FC_OUT_PAD), lambda i: (0, 0),
                             pipeline_mode=const_buf),
                pl.BlockSpec((1, FC_OUT_PAD), lambda i: (0, 0),
                             pipeline_mode=const_buf),
            ],
            out_specs=pl.BlockSpec((B, FC_OUT_PAD), lambda i: (i, 0)),
        ),
        compiler_params=pltpu.CompilerParams(
            dimension_semantics=("parallel",),
            vmem_limit_bytes=48 * 1024 * 1024,
        ),
        cost_estimate=cost,
    )(x_flat, wbig, bconv_row, wf, bf)
    return out[:N, :FC_OUT]


if __name__ == "__main__":
    key = jax.random.PRNGKey(0)
    k1, k2, k3, k4, k5 = jax.random.split(key, 5)

    N = 2
    x = jax.random.normal(k1, (N, IN_CH, L_IN), jnp.float32)
    # Deterministic synthetic parameters (shapes from nn.Conv1d / nn.Linear).
    w_conv = jax.random.normal(k2, (OUT_CH, IN_CH, KSIZE), jnp.float32) * 0.05
    b_conv = jax.random.normal(k3, (OUT_CH,), jnp.float32) * 0.05
    w_fc = jax.random.normal(k4, (FC_OUT, FC_IN), jnp.float32) * 0.02
    b_fc = jax.random.normal(k5, (FC_OUT,), jnp.float32) * 0.02

    params = jax.tree_util.tree_map(
        jax.block_until_ready, prepare_rpeak_params(w_conv, b_conv, w_fc, b_fc))
    out = jax.block_until_ready(rpeak_classifier(x, params))
    assert out.shape == (N, FC_OUT), out.shape

    # Pure-JAX f32 reference (matches PyTorch semantics).
    conv_ref = jax.lax.conv_general_dilated(
        x, w_conv, window_strides=(1,), padding="VALID",
        dimension_numbers=("NCH", "OIH", "NCH")) + b_conv[None, :, None]
    ref = jax.nn.sigmoid(conv_ref).reshape(N, FC_IN) @ w_fc.T + b_fc
    err = float(jnp.max(jnp.abs(out - ref)))
    # Tolerance relaxed vs pure-f32 because MXU operands are bf16 (f32 accumulate).
    assert jnp.allclose(out, ref, atol=3e-2, rtol=3e-2), err

    print("KERNEL_OK")
</pallas_src>

<mosaic_0001>
module attributes {stable_mosaic.version = 11 : i64} {
  func.func @rpeak_kernel(%arg0: i32, %arg1: memref<8x1800xf32, #tpu.memory_space<vmem>>, %arg2: memref<1800x1536xbf16, #tpu.memory_space<vmem>>, %arg3: memref<1x1536xf32, #tpu.memory_space<vmem>>, %arg4: memref<1536x512xbf16, #tpu.memory_space<vmem>>, %arg5: memref<1x512xf32, #tpu.memory_space<vmem>>, %arg6: memref<8x512xf32, #tpu.memory_space<vmem>>) attributes {dimension_semantics = [#tpu.dimension_semantics<parallel>], iteration_bounds = array<i64: 1>, scalar_prefetch = 0 : i64, scratch_operands = 0 : i64, tpu.core_type = #tpu.core_type<tc>, window_params = [{transform_indices = @transform_0, window_bounds = array<i64: 8, 1800>}, {pipeline_mode = #tpu.pipeline_mode<synchronous>, transform_indices = @transform_1, window_bounds = array<i64: 1800, 1536>}, {pipeline_mode = #tpu.pipeline_mode<synchronous>, transform_indices = @transform_2, window_bounds = array<i64: 1, 1536>}, {pipeline_mode = #tpu.pipeline_mode<synchronous>, transform_indices = @transform_3, window_bounds = array<i64: 1536, 512>}, {pipeline_mode = #tpu.pipeline_mode<synchronous>, transform_indices = @transform_4, window_bounds = array<i64: 1, 512>}, {transform_indices = @transform_5, window_bounds = array<i64: 8, 512>}]} {
    %c0 = arith.constant 0 : index
    %c0_0 = arith.constant 0 : index
    %0 = vector.load %arg1[%c0, %c0_0] : memref<8x1800xf32, #tpu.memory_space<vmem>>, vector<8x1800xf32>
    %1 = arith.truncf %0 : vector<8x1800xf32> to vector<8x1800xbf16>
    %c0_1 = arith.constant 0 : index
    %c0_2 = arith.constant 0 : index
    %2 = vector.load %arg2[%c0_1, %c0_2] : memref<1800x1536xbf16, #tpu.memory_space<vmem>>, vector<1800x1536xbf16>
    %cst = arith.constant dense<0.000000e+00> : vector<8x1536xf32>
    %3 = tpu.matmul %1, %2, %cst {dimension_numbers = #tpu.dot_dimension_numbers<[1], [0], [0], [1], [0, 0, 1, 1], [], []>} : vector<8x1800xbf16>, vector<1800x1536xbf16>, vector<8x1536xf32> -> vector<8x1536xf32>
    %c0_3 = arith.constant 0 : index
    %c0_4 = arith.constant 0 : index
    %4 = vector.load %arg3[%c0_3, %c0_4] : memref<1x1536xf32, #tpu.memory_space<vmem>>, vector<1x1536xf32>
    %5 = vector.broadcast %4 : vector<1x1536xf32> to vector<8x1536xf32>
    %6 = arith.addf %3, %5 : vector<8x1536xf32>
    %7 = arith.negf %6 : vector<8x1536xf32>
    %8 = math.exp %7 : vector<8x1536xf32>
    %cst_5 = arith.constant 1.000000e+00 : f32
    %9 = vector.broadcast %cst_5 : f32 to vector<8x1536xf32>
    %10 = arith.addf %9, %8 : vector<8x1536xf32>
    %11 = arith.divf %9, %10 : vector<8x1536xf32>
    %12 = arith.truncf %11 : vector<8x1536xf32> to vector<8x1536xbf16>
    %c0_6 = arith.constant 0 : index
    %c0_7 = arith.constant 0 : index
    %13 = vector.load %arg4[%c0_6, %c0_7] : memref<1536x512xbf16, #tpu.memory_space<vmem>>, vector<1536x512xbf16>
    %cst_8 = arith.constant dense<0.000000e+00> : vector<8x512xf32>
    %14 = tpu.matmul %12, %13, %cst_8 {dimension_numbers = #tpu.dot_dimension_numbers<[1], [0], [0], [1], [0, 0, 1, 1], [], []>} : vector<8x1536xbf16>, vector<1536x512xbf16>, vector<8x512xf32> -> vector<8x512xf32>
    %c0_9 = arith.constant 0 : index
    %c0_10 = arith.constant 0 : index
    %15 = vector.load %arg5[%c0_9, %c0_10] : memref<1x512xf32, #tpu.memory_space<vmem>>, vector<1x512xf32>
    %16 = vector.broadcast %15 : vector<1x512xf32> to vector<8x512xf32>
    %17 = arith.addf %14, %16 : vector<8x512xf32>
    %c0_11 = arith.constant 0 : index
    %c0_12 = arith.constant 0 : index
    %18 = vector.load %arg6[%c0_11, %c0_12] : memref<8x512xf32, #tpu.memory_space<vmem>>, vector<8x512xf32>
    tpu.vector_store %arg6[%c0_11, %c0_12], %17 {strides = array<i32>} : memref<8x512xf32, #tpu.memory_space<vmem>>, vector<8x512xf32>,
    return
  }
  func.func @transform_0(%arg0: i32) -> (i32, i32) {
    %c0_i32 = arith.constant 0 : i32
    %c0_i32_0 = arith.constant 0 : i32
    return %arg0, %c0_i32 : i32, i32
  }
  func.func @transform_1(%arg0: i32) -> (i32, i32) {
    %c0_i32 = arith.constant 0 : i32
    %c0_i32_0 = arith.constant 0 : i32
    %c0_i32_1 = arith.constant 0 : i32
    return %c0_i32, %c0_i32_0 : i32, i32
  }
  func.func @transform_2(%arg0: i32) -> (i32, i32) {
    %c0_i32 = arith.constant 0 : i32
    %c0_i32_0 = arith.constant 0 : i32
    %c0_i32_1 = arith.constant 0 : i32
    return %c0_i32, %c0_i32_0 : i32, i32
  }
  func.func @transform_3(%arg0: i32) -> (i32, i32) {
    %c0_i32 = arith.constant 0 : i32
    %c0_i32_0 = arith.constant 0 : i32
    %c0_i32_1 = arith.constant 0 : i32
    return %c0_i32, %c0_i32_0 : i32, i32
  }
  func.func @transform_4(%arg0: i32) -> (i32, i32) {
    %c0_i32 = arith.constant 0 : i32
    %c0_i32_0 = arith.constant 0 : i32
    %c0_i32_1 = arith.constant 0 : i32
    return %c0_i32, %c0_i32_0 : i32, i32
  }
  func.func @transform_5(%arg0: i32) -> (i32, i32) {
    %c0_i32 = arith.constant 0 : i32
    %c0_i32_0 = arith.constant 0 : i32
    return %arg0, %c0_i32 : i32, i32
  }
}

</mosaic_0001>

<bundles_post_ra>
// kernel: tpu_custom_call.1
= control target key start
LH: loop header
LB: loop body
LE: loop exit
PB: predicated region body
PF: predicated region fallthrough
CT: control target
= control target key end

     0   :  { %10 = vsyncpa [#allocation3], 0  ;;  %s18337_s0 = inlined_call_operand.hbm [shape: f32[8,1800], index: 0, kind: input, shape index: {}]   ;;  %s18338_s1 = inlined_call_operand.hbm [shape: bf16[1800,1536], index: 1, kind: input, shape index: {}]   ;;  %s18339_s2 = inlined_call_operand.hbm [shape: f32[1,1536], index: 2, kind: input, shape index: {}]   ;;  %s18340_s3 = inlined_call_operand.hbm [shape: bf16[1536,512], index: 3, kind: input, shape index: {}]   ;;  %s18341_s4 = inlined_call_operand.hbm [shape: f32[1,512], index: 4, kind: input, shape index: {}]   ;;  %s18342_s5 = inlined_call_operand.hbm [shape: f32[8,512], index: 5, kind: output, shape index: {}]  }
   0x1   :  { %11 = vsyncpa [#allocation6], 0 }
   0x2   :  { %12 = vsyncpa [#allocation9], 0 }
   0x3   :  { %13 = vsyncpa [#allocation4], 0  ;;  %s18002_s18 = smov [#allocation5]   ;;  %s17862_s22 = scalar_lea.hbm %s18338_s1, 172800 }
   0x4   :  { %s29_s19 = sshll.u32 %s18002_s18, 4  ;;  %p17863_p0 = scmp.ne.s32.totalorder %s18338_s1, %s17862_s22  ;;  %s30_s19 = int_to_ptr.vmem [resolvable:$true] %s29_s19 }
   0x5   :  { %p17866_p1 = scmp.lt.u32.totalorder %s17862_s22, %s18338_s1 }
   0x7   :  { %p17868_p2 = pnand %p17866_p1, %p17863_p0 }
   0x9   :  { %17871 = shalt.err (!%p17868_p2)
}
   0xa   :  { %s17872_s27 = scalar_lea.vmem %s30_s19, 172800  ;;  %p17877_p4 = scmp.lt.s32.totalorder %s30_s19, %s30_s19 }
   0xb   :  { %p17873_p3 = scmp.ne.s32.totalorder %s30_s19, %s17872_s27  ;;  %p17878_p5 = scmp.lt.s32.totalorder %s17872_s27, %s17872_s27 }
   0xd   :  { %p17879_p6 = por %p17878_p5, %p17877_p4 }
   0xf   :  { %p17880_p7 = pnand %p17879_p6, %p17873_p3 }
  0x11   :  { %17883 = shalt.err (!%p17880_p7)
}
  0x12   :  { %s18003_s28 = smov 768   ;;  %s18004_s29 = smov 48  }
  0x13   :  { %35 = dma.hbm_to_vmem [thread:$0]  %s18338_s1, 172800, %s30_s19, [#allocation6], %s18003_s28, %s18003_s28, %s18004_s29  }
  0x14   :  { %s18005_s7 = smov [#allocation8]   ;;  %s17884_s11 = scalar_lea.hbm %s18340_s3, 49152 }
  0x15   :  { %s51_s8 = sshll.u32 %s18005_s7, 4  ;;  %p17885_p8 = scmp.ne.s32.totalorder %s18340_s3, %s17884_s11  ;;  %s52_s8 = int_to_ptr.vmem [resolvable:$true] %s51_s8 }
  0x16   :  { %p17888_p9 = scmp.lt.u32.totalorder %s17884_s11, %s18340_s3 }
  0x18   :  { %p17890_p10 = pnand %p17888_p9, %p17885_p8 }
  0x1a   :  { %17893 = shalt.err (!%p17890_p10)
}
  0x1b   :  { %s17894_s16 = scalar_lea.vmem %s52_s8, 49152  ;;  %p17899_p12 = scmp.lt.s32.totalorder %s52_s8, %s52_s8 }
  0x1c   :  { %p17895_p11 = scmp.ne.s32.totalorder %s52_s8, %s17894_s16  ;;  %p17900_p13 = scmp.lt.s32.totalorder %s17894_s16, %s17894_s16 }
  0x1e   :  { %p17901_p0 = por %p17900_p13, %p17899_p12 }
  0x20   :  { %p17902_p1 = pnand %p17901_p0, %p17895_p11 }
  0x22   :  { %17905 = shalt.err (!%p17902_p1)
}
  0x23   :  { %s18006_s1 = smov 256   ;;  %s18007_s17 = smov 16  }
  0x24   :  { %57 = dma.hbm_to_vmem [thread:$0]  %s18340_s3, 49152, %s52_s8, [#allocation9], %s18006_s1, %s18006_s1, %s18007_s17  }
  0x25   :  { %s18008_s20 = smov [#allocation2]   ;;  %s18009_s22 = smov [#allocation7]  }
  0x26   :  { %s20_s21 = sshll.u32 %s18008_s20, 4  ;;  %s42_s23 = sshll.u32 %s18009_s22, 4  ;;  %s21_s21 = int_to_ptr.vmem [resolvable:$true] %s20_s21  ;;  %s43_s23 = int_to_ptr.vmem [resolvable:$true] %s42_s23 }
  0x27   :  { %s17906_s26 = scalar_lea.hbm %s18337_s0, 1920 }
  0x28   :  { %p17907_p2 = scmp.ne.s32.totalorder %s18337_s0, %s17906_s26  ;;  %p17910_p3 = scmp.lt.u32.totalorder %s17906_s26, %s18337_s0 }
  0x2a   :  { %p17912_p4 = pnand %p17910_p3, %p17907_p2 }
  0x2c   :  { %17915 = shalt.err (!%p17912_p4)
}
  0x2d   :  { %s17916_s3 = scalar_lea.vmem %s21_s21, 1920  ;;  %p17921_p6 = scmp.lt.s32.totalorder %s21_s21, %s21_s21 }
  0x2e   :  { %p17917_p5 = scmp.ne.s32.totalorder %s21_s21, %s17916_s3  ;;  %p17922_p7 = scmp.lt.s32.totalorder %s17916_s3, %s17916_s3 }
  0x30   :  { %p17923_p8 = por %p17922_p7, %p17921_p6 }
  0x32   :  { %p17924_p9 = pnand %p17923_p8, %p17917_p5 }
  0x34   :  { %17927 = shalt.err (!%p17924_p9)
}
  0x35   :  { %23 = dma.hbm_to_vmem [thread:$0]  %s18337_s0, 1920, %s21_s21, [#allocation3]  }
  0x36   :  { %s17928_s10 = scalar_lea.hbm %s18339_s2, 192 }
  0x37   :  { %p17929_p10 = scmp.ne.s32.totalorder %s18339_s2, %s17928_s10  ;;  %p17932_p11 = scmp.lt.u32.totalorder %s17928_s10, %s18339_s2 }
  0x39   :  { %p17934_p12 = pnand %p17932_p11, %p17929_p10 }
  0x3b   :  { %17937 = shalt.err (!%p17934_p12)
}
  0x3c   :  { %s17938_s15 = scalar_lea.vmem %s43_s23, 192  ;;  %p17943_p0 = scmp.lt.s32.totalorder %s43_s23, %s43_s23 }
  0x3d   :  { %p17939_p13 = scmp.ne.s32.totalorder %s43_s23, %s17938_s15  ;;  %p17944_p1 = scmp.lt.s32.totalorder %s17938_s15, %s17938_s15 }
  0x3f   :  { %p17945_p2 = por %p17944_p1, %p17943_p0 }
  0x41   :  { %p17946_p3 = pnand %p17945_p2, %p17939_p13 }
  0x43   :  { %17949 = shalt.err (!%p17946_p3)
}
  0x44   :  { %45 = dma.hbm_to_vmem [thread:$0]  %s18339_s2, 192, %s43_s23, [#allocation6]  }
  0x45   :  { %s18010_s1 = smov [#allocation10]   ;;  %s17950_s20 = scalar_lea.hbm %s18341_s4, 64 }
  0x46   :  { %s64_s17 = sshll.u32 %s18010_s1, 4  ;;  %p17951_p4 = scmp.ne.s32.totalorder %s18341_s4, %s17950_s20  ;;  %s65_s17 = int_to_ptr.vmem [resolvable:$true] %s64_s17 }
  0x47   :  { %p17954_p5 = scmp.lt.u32.totalorder %s17950_s20, %s18341_s4 }
  0x49   :  { %p17956_p6 = pnand %p17954_p5, %p17951_p4 }
  0x4b   :  { %17959 = shalt.err (!%p17956_p6)
}
  0x4c   :  { %s17960_s26 = scalar_lea.vmem %s65_s17, 64  ;;  %p17965_p8 = scmp.lt.s32.totalorder %s65_s17, %s65_s17 }
  0x4d   :  { %p17961_p7 = scmp.ne.s32.totalorder %s65_s17, %s17960_s26  ;;  %p17966_p9 = scmp.lt.s32.totalorder %s17960_s26, %s17960_s26 }
  0x4f   :  { %p17967_p10 = por %p17966_p9, %p17965_p8 }
  0x51   :  { %p17968_p11 = pnand %p17967_p10, %p17961_p7 }
  0x53   :  { %17971 = shalt.err (!%p17968_p11)
}
  0x54   :  { %67 = dma.hbm_to_vmem [thread:$0]  %s18341_s4, 64, %s65_s17, [#allocation9]  }
  0x55   :  { %17994 = dma.done.wait [#allocation3], 1920  }
  0x56   :  { %17995 = vsyncadd [#allocation3], 4294965376 }
  0x57   :  { %17996 = dma.done.wait [#allocation6], 172992  }
  0x58   :  { %17997 = vsyncadd [#allocation6], 4294794304 }
  0x59   :  { %17998 = dma.done.wait [#allocation9], 49216  }
  0x5a   :  { %17999 = vsyncadd [#allocation9], 4294918080  ;;  %v15209_v0 = vld [vmem:[#allocation5 + $0x4] ss:$48 sps:$4 sm:$0xff]   ;;  %v15211_v1 = vld [vmem:[#allocation5 + $0xc] ss:$48 sps:$4 sm:$0xff]  }
  0x5b   :  { %8319 = vmatprep.subr.bf16.mxu0 %v15209_v0  ;;  %v15213_v2 = vld [vmem:[#allocation5] ss:$48 sps:$4 sm:$0xff]   ;;  %v15214_v3 = vld [vmem:[#allocation5 + $0x8] ss:$48 sps:$4 sm:$0xff]   ;;  %8647 = vmatprep.subr.bf16.mxu1 %v15211_v1  ;;  %v15215_v4 = vld [vmem:[#allocation5 + $0x64] ss:$48 sps:$4 sm:$0xff]  }
  0x5c   :  { %8320 = vmatpush1.bf16.msra.mxu0 %v15213_v2  ;;  %8648 = vmatpush1.bf16.msra.mxu1 %v15214_v3  ;;  %v15217_v5 = vld [vmem:[#allocation5 + $0x6c] ss:$48 sps:$4 sm:$0xff]   ;;  %v15219_v6 = vld [vmem:[#allocation5 + $0x60] ss:$48 sps:$4 sm:$0xff]   ;;  %v15220_v7 = vld [vmem:[#allocation5 + $0x68] ss:$48 sps:$4 sm:$0xff]  }
  0x5d   :  { %8321 = vmatprep.subr.bf16.mxu0 %v15215_v4  ;;  %8649 = vmatprep.subr.bf16.mxu1 %v15217_v5  ;;  %v15221_v8 = vld [vmem:[#allocation5 + $0xc4] ss:$48 sps:$4 sm:$0xff]   ;;  %v15223_v9 = vld [vmem:[#allocation5 + $0xcc] ss:$48 sps:$4 sm:$0xff]   ;;  %v15225_v10 = vld [vmem:[#allocation5 + $0xc0] ss:$48 sps:$4 sm:$0xff]  }
  0x5e   :  { %v15226_v11 = vld [vmem:[#allocation5 + $0xc8] ss:$48 sps:$4 sm:$0xff]   ;;  %v15227_v12 = vld [vmem:[#allocation5 + $0x124] ss:$48 sps:$4 sm:$0xff]   ;;  %v15229_v13 = vld [vmem:[#allocation5 + $0x12c] ss:$48 sps:$4 sm:$0xff]  }
  0x5f   :  { %v15231_v14 = vld [vmem:[#allocation5 + $0x120] ss:$48 sps:$4 sm:$0xff]   ;;  %v15232_v15 = vld [vmem:[#allocation5 + $0x128] ss:$48 sps:$4 sm:$0xff]   ;;  %v15233_v16 = vld [vmem:[#allocation5 + $0x184] ss:$48 sps:$4 sm:$0xff]  }
  0x60   :  { %8322 = vmatpush1.bf16.msra.mxu0 %v15219_v6  ;;  %8650 = vmatpush1.bf16.msra.mxu1 %v15220_v7  ;;  %v15235_v17 = vld [vmem:[#allocation5 + $0x18c] ss:$48 sps:$4 sm:$0xff]   ;;  %v15237_v18 = vld [vmem:[#allocation5 + $0x180] ss:$48 sps:$4 sm:$0xff]   ;;  %v15238_v19 = vld [vmem:[#allocation5 + $0x188] ss:$48 sps:$4 sm:$0xff]  }
  0x61   :  { %8323 = vmatprep.subr.bf16.mxu0 %v15221_v8  ;;  %8651 = vmatprep.subr.bf16.mxu1 %v15223_v9  ;;  %v15239_v20 = vld [vmem:[#allocation5 + $0x1e4] ss:$48 sps:$4 sm:$0xff]   ;;  %v15241_v21 = vld [vmem:[#allocation5 + $0x1ec] ss:$48 sps:$4 sm:$0xff]   ;;  %v15243_v22 = vld [vmem:[#allocation5 + $0x1e0] ss:$48 sps:$4 sm:$0xff]  }
  0x62   :  { %v15244_v23 = vld [vmem:[#allocation5 + $0x1e8] ss:$48 sps:$4 sm:$0xff]   ;;  %v15245_v24 = vld [vmem:[#allocation5 + $0x244] ss:$48 sps:$4 sm:$0xff]   ;;  %v15247_v25 = vld [vmem:[#allocation5 + $0x24c] ss:$48 sps:$4 sm:$0xff]  }
  0x63   :  { %v15249_v26 = vld [vmem:[#allocation5 + $0x240] ss:$48 sps:$4 sm:$0xff]   ;;  %v15250_v27 = vld [vmem:[#allocation5 + $0x248] ss:$48 sps:$4 sm:$0xff]   ;;  %v15251_v28 = vld [vmem:[#allocation5 + $0x2a4] ss:$48 sps:$4 sm:$0xff]  }
  0x64   :  { %8324 = vmatpush1.bf16.msra.mxu0 %v15225_v10  ;;  %8652 = vmatpush1.bf16.msra.mxu1 %v15226_v11  ;;  %v15253_v29 = vld [vmem:[#allocation5 + $0x2ac] ss:$48 sps:$4 sm:$0xff]   ;;  %v15255_v30 = vld [vmem:[#allocation5 + $0x2a0] ss:$48 sps:$4 sm:$0xff]   ;;  %v15256_v31 = vld [vmem:[#allocation5 + $0x2a8] ss:$48 sps:$4 sm:$0xff]  }
  0x65   :  { %8325 = vmatprep.subr.bf16.mxu0 %v15227_v12  ;;  %8653 = vmatprep.subr.bf16.mxu1 %v15229_v13  ;;  %v15257_v32 = vld [vmem:[#allocation5 + $0x304] ss:$48 sps:$4 sm:$0xff]   ;;  %v15259_v33 = vld [vmem:[#allocation5 + $0x30c] ss:$48 sps:$4 sm:$0xff]   ;;  %v15261_v34 = vld [vmem:[#allocation5 + $0x300] ss:$48 sps:$4 sm:$0xff]  }
  0x66   :  { %v15262_v35 = vld [vmem:[#allocation5 + $0x308] ss:$48 sps:$4 sm:$0xff]   ;;  %v15263_v36 = vld [vmem:[#allocation5 + $0x364] ss:$48 sps:$4 sm:$0xff]   ;;  %v15265_v37 = vld [vmem:[#allocation5 + $0x36c] ss:$48 sps:$4 sm:$0xff]  }
  0x67   :  { %v15267_v38 = vld [vmem:[#allocation5 + $0x360] ss:$48 sps:$4 sm:$0xff]   ;;  %v15268_v39 = vld [vmem:[#allocation5 + $0x368] ss:$48 sps:$4 sm:$0xff]   ;;  %v15269_v40 = vld [vmem:[#allocation5 + $0x3c4] ss:$48 sps:$4 sm:$0xff]  }
  0x68   :  { %8326 = vmatpush1.bf16.msra.mxu0 %v15231_v14  ;;  %8654 = vmatpush1.bf16.msra.mxu1 %v15232_v15  ;;  %v15271_v41 = vld [vmem:[#allocation5 + $0x3cc] ss:$48 sps:$4 sm:$0xff]   ;;  %v15273_v42 = vld [vmem:[#allocation5 + $0x3c0] ss:$48 sps:$4 sm:$0xff]   ;;  %v15274_v43 = vld [vmem:[#allocation5 + $0x3c8] ss:$48 sps:$4 sm:$0xff]  }
  0x69   :  { %8327 = vmatprep.subr.bf16.mxu0 %v15233_v16  ;;  %8655 = vmatprep.subr.bf16.mxu1 %v15235_v17  ;;  %v15275_v44 = vld [vmem:[#allocation5 + $0x424] ss:$48 sps:$4 sm:$0xff]   ;;  %v15277_v45 = vld [vmem:[#allocation5 + $0x42c] ss:$48 sps:$4 sm:$0xff]   ;;  %v15279_v47 = vld [vmem:[#allocation5 + $0x420] ss:$48 sps:$4 sm:$0xff]  }
  0x6a   :  { %v85_v46 = vld [vmem:[#allocation2 + $0x8] sm:$0xff]  ;;  %v15280_v49 = vld [vmem:[#allocation5 + $0x428] ss:$48 sps:$4 sm:$0xff]   ;;  %v15283_v51 = vld [vmem:[#allocation5 + $0x48c] ss:$48 sps:$4 sm:$0xff]   ;;  %vm8282_vm0 = vcmask 1043456  }
  0x6b   :  { %v18103_v48 = vpack.c.bf16 %v85_v46, %v85_v46  ;;  %v15281_v50 = vld [vmem:[#allocation5 + $0x484] ss:$48 sps:$4 sm:$0xff]   ;;  %v15285_v52 = vld [vmem:[#allocation5 + $0x480] ss:$48 sps:$4 sm:$0xff]   ;;  %v15286_v53 = vld [vmem:[#allocation5 + $0x488] ss:$48 sps:$4 sm:$0xff]  }
  0x6c   :  { %8328 = vmatpush1.bf16.msra.mxu0 %v15237_v18  ;;  %8656 = vmatpush1.bf16.msra.mxu1 %v15238_v19  ;;  %v15287_v54 = vld [vmem:[#allocation5 + $0x4e4] ss:$48 sps:$4 sm:$0xff]   ;;  %v15289_v55 = vld [vmem:[#allocation5 + $0x4ec] ss:$48 sps:$4 sm:$0xff]   ;;  %v15291_v56 = vld [vmem:[#allocation5 + $0x4e0] ss:$48 sps:$4 sm:$0xff]  }
  0x6d   :  { %8329 = vmatprep.subr.bf16.mxu0 %v15239_v20  ;;  %8657 = vmatprep.subr.bf16.mxu1 %v15241_v21  ;;  %v15292_v57 = vld [vmem:[#allocation5 + $0x4e8] ss:$48 sps:$4 sm:$0xff]   ;;  %v15293_v58 = vld [vmem:[#allocation5 + $0x544] ss:$48 sps:$4 sm:$0xff]   ;;  %v15295_v59 = vld [vmem:[#allocation5 + $0x54c] ss:$48 sps:$4 sm:$0xff]  }
  0x6e   :  { %8351 = vmatprep.mubr.bf16.mxu0 %v18103_v48  ;;  %8679 = vmatprep.mubr.bf16.mxu1 %v18103_v48  ;;  %v15297_v60 = vld [vmem:[#allocation5 + $0x540] ss:$48 sps:$4 sm:$0xff]   ;;  %v15298_v61 = vld [vmem:[#allocation5 + $0x548] ss:$48 sps:$4 sm:$0xff]   ;;  %v15299_v62 = vld [vmem:[#allocation5 + $0x5a4] ss:$48 sps:$4 sm:$0xff]  }
  0x6f   :  { %v15301_v63 = vld [vmem:[#allocation5 + $0x5ac] ss:$48 sps:$4 sm:$0xff]   ;;  %v15303_v0 = vld [vmem:[#allocation5 + $0x5a0] ss:$48 sps:$4 sm:$0xff]   ;;  %v15304_v1 = vld [vmem:[#allocation5 + $0x5a8] ss:$48 sps:$4 sm:$0xff]  }
  0x70   :  { %8330 = vmatpush1.bf16.msra.mxu0 %v15243_v22  ;;  %8658 = vmatpush1.bf16.msra.mxu1 %v15244_v23  ;;  %v84_v2 = vld [vmem:[#allocation2] sm:$0xff]  ;;  %v15307_v3 = vld [vmem:[#allocation5 + $0x604] ss:$48 sps:$4 sm:$0xff]   ;;  %v15305_v6 = vld [vmem:[#allocation5 + $0x600] ss:$48 sps:$4 sm:$0xff]   ;;  %vm8278_vm1 = vcmask 64512  }
  0x71   :  { %8331 = vmatprep.subr.bf16.mxu0 %v15245_v24  ;;  %8659 = vmatprep.subr.bf16.mxu1 %v15247_v25  ;;  %v15310_v4 = vld [vmem:[#allocation5 + $0x60c] ss:$48 sps:$4 sm:$0xff]   ;;  %v18107_v5 = vpack.c.bf16 %v84_v2, %v84_v2  ;;  %v15308_v7 = vld [vmem:[#allocation5 + $0x608] ss:$48 sps:$4 sm:$0xff]   ;;  %v15313_v8 = vld [vmem:[#allocation5 + $0x664] ss:$48 sps:$4 sm:$0xff]  }
  0x72   :  { %v15316_v9 = vld [vmem:[#allocation5 + $0x66c] ss:$48 sps:$4 sm:$0xff]   ;;  %v15311_v10 = vld [vmem:[#allocation5 + $0x660] ss:$48 sps:$4 sm:$0xff]   ;;  %v15314_v11 = vld [vmem:[#allocation5 + $0x668] ss:$48 sps:$4 sm:$0xff]  }
  0x73   :  { %v15319_v12 = vld [vmem:[#allocation5 + $0x6c4] ss:$48 sps:$4 sm:$0xff]   ;;  %v15322_v13 = vld [vmem:[#allocation5 + $0x6cc] ss:$48 sps:$4 sm:$0xff]   ;;  %v15317_v14 = vld [vmem:[#allocation5 + $0x6c0] ss:$48 sps:$4 sm:$0xff]  }
  0x74   :  { %8332 = vmatpush1.bf16.msra.mxu0 %v15249_v26  ;;  %8660 = vmatpush1.bf16.msra.mxu1 %v15250_v27  ;;  %v15320_v15 = vld [vmem:[#allocation5 + $0x6c8] ss:$48 sps:$4 sm:$0xff]   ;;  %v15325_v16 = vld [vmem:[#allocation5 + $0x724] ss:$48 sps:$4 sm:$0xff]   ;;  %v15328_v17 = vld [vmem:[#allocation5 + $0x72c] ss:$48 sps:$4 sm:$0xff]  }
  0x75   :  { %8333 = vmatprep.subr.bf16.mxu0 %v15251_v28  ;;  %8661 = vmatprep.subr.bf16.mxu1 %v15253_v29  ;;  %v15323_v18 = vld [vmem:[#allocation5 + $0x720] ss:$48 sps:$4 sm:$0xff]   ;;  %v15326_v19 = vld [vmem:[#allocation5 + $0x728] ss:$48 sps:$4 sm:$0xff]   ;;  %v15331_v20 = vld [vmem:[#allocation5 + $0x784] ss:$48 sps:$4 sm:$0xff]  }
  0x76   :  { %v15334_v21 = vld [vmem:[#allocation5 + $0x78c] ss:$48 sps:$4 sm:$0xff]   ;;  %v15329_v22 = vld [vmem:[#allocation5 + $0x780] ss:$48 sps:$4 sm:$0xff]   ;;  %v15332_v23 = vld [vmem:[#allocation5 + $0x788] ss:$48 sps:$4 sm:$0xff]  }
  0x77   :  { %v15337_v24 = vld [vmem:[#allocation5 + $0x7e4] ss:$48 sps:$4 sm:$0xff]   ;;  %v15340_v25 = vld [vmem:[#allocation5 + $0x7ec] ss:$48 sps:$4 sm:$0xff]   ;;  %v15335_v26 = vld [vmem:[#allocation5 + $0x7e0] ss:$48 sps:$4 sm:$0xff]  }
  0x78   :  { %8334 = vmatpush1.bf16.msra.mxu0 %v15255_v30  ;;  %8662 = vmatpush1.bf16.msra.mxu1 %v15256_v31  ;;  %v15338_v27 = vld [vmem:[#allocation5 + $0x7e8] ss:$48 sps:$4 sm:$0xff]   ;;  %v15343_v28 = vld [vmem:[#allocation5 + $0x844] ss:$48 sps:$4 sm:$0xff]   ;;  %v15346_v29 = vld [vmem:[#allocation5 + $0x84c] ss:$48 sps:$4 sm:$0xff]  }
  0x79   :  { %8335 = vmatprep.subr.bf16.mxu0 %v15257_v32  ;;  %8663 = vmatprep.subr.bf16.mxu1 %v15259_v33  ;;  %v87_v30 = vld [vmem:[#allocation2 + $0x18] sm:$0xff]  ;;  %v15344_v33 = vld [vmem:[#allocation5 + $0x848] ss:$48 sps:$4 sm:$0xff]   ;;  %s18012_s4 = smov [#allocation11]  }
  0x7a   :  { %v15341_v31 = vld [vmem:[#allocation5 + $0x840] ss:$48 sps:$4 sm:$0xff]   ;;  %v18111_v32 = vpack.c.bf16 %v87_v30, %v87_v30  ;;  %v15367_v46 = vld [vmem:[#allocation5 + $0x9c4] ss:$48 sps:$4 sm:$0xff]   ;;  %v15392_v2 = vld [vmem:[#allocation5 + $0xb48] ss:$48 sps:$4 sm:$0xff]  }
  0x7b   :  { %v15425_v30 = vld [vmem:[#allocation5 + $0xd80] ss:$48 sps:$4 sm:$0xff]   ;;  %s13199_s27 = sshll.u32 %s18012_s4, 4  ;;  %s13200_s27 = int_to_ptr.vmem [resolvable:$true] %s13199_s27 }
  0x7c   :  { %8336 = vmatpush1.bf16.msra.mxu0 %v15261_v34  ;;  %8664 = vmatpush1.bf16.msra.mxu1 %v15262_v35  ;;  %v15349_v34 = vld [vmem:[#allocation5 + $0x8a4] ss:$48 sps:$4 sm:$0xff]   ;;  %v15352_v35 = vld [vmem:[#allocation5 + $0x8ac] ss:$48 sps:$4 sm:$0xff]   ;;  %s17972_s28 = scalar_lea.vmem %s13200_s27, 512  ;;  %p17977_p13 = scmp.lt.s32.totalorder %s13200_s27, %s13200_s27 }
  0x7d   :  { %8337 = vmatprep.subr.bf16.mxu0 %v15263_v36  ;;  %8665 = vmatprep.subr.bf16.mxu1 %v15265_v37  ;;  %v15347_v36 = vld [vmem:[#allocation5 + $0x8a0] ss:$48 sps:$4 sm:$0xff]   ;;  %v15350_v37 = vld [vmem:[#allocation5 + $0x8a8] ss:$48 sps:$4 sm:$0xff]   ;;  %p17973_p12 = scmp.ne.s32.totalorder %s13200_s27, %s17972_s28  ;;  %p17978_p0 = scmp.lt.s32.totalorder %s17972_s28, %s17972_s28 }
  0x7f   :  { %p17979_p1 = por %p17978_p0, %p17977_p13 }
  0x80   :  { %8338 = vmatpush1.bf16.msra.mxu0 %v15267_v38  ;;  %8666 = vmatpush1.bf16.msra.mxu1 %v15268_v39  ;;  %v15355_v38 = vld [vmem:[#allocation5 + $0x904] ss:$48 sps:$4 sm:$0xff]   ;;  %v15358_v39 = vld [vmem:[#allocation5 + $0x90c] ss:$48 sps:$4 sm:$0xff]  }
  0x81   :  { %8339 = vmatprep.subr.bf16.mxu0 %v15269_v40  ;;  %8667 = vmatprep.subr.bf16.mxu1 %v15271_v41  ;;  %v15353_v40 = vld [vmem:[#allocation5 + $0x900] ss:$48 sps:$4 sm:$0xff]   ;;  %v15356_v41 = vld [vmem:[#allocation5 + $0x908] ss:$48 sps:$4 sm:$0xff]   ;;  %p17980_p2 = pnand %p17979_p1, %p17973_p12 }
  0x84   :  { %8340 = vmatpush1.bf16.msra.mxu0 %v15273_v42  ;;  %8668 = vmatpush1.bf16.msra.mxu1 %v15274_v43  ;;  %v15361_v42 = vld [vmem:[#allocation5 + $0x964] ss:$48 sps:$4 sm:$0xff]   ;;  %v15364_v43 = vld [vmem:[#allocation5 + $0x96c] ss:$48 sps:$4 sm:$0xff]  }
  0x85   :  { %8341 = vmatprep.subr.bf16.mxu0 %v15275_v44  ;;  %8669 = vmatprep.subr.bf16.mxu1 %v15277_v45  ;;  %v15359_v44 = vld [vmem:[#allocation5 + $0x960] ss:$48 sps:$4 sm:$0xff]   ;;  %v15362_v45 = vld [vmem:[#allocation5 + $0x968] ss:$48 sps:$4 sm:$0xff]  }
  0x88   :  { %8342 = vmatpush1.bf16.msra.mxu0 %v15279_v47  ;;  %8670 = vmatpush1.bf16.msra.mxu1 %v15280_v49  ;;  %v15370_v47 = vld [vmem:[#allocation5 + $0x9cc] ss:$48 sps:$4 sm:$0xff]   ;;  %v15365_v49 = vld [vmem:[#allocation5 + $0x9c0] ss:$48 sps:$4 sm:$0xff]  }
  0x89   :  { %8343 = vmatprep.subr.bf16.mxu0 %v15281_v50  ;;  %8671 = vmatprep.subr.bf16.mxu1 %v15283_v51  ;;  %v15368_v50 = vld [vmem:[#allocation5 + $0x9c8] ss:$48 sps:$4 sm:$0xff]   ;;  %v15373_v51 = vld [vmem:[#allocation5 + $0xa24] ss:$48 sps:$4 sm:$0xff]  }
  0x8c   :  { %8344 = vmatpush1.bf16.msra.mxu0 %v15285_v52  ;;  %8672 = vmatpush1.bf16.msra.mxu1 %v15286_v53  ;;  %v15376_v52 = vld [vmem:[#allocation5 + $0xa2c] ss:$48 sps:$4 sm:$0xff]   ;;  %v15371_v53 = vld [vmem:[#allocation5 + $0xa20] ss:$48 sps:$4 sm:$0xff]  }
  0x8d   :  { %8345 = vmatprep.subr.bf16.mxu0 %v15287_v54  ;;  %8673 = vmatprep.subr.bf16.mxu1 %v15289_v55  ;;  %v15374_v54 = vld [vmem:[#allocation5 + $0xa28] ss:$48 sps:$4 sm:$0xff]   ;;  %v15379_v55 = vld [vmem:[#allocation5 + $0xa84] ss:$48 sps:$4 sm:$0xff]  }
  0x90   :  { %8346 = vmatpush1.bf16.msra.mxu0 %v15291_v56  ;;  %8674 = vmatpush1.bf16.msra.mxu1 %v15292_v57  ;;  %v15382_v56 = vld [vmem:[#allocation5 + $0xa8c] ss:$48 sps:$4 sm:$0xff]   ;;  %v15377_v57 = vld [vmem:[#allocation5 + $0xa80] ss:$48 sps:$4 sm:$0xff]  }
  0x91   :  { %8347 = vmatprep.subr.bf16.mxu0 %v15293_v58  ;;  %8675 = vmatprep.subr.bf16.mxu1 %v15295_v59  ;;  %v15380_v58 = vld [vmem:[#allocation5 + $0xa88] ss:$48 sps:$4 sm:$0xff]   ;;  %v15385_v59 = vld [vmem:[#allocation5 + $0xae4] ss:$48 sps:$4 sm:$0xff]  }
  0x94   :  { %8348 = vmatpush1.bf16.msra.mxu0 %v15297_v60  ;;  %8676 = vmatpush1.bf16.msra.mxu1 %v15298_v61  ;;  %v15388_v60 = vld [vmem:[#allocation5 + $0xaec] ss:$48 sps:$4 sm:$0xff]   ;;  %v15383_v61 = vld [vmem:[#allocation5 + $0xae0] ss:$48 sps:$4 sm:$0xff]  }
  0x95   :  { %8349 = vmatprep.subr.bf16.mxu0 %v15299_v62  ;;  %8677 = vmatprep.subr.bf16.mxu1 %v15301_v63  ;;  %v15386_v62 = vld [vmem:[#allocation5 + $0xae8] ss:$48 sps:$4 sm:$0xff]   ;;  %v15391_v63 = vld [vmem:[#allocation5 + $0xb44] ss:$48 sps:$4 sm:$0xff]  }
  0x98   :  { %8350 = vmatpush1.bf16.msra.mxu0 %v15303_v0  ;;  %8678 = vmatpush1.bf16.msra.mxu1 %v15304_v1  ;;  %v15394_v0 = vld [vmem:[#allocation5 + $0xb4c] ss:$48 sps:$4 sm:$0xff]   ;;  %v15389_v1 = vld [vmem:[#allocation5 + $0xb40] ss:$48 sps:$4 sm:$0xff]  }
  0x99   :  { %8360 = vmatprep.subr.bf16.mxu0 %v15307_v3  ;;  %8688 = vmatprep.subr.bf16.mxu1 %v15310_v4  ;;  %v15397_v3 = vld [vmem:[#allocation5 + $0xba4] ss:$48 sps:$4 sm:$0xff]   ;;  %v15400_v4 = vld [vmem:[#allocation5 + $0xbac] ss:$48 sps:$4 sm:$0xff]  }
  0x9b   :  { %8352 = vmatmul.mubr.bf16.vlgmr.msra.gmra.mrb[0].mxu0 %v18107_v5  ;;  %8680 = vmatmul.mubr.bf16.vlgmr.msra.gmra.mrb[0].mxu1 %v18107_v5 }
  0x9c   :  { %8361 = vmatpush1.bf16.msra.mxu0 %v15305_v6  ;;  %8689 = vmatpush1.bf16.msra.mxu1 %v15308_v7  ;;  %v15395_v6 = vld [vmem:[#allocation5 + $0xba0] ss:$48 sps:$4 sm:$0xff]   ;;  %v15398_v7 = vld [vmem:[#allocation5 + $0xba8] ss:$48 sps:$4 sm:$0xff]  }
  0x9d   :  { %8362 = vmatprep.subr.bf16.mxu0 %v15313_v8  ;;  %8690 = vmatprep.subr.bf16.mxu1 %v15316_v9  ;;  %v15403_v8 = vld [vmem:[#allocation5 + $0xc04] ss:$48 sps:$4 sm:$0xff]   ;;  %v86_v9 = vld [vmem:[#allocation2 + $0x10] sm:$0xff] }
  0x9e   :  { %8392 = vmatprep.mubr.bf16.mxu0 %v18111_v32  ;;  %8720 = vmatprep.mubr.bf16.mxu1 %v18111_v32 }
  0xa0   :  { %8363 = vmatpush1.bf16.msra.mxu0 %v15311_v10  ;;  %8691 = vmatpush1.bf16.msra.mxu1 %v15314_v11  ;;  %v15406_v10 = vld [vmem:[#allocation5 + $0xc0c] ss:$48 sps:$4 sm:$0xff]   ;;  %v15401_v11 = vld [vmem:[#allocation5 + $0xc00] ss:$48 sps:$4 sm:$0xff]  }
  0xa1   :  { %8364 = vmatprep.subr.bf16.mxu0 %v15319_v12  ;;  %8692 = vmatprep.subr.bf16.mxu1 %v15322_v13  ;;  %v15404_v12 = vld [vmem:[#allocation5 + $0xc08] ss:$48 sps:$4 sm:$0xff]   ;;  %v18115_v13 = vpack.c.bf16 %v86_v9, %v86_v9  ;;  %v15485_v9 = vld [vmem:[#allocation5 + $0x1140] ss:$48 sps:$4 sm:$0xff]  }
  0xa4   :  { %8365 = vmatpush1.bf16.msra.mxu0 %v15317_v14  ;;  %8693 = vmatpush1.bf16.msra.mxu1 %v15320_v15  ;;  %v15409_v14 = vld [vmem:[#allocation5 + $0xc64] ss:$48 sps:$4 sm:$0xff]   ;;  %v15412_v15 = vld [vmem:[#allocation5 + $0xc6c] ss:$48 sps:$4 sm:$0xff]  }
  0xa5   :  { %8366 = vmatprep.subr.bf16.mxu0 %v15325_v16  ;;  %8694 = vmatprep.subr.bf16.mxu1 %v15328_v17  ;;  %v89_v16 = vld [vmem:[#allocation2 + $0x28] sm:$0xff] }
  0xa6   :  { %v18117_v17 = vpack.c.bf16 %v89_v16, %v89_v16  ;;  %v15499_v16 = vld [vmem:[#allocation5 + $0x1204] ss:$48 sps:$4 sm:$0xff]  }
  0xa8   :  { %8367 = vmatpush1.bf16.msra.mxu0 %v15323_v18  ;;  %8695 = vmatpush1.bf16.msra.mxu1 %v15326_v19  ;;  %v15407_v18 = vld [vmem:[#allocation5 + $0xc60] ss:$48 sps:$4 sm:$0xff]   ;;  %v15410_v19 = vld [vmem:[#allocation5 + $0xc68] ss:$48 sps:$4 sm:$0xff]  }
  0xa9   :  { %8368 = vmatprep.subr.bf16.mxu0 %v15331_v20  ;;  %8696 = vmatprep.subr.bf16.mxu1 %v15334_v21  ;;  %v15415_v20 = vld [vmem:[#allocation5 + $0xcc4] ss:$48 sps:$4 sm:$0xff]   ;;  %v15418_v21 = vld [vmem:[#allocation5 + $0xccc] ss:$48 sps:$4 sm:$0xff]  }
  0xac   :  { %8369 = vmatpush1.bf16.msra.mxu0 %v15329_v22  ;;  %8697 = vmatpush1.bf16.msra.mxu1 %v15332_v23  ;;  %v15413_v22 = vld [vmem:[#allocation5 + $0xcc0] ss:$48 sps:$4 sm:$0xff]   ;;  %v15416_v23 = vld [vmem:[#allocation5 + $0xcc8] ss:$48 sps:$4 sm:$0xff]  }
  0xad   :  { %8370 = vmatprep.subr.bf16.mxu0 %v15337_v24  ;;  %8698 = vmatprep.subr.bf16.mxu1 %v15340_v25  ;;  %v15421_v24 = vld [vmem:[#allocation5 + $0xd24] ss:$48 sps:$4 sm:$0xff]   ;;  %v15424_v25 = vld [vmem:[#allocation5 + $0xd2c] ss:$48 sps:$4 sm:$0xff]  }
  0xb0   :  { %8371 = vmatpush1.bf16.msra.mxu0 %v15335_v26  ;;  %8699 = vmatpush1.bf16.msra.mxu1 %v15338_v27  ;;  %v15419_v26 = vld [vmem:[#allocation5 + $0xd20] ss:$48 sps:$4 sm:$0xff]   ;;  %v15422_v27 = vld [vmem:[#allocation5 + $0xd28] ss:$48 sps:$4 sm:$0xff]  }
  0xb1   :  { %8372 = vmatprep.subr.bf16.mxu0 %v15343_v28  ;;  %8700 = vmatprep.subr.bf16.mxu1 %v15346_v29  ;;  %v15427_v28 = vld [vmem:[#allocation5 + $0xd84] ss:$48 sps:$4 sm:$0xff]   ;;  %v15430_v29 = vld [vmem:[#allocation5 + $0xd8c] ss:$48 sps:$4 sm:$0xff]  }
  0xb4   :  { %8373 = vmatpush1.bf16.msra.mxu0 %v15341_v31  ;;  %8701 = vmatpush1.bf16.msra.mxu1 %v15344_v33  ;;  %v15428_v31 = vld [vmem:[#allocation5 + $0xd88] ss:$48 sps:$4 sm:$0xff]   ;;  %v15433_v33 = vld [vmem:[#allocation5 + $0xde4] ss:$48 sps:$4 sm:$0xff]  }
  0xb5   :  { %8374 = vmatprep.subr.bf16.mxu0 %v15349_v34  ;;  %8702 = vmatprep.subr.bf16.mxu1 %v15352_v35  ;;  %v15436_v34 = vld [vmem:[#allocation5 + $0xdec] ss:$48 sps:$4 sm:$0xff]   ;;  %v15431_v35 = vld [vmem:[#allocation5 + $0xde0] ss:$48 sps:$4 sm:$0xff]  }
  0xb8   :  { %8375 = vmatpush1.bf16.msra.mxu0 %v15347_v36  ;;  %8703 = vmatpush1.bf16.msra.mxu1 %v15350_v37  ;;  %v15434_v36 = vld [vmem:[#allocation5 + $0xde8] ss:$48 sps:$4 sm:$0xff]   ;;  %v15439_v37 = vld [vmem:[#allocation5 + $0xe44] ss:$48 sps:$4 sm:$0xff]  }
  0xb9   :  { %8376 = vmatprep.subr.bf16.mxu0 %v15355_v38  ;;  %8704 = vmatprep.subr.bf16.mxu1 %v15358_v39  ;;  %v15442_v38 = vld [vmem:[#allocation5 + $0xe4c] ss:$48 sps:$4 sm:$0xff]   ;;  %v15437_v39 = vld [vmem:[#allocation5 + $0xe40] ss:$48 sps:$4 sm:$0xff]  }
  0xbc   :  { %8377 = vmatpush1.bf16.msra.mxu0 %v15353_v40  ;;  %8705 = vmatpush1.bf16.msra.mxu1 %v15356_v41  ;;  %v15440_v40 = vld [vmem:[#allocation5 + $0xe48] ss:$48 sps:$4 sm:$0xff]   ;;  %v15445_v41 = vld [vmem:[#allocation5 + $0xea4] ss:$48 sps:$4 sm:$0xff]  }
  0xbd   :  { %8378 = vmatprep.subr.bf16.mxu0 %v15361_v42  ;;  %8706 = vmatprep.subr.bf16.mxu1 %v15364_v43  ;;  %v15448_v42 = vld [vmem:[#allocation5 + $0xeac] ss:$48 sps:$4 sm:$0xff]   ;;  %v15443_v43 = vld [vmem:[#allocation5 + $0xea0] ss:$48 sps:$4 sm:$0xff]  }
  0xc0   :  { %8379 = vmatpush1.bf16.msra.mxu0 %v15359_v44  ;;  %8707 = vmatpush1.bf16.msra.mxu1 %v15362_v45  ;;  %v15446_v44 = vld [vmem:[#allocation5 + $0xea8] ss:$48 sps:$4 sm:$0xff]   ;;  %v15451_v45 = vld [vmem:[#allocation5 + $0xf04] ss:$48 sps:$4 sm:$0xff]  }
  0xc1   :  { %8380 = vmatprep.subr.bf16.mxu0 %v15367_v46  ;;  %8708 = vmatprep.subr.bf16.mxu1 %v15370_v47  ;;  %v15454_v46 = vld [vmem:[#allocation5 + $0xf0c] ss:$48 sps:$4 sm:$0xff]   ;;  %v15449_v47 = vld [vmem:[#allocation5 + $0xf00] ss:$48 sps:$4 sm:$0xff]  }
  0xc4   :  { %8381 = vmatpush1.bf16.msra.mxu0 %v15365_v49  ;;  %8709 = vmatpush1.bf16.msra.mxu1 %v15368_v50  ;;  %v15452_v49 = vld [vmem:[#allocation5 + $0xf08] ss:$48 sps:$4 sm:$0xff]   ;;  %v15457_v50 = vld [vmem:[#allocation5 + $0xf64] ss:$48 sps:$4 sm:$0xff]  }
  0xc5   :  { %8382 = vmatprep.subr.bf16.mxu0 %v15373_v51  ;;  %8710 = vmatprep.subr.bf16.mxu1 %v15376_v52  ;;  %v15460_v51 = vld [vmem:[#allocation5 + $0xf6c] ss:$48 sps:$4 sm:$0xff]   ;;  %v15455_v52 = vld [vmem:[#allocation5 + $0xf60] ss:$48 sps:$4 sm:$0xff]  }
  0xc8   :  { %8383 = vmatpush1.bf16.msra.mxu0 %v15371_v53  ;;  %8711 = vmatpush1.bf16.msra.mxu1 %v15374_v54  ;;  %v15458_v53 = vld [vmem:[#allocation5 + $0xf68] ss:$48 sps:$4 sm:$0xff]   ;;  %v15463_v54 = vld [vmem:[#allocation5 + $0xfc4] ss:$48 sps:$4 sm:$0xff]  }
  0xc9   :  { %8384 = vmatprep.subr.bf16.mxu0 %v15379_v55  ;;  %8712 = vmatprep.subr.bf16.mxu1 %v15382_v56  ;;  %v15466_v55 = vld [vmem:[#allocation5 + $0xfcc] ss:$48 sps:$4 sm:$0xff]   ;;  %v15461_v56 = vld [vmem:[#allocation5 + $0xfc0] ss:$48 sps:$4 sm:$0xff]  }
  0xcc   :  { %8385 = vmatpush1.bf16.msra.mxu0 %v15377_v57  ;;  %8713 = vmatpush1.bf16.msra.mxu1 %v15380_v58  ;;  %v15464_v57 = vld [vmem:[#allocation5 + $0xfc8] ss:$48 sps:$4 sm:$0xff]   ;;  %v15469_v58 = vld [vmem:[#allocation5 + $0x1024] ss:$48 sps:$4 sm:$0xff]  }
  0xcd   :  { %8386 = vmatprep.subr.bf16.mxu0 %v15385_v59  ;;  %8714 = vmatprep.subr.bf16.mxu1 %v15388_v60  ;;  %v15472_v59 = vld [vmem:[#allocation5 + $0x102c] ss:$48 sps:$4 sm:$0xff]   ;;  %v15467_v60 = vld [vmem:[#allocation5 + $0x1020] ss:$48 sps:$4 sm:$0xff]  }
  0xd0   :  { %8387 = vmatpush1.bf16.msra.mxu0 %v15383_v61  ;;  %8715 = vmatpush1.bf16.msra.mxu1 %v15386_v62  ;;  %v15470_v61 = vld [vmem:[#allocation5 + $0x1028] ss:$48 sps:$4 sm:$0xff]   ;;  %v15475_v62 = vld [vmem:[#allocation5 + $0x1084] ss:$48 sps:$4 sm:$0xff]  }
  0xd1   :  { %8388 = vmatprep.subr.bf16.mxu0 %v15391_v63  ;;  %8716 = vmatprep.subr.bf16.mxu1 %v15394_v0  ;;  %v15478_v63 = vld [vmem:[#allocation5 + $0x108c] ss:$48 sps:$4 sm:$0xff]   ;;  %v15473_v0 = vld [vmem:[#allocation5 + $0x1080] ss:$48 sps:$4 sm:$0xff]  }
  0xd4   :  { %8389 = vmatpush1.bf16.msra.mxu0 %v15389_v1  ;;  %8717 = vmatpush1.bf16.msra.mxu1 %v15392_v2  ;;  %v15476_v1 = vld [vmem:[#allocation5 + $0x1088] ss:$48 sps:$4 sm:$0xff]   ;;  %v15481_v2 = vld [vmem:[#allocation5 + $0x10e4] ss:$48 sps:$4 sm:$0xff]  }
  0xd5   :  { %8390 = vmatprep.subr.bf16.mxu0 %v15397_v3  ;;  %8718 = vmatprep.subr.bf16.mxu1 %v15400_v4  ;;  %v15484_v3 = vld [vmem:[#allocation5 + $0x10ec] ss:$48 sps:$4 sm:$0xff]   ;;  %v15479_v4 = vld [vmem:[#allocation5 + $0x10e0] ss:$48 sps:$4 sm:$0xff]  }
  0xd8   :  { %8391 = vmatpush1.bf16.msra.mxu0 %v15395_v6  ;;  %8719 = vmatpush1.bf16.msra.mxu1 %v15398_v7  ;;  %v15482_v6 = vld [vmem:[#allocation5 + $0x10e8] ss:$48 sps:$4 sm:$0xff]   ;;  %v15487_v7 = vld [vmem:[#allocation5 + $0x1144] ss:$48 sps:$4 sm:$0xff]  }
  0xd9   :  { %8401 = vmatprep.subr.bf16.mxu0 %v15403_v8  ;;  %8729 = vmatprep.subr.bf16.mxu1 %v15406_v10  ;;  %v15490_v8 = vld [vmem:[#allocation5 + $0x114c] ss:$48 sps:$4 sm:$0xff]   ;;  %v15488_v10 = vld [vmem:[#allocation5 + $0x1148] ss:$48 sps:$4 sm:$0xff]  }
  0xdb   :  { %8393 = vmatmul.mubr.bf16.vlgmr.msra.gmra.mrb[0].mxu0 %v18115_v13  ;;  %8721 = vmatmul.mubr.bf16.vlgmr.msra.gmra.mrb[0].mxu1 %v18115_v13 }
  0xdc   :  { %8402 = vmatpush1.bf16.msra.mxu0 %v15401_v11  ;;  %8730 = vmatpush1.bf16.msra.mxu1 %v15404_v12  ;;  %v15493_v11 = vld [vmem:[#allocation5 + $0x11a4] ss:$48 sps:$4 sm:$0xff]   ;;  %v15496_v12 = vld [vmem:[#allocation5 + $0x11ac] ss:$48 sps:$4 sm:$0xff]  }
  0xdd   :  { %8403 = vmatprep.subr.bf16.mxu0 %v15409_v14  ;;  %8731 = vmatprep.subr.bf16.mxu1 %v15412_v15  ;;  %v15491_v14 = vld [vmem:[#allocation5 + $0x11a0] ss:$48 sps:$4 sm:$0xff]   ;;  %v15494_v15 = vld [vmem:[#allocation5 + $0x11a8] ss:$48 sps:$4 sm:$0xff]  }
  0xde   :  { %8433 = vmatprep.mubr.bf16.mxu0 %v18117_v17  ;;  %8761 = vmatprep.mubr.bf16.mxu1 %v18117_v17 }
  0xe0   :  { %8404 = vmatpush1.bf16.msra.mxu0 %v15407_v18  ;;  %8732 = vmatpush1.bf16.msra.mxu1 %v15410_v19  ;;  %v88_v18 = vld [vmem:[#allocation2 + $0x20] sm:$0xff] }
  0xe1   :  { %8405 = vmatprep.subr.bf16.mxu0 %v15415_v20  ;;  %8733 = vmatprep.subr.bf16.mxu1 %v15418_v21  ;;  %v15502_v19 = vld [vmem:[#allocation5 + $0x120c] ss:$48 sps:$4 sm:$0xff]   ;;  %v15497_v20 = vld [vmem:[#allocation5 + $0x1200] ss:$48 sps:$4 sm:$0xff]   ;;  %v15500_v21 = vld [vmem:[#allocation5 + $0x1208] ss:$48 sps:$4 sm:$0xff]  }
  0xe4   :  { %8406 = vmatpush1.bf16.msra.mxu0 %v15413_v22  ;;  %8734 = vmatpush1.bf16.msra.mxu1 %v15416_v23  ;;  %v18123_v22 = vpack.c.bf16 %v88_v18, %v88_v18  ;;  %v91_v23 = vld [vmem:[#allocation2 + $0x38] sm:$0xff] }
  0xe5   :  { %8407 = vmatprep.subr.bf16.mxu0 %v15421_v24  ;;  %8735 = vmatprep.subr.bf16.mxu1 %v15424_v25  ;;  %v15505_v24 = vld [vmem:[#allocation5 + $0x1264] ss:$48 sps:$4 sm:$0xff]   ;;  %v15508_v25 = vld [vmem:[#allocation5 + $0x126c] ss:$48 sps:$4 sm:$0xff]  }
  0xe6   :  { %v15583_v18 = vld [vmem:[#allocation5 + $0x1744] ss:$48 sps:$4 sm:$0xff]  }
  0xe8   :  { %8408 = vmatpush1.bf16.msra.mxu0 %v15419_v26  ;;  %8736 = vmatpush1.bf16.msra.mxu1 %v15422_v27  ;;  %v18125_v26 = vpack.c.bf16 %v91_v23, %v91_v23  ;;  %v15503_v27 = vld [vmem:[#allocation5 + $0x1260] ss:$48 sps:$4 sm:$0xff]   ;;  %v15589_v23 = vld [vmem:[#allocation5 + $0x17a4] ss:$48 sps:$4 sm:$0xff]  }
  0xe9   :  { %8409 = vmatprep.subr.bf16.mxu0 %v15427_v28  ;;  %8737 = vmatprep.subr.bf16.mxu1 %v15430_v29  ;;  %v15506_v28 = vld [vmem:[#allocation5 + $0x1268] ss:$48 sps:$4 sm:$0xff]   ;;  %v15511_v29 = vld [vmem:[#allocation5 + $0x12c4] ss:$48 sps:$4 sm:$0xff]  }
  0xec   :  { %8410 = vmatpush1.bf16.msra.mxu0 %v15425_v30  ;;  %8738 = vmatpush1.bf16.msra.mxu1 %v15428_v31  ;;  %v15514_v30 = vld [vmem:[#allocation5 + $0x12cc] ss:$48 sps:$4 sm:$0xff]   ;;  %v15509_v31 = vld [vmem:[#allocation5 + $0x12c0] ss:$48 sps:$4 sm:$0xff]  }
  0xed   :  { %8411 = vmatprep.subr.bf16.mxu0 %v15433_v33  ;;  %8739 = vmatprep.subr.bf16.mxu1 %v15436_v34  ;;  %v15512_v33 = vld [vmem:[#allocation5 + $0x12c8] ss:$48 sps:$4 sm:$0xff]   ;;  %v15517_v34 = vld [vmem:[#allocation5 + $0x1324] ss:$48 sps:$4 sm:$0xff]  }
  0xf0   :  { %8412 = vmatpush1.bf16.msra.mxu0 %v15431_v35  ;;  %8740 = vmatpush1.bf16.msra.mxu1 %v15434_v36  ;;  %v15520_v35 = vld [vmem:[#allocation5 + $0x132c] ss:$48 sps:$4 sm:$0xff]   ;;  %v15515_v36 = vld [vmem:[#allocation5 + $0x1320] ss:$48 sps:$4 sm:$0xff]  }
  0xf1   :  { %8413 = vmatprep.subr.bf16.mxu0 %v15439_v37  ;;  %8741 = vmatprep.subr.bf16.mxu1 %v15442_v38  ;;  %v15518_v37 = vld [vmem:[#allocation5 + $0x1328] ss:$48 sps:$4 sm:$0xff]   ;;  %v15523_v38 = vld [vmem:[#allocation5 + $0x1384] ss:$48 sps:$4 sm:$0xff]  }
  0xf4   :  { %8414 = vmatpush1.bf16.msra.mxu0 %v15437_v39  ;;  %8742 = vmatpush1.bf16.msra.mxu1 %v15440_v40  ;;  %v15526_v39 = vld [vmem:[#allocation5 + $0x138c] ss:$48 sps:$4 sm:$0xff]   ;;  %v15521_v40 = vld [vmem:[#allocation5 + $0x1380] ss:$48 sps:$4 sm:$0xff]  }
  0xf5   :  { %8415 = vmatprep.subr.bf16.mxu0 %v15445_v41  ;;  %8743 = vmatprep.subr.bf16.mxu1 %v15448_v42  ;;  %v15524_v41 = vld [vmem:[#allocation5 + $0x1388] ss:$48 sps:$4 sm:$0xff]   ;;  %v15529_v42 = vld [vmem:[#allocation5 + $0x13e4] ss:$48 sps:$4 sm:$0xff]  }
  0xf8   :  { %8416 = vmatpush1.bf16.msra.mxu0 %v15443_v43  ;;  %8744 = vmatpush1.bf16.msra.mxu1 %v15446_v44  ;;  %v15532_v43 = vld [vmem:[#allocation5 + $0x13ec] ss:$48 sps:$4 sm:$0xff]   ;;  %v15527_v44 = vld [vmem:[#allocation5 + $0x13e0] ss:$48 sps:$4 sm:$0xff]  }
  0xf9   :  { %8417 = vmatprep.subr.bf16.mxu0 %v15451_v45  ;;  %8745 = vmatprep.subr.bf16.mxu1 %v15454_v46  ;;  %v15530_v45 = vld [vmem:[#allocation5 + $0x13e8] ss:$48 sps:$4 sm:$0xff]   ;;  %v15535_v46 = vld [vmem:[#allocation5 + $0x1444] ss:$48 sps:$4 sm:$0xff]  }
  0xfc   :  { %8418 = vmatpush1.bf16.msra.mxu0 %v15449_v47  ;;  %8746 = vmatpush1.bf16.msra.mxu1 %v15452_v49  ;;  %v15538_v47 = vld [vmem:[#allocation5 + $0x144c] ss:$48 sps:$4 sm:$0xff]   ;;  %v15533_v49 = vld [vmem:[#allocation5 + $0x1440] ss:$48 sps:$4 sm:$0xff]  }
  0xfd   :  { %8419 = vmatprep.subr.bf16.mxu0 %v15457_v50  ;;  %8747 = vmatprep.subr.bf16.mxu1 %v15460_v51  ;;  %v15536_v50 = vld [vmem:[#allocation5 + $0x1448] ss:$48 sps:$4 sm:$0xff]   ;;  %v15541_v51 = vld [vmem:[#allocation5 + $0x14a4] ss:$48 sps:$4 sm:$0xff]  }
 0x100   :  { %8420 = vmatpush1.bf16.msra.mxu0 %v15455_v52  ;;  %8748 = vmatpush1.bf16.msra.mxu1 %v15458_v53  ;;  %v15544_v52 = vld [vmem:[#allocation5 + $0x14ac] ss:$48 sps:$4 sm:$0xff]   ;;  %v15539_v53 = vld [vmem:[#allocation5 + $0x14a0] ss:$48 sps:$4 sm:$0xff]  }
 0x101   :  { %8421 = vmatprep.subr.bf16.mxu0 %v15463_v54  ;;  %8749 = vmatprep.subr.bf16.mxu1 %v15466_v55  ;;  %v15542_v54 = vld [vmem:[#allocation5 + $0x14a8] ss:$48 sps:$4 sm:$0xff]   ;;  %v15547_v55 = vld [vmem:[#allocation5 + $0x1504] ss:$48 sps:$4 sm:$0xff]  }
 0x104   :  { %8422 = vmatpush1.bf16.msra.mxu0 %v15461_v56  ;;  %8750 = vmatpush1.bf16.msra.mxu1 %v15464_v57  ;;  %v15550_v56 = vld [vmem:[#allocation5 + $0x150c] ss:$48 sps:$4 sm:$0xff]   ;;  %v15545_v57 = vld [vmem:[#allocation5 + $0x1500] ss:$48 sps:$4 sm:$0xff]  }
 0x105   :  { %8423 = vmatprep.subr.bf16.mxu0 %v15469_v58  ;;  %8751 = vmatprep.subr.bf16.mxu1 %v15472_v59  ;;  %v15548_v58 = vld [vmem:[#allocation5 + $0x1508] ss:$48 sps:$4 sm:$0xff]   ;;  %v15553_v59 = vld [vmem:[#allocation5 + $0x1564] ss:$48 sps:$4 sm:$0xff]  }
 0x108   :  { %8424 = vmatpush1.bf16.msra.mxu0 %v15467_v60  ;;  %8752 = vmatpush1.bf16.msra.mxu1 %v15470_v61  ;;  %v15556_v60 = vld [vmem:[#allocation5 + $0x156c] ss:$48 sps:$4 sm:$0xff]   ;;  %v15551_v61 = vld [vmem:[#allocation5 + $0x1560] ss:$48 sps:$4 sm:$0xff]  }
 0x109   :  { %8425 = vmatprep.subr.bf16.mxu0 %v15475_v62  ;;  %8753 = vmatprep.subr.bf16.mxu1 %v15478_v63  ;;  %v15554_v62 = vld [vmem:[#allocation5 + $0x1568] ss:$48 sps:$4 sm:$0xff]   ;;  %v15559_v63 = vld [vmem:[#allocation5 + $0x15c4] ss:$48 sps:$4 sm:$0xff]  }
 0x10c   :  { %8426 = vmatpush1.bf16.msra.mxu0 %v15473_v0  ;;  %8754 = vmatpush1.bf16.msra.mxu1 %v15476_v1  ;;  %v15562_v0 = vld [vmem:[#allocation5 + $0x15cc] ss:$48 sps:$4 sm:$0xff]   ;;  %v15557_v1 = vld [vmem:[#allocation5 + $0x15c0] ss:$48 sps:$4 sm:$0xff]  }
 0x10d   :  { %8427 = vmatprep.subr.bf16.mxu0 %v15481_v2  ;;  %8755 = vmatprep.subr.bf16.mxu1 %v15484_v3  ;;  %v15560_v2 = vld [vmem:[#allocation5 + $0x15c8] ss:$48 sps:$4 sm:$0xff]   ;;  %v15565_v3 = vld [vmem:[#allocation5 + $0x1624] ss:$48 sps:$4 sm:$0xff]  }
 0x110   :  { %8428 = vmatpush1.bf16.msra.mxu0 %v15479_v4  ;;  %8756 = vmatpush1.bf16.msra.mxu1 %v15482_v6  ;;  %v15568_v4 = vld [vmem:[#allocation5 + $0x162c] ss:$48 sps:$4 sm:$0xff]   ;;  %v15563_v6 = vld [vmem:[#allocation5 + $0x1620] ss:$48 sps:$4 sm:$0xff]  }
 0x111   :  { %8429 = vmatprep.subr.bf16.mxu0 %v15487_v7  ;;  %8757 = vmatprep.subr.bf16.mxu1 %v15490_v8  ;;  %v15566_v7 = vld [vmem:[#allocation5 + $0x1628] ss:$48 sps:$4 sm:$0xff]   ;;  %v15571_v8 = vld [vmem:[#allocation5 + $0x1684] ss:$48 sps:$4 sm:$0xff]  }
 0x114   :  { %8430 = vmatpush1.bf16.msra.mxu0 %v15485_v9  ;;  %8758 = vmatpush1.bf16.msra.mxu1 %v15488_v10  ;;  %v15574_v9 = vld [vmem:[#allocation5 + $0x168c] ss:$48 sps:$4 sm:$0xff]   ;;  %v15569_v10 = vld [vmem:[#allocation5 + $0x1680] ss:$48 sps:$4 sm:$0xff]  }
 0x115   :  { %8431 = vmatprep.subr.bf16.mxu0 %v15493_v11  ;;  %8759 = vmatprep.subr.bf16.mxu1 %v15496_v12  ;;  %v15572_v11 = vld [vmem:[#allocation5 + $0x1688] ss:$48 sps:$4 sm:$0xff]   ;;  %v15577_v12 = vld [vmem:[#allocation5 + $0x16e4] ss:$48 sps:$4 sm:$0xff]  }
 0x118   :  { %8432 = vmatpush1.bf16.msra.mxu0 %v15491_v14  ;;  %8760 = vmatpush1.bf16.msra.mxu1 %v15494_v15  ;;  %v15580_v14 = vld [vmem:[#allocation5 + $0x16ec] ss:$48 sps:$4 sm:$0xff]   ;;  %v15575_v15 = vld [vmem:[#allocation5 + $0x16e0] ss:$48 sps:$4 sm:$0xff]  }
 0x119   :  { %8442 = vmatprep.subr.bf16.mxu0 %v15499_v16  ;;  %8770 = vmatprep.subr.bf16.mxu1 %v15502_v19  ;;  %v15578_v16 = vld [vmem:[#allocation5 + $0x16e8] ss:$48 sps:$4 sm:$0xff]   ;;  %v15586_v19 = vld [vmem:[#allocation5 + $0x174c] ss:$48 sps:$4 sm:$0xff]  }
 0x11b   :  { %8434 = vmatmul.mubr.bf16.vlgmr.msra.gmra.mrb[0].mxu0 %v18123_v22  ;;  %8762 = vmatmul.mubr.bf16.vlgmr.msra.gmra.mrb[0].mxu1 %v18123_v22 }
 0x11c   :  { %8443 = vmatpush1.bf16.msra.mxu0 %v15497_v20  ;;  %8771 = vmatpush1.bf16.msra.mxu1 %v15500_v21  ;;  %v15581_v20 = vld [vmem:[#allocation5 + $0x1740] ss:$48 sps:$4 sm:$0xff]   ;;  %v15584_v21 = vld [vmem:[#allocation5 + $0x1748] ss:$48 sps:$4 sm:$0xff]  }
 0x11d   :  { %8444 = vmatprep.subr.bf16.mxu0 %v15505_v24  ;;  %8772 = vmatprep.subr.bf16.mxu1 %v15508_v25  ;;  %v15592_v24 = vld [vmem:[#allocation5 + $0x17ac] ss:$48 sps:$4 sm:$0xff]   ;;  %v15587_v25 = vld [vmem:[#allocation5 + $0x17a0] ss:$48 sps:$4 sm:$0xff]  }
 0x11e   :  { %8474 = vmatprep.mubr.bf16.mxu0 %v18125_v26  ;;  %8802 = vmatprep.mubr.bf16.mxu1 %v18125_v26 }
 0x120   :  { %8445 = vmatpush1.bf16.msra.mxu0 %v15503_v27  ;;  %8773 = vmatpush1.bf16.msra.mxu1 %v15506_v28  ;;  %v15590_v27 = vld [vmem:[#allocation5 + $0x17a8] ss:$48 sps:$4 sm:$0xff]  }
 0x121   :  { %8446 = vmatprep.subr.bf16.mxu0 %v15511_v29  ;;  %8774 = vmatprep.subr.bf16.mxu1 %v15514_v30  ;;  %v90_v28 = vld [vmem:[#allocation2 + $0x30] sm:$0xff]  ;;  %v15595_v29 = vld [vmem:[#allocation5 + $0x1804] ss:$48 sps:$4 sm:$0xff]  }
 0x122   :  { %v15598_v30 = vld [vmem:[#allocation5 + $0x180c] ss:$48 sps:$4 sm:$0xff]  }
 0x124   :  { %8447 = vmatpush1.bf16.msra.mxu0 %v15509_v31  ;;  %8775 = vmatpush1.bf16.msra.mxu1 %v15512_v33  ;;  %v18131_v31 = vpack.c.bf16 %v90_v28, %v90_v28  ;;  %v93_v33 = vld [vmem:[#allocation2 + $0x48] sm:$0xff]  ;;  %v15676_v28 = vld [vmem:[#allocation5 + $0x1cec] ss:$48 sps:$4 sm:$0xff]  }
 0x125   :  { %8448 = vmatprep.subr.bf16.mxu0 %v15517_v34  ;;  %8776 = vmatprep.subr.bf16.mxu1 %v15520_v35  ;;  %v15593_v34 = vld [vmem:[#allocation5 + $0x1800] ss:$48 sps:$4 sm:$0xff]   ;;  %v15596_v35 = vld [vmem:[#allocation5 + $0x1808] ss:$48 sps:$4 sm:$0xff]  }
 0x128   :  { %8449 = vmatpush1.bf16.msra.mxu0 %v15515_v36  ;;  %8777 = vmatpush1.bf16.msra.mxu1 %v15518_v37  ;;  %v15601_v36 = vld [vmem:[#allocation5 + $0x1864] ss:$48 sps:$4 sm:$0xff]   ;;  %v15604_v37 = vld [vmem:[#allocation5 + $0x186c] ss:$48 sps:$4 sm:$0xff]  }
 0x129   :  { %8450 = vmatprep.subr.bf16.mxu0 %v15523_v38  ;;  %8778 = vmatprep.subr.bf16.mxu1 %v15526_v39  ;;  %v18133_v38 = vpack.c.bf16 %v93_v33, %v93_v33  ;;  %v15599_v39 = vld [vmem:[#allocation5 + $0x1860] ss:$48 sps:$4 sm:$0xff]   ;;  %v15679_v33 = vld [vmem:[#allocation5 + $0x1d44] ss:$48 sps:$4 sm:$0xff]  }
 0x12c   :  { %8451 = vmatpush1.bf16.msra.mxu0 %v15521_v40  ;;  %8779 = vmatpush1.bf16.msra.mxu1 %v15524_v41  ;;  %v15602_v40 = vld [vmem:[#allocation5 + $0x1868] ss:$48 sps:$4 sm:$0xff]   ;;  %v15607_v41 = vld [vmem:[#allocation5 + $0x18c4] ss:$48 sps:$4 sm:$0xff]  }
 0x12d   :  { %8452 = vmatprep.subr.bf16.mxu0 %v15529_v42  ;;  %8780 = vmatprep.subr.bf16.mxu1 %v15532_v43  ;;  %v15610_v42 = vld [vmem:[#allocation5 + $0x18cc] ss:$48 sps:$4 sm:$0xff]   ;;  %v15605_v43 = vld [vmem:[#allocation5 + $0x18c0] ss:$48 sps:$4 sm:$0xff]  }
 0x130   :  { %8453 = vmatpush1.bf16.msra.mxu0 %v15527_v44  ;;  %8781 = vmatpush1.bf16.msra.mxu1 %v15530_v45  ;;  %v15608_v44 = vld [vmem:[#allocation5 + $0x18c8] ss:$48 sps:$4 sm:$0xff]   ;;  %v15613_v45 = vld [vmem:[#allocation5 + $0x1924] ss:$48 sps:$4 sm:$0xff]  }
 0x131   :  { %8454 = vmatprep.subr.bf16.mxu0 %v15535_v46  ;;  %8782 = vmatprep.subr.bf16.mxu1 %v15538_v47  ;;  %v15616_v46 = vld [vmem:[#allocation5 + $0x192c] ss:$48 sps:$4 sm:$0xff]   ;;  %v15611_v47 = vld [vmem:[#allocation5 + $0x1920] ss:$48 sps:$4 sm:$0xff]  }
 0x134   :  { %8455 = vmatpush1.bf16.msra.mxu0 %v15533_v49  ;;  %8783 = vmatpush1.bf16.msra.mxu1 %v15536_v50  ;;  %v15614_v49 = vld [vmem:[#allocation5 + $0x1928] ss:$48 sps:$4 sm:$0xff]   ;;  %v15619_v50 = vld [vmem:[#allocation5 + $0x1984] ss:$48 sps:$4 sm:$0xff]  }
 0x135   :  { %8456 = vmatprep.subr.bf16.mxu0 %v15541_v51  ;;  %8784 = vmatprep.subr.bf16.mxu1 %v15544_v52  ;;  %v15622_v51 = vld [vmem:[#allocation5 + $0x198c] ss:$48 sps:$4 sm:$0xff]   ;;  %v15617_v52 = vld [vmem:[#allocation5 + $0x1980] ss:$48 sps:$4 sm:$0xff]  }
 0x138   :  { %8457 = vmatpush1.bf16.msra.mxu0 %v15539_v53  ;;  %8785 = vmatpush1.bf16.msra.mxu1 %v15542_v54  ;;  %v15620_v53 = vld [vmem:[#allocation5 + $0x1988] ss:$48 sps:$4 sm:$0xff]   ;;  %v15625_v54 = vld [vmem:[#allocation5 + $0x19e4] ss:$48 sps:$4 sm:$0xff]  }
 0x139   :  { %8458 = vmatprep.subr.bf16.mxu0 %v15547_v55  ;;  %8786 = vmatprep.subr.bf16.mxu1 %v15550_v56  ;;  %v15628_v55 = vld [vmem:[#allocation5 + $0x19ec] ss:$48 sps:$4 sm:$0xff]   ;;  %v15623_v56 = vld [vmem:[#allocation5 + $0x19e0] ss:$48 sps:$4 sm:$0xff]  }
 0x13c   :  { %8459 = vmatpush1.bf16.msra.mxu0 %v15545_v57  ;;  %8787 = vmatpush1.bf16.msra.mxu1 %v15548_v58  ;;  %v15626_v57 = vld [vmem:[#allocation5 + $0x19e8] ss:$48 sps:$4 sm:$0xff]   ;;  %v15631_v58 = vld [vmem:[#allocation5 + $0x1a44] ss:$48 sps:$4 sm:$0xff]  }
 0x13d   :  { %8460 = vmatprep.subr.bf16.mxu0 %v15553_v59  ;;  %8788 = vmatprep.subr.bf16.mxu1 %v15556_v60  ;;  %v15634_v59 = vld [vmem:[#allocation5 + $0x1a4c] ss:$48 sps:$4 sm:$0xff]   ;;  %v15629_v60 = vld [vmem:[#allocation5 + $0x1a40] ss:$48 sps:$4 sm:$0xff]  }
 0x140   :  { %8461 = vmatpush1.bf16.msra.mxu0 %v15551_v61  ;;  %8789 = vmatpush1.bf16.msra.mxu1 %v15554_v62  ;;  %v15632_v61 = vld [vmem:[#allocation5 + $0x1a48] ss:$48 sps:$4 sm:$0xff]   ;;  %v15637_v62 = vld [vmem:[#allocation5 + $0x1aa4] ss:$48 sps:$4 sm:$0xff]  }
 0x141   :  { %8462 = vmatprep.subr.bf16.mxu0 %v15559_v63  ;;  %8790 = vmatprep.subr.bf16.mxu1 %v15562_v0  ;;  %v15640_v63 = vld [vmem:[#allocation5 + $0x1aac] ss:$48 sps:$4 sm:$0xff]   ;;  %v15635_v0 = vld [vmem:[#allocation5 + $0x1aa0] ss:$48 sps:$4 sm:$0xff]  }
 0x144   :  { %8463 = vmatpush1.bf16.msra.mxu0 %v15557_v1  ;;  %8791 = vmatpush1.bf16.msra.mxu1 %v15560_v2  ;;  %v15638_v1 = vld [vmem:[#allocation5 + $0x1aa8] ss:$48 sps:$4 sm:$0xff]   ;;  %v15643_v2 = vld [vmem:[#allocation5 + $0x1b04] ss:$48 sps:$4 sm:$0xff]  }
 0x145   :  { %8464 = vmatprep.subr.bf16.mxu0 %v15565_v3  ;;  %8792 = vmatprep.subr.bf16.mxu1 %v15568_v4  ;;  %v15646_v3 = vld [vmem:[#allocation5 + $0x1b0c] ss:$48 sps:$4 sm:$0xff]   ;;  %v15641_v4 = vld [vmem:[#allocation5 + $0x1b00] ss:$48 sps:$4 sm:$0xff]  }
 0x148   :  { %8465 = vmatpush1.bf16.msra.mxu0 %v15563_v6  ;;  %8793 = vmatpush1.bf16.msra.mxu1 %v15566_v7  ;;  %v15644_v6 = vld [vmem:[#allocation5 + $0x1b08] ss:$48 sps:$4 sm:$0xff]   ;;  %v15649_v7 = vld [vmem:[#allocation5 + $0x1b64] ss:$48 sps:$4 sm:$0xff]  }
 0x149   :  { %8466 = vmatprep.subr.bf16.mxu0 %v15571_v8  ;;  %8794 = vmatprep.subr.bf16.mxu1 %v15574_v9  ;;  %v15652_v8 = vld [vmem:[#allocation5 + $0x1b6c] ss:$48 sps:$4 sm:$0xff]   ;;  %v15647_v9 = vld [vmem:[#allocation5 + $0x1b60] ss:$48 sps:$4 sm:$0xff]  }
 0x14c   :  { %8467 = vmatpush1.bf16.msra.mxu0 %v15569_v10  ;;  %8795 = vmatpush1.bf16.msra.mxu1 %v15572_v11  ;;  %v15650_v10 = vld [vmem:[#allocation5 + $0x1b68] ss:$48 sps:$4 sm:$0xff]   ;;  %v15655_v11 = vld [vmem:[#allocation5 + $0x1bc4] ss:$48 sps:$4 sm:$0xff]  }
 0x14d   :  { %8468 = vmatprep.subr.bf16.mxu0 %v15577_v12  ;;  %8796 = vmatprep.subr.bf16.mxu1 %v15580_v14  ;;  %v15658_v12 = vld [vmem:[#allocation5 + $0x1bcc] ss:$48 sps:$4 sm:$0xff]   ;;  %v15653_v14 = vld [vmem:[#allocation5 + $0x1bc0] ss:$48 sps:$4 sm:$0xff]  }
 0x150   :  { %8469 = vmatpush1.bf16.msra.mxu0 %v15575_v15  ;;  %8797 = vmatpush1.bf16.msra.mxu1 %v15578_v16  ;;  %v15656_v15 = vld [vmem:[#allocation5 + $0x1bc8] ss:$48 sps:$4 sm:$0xff]   ;;  %v15661_v16 = vld [vmem:[#allocation5 + $0x1c24] ss:$48 sps:$4 sm:$0xff]  }
 0x151   :  { %8470 = vmatprep.subr.bf16.mxu0 %v15583_v18  ;;  %8798 = vmatprep.subr.bf16.mxu1 %v15586_v19  ;;  %v15664_v18 = vld [vmem:[#allocation5 + $0x1c2c] ss:$48 sps:$4 sm:$0xff]   ;;  %v15659_v19 = vld [vmem:[#allocation5 + $0x1c20] ss:$48 sps:$4 sm:$0xff]  }
 0x154   :  { %8471 = vmatpush1.bf16.msra.mxu0 %v15581_v20  ;;  %8799 = vmatpush1.bf16.msra.mxu1 %v15584_v21  ;;  %v15662_v20 = vld [vmem:[#allocation5 + $0x1c28] ss:$48 sps:$4 sm:$0xff]   ;;  %v15667_v21 = vld [vmem:[#allocation5 + $0x1c84] ss:$48 sps:$4 sm:$0xff]  }
 0x155   :  { %8472 = vmatprep.subr.bf16.mxu0 %v15589_v23  ;;  %8800 = vmatprep.subr.bf16.mxu1 %v15592_v24  ;;  %v15670_v23 = vld [vmem:[#allocation5 + $0x1c8c] ss:$48 sps:$4 sm:$0xff]   ;;  %v15665_v24 = vld [vmem:[#allocation5 + $0x1c80] ss:$48 sps:$4 sm:$0xff]  }
 0x158   :  { %8473 = vmatpush1.bf16.msra.mxu0 %v15587_v25  ;;  %8801 = vmatpush1.bf16.msra.mxu1 %v15590_v27  ;;  %v15668_v25 = vld [vmem:[#allocation5 + $0x1c88] ss:$48 sps:$4 sm:$0xff]   ;;  %v15673_v27 = vld [vmem:[#allocation5 + $0x1ce4] ss:$48 sps:$4 sm:$0xff]  }
 0x159   :  { %8483 = vmatprep.subr.bf16.mxu0 %v15595_v29  ;;  %8811 = vmatprep.subr.bf16.mxu1 %v15598_v30  ;;  %v15671_v29 = vld [vmem:[#allocation5 + $0x1ce0] ss:$48 sps:$4 sm:$0xff]   ;;  %v15674_v30 = vld [vmem:[#allocation5 + $0x1ce8] ss:$48 sps:$4 sm:$0xff]  }
 0x15b   :  { %8475 = vmatmul.mubr.bf16.vlgmr.msra.gmra.mrb[0].mxu0 %v18131_v31  ;;  %8803 = vmatmul.mubr.bf16.vlgmr.msra.gmra.mrb[0].mxu1 %v18131_v31 }
 0x15c   :  { %8484 = vmatpush1.bf16.msra.mxu0 %v15593_v34  ;;  %8812 = vmatpush1.bf16.msra.mxu1 %v15596_v35  ;;  %v15682_v34 = vld [vmem:[#allocation5 + $0x1d4c] ss:$48 sps:$4 sm:$0xff]   ;;  %v15677_v35 = vld [vmem:[#allocation5 + $0x1d40] ss:$48 sps:$4 sm:$0xff]  }
 0x15d   :  { %8485 = vmatprep.subr.bf16.mxu0 %v15601_v36  ;;  %8813 = vmatprep.subr.bf16.mxu1 %v15604_v37  ;;  %v15680_v36 = vld [vmem:[#allocation5 + $0x1d48] ss:$48 sps:$4 sm:$0xff]   ;;  %v15685_v37 = vld [vmem:[#allocation5 + $0x1da4] ss:$48 sps:$4 sm:$0xff]  }
 0x15e   :  { %8515 = vmatprep.mubr.bf16.mxu0 %v18133_v38  ;;  %8843 = vmatprep.mubr.bf16.mxu1 %v18133_v38 }
 0x160   :  { %8486 = vmatpush1.bf16.msra.mxu0 %v15599_v39  ;;  %8814 = vmatpush1.bf16.msra.mxu1 %v15602_v40  ;;  %v15688_v39 = vld [vmem:[#allocation5 + $0x1dac] ss:$48 sps:$4 sm:$0xff]   ;;  %v15683_v40 = vld [vmem:[#allocation5 + $0x1da0] ss:$48 sps:$4 sm:$0xff]  }
 0x161   :  { %8487 = vmatprep.subr.bf16.mxu0 %v15607_v41  ;;  %8815 = vmatprep.subr.bf16.mxu1 %v15610_v42  ;;  %v15686_v41 = vld [vmem:[#allocation5 + $0x1da8] ss:$48 sps:$4 sm:$0xff]  }
 0x162   :  { %v92_v42 = vld [vmem:[#allocation2 + $0x40] sm:$0xff] }
 0x164   :  { %8488 = vmatpush1.bf16.msra.mxu0 %v15605_v43  ;;  %8816 = vmatpush1.bf16.msra.mxu1 %v15608_v44  ;;  %v15691_v43 = vld [vmem:[#allocation5 + $0x1e04] ss:$48 sps:$4 sm:$0xff]   ;;  %v15694_v44 = vld [vmem:[#allocation5 + $0x1e0c] ss:$48 sps:$4 sm:$0xff]  }
 0x165   :  { %8489 = vmatprep.subr.bf16.mxu0 %v15613_v45  ;;  %8817 = vmatprep.subr.bf16.mxu1 %v15616_v46  ;;  %v15689_v45 = vld [vmem:[#allocation5 + $0x1e00] ss:$48 sps:$4 sm:$0xff]   ;;  %v15692_v46 = vld [vmem:[#allocation5 + $0x1e08] ss:$48 sps:$4 sm:$0xff]  }
 0x168   :  { %8490 = vmatpush1.bf16.msra.mxu0 %v15611_v47  ;;  %8818 = vmatpush1.bf16.msra.mxu1 %v15614_v49  ;;  %v18139_v47 = vpack.c.bf16 %v92_v42, %v92_v42  ;;  %v15697_v49 = vld [vmem:[#allocation5 + $0x1e64] ss:$48 sps:$4 sm:$0xff]   ;;  %v15764_v42 = vld [vmem:[#allocation5 + $0x2288] ss:$48 sps:$4 sm:$0xff]  }
 0x169   :  { %8491 = vmatprep.subr.bf16.mxu0 %v15619_v50  ;;  %8819 = vmatprep.subr.bf16.mxu1 %v15622_v51  ;;  %v95_v50 = vld [vmem:[#allocation2 + $0x58] sm:$0xff]  ;;  %v15700_v51 = vld [vmem:[#allocation5 + $0x1e6c] ss:$48 sps:$4 sm:$0xff]  }
 0x16c   :  { %8492 = vmatpush1.bf16.msra.mxu0 %v15617_v52  ;;  %8820 = vmatpush1.bf16.msra.mxu1 %v15620_v53  ;;  %v18141_v52 = vpack.c.bf16 %v95_v50, %v95_v50  ;;  %v15695_v53 = vld [vmem:[#allocation5 + $0x1e60] ss:$48 sps:$4 sm:$0xff]   ;;  %v15778_v50 = vld [vmem:[#allocation5 + $0x234c] ss:$48 sps:$4 sm:$0xff]  }
 0x16d   :  { %8493 = vmatprep.subr.bf16.mxu0 %v15625_v54  ;;  %8821 = vmatprep.subr.bf16.mxu1 %v15628_v55  ;;  %v15698_v54 = vld [vmem:[#allocation5 + $0x1e68] ss:$48 sps:$4 sm:$0xff]   ;;  %v15703_v55 = vld [vmem:[#allocation5 + $0x1ec4] ss:$48 sps:$4 sm:$0xff]  }
 0x170   :  { %8494 = vmatpush1.bf16.msra.mxu0 %v15623_v56  ;;  %8822 = vmatpush1.bf16.msra.mxu1 %v15626_v57  ;;  %v15706_v56 = vld [vmem:[#allocation5 + $0x1ecc] ss:$48 sps:$4 sm:$0xff]   ;;  %v15701_v57 = vld [vmem:[#allocation5 + $0x1ec0] ss:$48 sps:$4 sm:$0xff]  }
 0x171   :  { %8495 = vmatprep.subr.bf16.mxu0 %v15631_v58  ;;  %8823 = vmatprep.subr.bf16.mxu1 %v15634_v59  ;;  %v15704_v58 = vld [vmem:[#allocation5 + $0x1ec8] ss:$48 sps:$4 sm:$0xff]   ;;  %v15709_v59 = vld [vmem:[#allocation5 + $0x1f24] ss:$48 sps:$4 sm:$0xff]  }
 0x174   :  { %8496 = vmatpush1.bf16.msra.mxu0 %v15629_v60  ;;  %8824 = vmatpush1.bf16.msra.mxu1 %v15632_v61  ;;  %v15712_v60 = vld [vmem:[#allocation5 + $0x1f2c] ss:$48 sps:$4 sm:$0xff]   ;;  %v15707_v61 = vld [vmem:[#allocation5 + $0x1f20] ss:$48 sps:$4 sm:$0xff]  }
 0x175   :  { %8497 = vmatprep.subr.bf16.mxu0 %v15637_v62  ;;  %8825 = vmatprep.subr.bf16.mxu1 %v15640_v63  ;;  %v15710_v62 = vld [vmem:[#allocation5 + $0x1f28] ss:$48 sps:$4 sm:$0xff]   ;;  %v15715_v63 = vld [vmem:[#allocation5 + $0x1f84] ss:$48 sps:$4 sm:$0xff]  }
 0x178   :  { %8498 = vmatpush1.bf16.msra.mxu0 %v15635_v0  ;;  %8826 = vmatpush1.bf16.msra.mxu1 %v15638_v1  ;;  %v15718_v0 = vld [vmem:[#allocation5 + $0x1f8c] ss:$48 sps:$4 sm:$0xff]   ;;  %v15713_v1 = vld [vmem:[#allocation5 + $0x1f80] ss:$48 sps:$4 sm:$0xff]  }
 0x179   :  { %8499 = vmatprep.subr.bf16.mxu0 %v15643_v2  ;;  %8827 = vmatprep.subr.bf16.mxu1 %v15646_v3  ;;  %v15716_v2 = vld [vmem:[#allocation5 + $0x1f88] ss:$48 sps:$4 sm:$0xff]   ;;  %v15721_v3 = vld [vmem:[#allocation5 + $0x1fe4] ss:$48 sps:$4 sm:$0xff]  }
 0x17c   :  { %8500 = vmatpush1.bf16.msra.mxu0 %v15641_v4  ;;  %8828 = vmatpush1.bf16.msra.mxu1 %v15644_v6  ;;  %v15724_v4 = vld [vmem:[#allocation5 + $0x1fec] ss:$48 sps:$4 sm:$0xff]   ;;  %v15719_v6 = vld [vmem:[#allocation5 + $0x1fe0] ss:$48 sps:$4 sm:$0xff]  }
 0x17d   :  { %8501 = vmatprep.subr.bf16.mxu0 %v15649_v7  ;;  %8829 = vmatprep.subr.bf16.mxu1 %v15652_v8  ;;  %v15722_v7 = vld [vmem:[#allocation5 + $0x1fe8] ss:$48 sps:$4 sm:$0xff]   ;;  %v15727_v8 = vld [vmem:[#allocation5 + $0x2044] ss:$48 sps:$4 sm:$0xff]  }
 0x180   :  { %8502 = vmatpush1.bf16.msra.mxu0 %v15647_v9  ;;  %8830 = vmatpush1.bf16.msra.mxu1 %v15650_v10  ;;  %v15730_v9 = vld [vmem:[#allocation5 + $0x204c] ss:$48 sps:$4 sm:$0xff]   ;;  %v15725_v10 = vld [vmem:[#allocation5 + $0x2040] ss:$48 sps:$4 sm:$0xff]  }
 0x181   :  { %8503 = vmatprep.subr.bf16.mxu0 %v15655_v11  ;;  %8831 = vmatprep.subr.bf16.mxu1 %v15658_v12  ;;  %v15728_v11 = vld [vmem:[#allocation5 + $0x2048] ss:$48 sps:$4 sm:$0xff]   ;;  %v15733_v12 = vld [vmem:[#allocation5 + $0x20a4] ss:$48 sps:$4 sm:$0xff]  }
 0x184   :  { %8504 = vmatpush1.bf16.msra.mxu0 %v15653_v14  ;;  %8832 = vmatpush1.bf16.msra.mxu1 %v15656_v15  ;;  %v15736_v14 = vld [vmem:[#allocation5 + $0x20ac] ss:$48 sps:$4 sm:$0xff]   ;;  %v15731_v15 = vld [vmem:[#allocation5 + $0x20a0] ss:$48 sps:$4 sm:$0xff]  }
 0x185   :  { %8505 = vmatprep.subr.bf16.mxu0 %v15661_v16  ;;  %8833 = vmatprep.subr.bf16.mxu1 %v15664_v18  ;;  %v15734_v16 = vld [vmem:[#allocation5 + $0x20a8] ss:$48 sps:$4 sm:$0xff]   ;;  %v15739_v18 = vld [vmem:[#allocation5 + $0x2104] ss:$48 sps:$4 sm:$0xff]  }
 0x188   :  { %8506 = vmatpush1.bf16.msra.mxu0 %v15659_v19  ;;  %8834 = vmatpush1.bf16.msra.mxu1 %v15662_v20  ;;  %v15742_v19 = vld [vmem:[#allocation5 + $0x210c] ss:$48 sps:$4 sm:$0xff]   ;;  %v15737_v20 = vld [vmem:[#allocation5 + $0x2100] ss:$48 sps:$4 sm:$0xff]  }
 0x189   :  { %8507 = vmatprep.subr.bf16.mxu0 %v15667_v21  ;;  %8835 = vmatprep.subr.bf16.mxu1 %v15670_v23  ;;  %v15740_v21 = vld [vmem:[#allocation5 + $0x2108] ss:$48 sps:$4 sm:$0xff]   ;;  %v15745_v23 = vld [vmem:[#allocation5 + $0x2164] ss:$48 sps:$4 sm:$0xff]  }
 0x18c   :  { %8508 = vmatpush1.bf16.msra.mxu0 %v15665_v24  ;;  %8836 = vmatpush1.bf16.msra.mxu1 %v15668_v25  ;;  %v15748_v24 = vld [vmem:[#allocation5 + $0x216c] ss:$48 sps:$4 sm:$0xff]   ;;  %v15743_v25 = vld [vmem:[#allocation5 + $0x2160] ss:$48 sps:$4 sm:$0xff]  }
 0x18d   :  { %8509 = vmatprep.subr.bf16.mxu0 %v15673_v27  ;;  %8837 = vmatprep.subr.bf16.mxu1 %v15676_v28  ;;  %v15746_v27 = vld [vmem:[#allocation5 + $0x2168] ss:$48 sps:$4 sm:$0xff]   ;;  %v15751_v28 = vld [vmem:[#allocation5 + $0x21c4] ss:$48 sps:$4 sm:$0xff]  }
 0x190   :  { %8510 = vmatpush1.bf16.msra.mxu0 %v15671_v29  ;;  %8838 = vmatpush1.bf16.msra.mxu1 %v15674_v30  ;;  %v15754_v29 = vld [vmem:[#allocation5 + $0x21cc] ss:$48 sps:$4 sm:$0xff]   ;;  %v15749_v30 = vld [vmem:[#allocation5 + $0x21c0] ss:$48 sps:$4 sm:$0xff]  }
 0x191   :  { %8511 = vmatprep.subr.bf16.mxu0 %v15679_v33  ;;  %8839 = vmatprep.subr.bf16.mxu1 %v15682_v34  ;;  %v15752_v33 = vld [vmem:[#allocation5 + $0x21c8] ss:$48 sps:$4 sm:$0xff]   ;;  %v15757_v34 = vld [vmem:[#allocation5 + $0x2224] ss:$48 sps:$4 sm:$0xff]  }
 0x194   :  { %8512 = vmatpush1.bf16.msra.mxu0 %v15677_v35  ;;  %8840 = vmatpush1.bf16.msra.mxu1 %v15680_v36  ;;  %v15760_v35 = vld [vmem:[#allocation5 + $0x222c] ss:$48 sps:$4 sm:$0xff]   ;;  %v15755_v36 = vld [vmem:[#allocation5 + $0x2220] ss:$48 sps:$4 sm:$0xff]  }
 0x195   :  { %8513 = vmatprep.subr.bf16.mxu0 %v15685_v37  ;;  %8841 = vmatprep.subr.bf16.mxu1 %v15688_v39  ;;  %v15758_v37 = vld [vmem:[#allocation5 + $0x2228] ss:$48 sps:$4 sm:$0xff]   ;;  %v15763_v39 = vld [vmem:[#allocation5 + $0x2284] ss:$48 sps:$4 sm:$0xff]  }
 0x198   :  { %8514 = vmatpush1.bf16.msra.mxu0 %v15683_v40  ;;  %8842 = vmatpush1.bf16.msra.mxu1 %v15686_v41  ;;  %v15766_v40 = vld [vmem:[#allocation5 + $0x228c] ss:$48 sps:$4 sm:$0xff]   ;;  %v15761_v41 = vld [vmem:[#allocation5 + $0x2280] ss:$48 sps:$4 sm:$0xff]  }
 0x199   :  { %8524 = vmatprep.subr.bf16.mxu0 %v15691_v43  ;;  %8852 = vmatprep.subr.bf16.mxu1 %v15694_v44  ;;  %v15769_v43 = vld [vmem:[#allocation5 + $0x22e4] ss:$48 sps:$4 sm:$0xff]   ;;  %v15772_v44 = vld [vmem:[#allocation5 + $0x22ec] ss:$48 sps:$4 sm:$0xff]  }
 0x19b   :  { %8516 = vmatmul.mubr.bf16.vlgmr.msra.gmra.mrb[0].mxu0 %v18139_v47  ;;  %8844 = vmatmul.mubr.bf16.vlgmr.msra.gmra.mrb[0].mxu1 %v18139_v47 }
 0x19c   :  { %8525 = vmatpush1.bf16.msra.mxu0 %v15689_v45  ;;  %8853 = vmatpush1.bf16.msra.mxu1 %v15692_v46  ;;  %v15767_v45 = vld [vmem:[#allocation5 + $0x22e0] ss:$48 sps:$4 sm:$0xff]   ;;  %v15770_v46 = vld [vmem:[#allocation5 + $0x22e8] ss:$48 sps:$4 sm:$0xff]  }
 0x19d   :  { %8526 = vmatprep.subr.bf16.mxu0 %v15697_v49  ;;  %8854 = vmatprep.subr.bf16.mxu1 %v15700_v51  ;;  %v15775_v49 = vld [vmem:[#allocation5 + $0x2344] ss:$48 sps:$4 sm:$0xff]   ;;  %v15773_v51 = vld [vmem:[#allocation5 + $0x2340] ss:$48 sps:$4 sm:$0xff]  }
 0x19e   :  { %8556 = vmatprep.mubr.bf16.mxu0 %v18141_v52  ;;  %8884 = vmatprep.mubr.bf16.mxu1 %v18141_v52 }
 0x1a0   :  { %8527 = vmatpush1.bf16.msra.mxu0 %v15695_v53  ;;  %8855 = vmatpush1.bf16.msra.mxu1 %v15698_v54  ;;  %v15776_v53 = vld [vmem:[#allocation5 + $0x2348] ss:$48 sps:$4 sm:$0xff]   ;;  %v15781_v54 = vld [vmem:[#allocation5 + $0x23a4] ss:$48 sps:$4 sm:$0xff]  }
 0x1a1   :  { %8528 = vmatprep.subr.bf16.mxu0 %v15703_v55  ;;  %8856 = vmatprep.subr.bf16.mxu1 %v15706_v56  ;;  %v15784_v55 = vld [vmem:[#allocation5 + $0x23ac] ss:$48 sps:$4 sm:$0xff]   ;;  %v15779_v56 = vld [vmem:[#allocation5 + $0x23a0] ss:$48 sps:$4 sm:$0xff]  }
 0x1a4   :  { %8529 = vmatpush1.bf16.msra.mxu0 %v15701_v57  ;;  %8857 = vmatpush1.bf16.msra.mxu1 %v15704_v58  ;;  %v15782_v57 = vld [vmem:[#allocation5 + $0x23a8] ss:$48 sps:$4 sm:$0xff]   ;;  %v15787_v58 = vld [vmem:[#allocation5 + $0x2404] ss:$48 sps:$4 sm:$0xff]  }
 0x1a5   :  { %8530 = vmatprep.subr.bf16.mxu0 %v15709_v59  ;;  %8858 = vmatprep.subr.bf16.mxu1 %v15712_v60  ;;  %v94_v59 = vld [vmem:[#allocation2 + $0x50] sm:$0xff] }
 0x1a6   :  { %v15790_v60 = vld [vmem:[#allocation5 + $0x240c] ss:$48 sps:$4 sm:$0xff]  }
 0x1a8   :  { %8531 = vmatpush1.bf16.msra.mxu0 %v15707_v61  ;;  %8859 = vmatpush1.bf16.msra.mxu1 %v15710_v62  ;;  %v97_v61 = vld [vmem:[#allocation2 + $0x68] sm:$0xff]  ;;  %v18147_v62 = vpack.c.bf16 %v94_v59, %v94_v59 }
 0x1a9   :  { %8532 = vmatprep.subr.bf16.mxu0 %v15715_v63  ;;  %8860 = vmatprep.subr.bf16.mxu1 %v15718_v0  ;;  %v15785_v63 = vld [vmem:[#allocation5 + $0x2400] ss:$48 sps:$4 sm:$0xff]   ;;  %v15788_v0 = vld [vmem:[#allocation5 + $0x2408] ss:$48 sps:$4 sm:$0xff]  }
 0x1aa   :  { %v15857_v59 = vld [vmem:[#allocation5 + $0x2880] ss:$48 sps:$4 sm:$0xff]  }
 0x1ac   :  { %8533 = vmatpush1.bf16.msra.mxu0 %v15713_v1  ;;  %8861 = vmatpush1.bf16.msra.mxu1 %v15716_v2  ;;  %v15793_v1 = vld [vmem:[#allocation5 + $0x2464] ss:$48 sps:$4 sm:$0xff]   ;;  %v15796_v2 = vld [vmem:[#allocation5 + $0x246c] ss:$48 sps:$4 sm:$0xff]  }
 0x1ad   :  { %8534 = vmatprep.subr.bf16.mxu0 %v15721_v3  ;;  %8862 = vmatprep.subr.bf16.mxu1 %v15724_v4  ;;  %v18149_v3 = vpack.c.bf16 %v97_v61, %v97_v61  ;;  %v15791_v4 = vld [vmem:[#allocation5 + $0x2460] ss:$48 sps:$4 sm:$0xff]   ;;  %v15865_v61 = vld [vmem:[#allocation5 + $0x28e4] ss:$48 sps:$4 sm:$0xff]  }
 0x1b0   :  { %8535 = vmatpush1.bf16.msra.mxu0 %v15719_v6  ;;  %8863 = vmatpush1.bf16.msra.mxu1 %v15722_v7  ;;  %v15794_v6 = vld [vmem:[#allocation5 + $0x2468] ss:$48 sps:$4 sm:$0xff]   ;;  %v15799_v7 = vld [vmem:[#allocation5 + $0x24c4] ss:$48 sps:$4 sm:$0xff]  }
 0x1b1   :  { %8536 = vmatprep.subr.bf16.mxu0 %v15727_v8  ;;  %8864 = vmatprep.subr.bf16.mxu1 %v15730_v9  ;;  %v15802_v8 = vld [vmem:[#allocation5 + $0x24cc] ss:$48 sps:$4 sm:$0xff]   ;;  %v15797_v9 = vld [vmem:[#allocation5 + $0x24c0] ss:$48 sps:$4 sm:$0xff]  }
 0x1b4   :  { %8537 = vmatpush1.bf16.msra.mxu0 %v15725_v10  ;;  %8865 = vmatpush1.bf16.msra.mxu1 %v15728_v11  ;;  %v15800_v10 = vld [vmem:[#allocation5 + $0x24c8] ss:$48 sps:$4 sm:$0xff]   ;;  %v15805_v11 = vld [vmem:[#allocation5 + $0x2524] ss:$48 sps:$4 sm:$0xff]  }
 0x1b5   :  { %8538 = vmatprep.subr.bf16.mxu0 %v15733_v12  ;;  %8866 = vmatprep.subr.bf16.mxu1 %v15736_v14  ;;  %v15808_v12 = vld [vmem:[#allocation5 + $0x252c] ss:$48 sps:$4 sm:$0xff]   ;;  %v15803_v14 = vld [vmem:[#allocation5 + $0x2520] ss:$48 sps:$4 sm:$0xff]  }
 0x1b8   :  { %8539 = vmatpush1.bf16.msra.mxu0 %v15731_v15  ;;  %8867 = vmatpush1.bf16.msra.mxu1 %v15734_v16  ;;  %v15806_v15 = vld [vmem:[#allocation5 + $0x2528] ss:$48 sps:$4 sm:$0xff]   ;;  %v15811_v16 = vld [vmem:[#allocation5 + $0x2584] ss:$48 sps:$4 sm:$0xff]  }
 0x1b9   :  { %8540 = vmatprep.subr.bf16.mxu0 %v15739_v18  ;;  %8868 = vmatprep.subr.bf16.mxu1 %v15742_v19  ;;  %v15814_v18 = vld [vmem:[#allocation5 + $0x258c] ss:$48 sps:$4 sm:$0xff]   ;;  %v15809_v19 = vld [vmem:[#allocation5 + $0x2580] ss:$48 sps:$4 sm:$0xff]  }
 0x1bc   :  { %8541 = vmatpush1.bf16.msra.mxu0 %v15737_v20  ;;  %8869 = vmatpush1.bf16.msra.mxu1 %v15740_v21  ;;  %v15812_v20 = vld [vmem:[#allocation5 + $0x2588] ss:$48 sps:$4 sm:$0xff]   ;;  %v15817_v21 = vld [vmem:[#allocation5 + $0x25e4] ss:$48 sps:$4 sm:$0xff]  }
 0x1bd   :  { %8542 = vmatprep.subr.bf16.mxu0 %v15745_v23  ;;  %8870 = vmatprep.subr.bf16.mxu1 %v15748_v24  ;;  %v15820_v23 = vld [vmem:[#allocation5 + $0x25ec] ss:$48 sps:$4 sm:$0xff]   ;;  %v15815_v24 = vld [vmem:[#allocation5 + $0x25e0] ss:$48 sps:$4 sm:$0xff]  }
 0x1c0   :  { %8543 = vmatpush1.bf16.msra.mxu0 %v15743_v25  ;;  %8871 = vmatpush1.bf16.msra.mxu1 %v15746_v27  ;;  %v15818_v25 = vld [vmem:[#allocation5 + $0x25e8] ss:$48 sps:$4 sm:$0xff]   ;;  %v15823_v27 = vld [vmem:[#allocation5 + $0x2644] ss:$48 sps:$4 sm:$0xff]  }
 0x1c1   :  { %8544 = vmatprep.subr.bf16.mxu0 %v15751_v28  ;;  %8872 = vmatprep.subr.bf16.mxu1 %v15754_v29  ;;  %v15826_v28 = vld [vmem:[#allocation5 + $0x264c] ss:$48 sps:$4 sm:$0xff]   ;;  %v15821_v29 = vld [vmem:[#allocation5 + $0x2640] ss:$48 sps:$4 sm:$0xff]  }
 0x1c4   :  { %8545 = vmatpush1.bf16.msra.mxu0 %v15749_v30  ;;  %8873 = vmatpush1.bf16.msra.mxu1 %v15752_v33  ;;  %v15824_v30 = vld [vmem:[#allocation5 + $0x2648] ss:$48 sps:$4 sm:$0xff]   ;;  %v15829_v33 = vld [vmem:[#allocation5 + $0x26a4] ss:$48 sps:$4 sm:$0xff]  }
 0x1c5   :  { %8546 = vmatprep.subr.bf16.mxu0 %v15757_v34  ;;  %8874 = vmatprep.subr.bf16.mxu1 %v15760_v35  ;;  %v15832_v34 = vld [vmem:[#allocation5 + $0x26ac] ss:$48 sps:$4 sm:$0xff]   ;;  %v15827_v35 = vld [vmem:[#allocation5 + $0x26a0] ss:$48 sps:$4 sm:$0xff]  }
 0x1c8   :  { %8547 = vmatpush1.bf16.msra.mxu0 %v15755_v36  ;;  %8875 = vmatpush1.bf16.msra.mxu1 %v15758_v37  ;;  %v15830_v36 = vld [vmem:[#allocation5 + $0x26a8] ss:$48 sps:$4 sm:$0xff]   ;;  %v15835_v37 = vld [vmem:[#allocation5 + $0x2704] ss:$48 sps:$4 sm:$0xff]  }
 0x1c9   :  { %8548 = vmatprep.subr.bf16.mxu0 %v15763_v39  ;;  %8876 = vmatprep.subr.bf16.mxu1 %v15766_v40  ;;  %v15838_v39 = vld [vmem:[#allocation5 + $0x270c] ss:$48 sps:$4 sm:$0xff]   ;;  %v15833_v40 = vld [vmem:[#allocation5 + $0x2700] ss:$48 sps:$4 sm:$0xff]  }
 0x1cc   :  { %8549 = vmatpush1.bf16.msra.mxu0 %v15761_v41  ;;  %8877 = vmatpush1.bf16.msra.mxu1 %v15764_v42  ;;  %v15836_v41 = vld [vmem:[#allocation5 + $0x2708] ss:$48 sps:$4 sm:$0xff]   ;;  %v15841_v42 = vld [vmem:[#allocation5 + $0x2764] ss:$48 sps:$4 sm:$0xff]  }
 0x1cd   :  { %8550 = vmatprep.subr.bf16.mxu0 %v15769_v43  ;;  %8878 = vmatprep.subr.bf16.mxu1 %v15772_v44  ;;  %v15844_v43 = vld [vmem:[#allocation5 + $0x276c] ss:$48 sps:$4 sm:$0xff]   ;;  %v15839_v44 = vld [vmem:[#allocation5 + $0x2760] ss:$48 sps:$4 sm:$0xff]  }
 0x1d0   :  { %8551 = vmatpush1.bf16.msra.mxu0 %v15767_v45  ;;  %8879 = vmatpush1.bf16.msra.mxu1 %v15770_v46  ;;  %v15842_v45 = vld [vmem:[#allocation5 + $0x2768] ss:$48 sps:$4 sm:$0xff]   ;;  %v15847_v46 = vld [vmem:[#allocation5 + $0x27c4] ss:$48 sps:$4 sm:$0xff]  }
 0x1d1   :  { %8552 = vmatprep.subr.bf16.mxu0 %v15775_v49  ;;  %8880 = vmatprep.subr.bf16.mxu1 %v15778_v50  ;;  %v15850_v49 = vld [vmem:[#allocation5 + $0x27cc] ss:$48 sps:$4 sm:$0xff]   ;;  %v15845_v50 = vld [vmem:[#allocation5 + $0x27c0] ss:$48 sps:$4 sm:$0xff]  }
 0x1d4   :  { %8553 = vmatpush1.bf16.msra.mxu0 %v15773_v51  ;;  %8881 = vmatpush1.bf16.msra.mxu1 %v15776_v53  ;;  %v15848_v51 = vld [vmem:[#allocation5 + $0x27c8] ss:$48 sps:$4 sm:$0xff]   ;;  %v15853_v53 = vld [vmem:[#allocation5 + $0x2824] ss:$48 sps:$4 sm:$0xff]  }
 0x1d5   :  { %8554 = vmatprep.subr.bf16.mxu0 %v15781_v54  ;;  %8882 = vmatprep.subr.bf16.mxu1 %v15784_v55  ;;  %v15856_v54 = vld [vmem:[#allocation5 + $0x282c] ss:$48 sps:$4 sm:$0xff]   ;;  %v15851_v55 = vld [vmem:[#allocation5 + $0x2820] ss:$48 sps:$4 sm:$0xff]  }
 0x1d8   :  { %8555 = vmatpush1.bf16.msra.mxu0 %v15779_v56  ;;  %8883 = vmatpush1.bf16.msra.mxu1 %v15782_v57  ;;  %v15854_v56 = vld [vmem:[#allocation5 + $0x2828] ss:$48 sps:$4 sm:$0xff]   ;;  %v15859_v57 = vld [vmem:[#allocation5 + $0x2884] ss:$48 sps:$4 sm:$0xff]  }
 0x1d9   :  { %8565 = vmatprep.subr.bf16.mxu0 %v15787_v58  ;;  %8893 = vmatprep.subr.bf16.mxu1 %v15790_v60  ;;  %v15862_v58 = vld [vmem:[#allocation5 + $0x288c] ss:$48 sps:$4 sm:$0xff]   ;;  %v15860_v60 = vld [vmem:[#allocation5 + $0x2888] ss:$48 sps:$4 sm:$0xff]  }
 0x1db   :  { %8557 = vmatmul.mubr.bf16.vlgmr.msra.gmra.mrb[0].mxu0 %v18147_v62  ;;  %8885 = vmatmul.mubr.bf16.vlgmr.msra.gmra.mrb[0].mxu1 %v18147_v62 }
 0x1dc   :  { %8566 = vmatpush1.bf16.msra.mxu0 %v15785_v63  ;;  %8894 = vmatpush1.bf16.msra.mxu1 %v15788_v0  ;;  %v15868_v63 = vld [vmem:[#allocation5 + $0x28ec] ss:$48 sps:$4 sm:$0xff]   ;;  %v15863_v0 = vld [vmem:[#allocation5 + $0x28e0] ss:$48 sps:$4 sm:$0xff]  }
 0x1dd   :  { %8567 = vmatprep.subr.bf16.mxu0 %v15793_v1  ;;  %8895 = vmatprep.subr.bf16.mxu1 %v15796_v2  ;;  %v15866_v1 = vld [vmem:[#allocation5 + $0x28e8] ss:$48 sps:$4 sm:$0xff]   ;;  %v15871_v2 = vld [vmem:[#allocation5 + $0x2944] ss:$48 sps:$4 sm:$0xff]  }
 0x1de   :  { %8597 = vmatprep.mubr.bf16.mxu0 %v18149_v3  ;;  %8925 = vmatprep.mubr.bf16.mxu1 %v18149_v3 }
 0x1e0   :  { %8568 = vmatpush1.bf16.msra.mxu0 %v15791_v4  ;;  %8896 = vmatpush1.bf16.msra.mxu1 %v15794_v6  ;;  %v15874_v4 = vld [vmem:[#allocation5 + $0x294c] ss:$48 sps:$4 sm:$0xff]   ;;  %v15869_v6 = vld [vmem:[#allocation5 + $0x2940] ss:$48 sps:$4 sm:$0xff]  }
 0x1e1   :  { %8569 = vmatprep.subr.bf16.mxu0 %v15799_v7  ;;  %8897 = vmatprep.subr.bf16.mxu1 %v15802_v8  ;;  %v15872_v7 = vld [vmem:[#allocation5 + $0x2948] ss:$48 sps:$4 sm:$0xff]   ;;  %v15877_v8 = vld [vmem:[#allocation5 + $0x29a4] ss:$48 sps:$4 sm:$0xff]  }
 0x1e4   :  { %8570 = vmatpush1.bf16.msra.mxu0 %v15797_v9  ;;  %8898 = vmatpush1.bf16.msra.mxu1 %v15800_v10  ;;  %v15880_v9 = vld [vmem:[#allocation5 + $0x29ac] ss:$48 sps:$4 sm:$0xff]   ;;  %v1458_v10 = vld [vmem:[#allocation5 + $0x2a00] sm:$0xff] }
 0x1e5   :  { %8571 = vmatprep.subr.bf16.mxu0 %v15805_v11  ;;  %8899 = vmatprep.subr.bf16.mxu1 %v15808_v12  ;;  %v1459_v11 = vld [vmem:[#allocation5 + $0x2a08] sm:$0xff]  ;;  %v15875_v12 = vld [vmem:[#allocation5 + $0x29a0] ss:$48 sps:$4 sm:$0xff]  }
 0x1e8   :  { %8572 = vmatpush1.bf16.msra.mxu0 %v15803_v14  ;;  %8900 = vmatpush1.bf16.msra.mxu1 %v15806_v15  ;;  %v15878_v14 = vld [vmem:[#allocation5 + $0x29a8] ss:$48 sps:$4 sm:$0xff]  }
 0x1e9   :  { %8573 = vmatprep.subr.bf16.mxu0 %v15811_v16  ;;  %8901 = vmatprep.subr.bf16.mxu1 %v15814_v18  ;;  %v96_v15 = vld [vmem:[#allocation2 + $0x60] sm:$0xff]  ;;  %v14555_v16 = vcombine.high %v1458_v10, %v1458_v10  ;;  %v14557_v18 = vcombine.high %v1459_v11, %v1459_v11 }
 0x1ec   :  { %8574 = vmatpush1.bf16.msra.mxu0 %v15809_v19  ;;  %8902 = vmatpush1.bf16.msra.mxu1 %v15812_v20  ;;  %v14554_v19 = vcombine.low %v1458_v10, %v1458_v10  ;;  %v14556_v20 = vcombine.low %v1459_v11, %v1459_v11  ;;  %v15941_v10 = vld [vmem:[#allocation5 + $0x374] ss:$48 sps:$4 sm:$0xff]   ;;  %v15944_v11 = vld [vmem:[#allocation5 + $0x37c] ss:$48 sps:$4 sm:$0xff]  }
 0x1ed   :  { %8575 = vmatprep.subr.bf16.mxu0 %v15817_v21  ;;  %8903 = vmatprep.subr.bf16.mxu1 %v15820_v23  ;;  %v18155_v21 = vpack.c.bf16 %v96_v15, %v96_v15  ;;  %v15887_v23 = vld [vmem:[#allocation5 + $0x14] ss:$48 sps:$4 sm:$0xff]  }
 0x1ee   :  { %v15947_v15 = vld [vmem:[#allocation5 + $0x3d4] ss:$48 sps:$4 sm:$0xff]  }
 0x1f0   :  { %8576 = vmatpush1.bf16.msra.mxu0 %v15815_v24  ;;  %8904 = vmatpush1.bf16.msra.mxu1 %v15818_v25  ;;  %v8284_v24 = vsel %vm8282_vm0, %v14554_v19, 0  ;;  %v8290_v25 = vsel %vm8282_vm0, %v14556_v20, 0  ;;  %v15948_v19 = vld [vmem:[#allocation5 + $0x3d8] ss:$48 sps:$4 sm:$0xff]   ;;  %v15953_v20 = vld [vmem:[#allocation5 + $0x434] ss:$48 sps:$4 sm:$0xff]  }
 0x1f1   :  { %8577 = vmatprep.subr.bf16.mxu0 %v15823_v27  ;;  %8905 = vmatprep.subr.bf16.mxu1 %v15826_v28  ;;  %v15890_v27 = vld [vmem:[#allocation5 + $0x1c] ss:$48 sps:$4 sm:$0xff]   ;;  %v18011_v28 = vmov 0  }
 0x1f4   :  { %8578 = vmatpush1.bf16.msra.mxu0 %v15821_v29  ;;  %8906 = vmatpush1.bf16.msra.mxu1 %v15824_v30  ;;  %v98_v29 = vld [vmem:[#allocation2 + $0x70] sm:$0xff] }
 0x1f5   :  { %8579 = vmatprep.subr.bf16.mxu0 %v15829_v33  ;;  %8907 = vmatprep.subr.bf16.mxu1 %v15832_v34  ;;  %v18165_v30 = vpack.c.bf16 %v98_v29, %v98_v29  ;;  %v15885_v33 = vld [vmem:[#allocation5 + $0x10] ss:$48 sps:$4 sm:$0xff]   ;;  %v15888_v34 = vld [vmem:[#allocation5 + $0x18] ss:$48 sps:$4 sm:$0xff]   ;;  %v15962_v29 = vld [vmem:[#allocation5 + $0x49c] ss:$48 sps:$4 sm:$0xff]  }
 0x1f8   :  { %8580 = vmatpush1.bf16.msra.mxu0 %v15827_v35  ;;  %8908 = vmatpush1.bf16.msra.mxu1 %v15830_v36  ;;  %v15893_v35 = vld [vmem:[#allocation5 + $0x74] ss:$48 sps:$4 sm:$0xff]   ;;  %v15896_v36 = vld [vmem:[#allocation5 + $0x7c] ss:$48 sps:$4 sm:$0xff]  }
 0x1f9   :  { %8581 = vmatprep.subr.bf16.mxu0 %v15835_v37  ;;  %8909 = vmatprep.subr.bf16.mxu1 %v15838_v39  ;;  %v15891_v37 = vld [vmem:[#allocation5 + $0x70] ss:$48 sps:$4 sm:$0xff]   ;;  %v15894_v39 = vld [vmem:[#allocation5 + $0x78] ss:$48 sps:$4 sm:$0xff]  }
 0x1fc   :  { %8582 = vmatpush1.bf16.msra.mxu0 %v15833_v40  ;;  %8910 = vmatpush1.bf16.msra.mxu1 %v15836_v41  ;;  %v15899_v40 = vld [vmem:[#allocation5 + $0xd4] ss:$48 sps:$4 sm:$0xff]   ;;  %v15902_v41 = vld [vmem:[#allocation5 + $0xdc] ss:$48 sps:$4 sm:$0xff]  }
 0x1fd   :  { %8583 = vmatprep.subr.bf16.mxu0 %v15841_v42  ;;  %8911 = vmatprep.subr.bf16.mxu1 %v15844_v43  ;;  %v15897_v42 = vld [vmem:[#allocation5 + $0xd0] ss:$48 sps:$4 sm:$0xff]   ;;  %v15900_v43 = vld [vmem:[#allocation5 + $0xd8] ss:$48 sps:$4 sm:$0xff]  }
 0x200   :  { %8584 = vmatpush1.bf16.msra.mxu0 %v15839_v44  ;;  %8912 = vmatpush1.bf16.msra.mxu1 %v15842_v45  ;;  %v15905_v44 = vld [vmem:[#allocation5 + $0x134] ss:$48 sps:$4 sm:$0xff]   ;;  %v15908_v45 = vld [vmem:[#allocation5 + $0x13c] ss:$48 sps:$4 sm:$0xff]  }
 0x201   :  { %8585 = vmatprep.subr.bf16.mxu0 %v15847_v46  ;;  %8913 = vmatprep.subr.bf16.mxu1 %v15850_v49  ;;  %v15903_v46 = vld [vmem:[#allocation5 + $0x130] ss:$48 sps:$4 sm:$0xff]   ;;  %v15906_v49 = vld [vmem:[#allocation5 + $0x138] ss:$48 sps:$4 sm:$0xff]  }
 0x204   :  { %8586 = vmatpush1.bf16.msra.mxu0 %v15845_v50  ;;  %8914 = vmatpush1.bf16.msra.mxu1 %v15848_v51  ;;  %v15911_v50 = vld [vmem:[#allocation5 + $0x194] ss:$48 sps:$4 sm:$0xff]   ;;  %v15914_v51 = vld [vmem:[#allocation5 + $0x19c] ss:$48 sps:$4 sm:$0xff]  }
 0x205   :  { %8587 = vmatprep.subr.bf16.mxu0 %v15853_v53  ;;  %8915 = vmatprep.subr.bf16.mxu1 %v15856_v54  ;;  %v15909_v53 = vld [vmem:[#allocation5 + $0x190] ss:$48 sps:$4 sm:$0xff]   ;;  %v15912_v54 = vld [vmem:[#allocation5 + $0x198] ss:$48 sps:$4 sm:$0xff]  }
 0x208   :  { %8588 = vmatpush1.bf16.msra.mxu0 %v15851_v55  ;;  %8916 = vmatpush1.bf16.msra.mxu1 %v15854_v56  ;;  %v15917_v55 = vld [vmem:[#allocation5 + $0x1f4] ss:$48 sps:$4 sm:$0xff]   ;;  %v15920_v56 = vld [vmem:[#allocation5 + $0x1fc] ss:$48 sps:$4 sm:$0xff]  }
 0x209   :  { %8589 = vmatprep.subr.bf16.mxu0 %v15859_v57  ;;  %8917 = vmatprep.subr.bf16.mxu1 %v15862_v58  ;;  %v15915_v57 = vld [vmem:[#allocation5 + $0x1f0] ss:$48 sps:$4 sm:$0xff]   ;;  %v15918_v58 = vld [vmem:[#allocation5 + $0x1f8] ss:$48 sps:$4 sm:$0xff]  }
 0x20c   :  { %8590 = vmatpush1.bf16.msra.mxu0 %v15857_v59  ;;  %8918 = vmatpush1.bf16.msra.mxu1 %v15860_v60  ;;  %v15923_v59 = vld [vmem:[#allocation5 + $0x254] ss:$48 sps:$4 sm:$0xff]   ;;  %v15926_v60 = vld [vmem:[#allocation5 + $0x25c] ss:$48 sps:$4 sm:$0xff]  }
 0x20d   :  { %8591 = vmatprep.subr.bf16.mxu0 %v15865_v61  ;;  %8919 = vmatprep.subr.bf16.mxu1 %v15868_v63  ;;  %v15921_v61 = vld [vmem:[#allocation5 + $0x250] ss:$48 sps:$4 sm:$0xff]   ;;  %v15924_v63 = vld [vmem:[#allocation5 + $0x258] ss:$48 sps:$4 sm:$0xff]  }
 0x210   :  { %8592 = vmatpush1.bf16.msra.mxu0 %v15863_v0  ;;  %8920 = vmatpush1.bf16.msra.mxu1 %v15866_v1  ;;  %v15929_v0 = vld [vmem:[#allocation5 + $0x2b4] ss:$48 sps:$4 sm:$0xff]   ;;  %v15932_v1 = vld [vmem:[#allocation5 + $0x2bc] ss:$48 sps:$4 sm:$0xff]  }
 0x211   :  { %8593 = vmatprep.subr.bf16.mxu0 %v15871_v2  ;;  %8921 = vmatprep.subr.bf16.mxu1 %v15874_v4  ;;  %v15927_v2 = vld [vmem:[#allocation5 + $0x2b0] ss:$48 sps:$4 sm:$0xff]   ;;  %v15930_v4 = vld [vmem:[#allocation5 + $0x2b8] ss:$48 sps:$4 sm:$0xff]  }
 0x214   :  { %8594 = vmatpush1.bf16.msra.mxu0 %v15869_v6  ;;  %8922 = vmatpush1.bf16.msra.mxu1 %v15872_v7  ;;  %v15935_v6 = vld [vmem:[#allocation5 + $0x314] ss:$48 sps:$4 sm:$0xff]   ;;  %v15938_v7 = vld [vmem:[#allocation5 + $0x31c] ss:$48 sps:$4 sm:$0xff]  }
 0x215   :  { %8595 = vmatprep.subr.bf16.mxu0 %v15877_v8  ;;  %8923 = vmatprep.subr.bf16.mxu1 %v15880_v9  ;;  %v15933_v8 = vld [vmem:[#allocation5 + $0x310] ss:$48 sps:$4 sm:$0xff]   ;;  %v15936_v9 = vld [vmem:[#allocation5 + $0x318] ss:$48 sps:$4 sm:$0xff]  }
 0x218   :  { %8596 = vmatpush1.bf16.msra.mxu0 %v15875_v12  ;;  %8924 = vmatpush1.bf16.msra.mxu1 %v15878_v14  ;;  %v15939_v12 = vld [vmem:[#allocation5 + $0x370] ss:$48 sps:$4 sm:$0xff]   ;;  %v15942_v14 = vld [vmem:[#allocation5 + $0x378] ss:$48 sps:$4 sm:$0xff]  }
 0x219   :  { %14566 = vmatprep.subr.msk.bf16.mxu0 %vm8282_vm0, %v14555_v16  ;;  %14568 = vmatprep.subr.msk.bf16.mxu1 %vm8282_vm0, %v14557_v18  ;;  %v15950_v16 = vld [vmem:[#allocation5 + $0x3dc] ss:$48 sps:$4 sm:$0xff]   ;;  %v15945_v18 = vld [vmem:[#allocation5 + $0x3d0] ss:$48 sps:$4 sm:$0xff]  }
 0x21b   :  { %8598 = vmatmul.mubr.bf16.vlgmr.msra.gmra.mrb[0].mxu0 %v18155_v21  ;;  %8926 = vmatmul.mubr.bf16.vlgmr.msra.gmra.mrb[0].mxu1 %v18155_v21 }
 0x21c   :  { %8607 = vmatpush1.bf16.msra.mxu0 %v8284_v24  ;;  %8935 = vmatpush1.bf16.msra.mxu1 %v8290_v25  ;;  %v15951_v24 = vld [vmem:[#allocation5 + $0x430] ss:$48 sps:$4 sm:$0xff]   ;;  %v15954_v25 = vld [vmem:[#allocation5 + $0x438] ss:$48 sps:$4 sm:$0xff]  }
 0x21d   :  { %8638 = vmatprep.mubr.bf16.mxu0 %v18011_v28  ;;  %8966 = vmatprep.mubr.bf16.mxu1 %v18011_v28 }
 0x21e   :  { %8975 = vmatprep.subr.bf16.mxu0 %v15887_v23  ;;  %9303 = vmatprep.subr.bf16.mxu1 %v15890_v27  ;;  %v15956_v23 = vld [vmem:[#allocation5 + $0x43c] ss:$48 sps:$4 sm:$0xff]   ;;  %v15959_v27 = vld [vmem:[#allocation5 + $0x494] ss:$48 sps:$4 sm:$0xff]  }
 0x227   :  { %14567 = vmatmul.mubr.msk.bf16.vlgmr.msra.gmra.mrb[0].mxu0 %vm8278_vm1, %v18165_v30  ;;  %14569 = vmatmul.mubr.msk.bf16.vlgmr.msra.gmra.mrb[0].mxu1 %vm8278_vm1, %v18165_v30 }
 0x228   :  { %8976 = vmatpush1.bf16.msra.mxu0 %v15885_v33  ;;  %9304 = vmatpush1.bf16.msra.mxu1 %v15888_v34  ;;  %v15957_v33 = vld [vmem:[#allocation5 + $0x490] ss:$48 sps:$4 sm:$0xff]   ;;  %v15960_v34 = vld [vmem:[#allocation5 + $0x498] ss:$48 sps:$4 sm:$0xff]  }
 0x229   :  { %8977 = vmatprep.subr.bf16.mxu0 %v15893_v35  ;;  %9305 = vmatprep.subr.bf16.mxu1 %v15896_v36  ;;  %v15965_v35 = vld [vmem:[#allocation5 + $0x4f4] ss:$48 sps:$4 sm:$0xff]   ;;  %v15968_v36 = vld [vmem:[#allocation5 + $0x4fc] ss:$48 sps:$4 sm:$0xff]  }
 0x22a   :  { %9007 = vmatprep.mubr.bf16.mxu0 %v18103_v48  ;;  %9335 = vmatprep.mubr.bf16.mxu1 %v18103_v48 }
 0x22c   :  { %8978 = vmatpush1.bf16.msra.mxu0 %v15891_v37  ;;  %9306 = vmatpush1.bf16.msra.mxu1 %v15894_v39  ;;  %v15963_v37 = vld [vmem:[#allocation5 + $0x4f0] ss:$48 sps:$4 sm:$0xff]   ;;  %v15966_v39 = vld [vmem:[#allocation5 + $0x4f8] ss:$48 sps:$4 sm:$0xff]  }
 0x22d   :  { %8979 = vmatprep.subr.bf16.mxu0 %v15899_v40  ;;  %9307 = vmatprep.subr.bf16.mxu1 %v15902_v41  ;;  %v15971_v40 = vld [vmem:[#allocation5 + $0x554] ss:$48 sps:$4 sm:$0xff]   ;;  %v15974_v41 = vld [vmem:[#allocation5 + $0x55c] ss:$48 sps:$4 sm:$0xff]  }
 0x230   :  { %8980 = vmatpush1.bf16.msra.mxu0 %v15897_v42  ;;  %9308 = vmatpush1.bf16.msra.mxu1 %v15900_v43  ;;  %v15969_v42 = vld [vmem:[#allocation5 + $0x550] ss:$48 sps:$4 sm:$0xff]   ;;  %v15972_v43 = vld [vmem:[#allocation5 + $0x558] ss:$48 sps:$4 sm:$0xff]  }
 0x231   :  { %8981 = vmatprep.subr.bf16.mxu0 %v15905_v44  ;;  %9309 = vmatprep.subr.bf16.mxu1 %v15908_v45  ;;  %v15977_v44 = vld [vmem:[#allocation5 + $0x5b4] ss:$48 sps:$4 sm:$0xff]   ;;  %v15980_v45 = vld [vmem:[#allocation5 + $0x5bc] ss:$48 sps:$4 sm:$0xff]  }
 0x234   :  { %8982 = vmatpush1.bf16.msra.mxu0 %v15903_v46  ;;  %9310 = vmatpush1.bf16.msra.mxu1 %v15906_v49  ;;  %v15975_v46 = vld [vmem:[#allocation5 + $0x5b0] ss:$48 sps:$4 sm:$0xff]   ;;  %v15978_v49 = vld [vmem:[#allocation5 + $0x5b8] ss:$48 sps:$4 sm:$0xff]  }
 0x235   :  { %8983 = vmatprep.subr.bf16.mxu0 %v15911_v50  ;;  %9311 = vmatprep.subr.bf16.mxu1 %v15914_v51  ;;  %v15983_v50 = vld [vmem:[#allocation5 + $0x614] ss:$48 sps:$4 sm:$0xff]   ;;  %v15986_v51 = vld [vmem:[#allocation5 + $0x61c] ss:$48 sps:$4 sm:$0xff]  }
 0x238   :  { %8984 = vmatpush1.bf16.msra.mxu0 %v15909_v53  ;;  %9312 = vmatpush1.bf16.msra.mxu1 %v15912_v54  ;;  %v15981_v53 = vld [vmem:[#allocation5 + $0x610] ss:$48 sps:$4 sm:$0xff]   ;;  %v15984_v54 = vld [vmem:[#allocation5 + $0x618] ss:$48 sps:$4 sm:$0xff]  }
 0x239   :  { %8985 = vmatprep.subr.bf16.mxu0 %v15917_v55  ;;  %9313 = vmatprep.subr.bf16.mxu1 %v15920_v56  ;;  %v15989_v55 = vld [vmem:[#allocation5 + $0x674] ss:$48 sps:$4 sm:$0xff]   ;;  %v15992_v56 = vld [vmem:[#allocation5 + $0x67c] ss:$48 sps:$4 sm:$0xff]  }
 0x23c   :  { %8986 = vmatpush1.bf16.msra.mxu0 %v15915_v57  ;;  %9314 = vmatpush1.bf16.msra.mxu1 %v15918_v58  ;;  %v15987_v57 = vld [vmem:[#allocation5 + $0x670] ss:$48 sps:$4 sm:$0xff]   ;;  %v15990_v58 = vld [vmem:[#allocation5 + $0x678] ss:$48 sps:$4 sm:$0xff]  }
 0x23d   :  { %8987 = vmatprep.subr.bf16.mxu0 %v15923_v59  ;;  %9315 = vmatprep.subr.bf16.mxu1 %v15926_v60  ;;  %v15995_v59 = vld [vmem:[#allocation5 + $0x6d4] ss:$48 sps:$4 sm:$0xff]   ;;  %v15998_v60 = vld [vmem:[#allocation5 + $0x6dc] ss:$48 sps:$4 sm:$0xff]  }
 0x240   :  { %8988 = vmatpush1.bf16.msra.mxu0 %v15921_v61  ;;  %9316 = vmatpush1.bf16.msra.mxu1 %v15924_v63  ;;  %v15993_v61 = vld [vmem:[#allocation5 + $0x6d0] ss:$48 sps:$4 sm:$0xff]   ;;  %v15996_v63 = vld [vmem:[#allocation5 + $0x6d8] ss:$48 sps:$4 sm:$0xff]  }
 0x241   :  { %8989 = vmatprep.subr.bf16.mxu0 %v15929_v0  ;;  %9317 = vmatprep.subr.bf16.mxu1 %v15932_v1  ;;  %v16001_v0 = vld [vmem:[#allocation5 + $0x734] ss:$48 sps:$4 sm:$0xff]   ;;  %v16004_v1 = vld [vmem:[#allocation5 + $0x73c] ss:$48 sps:$4 sm:$0xff]  }
 0x244   :  { %8990 = vmatpush1.bf16.msra.mxu0 %v15927_v2  ;;  %9318 = vmatpush1.bf16.msra.mxu1 %v15930_v4  ;;  %v15999_v2 = vld [vmem:[#allocation5 + $0x730] ss:$48 sps:$4 sm:$0xff]   ;;  %v16002_v4 = vld [vmem:[#allocation5 + $0x738] ss:$48 sps:$4 sm:$0xff]  }
 0x245   :  { %8991 = vmatprep.subr.bf16.mxu0 %v15935_v6  ;;  %9319 = vmatprep.subr.bf16.mxu1 %v15938_v7  ;;  %v16007_v6 = vld [vmem:[#allocation5 + $0x794] ss:$48 sps:$4 sm:$0xff]   ;;  %v16010_v7 = vld [vmem:[#allocation5 + $0x79c] ss:$48 sps:$4 sm:$0xff]  }
 0x248   :  { %8992 = vmatpush1.bf16.msra.mxu0 %v15933_v8  ;;  %9320 = vmatpush1.bf16.msra.mxu1 %v15936_v9  ;;  %v16005_v8 = vld [vmem:[#allocation5 + $0x790] ss:$48 sps:$4 sm:$0xff]   ;;  %v16008_v9 = vld [vmem:[#allocation5 + $0x798] ss:$48 sps:$4 sm:$0xff]  }
 0x249   :  { %8993 = vmatprep.subr.bf16.mxu0 %v15941_v10  ;;  %9321 = vmatprep.subr.bf16.mxu1 %v15944_v11  ;;  %v16013_v10 = vld [vmem:[#allocation5 + $0x7f4] ss:$48 sps:$4 sm:$0xff]   ;;  %v16016_v11 = vld [vmem:[#allocation5 + $0x7fc] ss:$48 sps:$4 sm:$0xff]  }
 0x24c   :  { %8994 = vmatpush1.bf16.msra.mxu0 %v15939_v12  ;;  %9322 = vmatpush1.bf16.msra.mxu1 %v15942_v14  ;;  %v16011_v12 = vld [vmem:[#allocation5 + $0x7f0] ss:$48 sps:$4 sm:$0xff]   ;;  %v16014_v14 = vld [vmem:[#allocation5 + $0x7f8] ss:$48 sps:$4 sm:$0xff]  }
 0x24d   :  { %8995 = vmatprep.subr.bf16.mxu0 %v15947_v15  ;;  %9323 = vmatprep.subr.bf16.mxu1 %v15950_v16  ;;  %v16019_v15 = vld [vmem:[#allocation5 + $0x854] ss:$48 sps:$4 sm:$0xff]   ;;  %v16022_v16 = vld [vmem:[#allocation5 + $0x85c] ss:$48 sps:$4 sm:$0xff]  }
 0x250   :  { %8996 = vmatpush1.bf16.msra.mxu0 %v15945_v18  ;;  %9324 = vmatpush1.bf16.msra.mxu1 %v15948_v19  ;;  %v16017_v18 = vld [vmem:[#allocation5 + $0x850] ss:$48 sps:$4 sm:$0xff]   ;;  %v16020_v19 = vld [vmem:[#allocation5 + $0x858] ss:$48 sps:$4 sm:$0xff]  }
 0x251   :  { %8997 = vmatprep.subr.bf16.mxu0 %v15953_v20  ;;  %9325 = vmatprep.subr.bf16.mxu1 %v15956_v23  ;;  %v16025_v20 = vld [vmem:[#allocation5 + $0x8b4] ss:$48 sps:$4 sm:$0xff]   ;;  %v16028_v23 = vld [vmem:[#allocation5 + $0x8bc] ss:$48 sps:$4 sm:$0xff]  }
 0x254   :  { %8998 = vmatpush1.bf16.msra.mxu0 %v15951_v24  ;;  %9326 = vmatpush1.bf16.msra.mxu1 %v15954_v25  ;;  %v16023_v24 = vld [vmem:[#allocation5 + $0x8b0] ss:$48 sps:$4 sm:$0xff]   ;;  %v16026_v25 = vld [vmem:[#allocation5 + $0x8b8] ss:$48 sps:$4 sm:$0xff]  }
 0x255   :  { %8999 = vmatprep.subr.bf16.mxu0 %v15959_v27  ;;  %9327 = vmatprep.subr.bf16.mxu1 %v15962_v29  ;;  %v16031_v27 = vld [vmem:[#allocation5 + $0x914] ss:$48 sps:$4 sm:$0xff]   ;;  %v16034_v29 = vld [vmem:[#allocation5 + $0x91c] ss:$48 sps:$4 sm:$0xff]  }
 0x258   :  { %9000 = vmatpush1.bf16.msra.mxu0 %v15957_v33  ;;  %9328 = vmatpush1.bf16.msra.mxu1 %v15960_v34  ;;  %v16029_v33 = vld [vmem:[#allocation5 + $0x910] ss:$48 sps:$4 sm:$0xff]   ;;  %v16032_v34 = vld [vmem:[#allocation5 + $0x918] ss:$48 sps:$4 sm:$0xff]  }
 0x259   :  { %9001 = vmatprep.subr.bf16.mxu0 %v15965_v35  ;;  %9329 = vmatprep.subr.bf16.mxu1 %v15968_v36  ;;  %v16037_v35 = vld [vmem:[#allocation5 + $0x974] ss:$48 sps:$4 sm:$0xff]   ;;  %v16040_v36 = vld [vmem:[#allocation5 + $0x97c] ss:$48 sps:$4 sm:$0xff]  }
 0x25c   :  { %9002 = vmatpush1.bf16.msra.mxu0 %v15963_v37  ;;  %9330 = vmatpush1.bf16.msra.mxu1 %v15966_v39  ;;  %v16035_v37 = vld [vmem:[#allocation5 + $0x970] ss:$48 sps:$4 sm:$0xff]   ;;  %v16038_v39 = vld [vmem:[#allocation5 + $0x978] ss:$48 sps:$4 sm:$0xff]  }
 0x25d   :  { %9003 = vmatprep.subr.bf16.mxu0 %v15971_v40  ;;  %9331 = vmatprep.subr.bf16.mxu1 %v15974_v41  ;;  %v16043_v40 = vld [vmem:[#allocation5 + $0x9d4] ss:$48 sps:$4 sm:$0xff]   ;;  %v16046_v41 = vld [vmem:[#allocation5 + $0x9dc] ss:$48 sps:$4 sm:$0xff]  }
 0x260   :  { %9004 = vmatpush1.bf16.msra.mxu0 %v15969_v42  ;;  %9332 = vmatpush1.bf16.msra.mxu1 %v15972_v43  ;;  %v16041_v42 = vld [vmem:[#allocation5 + $0x9d0] ss:$48 sps:$4 sm:$0xff]   ;;  %v16044_v43 = vld [vmem:[#allocation5 + $0x9d8] ss:$48 sps:$4 sm:$0xff]  }
 0x261   :  { %9005 = vmatprep.subr.bf16.mxu0 %v15977_v44  ;;  %9333 = vmatprep.subr.bf16.mxu1 %v15980_v45  ;;  %v16049_v44 = vld [vmem:[#allocation5 + $0xa34] ss:$48 sps:$4 sm:$0xff]   ;;  %v16052_v45 = vld [vmem:[#allocation5 + $0xa3c] ss:$48 sps:$4 sm:$0xff]  }
 0x264   :  { %9006 = vmatpush1.bf16.msra.mxu0 %v15975_v46  ;;  %9334 = vmatpush1.bf16.msra.mxu1 %v15978_v49  ;;  %v16047_v46 = vld [vmem:[#allocation5 + $0xa30] ss:$48 sps:$4 sm:$0xff]   ;;  %v16050_v49 = vld [vmem:[#allocation5 + $0xa38] ss:$48 sps:$4 sm:$0xff]  }
 0x265   :  { %9016 = vmatprep.subr.bf16.mxu0 %v15983_v50  ;;  %9344 = vmatprep.subr.bf16.mxu1 %v15986_v51  ;;  %v16055_v50 = vld [vmem:[#allocation5 + $0xa94] ss:$48 sps:$4 sm:$0xff]   ;;  %v16058_v51 = vld [vmem:[#allocation5 + $0xa9c] ss:$48 sps:$4 sm:$0xff]  }
 0x267   :  { %9008 = vmatmul.mubr.bf16.vlgmr.msra.gmra.mrb[4].mxu0 %v18107_v5  ;;  %9336 = vmatmul.mubr.bf16.vlgmr.msra.gmra.mrb[4].mxu1 %v18107_v5 }
 0x268   :  { %9017 = vmatpush1.bf16.msra.mxu0 %v15981_v53  ;;  %9345 = vmatpush1.bf16.msra.mxu1 %v15984_v54  ;;  %v16053_v53 = vld [vmem:[#allocation5 + $0xa90] ss:$48 sps:$4 sm:$0xff]   ;;  %v16056_v54 = vld [vmem:[#allocation5 + $0xa98] ss:$48 sps:$4 sm:$0xff]  }
 0x269   :  { %9018 = vmatprep.subr.bf16.mxu0 %v15989_v55  ;;  %9346 = vmatprep.subr.bf16.mxu1 %v15992_v56  ;;  %v16061_v55 = vld [vmem:[#allocation5 + $0xaf4] ss:$48 sps:$4 sm:$0xff]   ;;  %v16064_v56 = vld [vmem:[#allocation5 + $0xafc] ss:$48 sps:$4 sm:$0xff]  }
 0x26a   :  { %9048 = vmatprep.mubr.bf16.mxu0 %v18111_v32  ;;  %9376 = vmatprep.mubr.bf16.mxu1 %v18111_v32 }
 0x26c   :  { %9019 = vmatpush1.bf16.msra.mxu0 %v15987_v57  ;;  %9347 = vmatpush1.bf16.msra.mxu1 %v15990_v58  ;;  %v16059_v57 = vld [vmem:[#allocation5 + $0xaf0] ss:$48 sps:$4 sm:$0xff]   ;;  %v16062_v58 = vld [vmem:[#allocation5 + $0xaf8] ss:$48 sps:$4 sm:$0xff]  }
 0x26d   :  { %9020 = vmatprep.subr.bf16.mxu0 %v15995_v59  ;;  %9348 = vmatprep.subr.bf16.mxu1 %v15998_v60  ;;  %v16067_v59 = vld [vmem:[#allocation5 + $0xb54] ss:$48 sps:$4 sm:$0xff]   ;;  %v16070_v60 = vld [vmem:[#allocation5 + $0xb5c] ss:$48 sps:$4 sm:$0xff]  }
 0x270   :  { %9021 = vmatpush1.bf16.msra.mxu0 %v15993_v61  ;;  %9349 = vmatpush1.bf16.msra.mxu1 %v15996_v63  ;;  %v16065_v61 = vld [vmem:[#allocation5 + $0xb50] ss:$48 sps:$4 sm:$0xff]   ;;  %v16068_v63 = vld [vmem:[#allocation5 + $0xb58] ss:$48 sps:$4 sm:$0xff]  }
 0x271   :  { %9022 = vmatprep.subr.bf16.mxu0 %v16001_v0  ;;  %9350 = vmatprep.subr.bf16.mxu1 %v16004_v1  ;;  %v16073_v0 = vld [vmem:[#allocation5 + $0xbb4] ss:$48 sps:$4 sm:$0xff]   ;;  %v16076_v1 = vld [vmem:[#allocation5 + $0xbbc] ss:$48 sps:$4 sm:$0xff]  }
 0x274   :  { %9023 = vmatpush1.bf16.msra.mxu0 %v15999_v2  ;;  %9351 = vmatpush1.bf16.msra.mxu1 %v16002_v4  ;;  %v16071_v2 = vld [vmem:[#allocation5 + $0xbb0] ss:$48 sps:$4 sm:$0xff]   ;;  %v16074_v4 = vld [vmem:[#allocation5 + $0xbb8] ss:$48 sps:$4 sm:$0xff]  }
 0x275   :  { %9024 = vmatprep.subr.bf16.mxu0 %v16007_v6  ;;  %9352 = vmatprep.subr.bf16.mxu1 %v16010_v7  ;;  %v16079_v6 = vld [vmem:[#allocation5 + $0xc14] ss:$48 sps:$4 sm:$0xff]   ;;  %v16082_v7 = vld [vmem:[#allocation5 + $0xc1c] ss:$48 sps:$4 sm:$0xff]  }
 0x278   :  { %9025 = vmatpush1.bf16.msra.mxu0 %v16005_v8  ;;  %9353 = vmatpush1.bf16.msra.mxu1 %v16008_v9  ;;  %v16077_v8 = vld [vmem:[#allocation5 + $0xc10] ss:$48 sps:$4 sm:$0xff]   ;;  %v16080_v9 = vld [vmem:[#allocation5 + $0xc18] ss:$48 sps:$4 sm:$0xff]  }
 0x279   :  { %9026 = vmatprep.subr.bf16.mxu0 %v16013_v10  ;;  %9354 = vmatprep.subr.bf16.mxu1 %v16016_v11  ;;  %v16085_v10 = vld [vmem:[#allocation5 + $0xc74] ss:$48 sps:$4 sm:$0xff]   ;;  %v16088_v11 = vld [vmem:[#allocation5 + $0xc7c] ss:$48 sps:$4 sm:$0xff]  }
 0x27c   :  { %9027 = vmatpush1.bf16.msra.mxu0 %v16011_v12  ;;  %9355 = vmatpush1.bf16.msra.mxu1 %v16014_v14  ;;  %v16083_v12 = vld [vmem:[#allocation5 + $0xc70] ss:$48 sps:$4 sm:$0xff]   ;;  %v16086_v14 = vld [vmem:[#allocation5 + $0xc78] ss:$48 sps:$4 sm:$0xff]  }
 0x27d   :  { %9028 = vmatprep.subr.bf16.mxu0 %v16019_v15  ;;  %9356 = vmatprep.subr.bf16.mxu1 %v16022_v16  ;;  %v16091_v15 = vld [vmem:[#allocation5 + $0xcd4] ss:$48 sps:$4 sm:$0xff]   ;;  %v16094_v16 = vld [vmem:[#allocation5 + $0xcdc] ss:$48 sps:$4 sm:$0xff]  }
 0x280   :  { %9029 = vmatpush1.bf16.msra.mxu0 %v16017_v18  ;;  %9357 = vmatpush1.bf16.msra.mxu1 %v16020_v19  ;;  %v16089_v18 = vld [vmem:[#allocation5 + $0xcd0] ss:$48 sps:$4 sm:$0xff]   ;;  %v16092_v19 = vld [vmem:[#allocation5 + $0xcd8] ss:$48 sps:$4 sm:$0xff]  }
 0x281   :  { %9030 = vmatprep.subr.bf16.mxu0 %v16025_v20  ;;  %9358 = vmatprep.subr.bf16.mxu1 %v16028_v23  ;;  %v16097_v20 = vld [vmem:[#allocation5 + $0xd34] ss:$48 sps:$4 sm:$0xff]   ;;  %v16100_v23 = vld [vmem:[#allocation5 + $0xd3c] ss:$48 sps:$4 sm:$0xff]  }
 0x284   :  { %9031 = vmatpush1.bf16.msra.mxu0 %v16023_v24  ;;  %9359 = vmatpush1.bf16.msra.mxu1 %v16026_v25  ;;  %v16095_v24 = vld [vmem:[#allocation5 + $0xd30] ss:$48 sps:$4 sm:$0xff]   ;;  %v16098_v25 = vld [vmem:[#allocation5 + $0xd38] ss:$48 sps:$4 sm:$0xff]  }
 0x285   :  { %9032 = vmatprep.subr.bf16.mxu0 %v16031_v27  ;;  %9360 = vmatprep.subr.bf16.mxu1 %v16034_v29  ;;  %v16103_v27 = vld [vmem:[#allocation5 + $0xd94] ss:$48 sps:$4 sm:$0xff]   ;;  %v16106_v29 = vld [vmem:[#allocation5 + $0xd9c] ss:$48 sps:$4 sm:$0xff]  }
 0x288   :  { %9033 = vmatpush1.bf16.msra.mxu0 %v16029_v33  ;;  %9361 = vmatpush1.bf16.msra.mxu1 %v16032_v34  ;;  %v16101_v33 = vld [vmem:[#allocation5 + $0xd90] ss:$48 sps:$4 sm:$0xff]   ;;  %v16104_v34 = vld [vmem:[#allocation5 + $0xd98] ss:$48 sps:$4 sm:$0xff]  }
 0x289   :  { %9034 = vmatprep.subr.bf16.mxu0 %v16037_v35  ;;  %9362 = vmatprep.subr.bf16.mxu1 %v16040_v36  ;;  %v16109_v35 = vld [vmem:[#allocation5 + $0xdf4] ss:$48 sps:$4 sm:$0xff]   ;;  %v16112_v36 = vld [vmem:[#allocation5 + $0xdfc] ss:$48 sps:$4 sm:$0xff]  }
 0x28c   :  { %9035 = vmatpush1.bf16.msra.mxu0 %v16035_v37  ;;  %9363 = vmatpush1.bf16.msra.mxu1 %v16038_v39  ;;  %v16107_v37 = vld [vmem:[#allocation5 + $0xdf0] ss:$48 sps:$4 sm:$0xff]   ;;  %v16110_v39 = vld [vmem:[#allocation5 + $0xdf8] ss:$48 sps:$4 sm:$0xff]  }
 0x28d   :  { %9036 = vmatprep.subr.bf16.mxu0 %v16043_v40  ;;  %9364 = vmatprep.subr.bf16.mxu1 %v16046_v41  ;;  %v16115_v40 = vld [vmem:[#allocation5 + $0xe54] ss:$48 sps:$4 sm:$0xff]   ;;  %v16118_v41 = vld [vmem:[#allocation5 + $0xe5c] ss:$48 sps:$4 sm:$0xff]  }
 0x290   :  { %9037 = vmatpush1.bf16.msra.mxu0 %v16041_v42  ;;  %9365 = vmatpush1.bf16.msra.mxu1 %v16044_v43  ;;  %v16113_v42 = vld [vmem:[#allocation5 + $0xe50] ss:$48 sps:$4 sm:$0xff]   ;;  %v16116_v43 = vld [vmem:[#allocation5 + $0xe58] ss:$48 sps:$4 sm:$0xff]  }
 0x291   :  { %9038 = vmatprep.subr.bf16.mxu0 %v16049_v44  ;;  %9366 = vmatprep.subr.bf16.mxu1 %v16052_v45  ;;  %v16121_v44 = vld [vmem:[#allocation5 + $0xeb4] ss:$48 sps:$4 sm:$0xff]   ;;  %v16124_v45 = vld [vmem:[#allocation5 + $0xebc] ss:$48 sps:$4 sm:$0xff]  }
 0x294   :  { %9039 = vmatpush1.bf16.msra.mxu0 %v16047_v46  ;;  %9367 = vmatpush1.bf16.msra.mxu1 %v16050_v49  ;;  %v16119_v46 = vld [vmem:[#allocation5 + $0xeb0] ss:$48 sps:$4 sm:$0xff]   ;;  %v16122_v49 = vld [vmem:[#allocation5 + $0xeb8] ss:$48 sps:$4 sm:$0xff]  }
 0x295   :  { %9040 = vmatprep.subr.bf16.mxu0 %v16055_v50  ;;  %9368 = vmatprep.subr.bf16.mxu1 %v16058_v51  ;;  %v16127_v50 = vld [vmem:[#allocation5 + $0xf14] ss:$48 sps:$4 sm:$0xff]   ;;  %v16130_v51 = vld [vmem:[#allocation5 + $0xf1c] ss:$48 sps:$4 sm:$0xff]  }
 0x298   :  { %9041 = vmatpush1.bf16.msra.mxu0 %v16053_v53  ;;  %9369 = vmatpush1.bf16.msra.mxu1 %v16056_v54  ;;  %v16125_v53 = vld [vmem:[#allocation5 + $0xf10] ss:$48 sps:$4 sm:$0xff]   ;;  %v16128_v54 = vld [vmem:[#allocation5 + $0xf18] ss:$48 sps:$4 sm:$0xff]  }
 0x299   :  { %9042 = vmatprep.subr.bf16.mxu0 %v16061_v55  ;;  %9370 = vmatprep.subr.bf16.mxu1 %v16064_v56  ;;  %v16133_v55 = vld [vmem:[#allocation5 + $0xf74] ss:$48 sps:$4 sm:$0xff]   ;;  %v16136_v56 = vld [vmem:[#allocation5 + $0xf7c] ss:$48 sps:$4 sm:$0xff]  }
 0x29c   :  { %9043 = vmatpush1.bf16.msra.mxu0 %v16059_v57  ;;  %9371 = vmatpush1.bf16.msra.mxu1 %v16062_v58  ;;  %v16131_v57 = vld [vmem:[#allocation5 + $0xf70] ss:$48 sps:$4 sm:$0xff]   ;;  %v16134_v58 = vld [vmem:[#allocation5 + $0xf78] ss:$48 sps:$4 sm:$0xff]  }
 0x29d   :  { %9044 = vmatprep.subr.bf16.mxu0 %v16067_v59  ;;  %9372 = vmatprep.subr.bf16.mxu1 %v16070_v60  ;;  %v16139_v59 = vld [vmem:[#allocation5 + $0xfd4] ss:$48 sps:$4 sm:$0xff]   ;;  %v16142_v60 = vld [vmem:[#allocation5 + $0xfdc] ss:$48 sps:$4 sm:$0xff]  }
 0x2a0   :  { %9045 = vmatpush1.bf16.msra.mxu0 %v16065_v61  ;;  %9373 = vmatpush1.bf16.msra.mxu1 %v16068_v63  ;;  %v16137_v61 = vld [vmem:[#allocation5 + $0xfd0] ss:$48 sps:$4 sm:$0xff]   ;;  %v16140_v63 = vld [vmem:[#allocation5 + $0xfd8] ss:$48 sps:$4 sm:$0xff]  }
 0x2a1   :  { %9046 = vmatprep.subr.bf16.mxu0 %v16073_v0  ;;  %9374 = vmatprep.subr.bf16.mxu1 %v16076_v1  ;;  %v16145_v0 = vld [vmem:[#allocation5 + $0x1034] ss:$48 sps:$4 sm:$0xff]   ;;  %v16148_v1 = vld [vmem:[#allocation5 + $0x103c] ss:$48 sps:$4 sm:$0xff]  }
 0x2a4   :  { %9047 = vmatpush1.bf16.msra.mxu0 %v16071_v2  ;;  %9375 = vmatpush1.bf16.msra.mxu1 %v16074_v4  ;;  %v16143_v2 = vld [vmem:[#allocation5 + $0x1030] ss:$48 sps:$4 sm:$0xff]   ;;  %v16146_v4 = vld [vmem:[#allocation5 + $0x1038] ss:$48 sps:$4 sm:$0xff]  }
 0x2a5   :  { %9057 = vmatprep.subr.bf16.mxu0 %v16079_v6  ;;  %9385 = vmatprep.subr.bf16.mxu1 %v16082_v7  ;;  %v16151_v6 = vld [vmem:[#allocation5 + $0x1094] ss:$48 sps:$4 sm:$0xff]   ;;  %v16154_v7 = vld [vmem:[#allocation5 + $0x109c] ss:$48 sps:$4 sm:$0xff]  }
 0x2a7   :  { %9049 = vmatmul.mubr.bf16.vlgmr.msra.gmra.mrb[4].mxu0 %v18115_v13  ;;  %9377 = vmatmul.mubr.bf16.vlgmr.msra.gmra.mrb[4].mxu1 %v18115_v13 }
 0x2a8   :  { %9058 = vmatpush1.bf16.msra.mxu0 %v16077_v8  ;;  %9386 = vmatpush1.bf16.msra.mxu1 %v16080_v9  ;;  %v16149_v8 = vld [vmem:[#allocation5 + $0x1090] ss:$48 sps:$4 sm:$0xff]   ;;  %v16152_v9 = vld [vmem:[#allocation5 + $0x1098] ss:$48 sps:$4 sm:$0xff]  }
 0x2a9   :  { %9059 = vmatprep.subr.bf16.mxu0 %v16085_v10  ;;  %9387 = vmatprep.subr.bf16.mxu1 %v16088_v11  ;;  %v16157_v10 = vld [vmem:[#allocation5 + $0x10f4] ss:$48 sps:$4 sm:$0xff]   ;;  %v16160_v11 = vld [vmem:[#allocation5 + $0x10fc] ss:$48 sps:$4 sm:$0xff]  }
 0x2aa   :  { %9089 = vmatprep.mubr.bf16.mxu0 %v18117_v17  ;;  %9417 = vmatprep.mubr.bf16.mxu1 %v18117_v17 }
 0x2ac   :  { %9060 = vmatpush1.bf16.msra.mxu0 %v16083_v12  ;;  %9388 = vmatpush1.bf16.msra.mxu1 %v16086_v14  ;;  %v16155_v12 = vld [vmem:[#allocation5 + $0x10f0] ss:$48 sps:$4 sm:$0xff]   ;;  %v16158_v14 = vld [vmem:[#allocation5 + $0x10f8] ss:$48 sps:$4 sm:$0xff]  }
 0x2ad   :  { %9061 = vmatprep.subr.bf16.mxu0 %v16091_v15  ;;  %9389 = vmatprep.subr.bf16.mxu1 %v16094_v16  ;;  %v16163_v15 = vld [vmem:[#allocation5 + $0x1154] ss:$48 sps:$4 sm:$0xff]   ;;  %v16166_v16 = vld [vmem:[#allocation5 + $0x115c] ss:$48 sps:$4 sm:$0xff]  }
 0x2b0   :  { %9062 = vmatpush1.bf16.msra.mxu0 %v16089_v18  ;;  %9390 = vmatpush1.bf16.msra.mxu1 %v16092_v19  ;;  %v16161_v18 = vld [vmem:[#allocation5 + $0x1150] ss:$48 sps:$4 sm:$0xff]   ;;  %v16164_v19 = vld [vmem:[#allocation5 + $0x1158] ss:$48 sps:$4 sm:$0xff]  }
 0x2b1   :  { %9063 = vmatprep.subr.bf16.mxu0 %v16097_v20  ;;  %9391 = vmatprep.subr.bf16.mxu1 %v16100_v23  ;;  %v16169_v20 = vld [vmem:[#allocation5 + $0x11b4] ss:$48 sps:$4 sm:$0xff]   ;;  %v16172_v23 = vld [vmem:[#allocation5 + $0x11bc] ss:$48 sps:$4 sm:$0xff]  }
 0x2b4   :  { %9064 = vmatpush1.bf16.msra.mxu0 %v16095_v24  ;;  %9392 = vmatpush1.bf16.msra.mxu1 %v16098_v25  ;;  %v16167_v24 = vld [vmem:[#allocation5 + $0x11b0] ss:$48 sps:$4 sm:$0xff]   ;;  %v16170_v25 = vld [vmem:[#allocation5 + $0x11b8] ss:$48 sps:$4 sm:$0xff]  }
 0x2b5   :  { %9065 = vmatprep.subr.bf16.mxu0 %v16103_v27  ;;  %9393 = vmatprep.subr.bf16.mxu1 %v16106_v29  ;;  %v16175_v27 = vld [vmem:[#allocation5 + $0x1214] ss:$48 sps:$4 sm:$0xff]   ;;  %v16178_v29 = vld [vmem:[#allocation5 + $0x121c] ss:$48 sps:$4 sm:$0xff]  }
 0x2b8   :  { %9066 = vmatpush1.bf16.msra.mxu0 %v16101_v33  ;;  %9394 = vmatpush1.bf16.msra.mxu1 %v16104_v34  ;;  %v16173_v33 = vld [vmem:[#allocation5 + $0x1210] ss:$48 sps:$4 sm:$0xff]   ;;  %v16176_v34 = vld [vmem:[#allocation5 + $0x1218] ss:$48 sps:$4 sm:$0xff]  }
 0x2b9   :  { %9067 = vmatprep.subr.bf16.mxu0 %v16109_v35  ;;  %9395 = vmatprep.subr.bf16.mxu1 %v16112_v36  ;;  %v16181_v35 = vld [vmem:[#allocation5 + $0x1274] ss:$48 sps:$4 sm:$0xff]   ;;  %v16184_v36 = vld [vmem:[#allocation5 + $0x127c] ss:$48 sps:$4 sm:$0xff]  }
 0x2bc   :  { %9068 = vmatpush1.bf16.msra.mxu0 %v16107_v37  ;;  %9396 = vmatpush1.bf16.msra.mxu1 %v16110_v39  ;;  %v16179_v37 = vld [vmem:[#allocation5 + $0x1270] ss:$48 sps:$4 sm:$0xff]   ;;  %v16182_v39 = vld [vmem:[#allocation5 + $0x1278] ss:$48 sps:$4 sm:$0xff]  }
 0x2bd   :  { %9069 = vmatprep.subr.bf16.mxu0 %v16115_v40  ;;  %9397 = vmatprep.subr.bf16.mxu1 %v16118_v41  ;;  %v16187_v40 = vld [vmem:[#allocation5 + $0x12d4] ss:$48 sps:$4 sm:$0xff]   ;;  %v16190_v41 = vld [vmem:[#allocation5 + $0x12dc] ss:$48 sps:$4 sm:$0xff]  }
 0x2c0   :  { %9070 = vmatpush1.bf16.msra.mxu0 %v16113_v42  ;;  %9398 = vmatpush1.bf16.msra.mxu1 %v16116_v43  ;;  %v16185_v42 = vld [vmem:[#allocation5 + $0x12d0] ss:$48 sps:$4 sm:$0xff]   ;;  %v16188_v43 = vld [vmem:[#allocation5 + $0x12d8] ss:$48 sps:$4 sm:$0xff]  }
 0x2c1   :  { %9071 = vmatprep.subr.bf16.mxu0 %v16121_v44  ;;  %9399 = vmatprep.subr.bf16.mxu1 %v16124_v45  ;;  %v16193_v44 = vld [vmem:[#allocation5 + $0x1334] ss:$48 sps:$4 sm:$0xff]   ;;  %v16196_v45 = vld [vmem:[#allocation5 + $0x133c] ss:$48 sps:$4 sm:$0xff]  }
 0x2c4   :  { %9072 = vmatpush1.bf16.msra.mxu0 %v16119_v46  ;;  %9400 = vmatpush1.bf16.msra.mxu1 %v16122_v49  ;;  %v16191_v46 = vld [vmem:[#allocation5 + $0x1330] ss:$48 sps:$4 sm:$0xff]   ;;  %v16194_v49 = vld [vmem:[#allocation5 + $0x1338] ss:$48 sps:$4 sm:$0xff]  }
 0x2c5   :  { %9073 = vmatprep.subr.bf16.mxu0 %v16127_v50  ;;  %9401 = vmatprep.subr.bf16.mxu1 %v16130_v51  ;;  %v16199_v50 = vld [vmem:[#allocation5 + $0x1394] ss:$48 sps:$4 sm:$0xff]   ;;  %v16202_v51 = vld [vmem:[#allocation5 + $0x139c] ss:$48 sps:$4 sm:$0xff]  }
 0x2c8   :  { %9074 = vmatpush1.bf16.msra.mxu0 %v16125_v53  ;;  %9402 = vmatpush1.bf16.msra.mxu1 %v16128_v54  ;;  %v16197_v53 = vld [vmem:[#allocation5 + $0x1390] ss:$48 sps:$4 sm:$0xff]   ;;  %v16200_v54 = vld [vmem:[#allocation5 + $0x1398] ss:$48 sps:$4 sm:$0xff]  }
 0x2c9   :  { %9075 = vmatprep.subr.bf16.mxu0 %v16133_v55  ;;  %9403 = vmatprep.subr.bf16.mxu1 %v16136_v56  ;;  %v16205_v55 = vld [vmem:[#allocation5 + $0x13f4] ss:$48 sps:$4 sm:$0xff]   ;;  %v16208_v56 = vld [vmem:[#allocation5 + $0x13fc] ss:$48 sps:$4 sm:$0xff]  }
 0x2cc   :  { %9076 = vmatpush1.bf16.msra.mxu0 %v16131_v57  ;;  %9404 = vmatpush1.bf16.msra.mxu1 %v16134_v58  ;;  %v16203_v57 = vld [vmem:[#allocation5 + $0x13f0] ss:$48 sps:$4 sm:$0xff]   ;;  %v16206_v58 = vld [vmem:[#allocation5 + $0x13f8] ss:$48 sps:$4 sm:$0xff]  }
 0x2cd   :  { %9077 = vmatprep.subr.bf16.mxu0 %v16139_v59  ;;  %9405 = vmatprep.subr.bf16.mxu1 %v16142_v60  ;;  %v16211_v59 = vld [vmem:[#allocation5 + $0x1454] ss:$48 sps:$4 sm:$0xff]   ;;  %v16214_v60 = vld [vmem:[#allocation5 + $0x145c] ss:$48 sps:$4 sm:$0xff]  }
 0x2d0   :  { %9078 = vmatpush1.bf16.msra.mxu0 %v16137_v61  ;;  %9406 = vmatpush1.bf16.msra.mxu1 %v16140_v63 }
 0x2d1   :  { %9079 = vmatprep.subr.bf16.mxu0 %v16145_v0  ;;  %9407 = vmatprep.subr.bf16.mxu1 %v16148_v1 }
 0x2d4   :  { %9080 = vmatpush1.bf16.msra.mxu0 %v16143_v2  ;;  %9408 = vmatpush1.bf16.msra.mxu1 %v16146_v4 }
 0x2d5   :  { %9081 = vmatprep.subr.bf16.mxu0 %v16151_v6  ;;  %9409 = vmatprep.subr.bf16.mxu1 %v16154_v7  ;;  %v16209_v6 = vld [vmem:[#allocation5 + $0x1450] ss:$48 sps:$4 sm:$0xff]   ;;  %v16212_v7 = vld [vmem:[#allocation5 + $0x1458] ss:$48 sps:$4 sm:$0xff]  }
 0x2d8   :  { %9082 = vmatpush1.bf16.msra.mxu0 %v16149_v8  ;;  %9410 = vmatpush1.bf16.msra.mxu1 %v16152_v9 }
 0x2d9   :  { %9083 = vmatprep.subr.bf16.mxu0 %v16157_v10  ;;  %9411 = vmatprep.subr.bf16.mxu1 %v16160_v11  ;;  %v16217_v10 = vld [vmem:[#allocation5 + $0x14b4] ss:$48 sps:$4 sm:$0xff]   ;;  %v16220_v11 = vld [vmem:[#allocation5 + $0x14bc] ss:$48 sps:$4 sm:$0xff]  }
 0x2dc   :  { %9084 = vmatpush1.bf16.msra.mxu0 %v16155_v12  ;;  %9412 = vmatpush1.bf16.msra.mxu1 %v16158_v14  ;;  %v16215_v12 = vld [vmem:[#allocation5 + $0x14b0] ss:$48 sps:$4 sm:$0xff]   ;;  %v16218_v14 = vld [vmem:[#allocation5 + $0x14b8] ss:$48 sps:$4 sm:$0xff]  }
 0x2dd   :  { %9085 = vmatprep.subr.bf16.mxu0 %v16163_v15  ;;  %9413 = vmatprep.subr.bf16.mxu1 %v16166_v16  ;;  %v16223_v15 = vld [vmem:[#allocation5 + $0x1514] ss:$48 sps:$4 sm:$0xff]   ;;  %v16226_v16 = vld [vmem:[#allocation5 + $0x151c] ss:$48 sps:$4 sm:$0xff]  }
 0x2e0   :  { %9086 = vmatpush1.bf16.msra.mxu0 %v16161_v18  ;;  %9414 = vmatpush1.bf16.msra.mxu1 %v16164_v19  ;;  %v16221_v18 = vld [vmem:[#allocation5 + $0x1510] ss:$48 sps:$4 sm:$0xff]   ;;  %v16224_v19 = vld [vmem:[#allocation5 + $0x1518] ss:$48 sps:$4 sm:$0xff]  }
 0x2e1   :  { %9087 = vmatprep.subr.bf16.mxu0 %v16169_v20  ;;  %9415 = vmatprep.subr.bf16.mxu1 %v16172_v23  ;;  %v16229_v20 = vld [vmem:[#allocation5 + $0x1574] ss:$48 sps:$4 sm:$0xff]   ;;  %v16232_v23 = vld [vmem:[#allocation5 + $0x157c] ss:$48 sps:$4 sm:$0xff]  }
 0x2e4   :  { %9088 = vmatpush1.bf16.msra.mxu0 %v16167_v24  ;;  %9416 = vmatpush1.bf16.msra.mxu1 %v16170_v25  ;;  %v16227_v24 = vld [vmem:[#allocation5 + $0x1570] ss:$48 sps:$4 sm:$0xff]   ;;  %v16230_v25 = vld [vmem:[#allocation5 + $0x1578] ss:$48 sps:$4 sm:$0xff]  }
 0x2e5   :  { %9098 = vmatprep.subr.bf16.mxu0 %v16175_v27  ;;  %9426 = vmatprep.subr.bf16.mxu1 %v16178_v29  ;;  %v16235_v27 = vld [vmem:[#allocation5 + $0x15d4] ss:$48 sps:$4 sm:$0xff]   ;;  %v16238_v29 = vld [vmem:[#allocation5 + $0x15dc] ss:$48 sps:$4 sm:$0xff]  }
 0x2e7   :  { %9090 = vmatmul.mubr.bf16.vlgmr.msra.gmra.mrb[4].mxu0 %v18123_v22  ;;  %9418 = vmatmul.mubr.bf16.vlgmr.msra.gmra.mrb[4].mxu1 %v18123_v22 }
 0x2e8   :  { %9099 = vmatpush1.bf16.msra.mxu0 %v16173_v33  ;;  %9427 = vmatpush1.bf16.msra.mxu1 %v16176_v34  ;;  %v16233_v33 = vld [vmem:[#allocation5 + $0x15d0] ss:$48 sps:$4 sm:$0xff]   ;;  %v16236_v34 = vld [vmem:[#allocation5 + $0x15d8] ss:$48 sps:$4 sm:$0xff]  }
 0x2e9   :  { %9100 = vmatprep.subr.bf16.mxu0 %v16181_v35  ;;  %9428 = vmatprep.subr.bf16.mxu1 %v16184_v36  ;;  %v16241_v35 = vld [vmem:[#allocation5 + $0x1634] ss:$48 sps:$4 sm:$0xff]   ;;  %v16244_v36 = vld [vmem:[#allocation5 + $0x163c] ss:$48 sps:$4 sm:$0xff]  }
 0x2ea   :  { %9130 = vmatprep.mubr.bf16.mxu0 %v18125_v26  ;;  %9458 = vmatprep.mubr.bf16.mxu1 %v18125_v26 }
 0x2ec   :  { %9101 = vmatpush1.bf16.msra.mxu0 %v16179_v37  ;;  %9429 = vmatpush1.bf16.msra.mxu1 %v16182_v39  ;;  %v16239_v37 = vld [vmem:[#allocation5 + $0x1630] ss:$48 sps:$4 sm:$0xff]   ;;  %v16242_v39 = vld [vmem:[#allocation5 + $0x1638] ss:$48 sps:$4 sm:$0xff]  }
 0x2ed   :  { %9102 = vmatprep.subr.bf16.mxu0 %v16187_v40  ;;  %9430 = vmatprep.subr.bf16.mxu1 %v16190_v41  ;;  %v16247_v40 = vld [vmem:[#allocation5 + $0x1694] ss:$48 sps:$4 sm:$0xff]   ;;  %v16250_v41 = vld [vmem:[#allocation5 + $0x169c] ss:$48 sps:$4 sm:$0xff]  }
 0x2f0   :  { %9103 = vmatpush1.bf16.msra.mxu0 %v16185_v42  ;;  %9431 = vmatpush1.bf16.msra.mxu1 %v16188_v43  ;;  %v16245_v42 = vld [vmem:[#allocation5 + $0x1690] ss:$48 sps:$4 sm:$0xff]   ;;  %v16248_v43 = vld [vmem:[#allocation5 + $0x1698] ss:$48 sps:$4 sm:$0xff]  }
 0x2f1   :  { %9104 = vmatprep.subr.bf16.mxu0 %v16193_v44  ;;  %9432 = vmatprep.subr.bf16.mxu1 %v16196_v45  ;;  %v16253_v44 = vld [vmem:[#allocation5 + $0x16f4] ss:$48 sps:$4 sm:$0xff]   ;;  %v16256_v45 = vld [vmem:[#allocation5 + $0x16fc] ss:$48 sps:$4 sm:$0xff]  }
 0x2f4   :  { %9105 = vmatpush1.bf16.msra.mxu0 %v16191_v46  ;;  %9433 = vmatpush1.bf16.msra.mxu1 %v16194_v49  ;;  %v16251_v46 = vld [vmem:[#allocation5 + $0x16f0] ss:$48 sps:$4 sm:$0xff]   ;;  %v16254_v49 = vld [vmem:[#allocation5 + $0x16f8] ss:$48 sps:$4 sm:$0xff]  }
 0x2f5   :  { %9106 = vmatprep.subr.bf16.mxu0 %v16199_v50  ;;  %9434 = vmatprep.subr.bf16.mxu1 %v16202_v51  ;;  %v16259_v50 = vld [vmem:[#allocation5 + $0x1754] ss:$48 sps:$4 sm:$0xff]   ;;  %v16262_v51 = vld [vmem:[#allocation5 + $0x175c] ss:$48 sps:$4 sm:$0xff]  }
 0x2f8   :  { %9107 = vmatpush1.bf16.msra.mxu0 %v16197_v53  ;;  %9435 = vmatpush1.bf16.msra.mxu1 %v16200_v54  ;;  %v16257_v53 = vld [vmem:[#allocation5 + $0x1750] ss:$48 sps:$4 sm:$0xff]   ;;  %v16260_v54 = vld [vmem:[#allocation5 + $0x1758] ss:$48 sps:$4 sm:$0xff]  }
 0x2f9   :  { %9108 = vmatprep.subr.bf16.mxu0 %v16205_v55  ;;  %9436 = vmatprep.subr.bf16.mxu1 %v16208_v56  ;;  %v16265_v55 = vld [vmem:[#allocation5 + $0x17b4] ss:$48 sps:$4 sm:$0xff]   ;;  %v16268_v56 = vld [vmem:[#allocation5 + $0x17bc] ss:$48 sps:$4 sm:$0xff]  }
 0x2fa   :  { %v18185_v61 = vpop.f32.mrb[0].mxu0  ;;  %v18187_v63 = vpop.f32.mrb[0].mxu1 }
 0x2fb   :  { %v18189_v0 = vpop.f32.mrb[1].mxu0  ;;  %v18191_v1 = vpop.f32.mrb[1].mxu1 }
 0x2fc   :  { %9109 = vmatpush1.bf16.msra.mxu0 %v16203_v57  ;;  %9437 = vmatpush1.bf16.msra.mxu1 %v16206_v58  ;;  %v8644_v2 = vpop.f32.mrb[2].mxu0  ;;  %v8972_v4 = vpop.f32.mrb[2].mxu1  ;;  %v16263_v57 = vld [vmem:[#allocation5 + $0x17b0] ss:$48 sps:$4 sm:$0xff]   ;;  %v16266_v58 = vld [vmem:[#allocation5 + $0x17b8] ss:$48 sps:$4 sm:$0xff]  }
 0x2fd   :  { %v8645_v8 = vpop.f32.mrb[3].mxu0  ;;  %v8973_v9 = vpop.f32.mrb[3].mxu1  ;;  %9110 = vmatprep.subr.bf16.mxu0 %v16211_v59  ;;  %9438 = vmatprep.subr.bf16.mxu1 %v16214_v60  ;;  %v16271_v59 = vld [vmem:[#allocation5 + $0x1814] ss:$48 sps:$4 sm:$0xff]   ;;  %v16274_v60 = vld [vmem:[#allocation5 + $0x181c] ss:$48 sps:$4 sm:$0xff]  }
 0x2fe   :  { %v16269_v2 = vld [vmem:[#allocation5 + $0x1810] ss:$48 sps:$4 sm:$0xff]   ;;  %v16272_v4 = vld [vmem:[#allocation5 + $0x1818] ss:$48 sps:$4 sm:$0xff]  }
 0x2ff   :  { %v16275_v8 = vld [vmem:[#allocation5 + $0x1870] ss:$48 sps:$4 sm:$0xff]   ;;  %v16278_v9 = vld [vmem:[#allocation5 + $0x1878] ss:$48 sps:$4 sm:$0xff]  }
 0x300   :  { %9111 = vmatpush1.bf16.msra.mxu0 %v16209_v6  ;;  %9439 = vmatpush1.bf16.msra.mxu1 %v16212_v7  ;;  %v16277_v6 = vld [vmem:[#allocation5 + $0x1874] ss:$48 sps:$4 sm:$0xff]   ;;  %v16280_v7 = vld [vmem:[#allocation5 + $0x187c] ss:$48 sps:$4 sm:$0xff]  }
 0x301   :  { %9112 = vmatprep.subr.bf16.mxu0 %v16217_v10  ;;  %9440 = vmatprep.subr.bf16.mxu1 %v16220_v11  ;;  %v16283_v10 = vld [vmem:[#allocation5 + $0x18d4] ss:$48 sps:$4 sm:$0xff]   ;;  %v16286_v11 = vld [vmem:[#allocation5 + $0x18dc] ss:$48 sps:$4 sm:$0xff]  }
 0x304   :  { %9113 = vmatpush1.bf16.msra.mxu0 %v16215_v12  ;;  %9441 = vmatpush1.bf16.msra.mxu1 %v16218_v14  ;;  %v16281_v12 = vld [vmem:[#allocation5 + $0x18d0] ss:$48 sps:$4 sm:$0xff]   ;;  %v16284_v14 = vld [vmem:[#allocation5 + $0x18d8] ss:$48 sps:$4 sm:$0xff]  }
 0x305   :  { %9114 = vmatprep.subr.bf16.mxu0 %v16223_v15  ;;  %9442 = vmatprep.subr.bf16.mxu1 %v16226_v16  ;;  %v16289_v15 = vld [vmem:[#allocation5 + $0x1934] ss:$48 sps:$4 sm:$0xff]   ;;  %v16292_v16 = vld [vmem:[#allocation5 + $0x193c] ss:$48 sps:$4 sm:$0xff]  }
 0x308   :  { %9115 = vmatpush1.bf16.msra.mxu0 %v16221_v18  ;;  %9443 = vmatpush1.bf16.msra.mxu1 %v16224_v19  ;;  %v16287_v18 = vld [vmem:[#allocation5 + $0x1930] ss:$48 sps:$4 sm:$0xff]   ;;  %v16290_v19 = vld [vmem:[#allocation5 + $0x1938] ss:$48 sps:$4 sm:$0xff]  }
 0x309   :  { %9116 = vmatprep.subr.bf16.mxu0 %v16229_v20  ;;  %9444 = vmatprep.subr.bf16.mxu1 %v16232_v23  ;;  %v16295_v20 = vld [vmem:[#allocation5 + $0x1994] ss:$48 sps:$4 sm:$0xff]   ;;  %v16298_v23 = vld [vmem:[#allocation5 + $0x199c] ss:$48 sps:$4 sm:$0xff]  }
 0x30c   :  { %9117 = vmatpush1.bf16.msra.mxu0 %v16227_v24  ;;  %9445 = vmatpush1.bf16.msra.mxu1 %v16230_v25  ;;  %v16293_v24 = vld [vmem:[#allocation5 + $0x1990] ss:$48 sps:$4 sm:$0xff]   ;;  %v16296_v25 = vld [vmem:[#allocation5 + $0x1998] ss:$48 sps:$4 sm:$0xff]  }
 0x30d   :  { %9118 = vmatprep.subr.bf16.mxu0 %v16235_v27  ;;  %9446 = vmatprep.subr.bf16.mxu1 %v16238_v29  ;;  %v16301_v27 = vld [vmem:[#allocation5 + $0x19f4] ss:$48 sps:$4 sm:$0xff]   ;;  %v16304_v29 = vld [vmem:[#allocation5 + $0x19fc] ss:$48 sps:$4 sm:$0xff]  }
 0x310   :  { %9119 = vmatpush1.bf16.msra.mxu0 %v16233_v33  ;;  %9447 = vmatpush1.bf16.msra.mxu1 %v16236_v34  ;;  %v16299_v33 = vld [vmem:[#allocation5 + $0x19f0] ss:$48 sps:$4 sm:$0xff]   ;;  %v16302_v34 = vld [vmem:[#allocation5 + $0x19f8] ss:$48 sps:$4 sm:$0xff]  }
 0x311   :  { %9120 = vmatprep.subr.bf16.mxu0 %v16241_v35  ;;  %9448 = vmatprep.subr.bf16.mxu1 %v16244_v36  ;;  %v16307_v35 = vld [vmem:[#allocation5 + $0x1a54] ss:$48 sps:$4 sm:$0xff]   ;;  %v16310_v36 = vld [vmem:[#allocation5 + $0x1a5c] ss:$48 sps:$4 sm:$0xff]  }
 0x314   :  { %9121 = vmatpush1.bf16.msra.mxu0 %v16239_v37  ;;  %9449 = vmatpush1.bf16.msra.mxu1 %v16242_v39  ;;  %v16305_v37 = vld [vmem:[#allocation5 + $0x1a50] ss:$48 sps:$4 sm:$0xff]   ;;  %v16308_v39 = vld [vmem:[#allocation5 + $0x1a58] ss:$48 sps:$4 sm:$0xff]  }
 0x315   :  { %9122 = vmatprep.subr.bf16.mxu0 %v16247_v40  ;;  %9450 = vmatprep.subr.bf16.mxu1 %v16250_v41  ;;  %v16313_v40 = vld [vmem:[#allocation5 + $0x1ab4] ss:$48 sps:$4 sm:$0xff]   ;;  %v16316_v41 = vld [vmem:[#allocation5 + $0x1abc] ss:$48 sps:$4 sm:$0xff]  }
 0x318   :  { %9123 = vmatpush1.bf16.msra.mxu0 %v16245_v42  ;;  %9451 = vmatpush1.bf16.msra.mxu1 %v16248_v43  ;;  %v16311_v42 = vld [vmem:[#allocation5 + $0x1ab0] ss:$48 sps:$4 sm:$0xff]   ;;  %v16314_v43 = vld [vmem:[#allocation5 + $0x1ab8] ss:$48 sps:$4 sm:$0xff]  }
 0x319   :  { %9124 = vmatprep.subr.bf16.mxu0 %v16253_v44  ;;  %9452 = vmatprep.subr.bf16.mxu1 %v16256_v45  ;;  %v16319_v44 = vld [vmem:[#allocation5 + $0x1b14] ss:$48 sps:$4 sm:$0xff]   ;;  %v16322_v45 = vld [vmem:[#allocation5 + $0x1b1c] ss:$48 sps:$4 sm:$0xff]  }
 0x31c   :  { %9125 = vmatpush1.bf16.msra.mxu0 %v16251_v46  ;;  %9453 = vmatpush1.bf16.msra.mxu1 %v16254_v49  ;;  %v16317_v46 = vld [vmem:[#allocation5 + $0x1b10] ss:$48 sps:$4 sm:$0xff]   ;;  %v16320_v49 = vld [vmem:[#allocation5 + $0x1b18] ss:$48 sps:$4 sm:$0xff]  }
 0x31d   :  { %9126 = vmatprep.subr.bf16.mxu0 %v16259_v50  ;;  %9454 = vmatprep.subr.bf16.mxu1 %v16262_v51  ;;  %v16325_v50 = vld [vmem:[#allocation5 + $0x1b74] ss:$48 sps:$4 sm:$0xff]   ;;  %v16328_v51 = vld [vmem:[#allocation5 + $0x1b7c] ss:$48 sps:$4 sm:$0xff]  }
 0x320   :  { %9127 = vmatpush1.bf16.msra.mxu0 %v16257_v53  ;;  %9455 = vmatpush1.bf16.msra.mxu1 %v16260_v54  ;;  %v16323_v53 = vld [vmem:[#allocation5 + $0x1b70] ss:$48 sps:$4 sm:$0xff]   ;;  %v16326_v54 = vld [vmem:[#allocation5 + $0x1b78] ss:$48 sps:$4 sm:$0xff]  }
 0x321   :  { %9128 = vmatprep.subr.bf16.mxu0 %v16265_v55  ;;  %9456 = vmatprep.subr.bf16.mxu1 %v16268_v56  ;;  %v16331_v55 = vld [vmem:[#allocation5 + $0x1bd4] ss:$48 sps:$4 sm:$0xff]   ;;  %v16334_v56 = vld [vmem:[#allocation5 + $0x1bdc] ss:$48 sps:$4 sm:$0xff]  }
 0x324   :  { %9129 = vmatpush1.bf16.msra.mxu0 %v16263_v57  ;;  %9457 = vmatpush1.bf16.msra.mxu1 %v16266_v58  ;;  %v16329_v57 = vld [vmem:[#allocation5 + $0x1bd0] ss:$48 sps:$4 sm:$0xff]   ;;  %v16332_v58 = vld [vmem:[#allocation5 + $0x1bd8] ss:$48 sps:$4 sm:$0xff]  }
 0x325   :  { %9139 = vmatprep.subr.bf16.mxu0 %v16271_v59  ;;  %9467 = vmatprep.subr.bf16.mxu1 %v16274_v60  ;;  %v16337_v59 = vld [vmem:[#allocation5 + $0x1c34] ss:$48 sps:$4 sm:$0xff]   ;;  %v16340_v60 = vld [vmem:[#allocation5 + $0x1c3c] ss:$48 sps:$4 sm:$0xff]  }
 0x327   :  { %9131 = vmatmul.mubr.bf16.vlgmr.msra.gmra.mrb[4].mxu0 %v18131_v31  ;;  %9459 = vmatmul.mubr.bf16.vlgmr.msra.gmra.mrb[4].mxu1 %v18131_v31 }
 0x328   :  { %9140 = vmatpush1.bf16.msra.mxu0 %v16269_v2  ;;  %9468 = vmatpush1.bf16.msra.mxu1 %v16272_v4  ;;  %v16335_v2 = vld [vmem:[#allocation5 + $0x1c30] ss:$48 sps:$4 sm:$0xff]   ;;  %v16338_v4 = vld [vmem:[#allocation5 + $0x1c38] ss:$48 sps:$4 sm:$0xff]  }
 0x329   :  { %9141 = vmatprep.subr.bf16.mxu0 %v16277_v6  ;;  %9469 = vmatprep.subr.bf16.mxu1 %v16280_v7  ;;  %v16343_v6 = vld [vmem:[#allocation5 + $0x1c94] ss:$48 sps:$4 sm:$0xff]   ;;  %v16346_v7 = vld [vmem:[#allocation5 + $0x1c9c] ss:$48 sps:$4 sm:$0xff]  }
 0x32a   :  { %9171 = vmatprep.mubr.bf16.mxu0 %v18133_v38  ;;  %9499 = vmatprep.mubr.bf16.mxu1 %v18133_v38 }
 0x32c   :  { %9142 = vmatpush1.bf16.msra.mxu0 %v16275_v8  ;;  %9470 = vmatpush1.bf16.msra.mxu1 %v16278_v9  ;;  %v16341_v8 = vld [vmem:[#allocation5 + $0x1c90] ss:$48 sps:$4 sm:$0xff]   ;;  %v16344_v9 = vld [vmem:[#allocation5 + $0x1c98] ss:$48 sps:$4 sm:$0xff]  }
 0x32d   :  { %9143 = vmatprep.subr.bf16.mxu0 %v16283_v10  ;;  %9471 = vmatprep.subr.bf16.mxu1 %v16286_v11  ;;  %v16349_v10 = vld [vmem:[#allocation5 + $0x1cf4] ss:$48 sps:$4 sm:$0xff]   ;;  %v16352_v11 = vld [vmem:[#allocation5 + $0x1cfc] ss:$48 sps:$4 sm:$0xff]  }
 0x330   :  { %9144 = vmatpush1.bf16.msra.mxu0 %v16281_v12  ;;  %9472 = vmatpush1.bf16.msra.mxu1 %v16284_v14  ;;  %v16347_v12 = vld [vmem:[#allocation5 + $0x1cf0] ss:$48 sps:$4 sm:$0xff]   ;;  %v16350_v14 = vld [vmem:[#allocation5 + $0x1cf8] ss:$48 sps:$4 sm:$0xff]  }
 0x331   :  { %9145 = vmatprep.subr.bf16.mxu0 %v16289_v15  ;;  %9473 = vmatprep.subr.bf16.mxu1 %v16292_v16  ;;  %v16355_v15 = vld [vmem:[#allocation5 + $0x1d54] ss:$48 sps:$4 sm:$0xff]   ;;  %v16358_v16 = vld [vmem:[#allocation5 + $0x1d5c] ss:$48 sps:$4 sm:$0xff]  }
 0x334   :  { %9146 = vmatpush1.bf16.msra.mxu0 %v16287_v18  ;;  %9474 = vmatpush1.bf16.msra.mxu1 %v16290_v19  ;;  %v16353_v18 = vld [vmem:[#allocation5 + $0x1d50] ss:$48 sps:$4 sm:$0xff]   ;;  %v16356_v19 = vld [vmem:[#allocation5 + $0x1d58] ss:$48 sps:$4 sm:$0xff]  }
 0x335   :  { %9147 = vmatprep.subr.bf16.mxu0 %v16295_v20  ;;  %9475 = vmatprep.subr.bf16.mxu1 %v16298_v23  ;;  %v16361_v20 = vld [vmem:[#allocation5 + $0x1db4] ss:$48 sps:$4 sm:$0xff]   ;;  %v16364_v23 = vld [vmem:[#allocation5 + $0x1dbc] ss:$48 sps:$4 sm:$0xff]  }
 0x338   :  { %9148 = vmatpush1.bf16.msra.mxu0 %v16293_v24  ;;  %9476 = vmatpush1.bf16.msra.mxu1 %v16296_v25  ;;  %v16359_v24 = vld [vmem:[#allocation5 + $0x1db0] ss:$48 sps:$4 sm:$0xff]   ;;  %v16362_v25 = vld [vmem:[#allocation5 + $0x1db8] ss:$48 sps:$4 sm:$0xff]  }
 0x339   :  { %9149 = vmatprep.subr.bf16.mxu0 %v16301_v27  ;;  %9477 = vmatprep.subr.bf16.mxu1 %v16304_v29  ;;  %v16367_v27 = vld [vmem:[#allocation5 + $0x1e14] ss:$48 sps:$4 sm:$0xff]   ;;  %v16370_v29 = vld [vmem:[#allocation5 + $0x1e1c] ss:$48 sps:$4 sm:$0xff]  }
 0x33c   :  { %9150 = vmatpush1.bf16.msra.mxu0 %v16299_v33  ;;  %9478 = vmatpush1.bf16.msra.mxu1 %v16302_v34  ;;  %v16365_v33 = vld [vmem:[#allocation5 + $0x1e10] ss:$48 sps:$4 sm:$0xff]   ;;  %v16368_v34 = vld [vmem:[#allocation5 + $0x1e18] ss:$48 sps:$4 sm:$0xff]  }
 0x33d   :  { %9151 = vmatprep.subr.bf16.mxu0 %v16307_v35  ;;  %9479 = vmatprep.subr.bf16.mxu1 %v16310_v36  ;;  %v16373_v35 = vld [vmem:[#allocation5 + $0x1e74] ss:$48 sps:$4 sm:$0xff]   ;;  %v16376_v36 = vld [vmem:[#allocation5 + $0x1e7c] ss:$48 sps:$4 sm:$0xff]  }
 0x340   :  { %9152 = vmatpush1.bf16.msra.mxu0 %v16305_v37  ;;  %9480 = vmatpush1.bf16.msra.mxu1 %v16308_v39  ;;  %v16371_v37 = vld [vmem:[#allocation5 + $0x1e70] ss:$48 sps:$4 sm:$0xff]   ;;  %v16374_v39 = vld [vmem:[#allocation5 + $0x1e78] ss:$48 sps:$4 sm:$0xff]  }
 0x341   :  { %9153 = vmatprep.subr.bf16.mxu0 %v16313_v40  ;;  %9481 = vmatprep.subr.bf16.mxu1 %v16316_v41  ;;  %v16379_v40 = vld [vmem:[#allocation5 + $0x1ed4] ss:$48 sps:$4 sm:$0xff]   ;;  %v16382_v41 = vld [vmem:[#allocation5 + $0x1edc] ss:$48 sps:$4 sm:$0xff]  }
 0x344   :  { %9154 = vmatpush1.bf16.msra.mxu0 %v16311_v42  ;;  %9482 = vmatpush1.bf16.msra.mxu1 %v16314_v43  ;;  %v16377_v42 = vld [vmem:[#allocation5 + $0x1ed0] ss:$48 sps:$4 sm:$0xff]   ;;  %v16380_v43 = vld [vmem:[#allocation5 + $0x1ed8] ss:$48 sps:$4 sm:$0xff]  }
 0x345   :  { %9155 = vmatprep.subr.bf16.mxu0 %v16319_v44  ;;  %9483 = vmatprep.subr.bf16.mxu1 %v16322_v45  ;;  %v16385_v44 = vld [vmem:[#allocation5 + $0x1f34] ss:$48 sps:$4 sm:$0xff]   ;;  %v16388_v45 = vld [vmem:[#allocation5 + $0x1f3c] ss:$48 sps:$4 sm:$0xff]  }
 0x348   :  { %9156 = vmatpush1.bf16.msra.mxu0 %v16317_v46  ;;  %9484 = vmatpush1.bf16.msra.mxu1 %v16320_v49  ;;  %v16383_v46 = vld [vmem:[#allocation5 + $0x1f30] ss:$48 sps:$4 sm:$0xff]   ;;  %v16386_v49 = vld [vmem:[#allocation5 + $0x1f38] ss:$48 sps:$4 sm:$0xff]  }
 0x349   :  { %9157 = vmatprep.subr.bf16.mxu0 %v16325_v50  ;;  %9485 = vmatprep.subr.bf16.mxu1 %v16328_v51  ;;  %v16391_v50 = vld [vmem:[#allocation5 + $0x1f94] ss:$48 sps:$4 sm:$0xff]   ;;  %v16394_v51 = vld [vmem:[#allocation5 + $0x1f9c] ss:$48 sps:$4 sm:$0xff]  }
 0x34c   :  { %9158 = vmatpush1.bf16.msra.mxu0 %v16323_v53  ;;  %9486 = vmatpush1.bf16.msra.mxu1 %v16326_v54  ;;  %v16389_v53 = vld [vmem:[#allocation5 + $0x1f90] ss:$48 sps:$4 sm:$0xff]   ;;  %v16392_v54 = vld [vmem:[#allocation5 + $0x1f98] ss:$48 sps:$4 sm:$0xff]  }
 0x34d   :  { %9159 = vmatprep.subr.bf16.mxu0 %v16331_v55  ;;  %9487 = vmatprep.subr.bf16.mxu1 %v16334_v56  ;;  %v16397_v55 = vld [vmem:[#allocation5 + $0x1ff4] ss:$48 sps:$4 sm:$0xff]   ;;  %v16400_v56 = vld [vmem:[#allocation5 + $0x1ffc] ss:$48 sps:$4 sm:$0xff]  }
 0x350   :  { %9160 = vmatpush1.bf16.msra.mxu0 %v16329_v57  ;;  %9488 = vmatpush1.bf16.msra.mxu1 %v16332_v58  ;;  %v16395_v57 = vld [vmem:[#allocation5 + $0x1ff0] ss:$48 sps:$4 sm:$0xff]   ;;  %v16398_v58 = vld [vmem:[#allocation5 + $0x1ff8] ss:$48 sps:$4 sm:$0xff]  }
 0x351   :  { %9161 = vmatprep.subr.bf16.mxu0 %v16337_v59  ;;  %9489 = vmatprep.subr.bf16.mxu1 %v16340_v60  ;;  %v16403_v59 = vld [vmem:[#allocation5 + $0x2054] ss:$48 sps:$4 sm:$0xff]   ;;  %v16406_v60 = vld [vmem:[#allocation5 + $0x205c] ss:$48 sps:$4 sm:$0xff]  }
 0x354   :  { %9162 = vmatpush1.bf16.msra.mxu0 %v16335_v2  ;;  %9490 = vmatpush1.bf16.msra.mxu1 %v16338_v4  ;;  %v16401_v2 = vld [vmem:[#allocation5 + $0x2050] ss:$48 sps:$4 sm:$0xff]   ;;  %v16404_v4 = vld [vmem:[#allocation5 + $0x2058] ss:$48 sps:$4 sm:$0xff]  }
 0x355   :  { %9163 = vmatprep.subr.bf16.mxu0 %v16343_v6  ;;  %9491 = vmatprep.subr.bf16.mxu1 %v16346_v7  ;;  %v16409_v6 = vld [vmem:[#allocation5 + $0x20b4] ss:$48 sps:$4 sm:$0xff]   ;;  %v16412_v7 = vld [vmem:[#allocation5 + $0x20bc] ss:$48 sps:$4 sm:$0xff]  }
 0x358   :  { %9164 = vmatpush1.bf16.msra.mxu0 %v16341_v8  ;;  %9492 = vmatpush1.bf16.msra.mxu1 %v16344_v9  ;;  %v16407_v8 = vld [vmem:[#allocation5 + $0x20b0] ss:$48 sps:$4 sm:$0xff]   ;;  %v16410_v9 = vld [vmem:[#allocation5 + $0x20b8] ss:$48 sps:$4 sm:$0xff]  }
 0x359   :  { %9165 = vmatprep.subr.bf16.mxu0 %v16349_v10  ;;  %9493 = vmatprep.subr.bf16.mxu1 %v16352_v11  ;;  %v16415_v10 = vld [vmem:[#allocation5 + $0x2114] ss:$48 sps:$4 sm:$0xff]   ;;  %v16418_v11 = vld [vmem:[#allocation5 + $0x211c] ss:$48 sps:$4 sm:$0xff]  }
 0x35c   :  { %9166 = vmatpush1.bf16.msra.mxu0 %v16347_v12  ;;  %9494 = vmatpush1.bf16.msra.mxu1 %v16350_v14  ;;  %v16413_v12 = vld [vmem:[#allocation5 + $0x2110] ss:$48 sps:$4 sm:$0xff]   ;;  %v16416_v14 = vld [vmem:[#allocation5 + $0x2118] ss:$48 sps:$4 sm:$0xff]  }
 0x35d   :  { %9167 = vmatprep.subr.bf16.mxu0 %v16355_v15  ;;  %9495 = vmatprep.subr.bf16.mxu1 %v16358_v16  ;;  %v16421_v15 = vld [vmem:[#allocation5 + $0x2174] ss:$48 sps:$4 sm:$0xff]   ;;  %v16424_v16 = vld [vmem:[#allocation5 + $0x217c] ss:$48 sps:$4 sm:$0xff]  }
 0x360   :  { %9168 = vmatpush1.bf16.msra.mxu0 %v16353_v18  ;;  %9496 = vmatpush1.bf16.msra.mxu1 %v16356_v19  ;;  %v16419_v18 = vld [vmem:[#allocation5 + $0x2170] ss:$48 sps:$4 sm:$0xff]   ;;  %v16422_v19 = vld [vmem:[#allocation5 + $0x2178] ss:$48 sps:$4 sm:$0xff]  }
 0x361   :  { %9169 = vmatprep.subr.bf16.mxu0 %v16361_v20  ;;  %9497 = vmatprep.subr.bf16.mxu1 %v16364_v23  ;;  %v16427_v20 = vld [vmem:[#allocation5 + $0x21d4] ss:$48 sps:$4 sm:$0xff]   ;;  %v16430_v23 = vld [vmem:[#allocation5 + $0x21dc] ss:$48 sps:$4 sm:$0xff]  }
 0x364   :  { %9170 = vmatpush1.bf16.msra.mxu0 %v16359_v24  ;;  %9498 = vmatpush1.bf16.msra.mxu1 %v16362_v25  ;;  %v16425_v24 = vld [vmem:[#allocation5 + $0x21d0] ss:$48 sps:$4 sm:$0xff]   ;;  %v16428_v25 = vld [vmem:[#allocation5 + $0x21d8] ss:$48 sps:$4 sm:$0xff]  }
 0x365   :  { %9180 = vmatprep.subr.bf16.mxu0 %v16367_v27  ;;  %9508 = vmatprep.subr.bf16.mxu1 %v16370_v29  ;;  %v16433_v27 = vld [vmem:[#allocation5 + $0x2234] ss:$48 sps:$4 sm:$0xff]   ;;  %v16436_v29 = vld [vmem:[#allocation5 + $0x223c] ss:$48 sps:$4 sm:$0xff]  }
 0x367   :  { %9172 = vmatmul.mubr.bf16.vlgmr.msra.gmra.mrb[4].mxu0 %v18139_v47  ;;  %9500 = vmatmul.mubr.bf16.vlgmr.msra.gmra.mrb[4].mxu1 %v18139_v47 }
 0x368   :  { %9181 = vmatpush1.bf16.msra.mxu0 %v16365_v33  ;;  %9509 = vmatpush1.bf16.msra.mxu1 %v16368_v34  ;;  %v16431_v33 = vld [vmem:[#allocation5 + $0x2230] ss:$48 sps:$4 sm:$0xff]   ;;  %v16434_v34 = vld [vmem:[#allocation5 + $0x2238] ss:$48 sps:$4 sm:$0xff]  }
 0x369   :  { %9182 = vmatprep.subr.bf16.mxu0 %v16373_v35  ;;  %9510 = vmatprep.subr.bf16.mxu1 %v16376_v36  ;;  %v16439_v35 = vld [vmem:[#allocation5 + $0x2294] ss:$48 sps:$4 sm:$0xff]   ;;  %v16442_v36 = vld [vmem:[#allocation5 + $0x229c] ss:$48 sps:$4 sm:$0xff]  }
 0x36a   :  { %9212 = vmatprep.mubr.bf16.mxu0 %v18141_v52  ;;  %9540 = vmatprep.mubr.bf16.mxu1 %v18141_v52 }
 0x36c   :  { %9183 = vmatpush1.bf16.msra.mxu0 %v16371_v37  ;;  %9511 = vmatpush1.bf16.msra.mxu1 %v16374_v39  ;;  %v16437_v37 = vld [vmem:[#allocation5 + $0x2290] ss:$48 sps:$4 sm:$0xff]   ;;  %v16440_v39 = vld [vmem:[#allocation5 + $0x2298] ss:$48 sps:$4 sm:$0xff]  }
 0x36d   :  { %9184 = vmatprep.subr.bf16.mxu0 %v16379_v40  ;;  %9512 = vmatprep.subr.bf16.mxu1 %v16382_v41  ;;  %v16445_v40 = vld [vmem:[#allocation5 + $0x22f4] ss:$48 sps:$4 sm:$0xff]   ;;  %v16448_v41 = vld [vmem:[#allocation5 + $0x22fc] ss:$48 sps:$4 sm:$0xff]  }
 0x370   :  { %9185 = vmatpush1.bf16.msra.mxu0 %v16377_v42  ;;  %9513 = vmatpush1.bf16.msra.mxu1 %v16380_v43  ;;  %v16443_v42 = vld [vmem:[#allocation5 + $0x22f0] ss:$48 sps:$4 sm:$0xff]   ;;  %v16446_v43 = vld [vmem:[#allocation5 + $0x22f8] ss:$48 sps:$4 sm:$0xff]  }
 0x371   :  { %9186 = vmatprep.subr.bf16.mxu0 %v16385_v44  ;;  %9514 = vmatprep.subr.bf16.mxu1 %v16388_v45  ;;  %v16451_v44 = vld [vmem:[#allocation5 + $0x2354] ss:$48 sps:$4 sm:$0xff]   ;;  %v16454_v45 = vld [vmem:[#allocation5 + $0x235c] ss:$48 sps:$4 sm:$0xff]  }
 0x374   :  { %9187 = vmatpush1.bf16.msra.mxu0 %v16383_v46  ;;  %9515 = vmatpush1.bf16.msra.mxu1 %v16386_v49  ;;  %v16449_v46 = vld [vmem:[#allocation5 + $0x2350] ss:$48 sps:$4 sm:$0xff]   ;;  %v16452_v49 = vld [vmem:[#allocation5 + $0x2358] ss:$48 sps:$4 sm:$0xff]  }
 0x375   :  { %9188 = vmatprep.subr.bf16.mxu0 %v16391_v50  ;;  %9516 = vmatprep.subr.bf16.mxu1 %v16394_v51  ;;  %v16457_v50 = vld [vmem:[#allocation5 + $0x23b4] ss:$48 sps:$4 sm:$0xff]   ;;  %v16460_v51 = vld [vmem:[#allocation5 + $0x23bc] ss:$48 sps:$4 sm:$0xff]  }
 0x378   :  { %9189 = vmatpush1.bf16.msra.mxu0 %v16389_v53  ;;  %9517 = vmatpush1.bf16.msra.mxu1 %v16392_v54  ;;  %v16455_v53 = vld [vmem:[#allocation5 + $0x23b0] ss:$48 sps:$4 sm:$0xff]   ;;  %v16458_v54 = vld [vmem:[#allocation5 + $0x23b8] ss:$48 sps:$4 sm:$0xff]  }
 0x379   :  { %9190 = vmatprep.subr.bf16.mxu0 %v16397_v55  ;;  %9518 = vmatprep.subr.bf16.mxu1 %v16400_v56  ;;  %v16463_v55 = vld [vmem:[#allocation5 + $0x2414] ss:$48 sps:$4 sm:$0xff]   ;;  %v16466_v56 = vld [vmem:[#allocation5 + $0x241c] ss:$48 sps:$4 sm:$0xff]  }
 0x37c   :  { %9191 = vmatpush1.bf16.msra.mxu0 %v16395_v57  ;;  %9519 = vmatpush1.bf16.msra.mxu1 %v16398_v58  ;;  %v16461_v57 = vld [vmem:[#allocation5 + $0x2410] ss:$48 sps:$4 sm:$0xff]   ;;  %v16464_v58 = vld [vmem:[#allocation5 + $0x2418] ss:$48 sps:$4 sm:$0xff]  }
 0x37d   :  { %9192 = vmatprep.subr.bf16.mxu0 %v16403_v59  ;;  %9520 = vmatprep.subr.bf16.mxu1 %v16406_v60  ;;  %v16469_v59 = vld [vmem:[#allocation5 + $0x2474] ss:$48 sps:$4 sm:$0xff]   ;;  %v16472_v60 = vld [vmem:[#allocation5 + $0x247c] ss:$48 sps:$4 sm:$0xff]  }
 0x380   :  { %9193 = vmatpush1.bf16.msra.mxu0 %v16401_v2  ;;  %9521 = vmatpush1.bf16.msra.mxu1 %v16404_v4  ;;  %v16467_v2 = vld [vmem:[#allocation5 + $0x2470] ss:$48 sps:$4 sm:$0xff]   ;;  %v16470_v4 = vld [vmem:[#allocation5 + $0x2478] ss:$48 sps:$4 sm:$0xff]  }
 0x381   :  { %9194 = vmatprep.subr.bf16.mxu0 %v16409_v6  ;;  %9522 = vmatprep.subr.bf16.mxu1 %v16412_v7  ;;  %v16475_v6 = vld [vmem:[#allocation5 + $0x24d4] ss:$48 sps:$4 sm:$0xff]   ;;  %v16478_v7 = vld [vmem:[#allocation5 + $0x24dc] ss:$48 sps:$4 sm:$0xff]  }
 0x384   :  { %9195 = vmatpush1.bf16.msra.mxu0 %v16407_v8  ;;  %9523 = vmatpush1.bf16.msra.mxu1 %v16410_v9  ;;  %v16473_v8 = vld [vmem:[#allocation5 + $0x24d0] ss:$48 sps:$4 sm:$0xff]   ;;  %v16476_v9 = vld [vmem:[#allocation5 + $0x24d8] ss:$48 sps:$4 sm:$0xff]  }
 0x385   :  { %9196 = vmatprep.subr.bf16.mxu0 %v16415_v10  ;;  %9524 = vmatprep.subr.bf16.mxu1 %v16418_v11  ;;  %v16481_v10 = vld [vmem:[#allocation5 + $0x2534] ss:$48 sps:$4 sm:$0xff]   ;;  %v16484_v11 = vld [vmem:[#allocation5 + $0x253c] ss:$48 sps:$4 sm:$0xff]  }
 0x388   :  { %9197 = vmatpush1.bf16.msra.mxu0 %v16413_v12  ;;  %9525 = vmatpush1.bf16.msra.mxu1 %v16416_v14  ;;  %v16479_v12 = vld [vmem:[#allocation5 + $0x2530] ss:$48 sps:$4 sm:$0xff]   ;;  %v16482_v14 = vld [vmem:[#allocation5 + $0x2538] ss:$48 sps:$4 sm:$0xff]  }
 0x389   :  { %9198 = vmatprep.subr.bf16.mxu0 %v16421_v15  ;;  %9526 = vmatprep.subr.bf16.mxu1 %v16424_v16  ;;  %v16487_v15 = vld [vmem:[#allocation5 + $0x2594] ss:$48 sps:$4 sm:$0xff]   ;;  %v16490_v16 = vld [vmem:[#allocation5 + $0x259c] ss:$48 sps:$4 sm:$0xff]  }
 0x38c   :  { %9199 = vmatpush1.bf16.msra.mxu0 %v16419_v18  ;;  %9527 = vmatpush1.bf16.msra.mxu1 %v16422_v19  ;;  %v16485_v18 = vld [vmem:[#allocation5 + $0x2590] ss:$48 sps:$4 sm:$0xff]   ;;  %v16488_v19 = vld [vmem:[#allocation5 + $0x2598] ss:$48 sps:$4 sm:$0xff]  }
 0x38d   :  { %9200 = vmatprep.subr.bf16.mxu0 %v16427_v20  ;;  %9528 = vmatprep.subr.bf16.mxu1 %v16430_v23  ;;  %v16493_v20 = vld [vmem:[#allocation5 + $0x25f4] ss:$48 sps:$4 sm:$0xff]   ;;  %v16496_v23 = vld [vmem:[#allocation5 + $0x25fc] ss:$48 sps:$4 sm:$0xff]  }
 0x390   :  { %9201 = vmatpush1.bf16.msra.mxu0 %v16425_v24  ;;  %9529 = vmatpush1.bf16.msra.mxu1 %v16428_v25  ;;  %v16491_v24 = vld [vmem:[#allocation5 + $0x25f0] ss:$48 sps:$4 sm:$0xff]   ;;  %v16494_v25 = vld [vmem:[#allocation5 + $0x25f8] ss:$48 sps:$4 sm:$0xff]  }
 0x391   :  { %9202 = vmatprep.subr.bf16.mxu0 %v16433_v27  ;;  %9530 = vmatprep.subr.bf16.mxu1 %v16436_v29  ;;  %v16499_v27 = vld [vmem:[#allocation5 + $0x2654] ss:$48 sps:$4 sm:$0xff]   ;;  %v16502_v29 = vld [vmem:[#allocation5 + $0x265c] ss:$48 sps:$4 sm:$0xff]  }
 0x394   :  { %9203 = vmatpush1.bf16.msra.mxu0 %v16431_v33  ;;  %9531 = vmatpush1.bf16.msra.mxu1 %v16434_v34  ;;  %v16497_v33 = vld [vmem:[#allocation5 + $0x2650] ss:$48 sps:$4 sm:$0xff]   ;;  %v16500_v34 = vld [vmem:[#allocation5 + $0x2658] ss:$48 sps:$4 sm:$0xff]  }
 0x395   :  { %9204 = vmatprep.subr.bf16.mxu0 %v16439_v35  ;;  %9532 = vmatprep.subr.bf16.mxu1 %v16442_v36  ;;  %v16505_v35 = vld [vmem:[#allocation5 + $0x26b4] ss:$48 sps:$4 sm:$0xff]   ;;  %v16508_v36 = vld [vmem:[#allocation5 + $0x26bc] ss:$48 sps:$4 sm:$0xff]  }
 0x398   :  { %9205 = vmatpush1.bf16.msra.mxu0 %v16437_v37  ;;  %9533 = vmatpush1.bf16.msra.mxu1 %v16440_v39  ;;  %v16503_v37 = vld [vmem:[#allocation5 + $0x26b0] ss:$48 sps:$4 sm:$0xff]   ;;  %v16506_v39 = vld [vmem:[#allocation5 + $0x26b8] ss:$48 sps:$4 sm:$0xff]  }
 0x399   :  { %9206 = vmatprep.subr.bf16.mxu0 %v16445_v40  ;;  %9534 = vmatprep.subr.bf16.mxu1 %v16448_v41  ;;  %v16511_v40 = vld [vmem:[#allocation5 + $0x2714] ss:$48 sps:$4 sm:$0xff]   ;;  %v16514_v41 = vld [vmem:[#allocation5 + $0x271c] ss:$48 sps:$4 sm:$0xff]  }
 0x39c   :  { %9207 = vmatpush1.bf16.msra.mxu0 %v16443_v42  ;;  %9535 = vmatpush1.bf16.msra.mxu1 %v16446_v43  ;;  %v16509_v42 = vld [vmem:[#allocation5 + $0x2710] ss:$48 sps:$4 sm:$0xff]   ;;  %v16512_v43 = vld [vmem:[#allocation5 + $0x2718] ss:$48 sps:$4 sm:$0xff]  }
 0x39d   :  { %9208 = vmatprep.subr.bf16.mxu0 %v16451_v44  ;;  %9536 = vmatprep.subr.bf16.mxu1 %v16454_v45  ;;  %v16517_v44 = vld [vmem:[#allocation5 + $0x2774] ss:$48 sps:$4 sm:$0xff]   ;;  %v16520_v45 = vld [vmem:[#allocation5 + $0x277c] ss:$48 sps:$4 sm:$0xff]  }
 0x3a0   :  { %9209 = vmatpush1.bf16.msra.mxu0 %v16449_v46  ;;  %9537 = vmatpush1.bf16.msra.mxu1 %v16452_v49  ;;  %v16515_v46 = vld [vmem:[#allocation5 + $0x2770] ss:$48 sps:$4 sm:$0xff]   ;;  %v16518_v49 = vld [vmem:[#allocation5 + $0x2778] ss:$48 sps:$4 sm:$0xff]  }
 0x3a1   :  { %9210 = vmatprep.subr.bf16.mxu0 %v16457_v50  ;;  %9538 = vmatprep.subr.bf16.mxu1 %v16460_v51  ;;  %v16523_v50 = vld [vmem:[#allocation5 + $0x27d4] ss:$48 sps:$4 sm:$0xff]   ;;  %v16526_v51 = vld [vmem:[#allocation5 + $0x27dc] ss:$48 sps:$4 sm:$0xff]  }
 0x3a4   :  { %9211 = vmatpush1.bf16.msra.mxu0 %v16455_v53  ;;  %9539 = vmatpush1.bf16.msra.mxu1 %v16458_v54  ;;  %v16521_v53 = vld [vmem:[#allocation5 + $0x27d0] ss:$48 sps:$4 sm:$0xff]   ;;  %v16524_v54 = vld [vmem:[#allocation5 + $0x27d8] ss:$48 sps:$4 sm:$0xff]  }
 0x3a5   :  { %9221 = vmatprep.subr.bf16.mxu0 %v16463_v55  ;;  %9549 = vmatprep.subr.bf16.mxu1 %v16466_v56  ;;  %v16529_v55 = vld [vmem:[#allocation5 + $0x2834] ss:$48 sps:$4 sm:$0xff]   ;;  %v16532_v56 = vld [vmem:[#allocation5 + $0x283c] ss:$48 sps:$4 sm:$0xff]  }
 0x3a7   :  { %9213 = vmatmul.mubr.bf16.vlgmr.msra.gmra.mrb[4].mxu0 %v18147_v62  ;;  %9541 = vmatmul.mubr.bf16.vlgmr.msra.gmra.mrb[4].mxu1 %v18147_v62 }
 0x3a8   :  { %9222 = vmatpush1.bf16.msra.mxu0 %v16461_v57  ;;  %9550 = vmatpush1.bf16.msra.mxu1 %v16464_v58  ;;  %v16527_v57 = vld [vmem:[#allocation5 + $0x2830] ss:$48 sps:$4 sm:$0xff]   ;;  %v16530_v58 = vld [vmem:[#allocation5 + $0x2838] ss:$48 sps:$4 sm:$0xff]  }
 0x3a9   :  { %9223 = vmatprep.subr.bf16.mxu0 %v16469_v59  ;;  %9551 = vmatprep.subr.bf16.mxu1 %v16472_v60  ;;  %v16535_v59 = vld [vmem:[#allocation5 + $0x2894] ss:$48 sps:$4 sm:$0xff]   ;;  %v16538_v60 = vld [vmem:[#allocation5 + $0x289c] ss:$48 sps:$4 sm:$0xff]  }
 0x3aa   :  { %9253 = vmatprep.mubr.bf16.mxu0 %v18149_v3  ;;  %9581 = vmatprep.mubr.bf16.mxu1 %v18149_v3 }
 0x3ac   :  { %9224 = vmatpush1.bf16.msra.mxu0 %v16467_v2  ;;  %9552 = vmatpush1.bf16.msra.mxu1 %v16470_v4  ;;  %v16533_v2 = vld [vmem:[#allocation5 + $0x2890] ss:$48 sps:$4 sm:$0xff]   ;;  %v16536_v4 = vld [vmem:[#allocation5 + $0x2898] ss:$48 sps:$4 sm:$0xff]  }
 0x3ad   :  { %9225 = vmatprep.subr.bf16.mxu0 %v16475_v6  ;;  %9553 = vmatprep.subr.bf16.mxu1 %v16478_v7  ;;  %v16541_v6 = vld [vmem:[#allocation5 + $0x28f4] ss:$48 sps:$4 sm:$0xff]   ;;  %v16544_v7 = vld [vmem:[#allocation5 + $0x28fc] ss:$48 sps:$4 sm:$0xff]  }
 0x3b0   :  { %9226 = vmatpush1.bf16.msra.mxu0 %v16473_v8  ;;  %9554 = vmatpush1.bf16.msra.mxu1 %v16476_v9  ;;  %v16539_v8 = vld [vmem:[#allocation5 + $0x28f0] ss:$48 sps:$4 sm:$0xff]   ;;  %v16542_v9 = vld [vmem:[#allocation5 + $0x28f8] ss:$48 sps:$4 sm:$0xff]  }
 0x3b1   :  { %9227 = vmatprep.subr.bf16.mxu0 %v16481_v10  ;;  %9555 = vmatprep.subr.bf16.mxu1 %v16484_v11  ;;  %v16547_v10 = vld [vmem:[#allocation5 + $0x2954] ss:$48 sps:$4 sm:$0xff]   ;;  %v16550_v11 = vld [vmem:[#allocation5 + $0x295c] ss:$48 sps:$4 sm:$0xff]  }
 0x3b4   :  { %9228 = vmatpush1.bf16.msra.mxu0 %v16479_v12  ;;  %9556 = vmatpush1.bf16.msra.mxu1 %v16482_v14  ;;  %v16545_v12 = vld [vmem:[#allocation5 + $0x2950] ss:$48 sps:$4 sm:$0xff]   ;;  %v16548_v14 = vld [vmem:[#allocation5 + $0x2958] ss:$48 sps:$4 sm:$0xff]  }
 0x3b5   :  { %9229 = vmatprep.subr.bf16.mxu0 %v16487_v15  ;;  %9557 = vmatprep.subr.bf16.mxu1 %v16490_v16  ;;  %v16553_v15 = vld [vmem:[#allocation5 + $0x29b4] ss:$48 sps:$4 sm:$0xff]   ;;  %v16556_v16 = vld [vmem:[#allocation5 + $0x29bc] ss:$48 sps:$4 sm:$0xff]  }
 0x3b8   :  { %9230 = vmatpush1.bf16.msra.mxu0 %v16485_v18  ;;  %9558 = vmatpush1.bf16.msra.mxu1 %v16488_v19  ;;  %v1460_v18 = vld [vmem:[#allocation5 + $0x2a10] sm:$0xff]  ;;  %v1461_v19 = vld [vmem:[#allocation5 + $0x2a18] sm:$0xff] }
 0x3b9   :  { %9231 = vmatprep.subr.bf16.mxu0 %v16493_v20  ;;  %9559 = vmatprep.subr.bf16.mxu1 %v16496_v23  ;;  %v16551_v20 = vld [vmem:[#allocation5 + $0x29b0] ss:$48 sps:$4 sm:$0xff]   ;;  %v16554_v23 = vld [vmem:[#allocation5 + $0x29b8] ss:$48 sps:$4 sm:$0xff]  }
 0x3bc   :  { %9232 = vmatpush1.bf16.msra.mxu0 %v16491_v24  ;;  %9560 = vmatpush1.bf16.msra.mxu1 %v16494_v25  ;;  %v14559_v24 = vcombine.high %v1460_v18, %v1460_v18  ;;  %v14561_v25 = vcombine.high %v1461_v19, %v1461_v19 }
 0x3bd   :  { %9233 = vmatprep.subr.bf16.mxu0 %v16499_v27  ;;  %9561 = vmatprep.subr.bf16.mxu1 %v16502_v29  ;;  %v14558_v27 = vcombine.low %v1460_v18, %v1460_v18  ;;  %v14560_v29 = vcombine.low %v1461_v19, %v1461_v19  ;;  %v16612_v18 = vld [vmem:[#allocation5 + $0x328] ss:$48 sps:$4 sm:$0xff]   ;;  %v16617_v19 = vld [vmem:[#allocation5 + $0x384] ss:$48 sps:$4 sm:$0xff]  }
 0x3c0   :  { %9234 = vmatpush1.bf16.msra.mxu0 %v16497_v33  ;;  %9562 = vmatpush1.bf16.msra.mxu1 %v16500_v34  ;;  %v16563_v33 = vld [vmem:[#allocation5 + $0x24] ss:$48 sps:$4 sm:$0xff]   ;;  %v8296_v34 = vsel %vm8282_vm0, %v14558_v27, 0  ;;  %v16626_v27 = vld [vmem:[#allocation5 + $0x3ec] ss:$48 sps:$4 sm:$0xff]  }
 0x3c1   :  { %9235 = vmatprep.subr.bf16.mxu0 %v16505_v35  ;;  %9563 = vmatprep.subr.bf16.mxu1 %v16508_v36  ;;  %v8302_v35 = vsel %vm8282_vm0, %v14560_v29, 0  ;;  %v16566_v36 = vld [vmem:[#allocation5 + $0x2c] ss:$48 sps:$4 sm:$0xff]   ;;  %v16621_v29 = vld [vmem:[#allocation5 + $0x3e0] ss:$48 sps:$4 sm:$0xff]  }
 0x3c4   :  { %9236 = vmatpush1.bf16.msra.mxu0 %v16503_v37  ;;  %9564 = vmatpush1.bf16.msra.mxu1 %v16506_v39  ;;  %v16561_v37 = vld [vmem:[#allocation5 + $0x20] ss:$48 sps:$4 sm:$0xff]   ;;  %v16564_v39 = vld [vmem:[#allocation5 + $0x28] ss:$48 sps:$4 sm:$0xff]  }
 0x3c5   :  { %9237 = vmatprep.subr.bf16.mxu0 %v16511_v40  ;;  %9565 = vmatprep.subr.bf16.mxu1 %v16514_v41  ;;  %v16569_v40 = vld [vmem:[#allocation5 + $0x84] ss:$48 sps:$4 sm:$0xff]   ;;  %v16572_v41 = vld [vmem:[#allocation5 + $0x8c] ss:$48 sps:$4 sm:$0xff]  }
 0x3c8   :  { %9238 = vmatpush1.bf16.msra.mxu0 %v16509_v42  ;;  %9566 = vmatpush1.bf16.msra.mxu1 %v16512_v43  ;;  %v16567_v42 = vld [vmem:[#allocation5 + $0x80] ss:$48 sps:$4 sm:$0xff]   ;;  %v16570_v43 = vld [vmem:[#allocation5 + $0x88] ss:$48 sps:$4 sm:$0xff]  }
 0x3c9   :  { %9239 = vmatprep.subr.bf16.mxu0 %v16517_v44  ;;  %9567 = vmatprep.subr.bf16.mxu1 %v16520_v45  ;;  %v16575_v44 = vld [vmem:[#allocation5 + $0xe4] ss:$48 sps:$4 sm:$0xff]   ;;  %v16578_v45 = vld [vmem:[#allocation5 + $0xec] ss:$48 sps:$4 sm:$0xff]  }
 0x3cc   :  { %9240 = vmatpush1.bf16.msra.mxu0 %v16515_v46  ;;  %9568 = vmatpush1.bf16.msra.mxu1 %v16518_v49  ;;  %v16573_v46 = vld [vmem:[#allocation5 + $0xe0] ss:$48 sps:$4 sm:$0xff]   ;;  %v16576_v49 = vld [vmem:[#allocation5 + $0xe8] ss:$48 sps:$4 sm:$0xff]  }
 0x3cd   :  { %9241 = vmatprep.subr.bf16.mxu0 %v16523_v50  ;;  %9569 = vmatprep.subr.bf16.mxu1 %v16526_v51  ;;  %v16581_v50 = vld [vmem:[#allocation5 + $0x144] ss:$48 sps:$4 sm:$0xff]   ;;  %v16584_v51 = vld [vmem:[#allocation5 + $0x14c] ss:$48 sps:$4 sm:$0xff]  }
 0x3d0   :  { %9242 = vmatpush1.bf16.msra.mxu0 %v16521_v53  ;;  %9570 = vmatpush1.bf16.msra.mxu1 %v16524_v54  ;;  %v16579_v53 = vld [vmem:[#allocation5 + $0x140] ss:$48 sps:$4 sm:$0xff]   ;;  %v16582_v54 = vld [vmem:[#allocation5 + $0x148] ss:$48 sps:$4 sm:$0xff]  }
 0x3d1   :  { %9243 = vmatprep.subr.bf16.mxu0 %v16529_v55  ;;  %9571 = vmatprep.subr.bf16.mxu1 %v16532_v56  ;;  %v16587_v55 = vld [vmem:[#allocation5 + $0x1a4] ss:$48 sps:$4 sm:$0xff]   ;;  %v16590_v56 = vld [vmem:[#allocation5 + $0x1ac] ss:$48 sps:$4 sm:$0xff]  }
 0x3d4   :  { %9244 = vmatpush1.bf16.msra.mxu0 %v16527_v57  ;;  %9572 = vmatpush1.bf16.msra.mxu1 %v16530_v58  ;;  %v16585_v57 = vld [vmem:[#allocation5 + $0x1a0] ss:$48 sps:$4 sm:$0xff]   ;;  %v16593_v58 = vld [vmem:[#allocation5 + $0x204] ss:$48 sps:$4 sm:$0xff]  }
 0x3d5   :  { %9245 = vmatprep.subr.bf16.mxu0 %v16535_v59  ;;  %9573 = vmatprep.subr.bf16.mxu1 %v16538_v60  ;;  %v16596_v59 = vld [vmem:[#allocation5 + $0x20c] ss:$48 sps:$4 sm:$0xff]   ;;  %v16591_v60 = vld [vmem:[#allocation5 + $0x200] ss:$48 sps:$4 sm:$0xff]  }
 0x3d8   :  { %9246 = vmatpush1.bf16.msra.mxu0 %v16533_v2  ;;  %9574 = vmatpush1.bf16.msra.mxu1 %v16536_v4  ;;  %v16594_v2 = vld [vmem:[#allocation5 + $0x208] ss:$48 sps:$4 sm:$0xff]   ;;  %v16599_v4 = vld [vmem:[#allocation5 + $0x264] ss:$48 sps:$4 sm:$0xff]  }
 0x3d9   :  { %9247 = vmatprep.subr.bf16.mxu0 %v16541_v6  ;;  %9575 = vmatprep.subr.bf16.mxu1 %v16544_v7  ;;  %v16602_v6 = vld [vmem:[#allocation5 + $0x26c] ss:$48 sps:$4 sm:$0xff]   ;;  %v16597_v7 = vld [vmem:[#allocation5 + $0x260] ss:$48 sps:$4 sm:$0xff]  }
 0x3dc   :  { %9248 = vmatpush1.bf16.msra.mxu0 %v16539_v8  ;;  %9576 = vmatpush1.bf16.msra.mxu1 %v16542_v9  ;;  %v16600_v8 = vld [vmem:[#allocation5 + $0x268] ss:$48 sps:$4 sm:$0xff]   ;;  %v16605_v9 = vld [vmem:[#allocation5 + $0x2c4] ss:$48 sps:$4 sm:$0xff]  }
 0x3dd   :  { %9249 = vmatprep.subr.bf16.mxu0 %v16547_v10  ;;  %9577 = vmatprep.subr.bf16.mxu1 %v16550_v11  ;;  %v16608_v10 = vld [vmem:[#allocation5 + $0x2cc] ss:$48 sps:$4 sm:$0xff]   ;;  %v16603_v11 = vld [vmem:[#allocation5 + $0x2c0] ss:$48 sps:$4 sm:$0xff]  }
 0x3e0   :  { %9250 = vmatpush1.bf16.msra.mxu0 %v16545_v12  ;;  %9578 = vmatpush1.bf16.msra.mxu1 %v16548_v14  ;;  %v16606_v12 = vld [vmem:[#allocation5 + $0x2c8] ss:$48 sps:$4 sm:$0xff]   ;;  %v16611_v14 = vld [vmem:[#allocation5 + $0x324] ss:$48 sps:$4 sm:$0xff]  }
 0x3e1   :  { %9251 = vmatprep.subr.bf16.mxu0 %v16553_v15  ;;  %9579 = vmatprep.subr.bf16.mxu1 %v16556_v16  ;;  %v16614_v15 = vld [vmem:[#allocation5 + $0x32c] ss:$48 sps:$4 sm:$0xff]   ;;  %v16609_v16 = vld [vmem:[#allocation5 + $0x320] ss:$48 sps:$4 sm:$0xff]  }
 0x3e4   :  { %9252 = vmatpush1.bf16.msra.mxu0 %v16551_v20  ;;  %9580 = vmatpush1.bf16.msra.mxu1 %v16554_v23  ;;  %v16620_v20 = vld [vmem:[#allocation5 + $0x38c] ss:$48 sps:$4 sm:$0xff]   ;;  %v16615_v23 = vld [vmem:[#allocation5 + $0x380] ss:$48 sps:$4 sm:$0xff]  }
 0x3e5   :  { %14570 = vmatprep.subr.msk.bf16.mxu0 %vm8282_vm0, %v14559_v24  ;;  %14572 = vmatprep.subr.msk.bf16.mxu1 %vm8282_vm0, %v14561_v25  ;;  %v16618_v24 = vld [vmem:[#allocation5 + $0x388] ss:$48 sps:$4 sm:$0xff]   ;;  %v16623_v25 = vld [vmem:[#allocation5 + $0x3e4] ss:$48 sps:$4 sm:$0xff]  }
 0x3e7   :  { %9254 = vmatmul.mubr.bf16.vlgmr.msra.gmra.mrb[4].mxu0 %v18155_v21  ;;  %9582 = vmatmul.mubr.bf16.vlgmr.msra.gmra.mrb[4].mxu1 %v18155_v21 }
 0x3e8   :  { %9263 = vmatpush1.bf16.msra.mxu0 %v8296_v34  ;;  %9591 = vmatpush1.bf16.msra.mxu1 %v8302_v35  ;;  %v16629_v34 = vld [vmem:[#allocation5 + $0x444] ss:$48 sps:$4 sm:$0xff]   ;;  %v16632_v35 = vld [vmem:[#allocation5 + $0x44c] ss:$48 sps:$4 sm:$0xff]  }
 0x3e9   :  { %9294 = vmatprep.mubr.bf16.mxu0 %v18011_v28  ;;  %9622 = vmatprep.mubr.bf16.mxu1 %v18011_v28 }
 0x3ea   :  { %9631 = vmatprep.subr.bf16.mxu0 %v16563_v33  ;;  %9959 = vmatprep.subr.bf16.mxu1 %v16566_v36  ;;  %v16624_v33 = vld [vmem:[#allocation5 + $0x3e8] ss:$48 sps:$4 sm:$0xff]   ;;  %v16627_v36 = vld [vmem:[#allocation5 + $0x440] ss:$48 sps:$4 sm:$0xff]  }
 0x3f3   :  { %14571 = vmatmul.mubr.msk.bf16.vlgmr.msra.gmra.mrb[4].mxu0 %vm8278_vm1, %v18165_v30  ;;  %14573 = vmatmul.mubr.msk.bf16.vlgmr.msra.gmra.mrb[4].mxu1 %vm8278_vm1, %v18165_v30 }
 0x3f4   :  { %9632 = vmatpush1.bf16.msra.mxu0 %v16561_v37  ;;  %9960 = vmatpush1.bf16.msra.mxu1 %v16564_v39  ;;  %v16630_v37 = vld [vmem:[#allocation5 + $0x448] ss:$48 sps:$4 sm:$0xff]   ;;  %v16635_v39 = vld [vmem:[#allocation5 + $0x4a4] ss:$48 sps:$4 sm:$0xff]  }
 0x3f5   :  { %9633 = vmatprep.subr.bf16.mxu0 %v16569_v40  ;;  %9961 = vmatprep.subr.bf16.mxu1 %v16572_v41  ;;  %v16638_v40 = vld [vmem:[#allocation5 + $0x4ac] ss:$48 sps:$4 sm:$0xff]   ;;  %v16633_v41 = vld [vmem:[#allocation5 + $0x4a0] ss:$48 sps:$4 sm:$0xff]  }
 0x3f6   :  { %9663 = vmatprep.mubr.bf16.mxu0 %v18103_v48  ;;  %9991 = vmatprep.mubr.bf16.mxu1 %v18103_v48  ;;  %v16588_v48 = vld [vmem:[#allocation5 + $0x1a8] ss:$48 sps:$4 sm:$0xff]  }
 0x3f8   :  { %9634 = vmatpush1.bf16.msra.mxu0 %v16567_v42  ;;  %9962 = vmatpush1.bf16.msra.mxu1 %v16570_v43  ;;  %v16636_v42 = vld [vmem:[#allocation5 + $0x4a8] ss:$48 sps:$4 sm:$0xff]   ;;  %v16641_v43 = vld [vmem:[#allocation5 + $0x504] ss:$48 sps:$4 sm:$0xff]  }
 0x3f9   :  { %9635 = vmatprep.subr.bf16.mxu0 %v16575_v44  ;;  %9963 = vmatprep.subr.bf16.mxu1 %v16578_v45  ;;  %v16644_v44 = vld [vmem:[#allocation5 + $0x50c] ss:$48 sps:$4 sm:$0xff]   ;;  %v16639_v45 = vld [vmem:[#allocation5 + $0x500] ss:$48 sps:$4 sm:$0xff]  }
 0x3fc   :  { %9636 = vmatpush1.bf16.msra.mxu0 %v16573_v46  ;;  %9964 = vmatpush1.bf16.msra.mxu1 %v16576_v49  ;;  %v16642_v46 = vld [vmem:[#allocation5 + $0x508] ss:$48 sps:$4 sm:$0xff]   ;;  %v16647_v49 = vld [vmem:[#allocation5 + $0x564] ss:$48 sps:$4 sm:$0xff]  }
 0x3fd   :  { %9637 = vmatprep.subr.bf16.mxu0 %v16581_v50  ;;  %9965 = vmatprep.subr.bf16.mxu1 %v16584_v51  ;;  %v16650_v50 = vld [vmem:[#allocation5 + $0x56c] ss:$48 sps:$4 sm:$0xff]   ;;  %v16645_v51 = vld [vmem:[#allocation5 + $0x560] ss:$48 sps:$4 sm:$0xff]  }
 0x400   :  { %9638 = vmatpush1.bf16.msra.mxu0 %v16579_v53  ;;  %9966 = vmatpush1.bf16.msra.mxu1 %v16582_v54  ;;  %v16648_v53 = vld [vmem:[#allocation5 + $0x568] ss:$48 sps:$4 sm:$0xff]   ;;  %v16653_v54 = vld [vmem:[#allocation5 + $0x5c4] ss:$48 sps:$4 sm:$0xff]  }
 0x401   :  { %9639 = vmatprep.subr.bf16.mxu0 %v16587_v55  ;;  %9967 = vmatprep.subr.bf16.mxu1 %v16590_v56  ;;  %v16656_v55 = vld [vmem:[#allocation5 + $0x5cc] ss:$48 sps:$4 sm:$0xff]   ;;  %v16651_v56 = vld [vmem:[#allocation5 + $0x5c0] ss:$48 sps:$4 sm:$0xff]  }
 0x404   :  { %9640 = vmatpush1.bf16.msra.mxu0 %v16585_v57  ;;  %9968 = vmatpush1.bf16.msra.mxu1 %v16588_v48  ;;  %v16654_v57 = vld [vmem:[#allocation5 + $0x5c8] ss:$48 sps:$4 sm:$0xff]   ;;  %v16659_v48 = vld [vmem:[#allocation5 + $0x624] ss:$48 sps:$4 sm:$0xff]  }
 0x405   :  { %9641 = vmatprep.subr.bf16.mxu0 %v16593_v58  ;;  %9969 = vmatprep.subr.bf16.mxu1 %v16596_v59  ;;  %v16662_v58 = vld [vmem:[#allocation5 + $0x62c] ss:$48 sps:$4 sm:$0xff]   ;;  %v16657_v59 = vld [vmem:[#allocation5 + $0x620] ss:$48 sps:$4 sm:$0xff]  }
 0x408   :  { %9642 = vmatpush1.bf16.msra.mxu0 %v16591_v60  ;;  %9970 = vmatpush1.bf16.msra.mxu1 %v16594_v2  ;;  %v16660_v60 = vld [vmem:[#allocation5 + $0x628] ss:$48 sps:$4 sm:$0xff]   ;;  %v16665_v2 = vld [vmem:[#allocation5 + $0x684] ss:$48 sps:$4 sm:$0xff]  }
 0x409   :  { %9643 = vmatprep.subr.bf16.mxu0 %v16599_v4  ;;  %9971 = vmatprep.subr.bf16.mxu1 %v16602_v6  ;;  %v16668_v4 = vld [vmem:[#allocation5 + $0x68c] ss:$48 sps:$4 sm:$0xff]   ;;  %v16663_v6 = vld [vmem:[#allocation5 + $0x680] ss:$48 sps:$4 sm:$0xff]  }
 0x40c   :  { %9644 = vmatpush1.bf16.msra.mxu0 %v16597_v7  ;;  %9972 = vmatpush1.bf16.msra.mxu1 %v16600_v8  ;;  %v16666_v7 = vld [vmem:[#allocation5 + $0x688] ss:$48 sps:$4 sm:$0xff]   ;;  %v16671_v8 = vld [vmem:[#allocation5 + $0x6e4] ss:$48 sps:$4 sm:$0xff]  }
 0x40d   :  { %9645 = vmatprep.subr.bf16.mxu0 %v16605_v9  ;;  %9973 = vmatprep.subr.bf16.mxu1 %v16608_v10  ;;  %v16674_v9 = vld [vmem:[#allocation5 + $0x6ec] ss:$48 sps:$4 sm:$0xff]   ;;  %v16669_v10 = vld [vmem:[#allocation5 + $0x6e0] ss:$48 sps:$4 sm:$0xff]  }
 0x410   :  { %9646 = vmatpush1.bf16.msra.mxu0 %v16603_v11  ;;  %9974 = vmatpush1.bf16.msra.mxu1 %v16606_v12  ;;  %v16672_v11 = vld [vmem:[#allocation5 + $0x6e8] ss:$48 sps:$4 sm:$0xff]   ;;  %v16677_v12 = vld [vmem:[#allocation5 + $0x744] ss:$48 sps:$4 sm:$0xff]  }
 0x411   :  { %9647 = vmatprep.subr.bf16.mxu0 %v16611_v14  ;;  %9975 = vmatprep.subr.bf16.mxu1 %v16614_v15  ;;  %v16675_v14 = vld [vmem:[#allocation5 + $0x740] ss:$48 sps:$4 sm:$0xff]   ;;  %v16678_v15 = vld [vmem:[#allocation5 + $0x748] ss:$48 sps:$4 sm:$0xff]  }
 0x414   :  { %9648 = vmatpush1.bf16.msra.mxu0 %v16609_v16  ;;  %9976 = vmatpush1.bf16.msra.mxu1 %v16612_v18  ;;  %v16683_v16 = vld [vmem:[#allocation5 + $0x7a4] ss:$48 sps:$4 sm:$0xff]   ;;  %v16686_v18 = vld [vmem:[#allocation5 + $0x7ac] ss:$48 sps:$4 sm:$0xff]  }
 0x415   :  { %9649 = vmatprep.subr.bf16.mxu0 %v16617_v19  ;;  %9977 = vmatprep.subr.bf16.mxu1 %v16620_v20  ;;  %v16681_v19 = vld [vmem:[#allocation5 + $0x7a0] ss:$48 sps:$4 sm:$0xff]   ;;  %v16689_v20 = vld [vmem:[#allocation5 + $0x804] ss:$48 sps:$4 sm:$0xff]  }
 0x418   :  { %9650 = vmatpush1.bf16.msra.mxu0 %v16615_v23  ;;  %9978 = vmatpush1.bf16.msra.mxu1 %v16618_v24  ;;  %v16692_v23 = vld [vmem:[#allocation5 + $0x80c] ss:$48 sps:$4 sm:$0xff]   ;;  %v16687_v24 = vld [vmem:[#allocation5 + $0x800] ss:$48 sps:$4 sm:$0xff]  }
 0x419   :  { %9651 = vmatprep.subr.bf16.mxu0 %v16623_v25  ;;  %9979 = vmatprep.subr.bf16.mxu1 %v16626_v27  ;;  %v16690_v25 = vld [vmem:[#allocation5 + $0x808] ss:$48 sps:$4 sm:$0xff]   ;;  %v16695_v27 = vld [vmem:[#allocation5 + $0x864] ss:$48 sps:$4 sm:$0xff]  }
 0x41c   :  { %9652 = vmatpush1.bf16.msra.mxu0 %v16621_v29  ;;  %9980 = vmatpush1.bf16.msra.mxu1 %v16624_v33  ;;  %v16698_v29 = vld [vmem:[#allocation5 + $0x86c] ss:$48 sps:$4 sm:$0xff]   ;;  %v16693_v33 = vld [vmem:[#allocation5 + $0x860] ss:$48 sps:$4 sm:$0xff]  }
 0x41d   :  { %9653 = vmatprep.subr.bf16.mxu0 %v16629_v34  ;;  %9981 = vmatprep.subr.bf16.mxu1 %v16632_v35  ;;  %v16696_v34 = vld [vmem:[#allocation5 + $0x868] ss:$48 sps:$4 sm:$0xff]   ;;  %v16701_v35 = vld [vmem:[#allocation5 + $0x8c4] ss:$48 sps:$4 sm:$0xff]  }
 0x420   :  { %9654 = vmatpush1.bf16.msra.mxu0 %v16627_v36  ;;  %9982 = vmatpush1.bf16.msra.mxu1 %v16630_v37  ;;  %v16704_v36 = vld [vmem:[#allocation5 + $0x8cc] ss:$48 sps:$4 sm:$0xff]   ;;  %v16699_v37 = vld [vmem:[#allocation5 + $0x8c0] ss:$48 sps:$4 sm:$0xff]  }
 0x421   :  { %9655 = vmatprep.subr.bf16.mxu0 %v16635_v39  ;;  %9983 = vmatprep.subr.bf16.mxu1 %v16638_v40  ;;  %v16702_v39 = vld [vmem:[#allocation5 + $0x8c8] ss:$48 sps:$4 sm:$0xff]   ;;  %v16707_v40 = vld [vmem:[#allocation5 + $0x924] ss:$48 sps:$4 sm:$0xff]  }
 0x424   :  { %9656 = vmatpush1.bf16.msra.mxu0 %v16633_v41  ;;  %9984 = vmatpush1.bf16.msra.mxu1 %v16636_v42  ;;  %v16710_v41 = vld [vmem:[#allocation5 + $0x92c] ss:$48 sps:$4 sm:$0xff]   ;;  %v16705_v42 = vld [vmem:[#allocation5 + $0x920] ss:$48 sps:$4 sm:$0xff]  }
 0x425   :  { %9657 = vmatprep.subr.bf16.mxu0 %v16641_v43  ;;  %9985 = vmatprep.subr.bf16.mxu1 %v16644_v44  ;;  %v16708_v43 = vld [vmem:[#allocation5 + $0x928] ss:$48 sps:$4 sm:$0xff]   ;;  %v16713_v44 = vld [vmem:[#allocation5 + $0x984] ss:$48 sps:$4 sm:$0xff]  }
 0x428   :  { %9658 = vmatpush1.bf16.msra.mxu0 %v16639_v45  ;;  %9986 = vmatpush1.bf16.msra.mxu1 %v16642_v46  ;;  %v16716_v45 = vld [vmem:[#allocation5 + $0x98c] ss:$48 sps:$4 sm:$0xff]   ;;  %v16711_v46 = vld [vmem:[#allocation5 + $0x980] ss:$48 sps:$4 sm:$0xff]  }
 0x429   :  { %9659 = vmatprep.subr.bf16.mxu0 %v16647_v49  ;;  %9987 = vmatprep.subr.bf16.mxu1 %v16650_v50  ;;  %v16714_v49 = vld [vmem:[#allocation5 + $0x988] ss:$48 sps:$4 sm:$0xff]   ;;  %v16719_v50 = vld [vmem:[#allocation5 + $0x9e4] ss:$48 sps:$4 sm:$0xff]  }
 0x42c   :  { %9660 = vmatpush1.bf16.msra.mxu0 %v16645_v51  ;;  %9988 = vmatpush1.bf16.msra.mxu1 %v16648_v53  ;;  %v16722_v51 = vld [vmem:[#allocation5 + $0x9ec] ss:$48 sps:$4 sm:$0xff]   ;;  %v16717_v53 = vld [vmem:[#allocation5 + $0x9e0] ss:$48 sps:$4 sm:$0xff]  }
 0x42d   :  { %9661 = vmatprep.subr.bf16.mxu0 %v16653_v54  ;;  %9989 = vmatprep.subr.bf16.mxu1 %v16656_v55  ;;  %v16720_v54 = vld [vmem:[#allocation5 + $0x9e8] ss:$48 sps:$4 sm:$0xff]   ;;  %v16725_v55 = vld [vmem:[#allocation5 + $0xa44] ss:$48 sps:$4 sm:$0xff]  }
 0x430   :  { %9662 = vmatpush1.bf16.msra.mxu0 %v16651_v56  ;;  %9990 = vmatpush1.bf16.msra.mxu1 %v16654_v57  ;;  %v16728_v56 = vld [vmem:[#allocation5 + $0xa4c] ss:$48 sps:$4 sm:$0xff]   ;;  %v16723_v57 = vld [vmem:[#allocation5 + $0xa40] ss:$48 sps:$4 sm:$0xff]  }
 0x431   :  { %9672 = vmatprep.subr.bf16.mxu0 %v16659_v48  ;;  %10000 = vmatprep.subr.bf16.mxu1 %v16662_v58  ;;  %v16726_v48 = vld [vmem:[#allocation5 + $0xa48] ss:$48 sps:$4 sm:$0xff]   ;;  %v16731_v58 = vld [vmem:[#allocation5 + $0xaa4] ss:$48 sps:$4 sm:$0xff]  }
 0x433   :  { %9664 = vmatmul.mubr.bf16.vlgmr.msra.gmra.mrb[8].mxu0 %v18107_v5  ;;  %9992 = vmatmul.mubr.bf16.vlgmr.msra.gmra.mrb[8].mxu1 %v18107_v5  ;;  %v16680_v5 = vld [vmem:[#allocation5 + $0x74c] ss:$48 sps:$4 sm:$0xff]  }
 0x434   :  { %9673 = vmatpush1.bf16.msra.mxu0 %v16657_v59  ;;  %10001 = vmatpush1.bf16.msra.mxu1 %v16660_v60  ;;  %v16734_v59 = vld [vmem:[#allocation5 + $0xaac] ss:$48 sps:$4 sm:$0xff]   ;;  %v16729_v60 = vld [vmem:[#allocation5 + $0xaa0] ss:$48 sps:$4 sm:$0xff]  }
 0x435   :  { %9674 = vmatprep.subr.bf16.mxu0 %v16665_v2  ;;  %10002 = vmatprep.subr.bf16.mxu1 %v16668_v4  ;;  %v16732_v2 = vld [vmem:[#allocation5 + $0xaa8] ss:$48 sps:$4 sm:$0xff]   ;;  %v16737_v4 = vld [vmem:[#allocation5 + $0xb04] ss:$48 sps:$4 sm:$0xff]  }
 0x436   :  { %9704 = vmatprep.mubr.bf16.mxu0 %v18111_v32  ;;  %10032 = vmatprep.mubr.bf16.mxu1 %v18111_v32  ;;  %v16684_v32 = vld [vmem:[#allocation5 + $0x7a8] ss:$48 sps:$4 sm:$0xff]  }
 0x438   :  { %9675 = vmatpush1.bf16.msra.mxu0 %v16663_v6  ;;  %10003 = vmatpush1.bf16.msra.mxu1 %v16666_v7  ;;  %v16740_v6 = vld [vmem:[#allocation5 + $0xb0c] ss:$48 sps:$4 sm:$0xff]   ;;  %v16735_v7 = vld [vmem:[#allocation5 + $0xb00] ss:$48 sps:$4 sm:$0xff]  }
 0x439   :  { %9676 = vmatprep.subr.bf16.mxu0 %v16671_v8  ;;  %10004 = vmatprep.subr.bf16.mxu1 %v16674_v9  ;;  %v16738_v8 = vld [vmem:[#allocation5 + $0xb08] ss:$48 sps:$4 sm:$0xff]   ;;  %v16743_v9 = vld [vmem:[#allocation5 + $0xb64] ss:$48 sps:$4 sm:$0xff]  }
 0x43c   :  { %9677 = vmatpush1.bf16.msra.mxu0 %v16669_v10  ;;  %10005 = vmatpush1.bf16.msra.mxu1 %v16672_v11  ;;  %v16746_v10 = vld [vmem:[#allocation5 + $0xb6c] ss:$48 sps:$4 sm:$0xff]   ;;  %v16741_v11 = vld [vmem:[#allocation5 + $0xb60] ss:$48 sps:$4 sm:$0xff]  }
 0x43d   :  { %9678 = vmatprep.subr.bf16.mxu0 %v16677_v12  ;;  %10006 = vmatprep.subr.bf16.mxu1 %v16680_v5  ;;  %v16744_v12 = vld [vmem:[#allocation5 + $0xb68] ss:$48 sps:$4 sm:$0xff]   ;;  %v16749_v5 = vld [vmem:[#allocation5 + $0xbc4] ss:$48 sps:$4 sm:$0xff]  }
 0x440   :  { %9679 = vmatpush1.bf16.msra.mxu0 %v16675_v14  ;;  %10007 = vmatpush1.bf16.msra.mxu1 %v16678_v15  ;;  %v16752_v14 = vld [vmem:[#allocation5 + $0xbcc] ss:$48 sps:$4 sm:$0xff]   ;;  %v16747_v15 = vld [vmem:[#allocation5 + $0xbc0] ss:$48 sps:$4 sm:$0xff]  }
 0x441   :  { %9680 = vmatprep.subr.bf16.mxu0 %v16683_v16  ;;  %10008 = vmatprep.subr.bf16.mxu1 %v16686_v18  ;;  %v16750_v16 = vld [vmem:[#allocation5 + $0xbc8] ss:$48 sps:$4 sm:$0xff]   ;;  %v16755_v18 = vld [vmem:[#allocation5 + $0xc24] ss:$48 sps:$4 sm:$0xff]  }
 0x444   :  { %9681 = vmatpush1.bf16.msra.mxu0 %v16681_v19  ;;  %10009 = vmatpush1.bf16.msra.mxu1 %v16684_v32  ;;  %v16758_v19 = vld [vmem:[#allocation5 + $0xc2c] ss:$48 sps:$4 sm:$0xff]   ;;  %v16753_v32 = vld [vmem:[#allocation5 + $0xc20] ss:$48 sps:$4 sm:$0xff]  }
 0x445   :  { %9682 = vmatprep.subr.bf16.mxu0 %v16689_v20  ;;  %10010 = vmatprep.subr.bf16.mxu1 %v16692_v23  ;;  %v16756_v20 = vld [vmem:[#allocation5 + $0xc28] ss:$48 sps:$4 sm:$0xff]   ;;  %v16761_v23 = vld [vmem:[#allocation5 + $0xc84] ss:$48 sps:$4 sm:$0xff]  }
 0x448   :  { %9683 = vmatpush1.bf16.msra.mxu0 %v16687_v24  ;;  %10011 = vmatpush1.bf16.msra.mxu1 %v16690_v25  ;;  %v16764_v24 = vld [vmem:[#allocation5 + $0xc8c] ss:$48 sps:$4 sm:$0xff]   ;;  %v16759_v25 = vld [vmem:[#allocation5 + $0xc80] ss:$48 sps:$4 sm:$0xff]  }
 0x449   :  { %9684 = vmatprep.subr.bf16.mxu0 %v16695_v27  ;;  %10012 = vmatprep.subr.bf16.mxu1 %v16698_v29  ;;  %v16762_v27 = vld [vmem:[#allocation5 + $0xc88] ss:$48 sps:$4 sm:$0xff]   ;;  %v16767_v29 = vld [vmem:[#allocation5 + $0xce4] ss:$48 sps:$4 sm:$0xff]  }
 0x44c   :  { %9685 = vmatpush1.bf16.msra.mxu0 %v16693_v33  ;;  %10013 = vmatpush1.bf16.msra.mxu1 %v16696_v34  ;;  %v16770_v33 = vld [vmem:[#allocation5 + $0xcec] ss:$48 sps:$4 sm:$0xff]   ;;  %v16765_v34 = vld [vmem:[#allocation5 + $0xce0] ss:$48 sps:$4 sm:$0xff]  }
 0x44d   :  { %9686 = vmatprep.subr.bf16.mxu0 %v16701_v35  ;;  %10014 = vmatprep.subr.bf16.mxu1 %v16704_v36  ;;  %v16768_v35 = vld [vmem:[#allocation5 + $0xce8] ss:$48 sps:$4 sm:$0xff]   ;;  %v16773_v36 = vld [vmem:[#allocation5 + $0xd44] ss:$48 sps:$4 sm:$0xff]  }
 0x450   :  { %9687 = vmatpush1.bf16.msra.mxu0 %v16699_v37  ;;  %10015 = vmatpush1.bf16.msra.mxu1 %v16702_v39  ;;  %v16771_v37 = vld [vmem:[#allocation5 + $0xd40] ss:$48 sps:$4 sm:$0xff]   ;;  %v16774_v39 = vld [vmem:[#allocation5 + $0xd48] ss:$48 sps:$4 sm:$0xff]  }
 0x451   :  { %9688 = vmatprep.subr.bf16.mxu0 %v16707_v40  ;;  %10016 = vmatprep.subr.bf16.mxu1 %v16710_v41  ;;  %v16779_v40 = vld [vmem:[#allocation5 + $0xda4] ss:$48 sps:$4 sm:$0xff]   ;;  %v16782_v41 = vld [vmem:[#allocation5 + $0xdac] ss:$48 sps:$4 sm:$0xff]  }
 0x454   :  { %9689 = vmatpush1.bf16.msra.mxu0 %v16705_v42  ;;  %10017 = vmatpush1.bf16.msra.mxu1 %v16708_v43  ;;  %v16777_v42 = vld [vmem:[#allocation5 + $0xda0] ss:$48 sps:$4 sm:$0xff]   ;;  %v16785_v43 = vld [vmem:[#allocation5 + $0xe04] ss:$48 sps:$4 sm:$0xff]  }
 0x455   :  { %9690 = vmatprep.subr.bf16.mxu0 %v16713_v44  ;;  %10018 = vmatprep.subr.bf16.mxu1 %v16716_v45  ;;  %v16788_v44 = vld [vmem:[#allocation5 + $0xe0c] ss:$48 sps:$4 sm:$0xff]   ;;  %v16783_v45 = vld [vmem:[#allocation5 + $0xe00] ss:$48 sps:$4 sm:$0xff]  }
 0x458   :  { %9691 = vmatpush1.bf16.msra.mxu0 %v16711_v46  ;;  %10019 = vmatpush1.bf16.msra.mxu1 %v16714_v49  ;;  %v16786_v46 = vld [vmem:[#allocation5 + $0xe08] ss:$48 sps:$4 sm:$0xff]   ;;  %v16791_v49 = vld [vmem:[#allocation5 + $0xe64] ss:$48 sps:$4 sm:$0xff]  }
 0x459   :  { %9692 = vmatprep.subr.bf16.mxu0 %v16719_v50  ;;  %10020 = vmatprep.subr.bf16.mxu1 %v16722_v51  ;;  %v16794_v50 = vld [vmem:[#allocation5 + $0xe6c] ss:$48 sps:$4 sm:$0xff]   ;;  %v16789_v51 = vld [vmem:[#allocation5 + $0xe60] ss:$48 sps:$4 sm:$0xff]  }
 0x45c   :  { %9693 = vmatpush1.bf16.msra.mxu0 %v16717_v53  ;;  %10021 = vmatpush1.bf16.msra.mxu1 %v16720_v54  ;;  %v16792_v53 = vld [vmem:[#allocation5 + $0xe68] ss:$48 sps:$4 sm:$0xff]   ;;  %v16797_v54 = vld [vmem:[#allocation5 + $0xec4] ss:$48 sps:$4 sm:$0xff]  }
 0x45d   :  { %9694 = vmatprep.subr.bf16.mxu0 %v16725_v55  ;;  %10022 = vmatprep.subr.bf16.mxu1 %v16728_v56  ;;  %v16800_v55 = vld [vmem:[#allocation5 + $0xecc] ss:$48 sps:$4 sm:$0xff]   ;;  %v16795_v56 = vld [vmem:[#allocation5 + $0xec0] ss:$48 sps:$4 sm:$0xff]  }
 0x460   :  { %9695 = vmatpush1.bf16.msra.mxu0 %v16723_v57  ;;  %10023 = vmatpush1.bf16.msra.mxu1 %v16726_v48  ;;  %v16798_v57 = vld [vmem:[#allocation5 + $0xec8] ss:$48 sps:$4 sm:$0xff]   ;;  %v16803_v48 = vld [vmem:[#allocation5 + $0xf24] ss:$48 sps:$4 sm:$0xff]  }
 0x461   :  { %9696 = vmatprep.subr.bf16.mxu0 %v16731_v58  ;;  %10024 = vmatprep.subr.bf16.mxu1 %v16734_v59  ;;  %v16806_v58 = vld [vmem:[#allocation5 + $0xf2c] ss:$48 sps:$4 sm:$0xff]   ;;  %v16801_v59 = vld [vmem:[#allocation5 + $0xf20] ss:$48 sps:$4 sm:$0xff]  }
 0x464   :  { %9697 = vmatpush1.bf16.msra.mxu0 %v16729_v60  ;;  %10025 = vmatpush1.bf16.msra.mxu1 %v16732_v2  ;;  %v16804_v60 = vld [vmem:[#allocation5 + $0xf28] ss:$48 sps:$4 sm:$0xff]   ;;  %v16809_v2 = vld [vmem:[#allocation5 + $0xf84] ss:$48 sps:$4 sm:$0xff]  }
 0x465   :  { %9698 = vmatprep.subr.bf16.mxu0 %v16737_v4  ;;  %10026 = vmatprep.subr.bf16.mxu1 %v16740_v6  ;;  %v16812_v4 = vld [vmem:[#allocation5 + $0xf8c] ss:$48 sps:$4 sm:$0xff]   ;;  %v16807_v6 = vld [vmem:[#allocation5 + $0xf80] ss:$48 sps:$4 sm:$0xff]  }
 0x468   :  { %9699 = vmatpush1.bf16.msra.mxu0 %v16735_v7  ;;  %10027 = vmatpush1.bf16.msra.mxu1 %v16738_v8  ;;  %v16810_v7 = vld [vmem:[#allocation5 + $0xf88] ss:$48 sps:$4 sm:$0xff]   ;;  %v16815_v8 = vld [vmem:[#allocation5 + $0xfe4] ss:$48 sps:$4 sm:$0xff]  }
 0x469   :  { %9700 = vmatprep.subr.bf16.mxu0 %v16743_v9  ;;  %10028 = vmatprep.subr.bf16.mxu1 %v16746_v10  ;;  %v16818_v9 = vld [vmem:[#allocation5 + $0xfec] ss:$48 sps:$4 sm:$0xff]   ;;  %v16813_v10 = vld [vmem:[#allocation5 + $0xfe0] ss:$48 sps:$4 sm:$0xff]  }
 0x46c   :  { %9701 = vmatpush1.bf16.msra.mxu0 %v16741_v11  ;;  %10029 = vmatpush1.bf16.msra.mxu1 %v16744_v12  ;;  %v16816_v11 = vld [vmem:[#allocation5 + $0xfe8] ss:$48 sps:$4 sm:$0xff]   ;;  %v16821_v12 = vld [vmem:[#allocation5 + $0x1044] ss:$48 sps:$4 sm:$0xff]  }
 0x46d   :  { %9702 = vmatprep.subr.bf16.mxu0 %v16749_v5  ;;  %10030 = vmatprep.subr.bf16.mxu1 %v16752_v14  ;;  %v16824_v5 = vld [vmem:[#allocation5 + $0x104c] ss:$48 sps:$4 sm:$0xff]   ;;  %v16819_v14 = vld [vmem:[#allocation5 + $0x1040] ss:$48 sps:$4 sm:$0xff]  }
 0x470   :  { %9703 = vmatpush1.bf16.msra.mxu0 %v16747_v15  ;;  %10031 = vmatpush1.bf16.msra.mxu1 %v16750_v16  ;;  %v16822_v15 = vld [vmem:[#allocation5 + $0x1048] ss:$48 sps:$4 sm:$0xff]   ;;  %v16827_v16 = vld [vmem:[#allocation5 + $0x10a4] ss:$48 sps:$4 sm:$0xff]  }
 0x471   :  { %9713 = vmatprep.subr.bf16.mxu0 %v16755_v18  ;;  %10041 = vmatprep.subr.bf16.mxu1 %v16758_v19  ;;  %v16830_v18 = vld [vmem:[#allocation5 + $0x10ac] ss:$48 sps:$4 sm:$0xff]   ;;  %v16825_v19 = vld [vmem:[#allocation5 + $0x10a0] ss:$48 sps:$4 sm:$0xff]  }
 0x473   :  { %9705 = vmatmul.mubr.bf16.vlgmr.msra.gmra.mrb[8].mxu0 %v18115_v13  ;;  %10033 = vmatmul.mubr.bf16.vlgmr.msra.gmra.mrb[8].mxu1 %v18115_v13  ;;  %v16776_v13 = vld [vmem:[#allocation5 + $0xd4c] ss:$48 sps:$4 sm:$0xff]  }
 0x474   :  { %9714 = vmatpush1.bf16.msra.mxu0 %v16753_v32  ;;  %10042 = vmatpush1.bf16.msra.mxu1 %v16756_v20  ;;  %v16828_v32 = vld [vmem:[#allocation5 + $0x10a8] ss:$48 sps:$4 sm:$0xff]   ;;  %v16833_v20 = vld [vmem:[#allocation5 + $0x1104] ss:$48 sps:$4 sm:$0xff]  }
 0x475   :  { %9715 = vmatprep.subr.bf16.mxu0 %v16761_v23  ;;  %10043 = vmatprep.subr.bf16.mxu1 %v16764_v24  ;;  %v16836_v23 = vld [vmem:[#allocation5 + $0x110c] ss:$48 sps:$4 sm:$0xff]   ;;  %v16831_v24 = vld [vmem:[#allocation5 + $0x1100] ss:$48 sps:$4 sm:$0xff]  }
 0x476   :  { %9745 = vmatprep.mubr.bf16.mxu0 %v18117_v17  ;;  %10073 = vmatprep.mubr.bf16.mxu1 %v18117_v17  ;;  %v16780_v17 = vld [vmem:[#allocation5 + $0xda8] ss:$48 sps:$4 sm:$0xff]  }
 0x478   :  { %9716 = vmatpush1.bf16.msra.mxu0 %v16759_v25  ;;  %10044 = vmatpush1.bf16.msra.mxu1 %v16762_v27  ;;  %v16834_v25 = vld [vmem:[#allocation5 + $0x1108] ss:$48 sps:$4 sm:$0xff]   ;;  %v16839_v27 = vld [vmem:[#allocation5 + $0x1164] ss:$48 sps:$4 sm:$0xff]  }
 0x479   :  { %9717 = vmatprep.subr.bf16.mxu0 %v16767_v29  ;;  %10045 = vmatprep.subr.bf16.mxu1 %v16770_v33  ;;  %v16842_v29 = vld [vmem:[#allocation5 + $0x116c] ss:$48 sps:$4 sm:$0xff]   ;;  %v16837_v33 = vld [vmem:[#allocation5 + $0x1160] ss:$48 sps:$4 sm:$0xff]  }
 0x47c   :  { %9718 = vmatpush1.bf16.msra.mxu0 %v16765_v34  ;;  %10046 = vmatpush1.bf16.msra.mxu1 %v16768_v35  ;;  %v16840_v34 = vld [vmem:[#allocation5 + $0x1168] ss:$48 sps:$4 sm:$0xff]   ;;  %v16845_v35 = vld [vmem:[#allocation5 + $0x11c4] ss:$48 sps:$4 sm:$0xff]  }
 0x47d   :  { %9719 = vmatprep.subr.bf16.mxu0 %v16773_v36  ;;  %10047 = vmatprep.subr.bf16.mxu1 %v16776_v13  ;;  %v16848_v36 = vld [vmem:[#allocation5 + $0x11cc] ss:$48 sps:$4 sm:$0xff]   ;;  %v16843_v13 = vld [vmem:[#allocation5 + $0x11c0] ss:$48 sps:$4 sm:$0xff]  }
 0x480   :  { %9720 = vmatpush1.bf16.msra.mxu0 %v16771_v37  ;;  %10048 = vmatpush1.bf16.msra.mxu1 %v16774_v39  ;;  %v16846_v37 = vld [vmem:[#allocation5 + $0x11c8] ss:$48 sps:$4 sm:$0xff]   ;;  %v16851_v39 = vld [vmem:[#allocation5 + $0x1224] ss:$48 sps:$4 sm:$0xff]  }
 0x481   :  { %9721 = vmatprep.subr.bf16.mxu0 %v16779_v40  ;;  %10049 = vmatprep.subr.bf16.mxu1 %v16782_v41  ;;  %v16854_v40 = vld [vmem:[#allocation5 + $0x122c] ss:$48 sps:$4 sm:$0xff]   ;;  %v16849_v41 = vld [vmem:[#allocation5 + $0x1220] ss:$48 sps:$4 sm:$0xff]  }
 0x484   :  { %9722 = vmatpush1.bf16.msra.mxu0 %v16777_v42  ;;  %10050 = vmatpush1.bf16.msra.mxu1 %v16780_v17  ;;  %v16852_v42 = vld [vmem:[#allocation5 + $0x1228] ss:$48 sps:$4 sm:$0xff]   ;;  %v16857_v17 = vld [vmem:[#allocation5 + $0x1284] ss:$48 sps:$4 sm:$0xff]  }
 0x485   :  { %9723 = vmatprep.subr.bf16.mxu0 %v16785_v43  ;;  %10051 = vmatprep.subr.bf16.mxu1 %v16788_v44  ;;  %v16860_v43 = vld [vmem:[#allocation5 + $0x128c] ss:$48 sps:$4 sm:$0xff]   ;;  %v16855_v44 = vld [vmem:[#allocation5 + $0x1280] ss:$48 sps:$4 sm:$0xff]  }
 0x488   :  { %9724 = vmatpush1.bf16.msra.mxu0 %v16783_v45  ;;  %10052 = vmatpush1.bf16.msra.mxu1 %v16786_v46  ;;  %v16858_v45 = vld [vmem:[#allocation5 + $0x1288] ss:$48 sps:$4 sm:$0xff]   ;;  %v16863_v46 = vld [vmem:[#allocation5 + $0x12e4] ss:$48 sps:$4 sm:$0xff]  }
 0x489   :  { %9725 = vmatprep.subr.bf16.mxu0 %v16791_v49  ;;  %10053 = vmatprep.subr.bf16.mxu1 %v16794_v50  ;;  %v16866_v49 = vld [vmem:[#allocation5 + $0x12ec] ss:$48 sps:$4 sm:$0xff]   ;;  %v16861_v50 = vld [vmem:[#allocation5 + $0x12e0] ss:$48 sps:$4 sm:$0xff]  }
 0x48c   :  { %9726 = vmatpush1.bf16.msra.mxu0 %v16789_v51  ;;  %10054 = vmatpush1.bf16.msra.mxu1 %v16792_v53  ;;  %v16864_v51 = vld [vmem:[#allocation5 + $0x12e8] ss:$48 sps:$4 sm:$0xff]   ;;  %v16869_v53 = vld [vmem:[#allocation5 + $0x1344] ss:$48 sps:$4 sm:$0xff]  }
 0x48d   :  { %9727 = vmatprep.subr.bf16.mxu0 %v16797_v54  ;;  %10055 = vmatprep.subr.bf16.mxu1 %v16800_v55  ;;  %v16867_v54 = vld [vmem:[#allocation5 + $0x1340] ss:$48 sps:$4 sm:$0xff]   ;;  %v16870_v55 = vld [vmem:[#allocation5 + $0x1348] ss:$48 sps:$4 sm:$0xff]  }
 0x490   :  { %9728 = vmatpush1.bf16.msra.mxu0 %v16795_v56  ;;  %10056 = vmatpush1.bf16.msra.mxu1 %v16798_v57  ;;  %v16875_v56 = vld [vmem:[#allocation5 + $0x13a4] ss:$48 sps:$4 sm:$0xff]   ;;  %v16878_v57 = vld [vmem:[#allocation5 + $0x13ac] ss:$48 sps:$4 sm:$0xff]  }
 0x491   :  { %9729 = vmatprep.subr.bf16.mxu0 %v16803_v48  ;;  %10057 = vmatprep.subr.bf16.mxu1 %v16806_v58  ;;  %v16873_v48 = vld [vmem:[#allocation5 + $0x13a0] ss:$48 sps:$4 sm:$0xff]   ;;  %v16881_v58 = vld [vmem:[#allocation5 + $0x1404] ss:$48 sps:$4 sm:$0xff]  }
 0x494   :  { %9730 = vmatpush1.bf16.msra.mxu0 %v16801_v59  ;;  %10058 = vmatpush1.bf16.msra.mxu1 %v16804_v60  ;;  %v16884_v59 = vld [vmem:[#allocation5 + $0x140c] ss:$48 sps:$4 sm:$0xff]   ;;  %v16879_v60 = vld [vmem:[#allocation5 + $0x1400] ss:$48 sps:$4 sm:$0xff]  }
 0x495   :  { %9731 = vmatprep.subr.bf16.mxu0 %v16809_v2  ;;  %10059 = vmatprep.subr.bf16.mxu1 %v16812_v4  ;;  %v16882_v2 = vld [vmem:[#allocation5 + $0x1408] ss:$48 sps:$4 sm:$0xff]   ;;  %v16887_v4 = vld [vmem:[#allocation5 + $0x1464] ss:$48 sps:$4 sm:$0xff]  }
 0x498   :  { %9732 = vmatpush1.bf16.msra.mxu0 %v16807_v6  ;;  %10060 = vmatpush1.bf16.msra.mxu1 %v16810_v7  ;;  %v16890_v6 = vld [vmem:[#allocation5 + $0x146c] ss:$48 sps:$4 sm:$0xff]  }
 0x499   :  { %9733 = vmatprep.subr.bf16.mxu0 %v16815_v8  ;;  %10061 = vmatprep.subr.bf16.mxu1 %v16818_v9 }
 0x49c   :  { %9734 = vmatpush1.bf16.msra.mxu0 %v16813_v10  ;;  %10062 = vmatpush1.bf16.msra.mxu1 %v16816_v11 }
 0x49d   :  { %9735 = vmatprep.subr.bf16.mxu0 %v16821_v12  ;;  %10063 = vmatprep.subr.bf16.mxu1 %v16824_v5  ;;  %v16885_v5 = vld [vmem:[#allocation5 + $0x1460] ss:$48 sps:$4 sm:$0xff]  }
 0x4a0   :  { %9736 = vmatpush1.bf16.msra.mxu0 %v16819_v14  ;;  %10064 = vmatpush1.bf16.msra.mxu1 %v16822_v15  ;;  %v16888_v14 = vld [vmem:[#allocation5 + $0x1468] ss:$48 sps:$4 sm:$0xff]  }
 0x4a1   :  { %9737 = vmatprep.subr.bf16.mxu0 %v16827_v16  ;;  %10065 = vmatprep.subr.bf16.mxu1 %v16830_v18  ;;  %v16893_v18 = vld [vmem:[#allocation5 + $0x14c4] ss:$48 sps:$4 sm:$0xff]  }
 0x4a4   :  { %9738 = vmatpush1.bf16.msra.mxu0 %v16825_v19  ;;  %10066 = vmatpush1.bf16.msra.mxu1 %v16828_v32  ;;  %v16896_v19 = vld [vmem:[#allocation5 + $0x14cc] ss:$48 sps:$4 sm:$0xff]   ;;  %v16891_v32 = vld [vmem:[#allocation5 + $0x14c0] ss:$48 sps:$4 sm:$0xff]  }
 0x4a5   :  { %9739 = vmatprep.subr.bf16.mxu0 %v16833_v20  ;;  %10067 = vmatprep.subr.bf16.mxu1 %v16836_v23  ;;  %v16894_v20 = vld [vmem:[#allocation5 + $0x14c8] ss:$48 sps:$4 sm:$0xff]   ;;  %v16899_v23 = vld [vmem:[#allocation5 + $0x1524] ss:$48 sps:$4 sm:$0xff]  }
 0x4a8   :  { %9740 = vmatpush1.bf16.msra.mxu0 %v16831_v24  ;;  %10068 = vmatpush1.bf16.msra.mxu1 %v16834_v25  ;;  %v16902_v24 = vld [vmem:[#allocation5 + $0x152c] ss:$48 sps:$4 sm:$0xff]   ;;  %v16897_v25 = vld [vmem:[#allocation5 + $0x1520] ss:$48 sps:$4 sm:$0xff]  }
 0x4a9   :  { %9741 = vmatprep.subr.bf16.mxu0 %v16839_v27  ;;  %10069 = vmatprep.subr.bf16.mxu1 %v16842_v29  ;;  %v16900_v27 = vld [vmem:[#allocation5 + $0x1528] ss:$48 sps:$4 sm:$0xff]   ;;  %v16905_v29 = vld [vmem:[#allocation5 + $0x1584] ss:$48 sps:$4 sm:$0xff]  }
 0x4ac   :  { %9742 = vmatpush1.bf16.msra.mxu0 %v16837_v33  ;;  %10070 = vmatpush1.bf16.msra.mxu1 %v16840_v34  ;;  %v16908_v33 = vld [vmem:[#allocation5 + $0x158c] ss:$48 sps:$4 sm:$0xff]   ;;  %v16903_v34 = vld [vmem:[#allocation5 + $0x1580] ss:$48 sps:$4 sm:$0xff]  }
 0x4ad   :  { %9743 = vmatprep.subr.bf16.mxu0 %v16845_v35  ;;  %10071 = vmatprep.subr.bf16.mxu1 %v16848_v36  ;;  %v16906_v35 = vld [vmem:[#allocation5 + $0x1588] ss:$48 sps:$4 sm:$0xff]   ;;  %v16911_v36 = vld [vmem:[#allocation5 + $0x15e4] ss:$48 sps:$4 sm:$0xff]  }
 0x4b0   :  { %9744 = vmatpush1.bf16.msra.mxu0 %v16843_v13  ;;  %10072 = vmatpush1.bf16.msra.mxu1 %v16846_v37  ;;  %v16914_v13 = vld [vmem:[#allocation5 + $0x15ec] ss:$48 sps:$4 sm:$0xff]   ;;  %v16909_v37 = vld [vmem:[#allocation5 + $0x15e0] ss:$48 sps:$4 sm:$0xff]  }
 0x4b1   :  { %9754 = vmatprep.subr.bf16.mxu0 %v16851_v39  ;;  %10082 = vmatprep.subr.bf16.mxu1 %v16854_v40  ;;  %v16912_v39 = vld [vmem:[#allocation5 + $0x15e8] ss:$48 sps:$4 sm:$0xff]   ;;  %v16917_v40 = vld [vmem:[#allocation5 + $0x1644] ss:$48 sps:$4 sm:$0xff]  }
 0x4b3   :  { %9746 = vmatmul.mubr.bf16.vlgmr.msra.gmra.mrb[8].mxu0 %v18123_v22  ;;  %10074 = vmatmul.mubr.bf16.vlgmr.msra.gmra.mrb[8].mxu1 %v18123_v22  ;;  %v16872_v22 = vld [vmem:[#allocation5 + $0x134c] ss:$48 sps:$4 sm:$0xff]  }
 0x4b4   :  { %9755 = vmatpush1.bf16.msra.mxu0 %v16849_v41  ;;  %10083 = vmatpush1.bf16.msra.mxu1 %v16852_v42  ;;  %v16920_v41 = vld [vmem:[#allocation5 + $0x164c] ss:$48 sps:$4 sm:$0xff]   ;;  %v16915_v42 = vld [vmem:[#allocation5 + $0x1640] ss:$48 sps:$4 sm:$0xff]  }
 0x4b5   :  { %9756 = vmatprep.subr.bf16.mxu0 %v16857_v17  ;;  %10084 = vmatprep.subr.bf16.mxu1 %v16860_v43  ;;  %v16918_v17 = vld [vmem:[#allocation5 + $0x1648] ss:$48 sps:$4 sm:$0xff]   ;;  %v16923_v43 = vld [vmem:[#allocation5 + $0x16a4] ss:$48 sps:$4 sm:$0xff]  }
 0x4b6   :  { %9786 = vmatprep.mubr.bf16.mxu0 %v18125_v26  ;;  %10114 = vmatprep.mubr.bf16.mxu1 %v18125_v26  ;;  %v16876_v26 = vld [vmem:[#allocation5 + $0x13a8] ss:$48 sps:$4 sm:$0xff]  }
 0x4b8   :  { %9757 = vmatpush1.bf16.msra.mxu0 %v16855_v44  ;;  %10085 = vmatpush1.bf16.msra.mxu1 %v16858_v45  ;;  %v16926_v44 = vld [vmem:[#allocation5 + $0x16ac] ss:$48 sps:$4 sm:$0xff]   ;;  %v16921_v45 = vld [vmem:[#allocation5 + $0x16a0] ss:$48 sps:$4 sm:$0xff]  }
 0x4b9   :  { %9758 = vmatprep.subr.bf16.mxu0 %v16863_v46  ;;  %10086 = vmatprep.subr.bf16.mxu1 %v16866_v49  ;;  %v16924_v46 = vld [vmem:[#allocation5 + $0x16a8] ss:$48 sps:$4 sm:$0xff]   ;;  %v16929_v49 = vld [vmem:[#allocation5 + $0x1704] ss:$48 sps:$4 sm:$0xff]  }
 0x4bc   :  { %9759 = vmatpush1.bf16.msra.mxu0 %v16861_v50  ;;  %10087 = vmatpush1.bf16.msra.mxu1 %v16864_v51  ;;  %v16932_v50 = vld [vmem:[#allocation5 + $0x170c] ss:$48 sps:$4 sm:$0xff]   ;;  %v16927_v51 = vld [vmem:[#allocation5 + $0x1700] ss:$48 sps:$4 sm:$0xff]  }
 0x4bd   :  { %9760 = vmatprep.subr.bf16.mxu0 %v16869_v53  ;;  %10088 = vmatprep.subr.bf16.mxu1 %v16872_v22  ;;  %v16930_v53 = vld [vmem:[#allocation5 + $0x1708] ss:$48 sps:$4 sm:$0xff]   ;;  %v16935_v22 = vld [vmem:[#allocation5 + $0x1764] ss:$48 sps:$4 sm:$0xff]  }
 0x4c0   :  { %9761 = vmatpush1.bf16.msra.mxu0 %v16867_v54  ;;  %10089 = vmatpush1.bf16.msra.mxu1 %v16870_v55  ;;  %v16938_v54 = vld [vmem:[#allocation5 + $0x176c] ss:$48 sps:$4 sm:$0xff]   ;;  %v16933_v55 = vld [vmem:[#allocation5 + $0x1760] ss:$48 sps:$4 sm:$0xff]  }
 0x4c1   :  { %9762 = vmatprep.subr.bf16.mxu0 %v16875_v56  ;;  %10090 = vmatprep.subr.bf16.mxu1 %v16878_v57  ;;  %v16936_v56 = vld [vmem:[#allocation5 + $0x1768] ss:$48 sps:$4 sm:$0xff]   ;;  %v16941_v57 = vld [vmem:[#allocation5 + $0x17c4] ss:$48 sps:$4 sm:$0xff]  }
 0x4c4   :  { %9763 = vmatpush1.bf16.msra.mxu0 %v16873_v48  ;;  %10091 = vmatpush1.bf16.msra.mxu1 %v16876_v26  ;;  %v16944_v48 = vld [vmem:[#allocation5 + $0x17cc] ss:$48 sps:$4 sm:$0xff]   ;;  %v16939_v26 = vld [vmem:[#allocation5 + $0x17c0] ss:$48 sps:$4 sm:$0xff]  }
 0x4c5   :  { %9764 = vmatprep.subr.bf16.mxu0 %v16881_v58  ;;  %10092 = vmatprep.subr.bf16.mxu1 %v16884_v59  ;;  %v16942_v58 = vld [vmem:[#allocation5 + $0x17c8] ss:$48 sps:$4 sm:$0xff]   ;;  %v16947_v59 = vld [vmem:[#allocation5 + $0x1824] ss:$48 sps:$4 sm:$0xff]  }
 0x4c6   :  { %v18231_v7 = vpop.f32.mrb[4].mxu0  ;;  %v18233_v8 = vpop.f32.mrb[4].mxu1 }
 0x4c7   :  { %v18235_v9 = vpop.f32.mrb[5].mxu0  ;;  %v18237_v10 = vpop.f32.mrb[5].mxu1 }
 0x4c8   :  { %9765 = vmatpush1.bf16.msra.mxu0 %v16879_v60  ;;  %10093 = vmatpush1.bf16.msra.mxu1 %v16882_v2  ;;  %v9300_v11 = vpop.f32.mrb[6].mxu0  ;;  %v9628_v12 = vpop.f32.mrb[6].mxu1  ;;  %v16950_v60 = vld [vmem:[#allocation5 + $0x182c] ss:$48 sps:$4 sm:$0xff]   ;;  %v16945_v2 = vld [vmem:[#allocation5 + $0x1820] ss:$48 sps:$4 sm:$0xff]  }
 0x4c9   :  { %v9301_v15 = vpop.f32.mrb[7].mxu0  ;;  %v9629_v16 = vpop.f32.mrb[7].mxu1  ;;  %9766 = vmatprep.subr.bf16.mxu0 %v16887_v4  ;;  %10094 = vmatprep.subr.bf16.mxu1 %v16890_v6  ;;  %v16948_v4 = vld [vmem:[#allocation5 + $0x1828] ss:$48 sps:$4 sm:$0xff]   ;;  %v16953_v6 = vld [vmem:[#allocation5 + $0x1884] ss:$48 sps:$4 sm:$0xff]  }
 0x4ca   :  { %v16956_v11 = vld [vmem:[#allocation5 + $0x188c] ss:$48 sps:$4 sm:$0xff]   ;;  %v16951_v12 = vld [vmem:[#allocation5 + $0x1880] ss:$48 sps:$4 sm:$0xff]  }
 0x4cb   :  { %v16962_v15 = vld [vmem:[#allocation5 + $0x18ec] ss:$48 sps:$4 sm:$0xff]   ;;  %v16957_v16 = vld [vmem:[#allocation5 + $0x18e0] ss:$48 sps:$4 sm:$0xff]  }
 0x4cc   :  { %9767 = vmatpush1.bf16.msra.mxu0 %v16885_v5  ;;  %10095 = vmatpush1.bf16.msra.mxu1 %v16888_v14  ;;  %v16954_v5 = vld [vmem:[#allocation5 + $0x1888] ss:$48 sps:$4 sm:$0xff]   ;;  %v16959_v14 = vld [vmem:[#allocation5 + $0x18e4] ss:$48 sps:$4 sm:$0xff]  }
 0x4cd   :  { %9768 = vmatprep.subr.bf16.mxu0 %v16893_v18  ;;  %10096 = vmatprep.subr.bf16.mxu1 %v16896_v19  ;;  %v16960_v18 = vld [vmem:[#allocation5 + $0x18e8] ss:$48 sps:$4 sm:$0xff]   ;;  %v16965_v19 = vld [vmem:[#allocation5 + $0x1944] ss:$48 sps:$4 sm:$0xff]  }
 0x4d0   :  { %9769 = vmatpush1.bf16.msra.mxu0 %v16891_v32  ;;  %10097 = vmatpush1.bf16.msra.mxu1 %v16894_v20  ;;  %v16963_v32 = vld [vmem:[#allocation5 + $0x1940] ss:$48 sps:$4 sm:$0xff]   ;;  %v16966_v20 = vld [vmem:[#allocation5 + $0x1948] ss:$48 sps:$4 sm:$0xff]  }
 0x4d1   :  { %9770 = vmatprep.subr.bf16.mxu0 %v16899_v23  ;;  %10098 = vmatprep.subr.bf16.mxu1 %v16902_v24  ;;  %v16971_v23 = vld [vmem:[#allocation5 + $0x19a4] ss:$48 sps:$4 sm:$0xff]   ;;  %v16974_v24 = vld [vmem:[#allocation5 + $0x19ac] ss:$48 sps:$4 sm:$0xff]  }
 0x4d4   :  { %9771 = vmatpush1.bf16.msra.mxu0 %v16897_v25  ;;  %10099 = vmatpush1.bf16.msra.mxu1 %v16900_v27  ;;  %v16969_v25 = vld [vmem:[#allocation5 + $0x19a0] ss:$48 sps:$4 sm:$0xff]   ;;  %v16977_v27 = vld [vmem:[#allocation5 + $0x1a04] ss:$48 sps:$4 sm:$0xff]  }
 0x4d5   :  { %9772 = vmatprep.subr.bf16.mxu0 %v16905_v29  ;;  %10100 = vmatprep.subr.bf16.mxu1 %v16908_v33  ;;  %v16980_v29 = vld [vmem:[#allocation5 + $0x1a0c] ss:$48 sps:$4 sm:$0xff]   ;;  %v16975_v33 = vld [vmem:[#allocation5 + $0x1a00] ss:$48 sps:$4 sm:$0xff]  }
 0x4d8   :  { %9773 = vmatpush1.bf16.msra.mxu0 %v16903_v34  ;;  %10101 = vmatpush1.bf16.msra.mxu1 %v16906_v35  ;;  %v16978_v34 = vld [vmem:[#allocation5 + $0x1a08] ss:$48 sps:$4 sm:$0xff]   ;;  %v16983_v35 = vld [vmem:[#allocation5 + $0x1a64] ss:$48 sps:$4 sm:$0xff]  }
 0x4d9   :  { %9774 = vmatprep.subr.bf16.mxu0 %v16911_v36  ;;  %10102 = vmatprep.subr.bf16.mxu1 %v16914_v13  ;;  %v16986_v36 = vld [vmem:[#allocation5 + $0x1a6c] ss:$48 sps:$4 sm:$0xff]   ;;  %v16981_v13 = vld [vmem:[#allocation5 + $0x1a60] ss:$48 sps:$4 sm:$0xff]  }
 0x4dc   :  { %9775 = vmatpush1.bf16.msra.mxu0 %v16909_v37  ;;  %10103 = vmatpush1.bf16.msra.mxu1 %v16912_v39  ;;  %v16984_v37 = vld [vmem:[#allocation5 + $0x1a68] ss:$48 sps:$4 sm:$0xff]   ;;  %v16989_v39 = vld [vmem:[#allocation5 + $0x1ac4] ss:$48 sps:$4 sm:$0xff]  }
 0x4dd   :  { %9776 = vmatprep.subr.bf16.mxu0 %v16917_v40  ;;  %10104 = vmatprep.subr.bf16.mxu1 %v16920_v41  ;;  %v16992_v40 = vld [vmem:[#allocation5 + $0x1acc] ss:$48 sps:$4 sm:$0xff]   ;;  %v16987_v41 = vld [vmem:[#allocation5 + $0x1ac0] ss:$48 sps:$4 sm:$0xff]  }
 0x4e0   :  { %9777 = vmatpush1.bf16.msra.mxu0 %v16915_v42  ;;  %10105 = vmatpush1.bf16.msra.mxu1 %v16918_v17  ;;  %v16990_v42 = vld [vmem:[#allocation5 + $0x1ac8] ss:$48 sps:$4 sm:$0xff]   ;;  %v16995_v17 = vld [vmem:[#allocation5 + $0x1b24] ss:$48 sps:$4 sm:$0xff]  }
 0x4e1   :  { %9778 = vmatprep.subr.bf16.mxu0 %v16923_v43  ;;  %10106 = vmatprep.subr.bf16.mxu1 %v16926_v44  ;;  %v16998_v43 = vld [vmem:[#allocation5 + $0x1b2c] ss:$48 sps:$4 sm:$0xff]   ;;  %v16993_v44 = vld [vmem:[#allocation5 + $0x1b20] ss:$48 sps:$4 sm:$0xff]  }
 0x4e4   :  { %9779 = vmatpush1.bf16.msra.mxu0 %v16921_v45  ;;  %10107 = vmatpush1.bf16.msra.mxu1 %v16924_v46  ;;  %v16996_v45 = vld [vmem:[#allocation5 + $0x1b28] ss:$48 sps:$4 sm:$0xff]   ;;  %v17001_v46 = vld [vmem:[#allocation5 + $0x1b84] ss:$48 sps:$4 sm:$0xff]  }
 0x4e5   :  { %9780 = vmatprep.subr.bf16.mxu0 %v16929_v49  ;;  %10108 = vmatprep.subr.bf16.mxu1 %v16932_v50  ;;  %v17004_v49 = vld [vmem:[#allocation5 + $0x1b8c] ss:$48 sps:$4 sm:$0xff]   ;;  %v16999_v50 = vld [vmem:[#allocation5 + $0x1b80] ss:$48 sps:$4 sm:$0xff]  }
 0x4e8   :  { %9781 = vmatpush1.bf16.msra.mxu0 %v16927_v51  ;;  %10109 = vmatpush1.bf16.msra.mxu1 %v16930_v53  ;;  %v17002_v51 = vld [vmem:[#allocation5 + $0x1b88] ss:$48 sps:$4 sm:$0xff]   ;;  %v17007_v53 = vld [vmem:[#allocation5 + $0x1be4] ss:$48 sps:$4 sm:$0xff]  }
 0x4e9   :  { %9782 = vmatprep.subr.bf16.mxu0 %v16935_v22  ;;  %10110 = vmatprep.subr.bf16.mxu1 %v16938_v54  ;;  %v17010_v22 = vld [vmem:[#allocation5 + $0x1bec] ss:$48 sps:$4 sm:$0xff]   ;;  %v17005_v54 = vld [vmem:[#allocation5 + $0x1be0] ss:$48 sps:$4 sm:$0xff]  }
 0x4ec   :  { %9783 = vmatpush1.bf16.msra.mxu0 %v16933_v55  ;;  %10111 = vmatpush1.bf16.msra.mxu1 %v16936_v56  ;;  %v17008_v55 = vld [vmem:[#allocation5 + $0x1be8] ss:$48 sps:$4 sm:$0xff]   ;;  %v17013_v56 = vld [vmem:[#allocation5 + $0x1c44] ss:$48 sps:$4 sm:$0xff]  }
 0x4ed   :  { %9784 = vmatprep.subr.bf16.mxu0 %v16941_v57  ;;  %10112 = vmatprep.subr.bf16.mxu1 %v16944_v48  ;;  %v17016_v57 = vld [vmem:[#allocation5 + $0x1c4c] ss:$48 sps:$4 sm:$0xff]   ;;  %v17011_v48 = vld [vmem:[#allocation5 + $0x1c40] ss:$48 sps:$4 sm:$0xff]  }
 0x4f0   :  { %9785 = vmatpush1.bf16.msra.mxu0 %v16939_v26  ;;  %10113 = vmatpush1.bf16.msra.mxu1 %v16942_v58  ;;  %v17014_v26 = vld [vmem:[#allocation5 + $0x1c48] ss:$48 sps:$4 sm:$0xff]   ;;  %v17019_v58 = vld [vmem:[#allocation5 + $0x1ca4] ss:$48 sps:$4 sm:$0xff]  }
 0x4f1   :  { %9795 = vmatprep.subr.bf16.mxu0 %v16947_v59  ;;  %10123 = vmatprep.subr.bf16.mxu1 %v16950_v60  ;;  %v17022_v59 = vld [vmem:[#allocation5 + $0x1cac] ss:$48 sps:$4 sm:$0xff]   ;;  %v17017_v60 = vld [vmem:[#allocation5 + $0x1ca0] ss:$48 sps:$4 sm:$0xff]  }
 0x4f3   :  { %9787 = vmatmul.mubr.bf16.vlgmr.msra.gmra.mrb[8].mxu0 %v18131_v31  ;;  %10115 = vmatmul.mubr.bf16.vlgmr.msra.gmra.mrb[8].mxu1 %v18131_v31  ;;  %v16968_v31 = vld [vmem:[#allocation5 + $0x194c] ss:$48 sps:$4 sm:$0xff]  }
 0x4f4   :  { %9796 = vmatpush1.bf16.msra.mxu0 %v16945_v2  ;;  %10124 = vmatpush1.bf16.msra.mxu1 %v16948_v4  ;;  %v17020_v2 = vld [vmem:[#allocation5 + $0x1ca8] ss:$48 sps:$4 sm:$0xff]   ;;  %v17025_v4 = vld [vmem:[#allocation5 + $0x1d04] ss:$48 sps:$4 sm:$0xff]  }
 0x4f5   :  { %9797 = vmatprep.subr.bf16.mxu0 %v16953_v6  ;;  %10125 = vmatprep.subr.bf16.mxu1 %v16956_v11  ;;  %v17028_v6 = vld [vmem:[#allocation5 + $0x1d0c] ss:$48 sps:$4 sm:$0xff]   ;;  %v17023_v11 = vld [vmem:[#allocation5 + $0x1d00] ss:$48 sps:$4 sm:$0xff]  }
 0x4f6   :  { %9827 = vmatprep.mubr.bf16.mxu0 %v18133_v38  ;;  %10155 = vmatprep.mubr.bf16.mxu1 %v18133_v38  ;;  %v16972_v38 = vld [vmem:[#allocation5 + $0x19a8] ss:$48 sps:$4 sm:$0xff]  }
 0x4f8   :  { %9798 = vmatpush1.bf16.msra.mxu0 %v16951_v12  ;;  %10126 = vmatpush1.bf16.msra.mxu1 %v16954_v5  ;;  %v17026_v12 = vld [vmem:[#allocation5 + $0x1d08] ss:$48 sps:$4 sm:$0xff]   ;;  %v17031_v5 = vld [vmem:[#allocation5 + $0x1d64] ss:$48 sps:$4 sm:$0xff]  }
 0x4f9   :  { %9799 = vmatprep.subr.bf16.mxu0 %v16959_v14  ;;  %10127 = vmatprep.subr.bf16.mxu1 %v16962_v15  ;;  %v17034_v14 = vld [vmem:[#allocation5 + $0x1d6c] ss:$48 sps:$4 sm:$0xff]   ;;  %v17029_v15 = vld [vmem:[#allocation5 + $0x1d60] ss:$48 sps:$4 sm:$0xff]  }
 0x4fc   :  { %9800 = vmatpush1.bf16.msra.mxu0 %v16957_v16  ;;  %10128 = vmatpush1.bf16.msra.mxu1 %v16960_v18  ;;  %v17032_v16 = vld [vmem:[#allocation5 + $0x1d68] ss:$48 sps:$4 sm:$0xff]   ;;  %v17037_v18 = vld [vmem:[#allocation5 + $0x1dc4] ss:$48 sps:$4 sm:$0xff]  }
 0x4fd   :  { %9801 = vmatprep.subr.bf16.mxu0 %v16965_v19  ;;  %10129 = vmatprep.subr.bf16.mxu1 %v16968_v31  ;;  %v17040_v19 = vld [vmem:[#allocation5 + $0x1dcc] ss:$48 sps:$4 sm:$0xff]   ;;  %v17035_v31 = vld [vmem:[#allocation5 + $0x1dc0] ss:$48 sps:$4 sm:$0xff]  }
 0x500   :  { %9802 = vmatpush1.bf16.msra.mxu0 %v16963_v32  ;;  %10130 = vmatpush1.bf16.msra.mxu1 %v16966_v20  ;;  %v17038_v32 = vld [vmem:[#allocation5 + $0x1dc8] ss:$48 sps:$4 sm:$0xff]   ;;  %v17043_v20 = vld [vmem:[#allocation5 + $0x1e24] ss:$48 sps:$4 sm:$0xff]  }
 0x501   :  { %9803 = vmatprep.subr.bf16.mxu0 %v16971_v23  ;;  %10131 = vmatprep.subr.bf16.mxu1 %v16974_v24  ;;  %v17046_v23 = vld [vmem:[#allocation5 + $0x1e2c] ss:$48 sps:$4 sm:$0xff]   ;;  %v17041_v24 = vld [vmem:[#allocation5 + $0x1e20] ss:$48 sps:$4 sm:$0xff]  }
 0x504   :  { %9804 = vmatpush1.bf16.msra.mxu0 %v16969_v25  ;;  %10132 = vmatpush1.bf16.msra.mxu1 %v16972_v38  ;;  %v17044_v25 = vld [vmem:[#allocation5 + $0x1e28] ss:$48 sps:$4 sm:$0xff]   ;;  %v17049_v38 = vld [vmem:[#allocation5 + $0x1e84] ss:$48 sps:$4 sm:$0xff]  }
 0x505   :  { %9805 = vmatprep.subr.bf16.mxu0 %v16977_v27  ;;  %10133 = vmatprep.subr.bf16.mxu1 %v16980_v29  ;;  %v17052_v27 = vld [vmem:[#allocation5 + $0x1e8c] ss:$48 sps:$4 sm:$0xff]   ;;  %v17047_v29 = vld [vmem:[#allocation5 + $0x1e80] ss:$48 sps:$4 sm:$0xff]  }
 0x508   :  { %9806 = vmatpush1.bf16.msra.mxu0 %v16975_v33  ;;  %10134 = vmatpush1.bf16.msra.mxu1 %v16978_v34  ;;  %v17050_v33 = vld [vmem:[#allocation5 + $0x1e88] ss:$48 sps:$4 sm:$0xff]   ;;  %v17055_v34 = vld [vmem:[#allocation5 + $0x1ee4] ss:$48 sps:$4 sm:$0xff]  }
 0x509   :  { %9807 = vmatprep.subr.bf16.mxu0 %v16983_v35  ;;  %10135 = vmatprep.subr.bf16.mxu1 %v16986_v36  ;;  %v17058_v35 = vld [vmem:[#allocation5 + $0x1eec] ss:$48 sps:$4 sm:$0xff]   ;;  %v17053_v36 = vld [vmem:[#allocation5 + $0x1ee0] ss:$48 sps:$4 sm:$0xff]  }
 0x50c   :  { %9808 = vmatpush1.bf16.msra.mxu0 %v16981_v13  ;;  %10136 = vmatpush1.bf16.msra.mxu1 %v16984_v37  ;;  %v17056_v13 = vld [vmem:[#allocation5 + $0x1ee8] ss:$48 sps:$4 sm:$0xff]   ;;  %v17061_v37 = vld [vmem:[#allocation5 + $0x1f44] ss:$48 sps:$4 sm:$0xff]  }
 0x50d   :  { %9809 = vmatprep.subr.bf16.mxu0 %v16989_v39  ;;  %10137 = vmatprep.subr.bf16.mxu1 %v16992_v40  ;;  %v17059_v39 = vld [vmem:[#allocation5 + $0x1f40] ss:$48 sps:$4 sm:$0xff]   ;;  %v17062_v40 = vld [vmem:[#allocation5 + $0x1f48] ss:$48 sps:$4 sm:$0xff]  }
 0x510   :  { %9810 = vmatpush1.bf16.msra.mxu0 %v16987_v41  ;;  %10138 = vmatpush1.bf16.msra.mxu1 %v16990_v42  ;;  %v17067_v41 = vld [vmem:[#allocation5 + $0x1fa4] ss:$48 sps:$4 sm:$0xff]   ;;  %v17070_v42 = vld [vmem:[#allocation5 + $0x1fac] ss:$48 sps:$4 sm:$0xff]  }
 0x511   :  { %9811 = vmatprep.subr.bf16.mxu0 %v16995_v17  ;;  %10139 = vmatprep.subr.bf16.mxu1 %v16998_v43  ;;  %v17065_v17 = vld [vmem:[#allocation5 + $0x1fa0] ss:$48 sps:$4 sm:$0xff]   ;;  %v17073_v43 = vld [vmem:[#allocation5 + $0x2004] ss:$48 sps:$4 sm:$0xff]  }
 0x514   :  { %9812 = vmatpush1.bf16.msra.mxu0 %v16993_v44  ;;  %10140 = vmatpush1.bf16.msra.mxu1 %v16996_v45  ;;  %v17076_v44 = vld [vmem:[#allocation5 + $0x200c] ss:$48 sps:$4 sm:$0xff]   ;;  %v17071_v45 = vld [vmem:[#allocation5 + $0x2000] ss:$48 sps:$4 sm:$0xff]  }
 0x515   :  { %9813 = vmatprep.subr.bf16.mxu0 %v17001_v46  ;;  %10141 = vmatprep.subr.bf16.mxu1 %v17004_v49  ;;  %v17074_v46 = vld [vmem:[#allocation5 + $0x2008] ss:$48 sps:$4 sm:$0xff]   ;;  %v17079_v49 = vld [vmem:[#allocation5 + $0x2064] ss:$48 sps:$4 sm:$0xff]  }
 0x518   :  { %9814 = vmatpush1.bf16.msra.mxu0 %v16999_v50  ;;  %10142 = vmatpush1.bf16.msra.mxu1 %v17002_v51  ;;  %v17082_v50 = vld [vmem:[#allocation5 + $0x206c] ss:$48 sps:$4 sm:$0xff]   ;;  %v17077_v51 = vld [vmem:[#allocation5 + $0x2060] ss:$48 sps:$4 sm:$0xff]  }
 0x519   :  { %9815 = vmatprep.subr.bf16.mxu0 %v17007_v53  ;;  %10143 = vmatprep.subr.bf16.mxu1 %v17010_v22  ;;  %v17080_v53 = vld [vmem:[#allocation5 + $0x2068] ss:$48 sps:$4 sm:$0xff]   ;;  %v17085_v22 = vld [vmem:[#allocation5 + $0x20c4] ss:$48 sps:$4 sm:$0xff]  }
 0x51c   :  { %9816 = vmatpush1.bf16.msra.mxu0 %v17005_v54  ;;  %10144 = vmatpush1.bf16.msra.mxu1 %v17008_v55  ;;  %v17088_v54 = vld [vmem:[#allocation5 + $0x20cc] ss:$48 sps:$4 sm:$0xff]   ;;  %v17083_v55 = vld [vmem:[#allocation5 + $0x20c0] ss:$48 sps:$4 sm:$0xff]  }
 0x51d   :  { %9817 = vmatprep.subr.bf16.mxu0 %v17013_v56  ;;  %10145 = vmatprep.subr.bf16.mxu1 %v17016_v57  ;;  %v17086_v56 = vld [vmem:[#allocation5 + $0x20c8] ss:$48 sps:$4 sm:$0xff]   ;;  %v17091_v57 = vld [vmem:[#allocation5 + $0x2124] ss:$48 sps:$4 sm:$0xff]  }
 0x520   :  { %9818 = vmatpush1.bf16.msra.mxu0 %v17011_v48  ;;  %10146 = vmatpush1.bf16.msra.mxu1 %v17014_v26  ;;  %v17094_v48 = vld [vmem:[#allocation5 + $0x212c] ss:$48 sps:$4 sm:$0xff]   ;;  %v17089_v26 = vld [vmem:[#allocation5 + $0x2120] ss:$48 sps:$4 sm:$0xff]  }
 0x521   :  { %9819 = vmatprep.subr.bf16.mxu0 %v17019_v58  ;;  %10147 = vmatprep.subr.bf16.mxu1 %v17022_v59  ;;  %v17092_v58 = vld [vmem:[#allocation5 + $0x2128] ss:$48 sps:$4 sm:$0xff]   ;;  %v17097_v59 = vld [vmem:[#allocation5 + $0x2184] ss:$48 sps:$4 sm:$0xff]  }
 0x524   :  { %9820 = vmatpush1.bf16.msra.mxu0 %v17017_v60  ;;  %10148 = vmatpush1.bf16.msra.mxu1 %v17020_v2  ;;  %v17100_v60 = vld [vmem:[#allocation5 + $0x218c] ss:$48 sps:$4 sm:$0xff]   ;;  %v17095_v2 = vld [vmem:[#allocation5 + $0x2180] ss:$48 sps:$4 sm:$0xff]  }
 0x525   :  { %9821 = vmatprep.subr.bf16.mxu0 %v17025_v4  ;;  %10149 = vmatprep.subr.bf16.mxu1 %v17028_v6  ;;  %v17098_v4 = vld [vmem:[#allocation5 + $0x2188] ss:$48 sps:$4 sm:$0xff]   ;;  %v17103_v6 = vld [vmem:[#allocation5 + $0x21e4] ss:$48 sps:$4 sm:$0xff]  }
 0x528   :  { %9822 = vmatpush1.bf16.msra.mxu0 %v17023_v11  ;;  %10150 = vmatpush1.bf16.msra.mxu1 %v17026_v12  ;;  %v17106_v11 = vld [vmem:[#allocation5 + $0x21ec] ss:$48 sps:$4 sm:$0xff]   ;;  %v17101_v12 = vld [vmem:[#allocation5 + $0x21e0] ss:$48 sps:$4 sm:$0xff]  }
 0x529   :  { %9823 = vmatprep.subr.bf16.mxu0 %v17031_v5  ;;  %10151 = vmatprep.subr.bf16.mxu1 %v17034_v14  ;;  %v17104_v5 = vld [vmem:[#allocation5 + $0x21e8] ss:$48 sps:$4 sm:$0xff]   ;;  %v17109_v14 = vld [vmem:[#allocation5 + $0x2244] ss:$48 sps:$4 sm:$0xff]  }
 0x52c   :  { %9824 = vmatpush1.bf16.msra.mxu0 %v17029_v15  ;;  %10152 = vmatpush1.bf16.msra.mxu1 %v17032_v16  ;;  %v17112_v15 = vld [vmem:[#allocation5 + $0x224c] ss:$48 sps:$4 sm:$0xff]   ;;  %v17107_v16 = vld [vmem:[#allocation5 + $0x2240] ss:$48 sps:$4 sm:$0xff]  }
 0x52d   :  { %9825 = vmatprep.subr.bf16.mxu0 %v17037_v18  ;;  %10153 = vmatprep.subr.bf16.mxu1 %v17040_v19  ;;  %v17110_v18 = vld [vmem:[#allocation5 + $0x2248] ss:$48 sps:$4 sm:$0xff]   ;;  %v17115_v19 = vld [vmem:[#allocation5 + $0x22a4] ss:$48 sps:$4 sm:$0xff]  }
 0x530   :  { %9826 = vmatpush1.bf16.msra.mxu0 %v17035_v31  ;;  %10154 = vmatpush1.bf16.msra.mxu1 %v17038_v32  ;;  %v17118_v31 = vld [vmem:[#allocation5 + $0x22ac] ss:$48 sps:$4 sm:$0xff]   ;;  %v17113_v32 = vld [vmem:[#allocation5 + $0x22a0] ss:$48 sps:$4 sm:$0xff]  }
 0x531   :  { %9836 = vmatprep.subr.bf16.mxu0 %v17043_v20  ;;  %10164 = vmatprep.subr.bf16.mxu1 %v17046_v23  ;;  %v17116_v20 = vld [vmem:[#allocation5 + $0x22a8] ss:$48 sps:$4 sm:$0xff]   ;;  %v17121_v23 = vld [vmem:[#allocation5 + $0x2304] ss:$48 sps:$4 sm:$0xff]  }
 0x533   :  { %9828 = vmatmul.mubr.bf16.vlgmr.msra.gmra.mrb[8].mxu0 %v18139_v47  ;;  %10156 = vmatmul.mubr.bf16.vlgmr.msra.gmra.mrb[8].mxu1 %v18139_v47  ;;  %v17064_v47 = vld [vmem:[#allocation5 + $0x1f4c] ss:$48 sps:$4 sm:$0xff]  }
 0x534   :  { %9837 = vmatpush1.bf16.msra.mxu0 %v17041_v24  ;;  %10165 = vmatpush1.bf16.msra.mxu1 %v17044_v25  ;;  %v17124_v24 = vld [vmem:[#allocation5 + $0x230c] ss:$48 sps:$4 sm:$0xff]   ;;  %v17119_v25 = vld [vmem:[#allocation5 + $0x2300] ss:$48 sps:$4 sm:$0xff]  }
 0x535   :  { %9838 = vmatprep.subr.bf16.mxu0 %v17049_v38  ;;  %10166 = vmatprep.subr.bf16.mxu1 %v17052_v27  ;;  %v17122_v38 = vld [vmem:[#allocation5 + $0x2308] ss:$48 sps:$4 sm:$0xff]   ;;  %v17127_v27 = vld [vmem:[#allocation5 + $0x2364] ss:$48 sps:$4 sm:$0xff]  }
 0x536   :  { %9868 = vmatprep.mubr.bf16.mxu0 %v18141_v52  ;;  %10196 = vmatprep.mubr.bf16.mxu1 %v18141_v52  ;;  %v17068_v52 = vld [vmem:[#allocation5 + $0x1fa8] ss:$48 sps:$4 sm:$0xff]  }
 0x538   :  { %9839 = vmatpush1.bf16.msra.mxu0 %v17047_v29  ;;  %10167 = vmatpush1.bf16.msra.mxu1 %v17050_v33  ;;  %v17130_v29 = vld [vmem:[#allocation5 + $0x236c] ss:$48 sps:$4 sm:$0xff]   ;;  %v17125_v33 = vld [vmem:[#allocation5 + $0x2360] ss:$48 sps:$4 sm:$0xff]  }
 0x539   :  { %9840 = vmatprep.subr.bf16.mxu0 %v17055_v34  ;;  %10168 = vmatprep.subr.bf16.mxu1 %v17058_v35  ;;  %v17128_v34 = vld [vmem:[#allocation5 + $0x2368] ss:$48 sps:$4 sm:$0xff]   ;;  %v17133_v35 = vld [vmem:[#allocation5 + $0x23c4] ss:$48 sps:$4 sm:$0xff]  }
 0x53c   :  { %9841 = vmatpush1.bf16.msra.mxu0 %v17053_v36  ;;  %10169 = vmatpush1.bf16.msra.mxu1 %v17056_v13  ;;  %v17136_v36 = vld [vmem:[#allocation5 + $0x23cc] ss:$48 sps:$4 sm:$0xff]   ;;  %v17131_v13 = vld [vmem:[#allocation5 + $0x23c0] ss:$48 sps:$4 sm:$0xff]  }
 0x53d   :  { %9842 = vmatprep.subr.bf16.mxu0 %v17061_v37  ;;  %10170 = vmatprep.subr.bf16.mxu1 %v17064_v47  ;;  %v17134_v37 = vld [vmem:[#allocation5 + $0x23c8] ss:$48 sps:$4 sm:$0xff]   ;;  %v17139_v47 = vld [vmem:[#allocation5 + $0x2424] ss:$48 sps:$4 sm:$0xff]  }
 0x540   :  { %9843 = vmatpush1.bf16.msra.mxu0 %v17059_v39  ;;  %10171 = vmatpush1.bf16.msra.mxu1 %v17062_v40  ;;  %v17142_v39 = vld [vmem:[#allocation5 + $0x242c] ss:$48 sps:$4 sm:$0xff]   ;;  %v17137_v40 = vld [vmem:[#allocation5 + $0x2420] ss:$48 sps:$4 sm:$0xff]  }
 0x541   :  { %9844 = vmatprep.subr.bf16.mxu0 %v17067_v41  ;;  %10172 = vmatprep.subr.bf16.mxu1 %v17070_v42  ;;  %v17140_v41 = vld [vmem:[#allocation5 + $0x2428] ss:$48 sps:$4 sm:$0xff]   ;;  %v17145_v42 = vld [vmem:[#allocation5 + $0x2484] ss:$48 sps:$4 sm:$0xff]  }
 0x544   :  { %9845 = vmatpush1.bf16.msra.mxu0 %v17065_v17  ;;  %10173 = vmatpush1.bf16.msra.mxu1 %v17068_v52  ;;  %v17148_v17 = vld [vmem:[#allocation5 + $0x248c] ss:$48 sps:$4 sm:$0xff]   ;;  %v17143_v52 = vld [vmem:[#allocation5 + $0x2480] ss:$48 sps:$4 sm:$0xff]  }
 0x545   :  { %9846 = vmatprep.subr.bf16.mxu0 %v17073_v43  ;;  %10174 = vmatprep.subr.bf16.mxu1 %v17076_v44  ;;  %v17146_v43 = vld [vmem:[#allocation5 + $0x2488] ss:$48 sps:$4 sm:$0xff]   ;;  %v17151_v44 = vld [vmem:[#allocation5 + $0x24e4] ss:$48 sps:$4 sm:$0xff]  }
 0x548   :  { %9847 = vmatpush1.bf16.msra.mxu0 %v17071_v45  ;;  %10175 = vmatpush1.bf16.msra.mxu1 %v17074_v46  ;;  %v17154_v45 = vld [vmem:[#allocation5 + $0x24ec] ss:$48 sps:$4 sm:$0xff]   ;;  %v17149_v46 = vld [vmem:[#allocation5 + $0x24e0] ss:$48 sps:$4 sm:$0xff]  }
 0x549   :  { %9848 = vmatprep.subr.bf16.mxu0 %v17079_v49  ;;  %10176 = vmatprep.subr.bf16.mxu1 %v17082_v50  ;;  %v17152_v49 = vld [vmem:[#allocation5 + $0x24e8] ss:$48 sps:$4 sm:$0xff]   ;;  %v17157_v50 = vld [vmem:[#allocation5 + $0x2544] ss:$48 sps:$4 sm:$0xff]  }
 0x54c   :  { %9849 = vmatpush1.bf16.msra.mxu0 %v17077_v51  ;;  %10177 = vmatpush1.bf16.msra.mxu1 %v17080_v53  ;;  %v17155_v51 = vld [vmem:[#allocation5 + $0x2540] ss:$48 sps:$4 sm:$0xff]   ;;  %v17158_v53 = vld [vmem:[#allocation5 + $0x2548] ss:$48 sps:$4 sm:$0xff]  }
 0x54d   :  { %9850 = vmatprep.subr.bf16.mxu0 %v17085_v22  ;;  %10178 = vmatprep.subr.bf16.mxu1 %v17088_v54  ;;  %v17163_v22 = vld [vmem:[#allocation5 + $0x25a4] ss:$48 sps:$4 sm:$0xff]   ;;  %v17166_v54 = vld [vmem:[#allocation5 + $0x25ac] ss:$48 sps:$4 sm:$0xff]  }
 0x550   :  { %9851 = vmatpush1.bf16.msra.mxu0 %v17083_v55  ;;  %10179 = vmatpush1.bf16.msra.mxu1 %v17086_v56  ;;  %v17161_v55 = vld [vmem:[#allocation5 + $0x25a0] ss:$48 sps:$4 sm:$0xff]   ;;  %v17169_v56 = vld [vmem:[#allocation5 + $0x2604] ss:$48 sps:$4 sm:$0xff]  }
 0x551   :  { %9852 = vmatprep.subr.bf16.mxu0 %v17091_v57  ;;  %10180 = vmatprep.subr.bf16.mxu1 %v17094_v48  ;;  %v17172_v57 = vld [vmem:[#allocation5 + $0x260c] ss:$48 sps:$4 sm:$0xff]   ;;  %v17167_v48 = vld [vmem:[#allocation5 + $0x2600] ss:$48 sps:$4 sm:$0xff]  }
 0x554   :  { %9853 = vmatpush1.bf16.msra.mxu0 %v17089_v26  ;;  %10181 = vmatpush1.bf16.msra.mxu1 %v17092_v58  ;;  %v17170_v26 = vld [vmem:[#allocation5 + $0x2608] ss:$48 sps:$4 sm:$0xff]   ;;  %v17175_v58 = vld [vmem:[#allocation5 + $0x2664] ss:$48 sps:$4 sm:$0xff]  }
 0x555   :  { %9854 = vmatprep.subr.bf16.mxu0 %v17097_v59  ;;  %10182 = vmatprep.subr.bf16.mxu1 %v17100_v60  ;;  %v17178_v59 = vld [vmem:[#allocation5 + $0x266c] ss:$48 sps:$4 sm:$0xff]   ;;  %v17173_v60 = vld [vmem:[#allocation5 + $0x2660] ss:$48 sps:$4 sm:$0xff]  }
 0x558   :  { %9855 = vmatpush1.bf16.msra.mxu0 %v17095_v2  ;;  %10183 = vmatpush1.bf16.msra.mxu1 %v17098_v4  ;;  %v17176_v2 = vld [vmem:[#allocation5 + $0x2668] ss:$48 sps:$4 sm:$0xff]   ;;  %v1468_v4 = vlaneseq }
 0x559   :  { %9856 = vmatprep.subr.bf16.mxu0 %v17103_v6  ;;  %10184 = vmatprep.subr.bf16.mxu1 %v17106_v11  ;;  %v17181_v6 = vld [vmem:[#allocation5 + $0x26c4] ss:$48 sps:$4 sm:$0xff]   ;;  %v17184_v11 = vld [vmem:[#allocation5 + $0x26cc] ss:$48 sps:$4 sm:$0xff]  }
 0x55c   :  { %9857 = vmatpush1.bf16.msra.mxu0 %v17101_v12  ;;  %10185 = vmatpush1.bf16.msra.mxu1 %v17104_v5  ;;  %v17179_v12 = vld [vmem:[#allocation5 + $0x26c0] ss:$48 sps:$4 sm:$0xff]   ;;  %v17182_v5 = vld [vmem:[#allocation5 + $0x26c8] ss:$48 sps:$4 sm:$0xff]  }
 0x55d   :  { %9858 = vmatprep.subr.bf16.mxu0 %v17109_v14  ;;  %10186 = vmatprep.subr.bf16.mxu1 %v17112_v15  ;;  %v18251_v14 = vshrl.u32 %v1468_v4, 7  ;;  %v17187_v15 = vld [vmem:[#allocation5 + $0x2724] ss:$48 sps:$4 sm:$0xff]   ;;  %v17242_v4 = vld [vmem:[#allocation8 + $0xc] ss:$16 sps:$4 sm:$0xff]  }
 0x560   :  { %9859 = vmatpush1.bf16.msra.mxu0 %v17107_v16  ;;  %10187 = vmatpush1.bf16.msra.mxu1 %v17110_v18  ;;  %v17190_v16 = vld [vmem:[#allocation5 + $0x272c] ss:$48 sps:$4 sm:$0xff]   ;;  %v17185_v18 = vld [vmem:[#allocation5 + $0x2720] ss:$48 sps:$4 sm:$0xff]  }
 0x561   :  { %9860 = vmatprep.subr.bf16.mxu0 %v17115_v19  ;;  %10188 = vmatprep.subr.bf16.mxu1 %v17118_v31  ;;  %v17188_v19 = vld [vmem:[#allocation5 + $0x2728] ss:$48 sps:$4 sm:$0xff]   ;;  %v18254_v31 = vsub.s32 1, %v18251_v14 }
 0x564   :  { %9861 = vmatpush1.bf16.msra.mxu0 %v17113_v32  ;;  %10189 = vmatpush1.bf16.msra.mxu1 %v17116_v20  ;;  %v17193_v32 = vld [vmem:[#allocation5 + $0x2784] ss:$48 sps:$4 sm:$0xff]   ;;  %v17196_v20 = vld [vmem:[#allocation5 + $0x278c] ss:$48 sps:$4 sm:$0xff]  }
 0x565   :  { %9862 = vmatprep.subr.bf16.mxu0 %v17121_v23  ;;  %10190 = vmatprep.subr.bf16.mxu1 %v17124_v24  ;;  %v18256_v23 = vld [vmem:[#allocation7] sm:$0xff] }
 0x566   :  { %v17191_v24 = vld [vmem:[#allocation5 + $0x2780] ss:$48 sps:$4 sm:$0xff]  }
 0x568   :  { %9863 = vmatpush1.bf16.msra.mxu0 %v17119_v25  ;;  %10191 = vmatpush1.bf16.msra.mxu1 %v17122_v38  ;;  %v17194_v25 = vld [vmem:[#allocation5 + $0x2788] ss:$48 sps:$4 sm:$0xff]   ;;  %v1475_v38 = vrot.slane %v18256_v23, %v18254_v31 }
 0x569   :  { %9864 = vmatprep.subr.bf16.mxu0 %v17127_v27  ;;  %10192 = vmatprep.subr.bf16.mxu1 %v17130_v29  ;;  %v17199_v27 = vld [vmem:[#allocation5 + $0x27e4] ss:$48 sps:$4 sm:$0xff]   ;;  %v17202_v29 = vld [vmem:[#allocation5 + $0x27ec] ss:$48 sps:$4 sm:$0xff]  }
 0x56c   :  { %9865 = vmatpush1.bf16.msra.mxu0 %v17125_v33  ;;  %10193 = vmatpush1.bf16.msra.mxu1 %v17128_v34  ;;  %v17197_v33 = vld [vmem:[#allocation5 + $0x27e0] ss:$48 sps:$4 sm:$0xff]   ;;  %v17200_v34 = vld [vmem:[#allocation5 + $0x27e8] ss:$48 sps:$4 sm:$0xff]  }
 0x56d   :  { %9866 = vmatprep.subr.bf16.mxu0 %v17133_v35  ;;  %10194 = vmatprep.subr.bf16.mxu1 %v17136_v36  ;;  %v14975_v35 = vadd.f32 %v18189_v0, %v1475_v38  ;;  %v17205_v36 = vld [vmem:[#allocation5 + $0x2844] ss:$48 sps:$4 sm:$0xff]  }
 0x56e   :  { %v17217_v0 = vld [vmem:[#allocation5 + $0x2904] ss:$48 sps:$4 sm:$0xff]  }
 0x56f   :  { %v17258_v38 = vld [vmem:[#allocation8 + $0x68] ss:$16 sps:$4 sm:$0xff]  }
 0x570   :  { %9867 = vmatpush1.bf16.msra.mxu0 %v17131_v13  ;;  %10195 = vmatpush1.bf16.msra.mxu1 %v17134_v37  ;;  %v17208_v13 = vld [vmem:[#allocation5 + $0x284c] ss:$48 sps:$4 sm:$0xff]   ;;  %v17203_v37 = vld [vmem:[#allocation5 + $0x2840] ss:$48 sps:$4 sm:$0xff]  }
 0x571   :  { %9877 = vmatprep.subr.bf16.mxu0 %v17139_v47  ;;  %10205 = vmatprep.subr.bf16.mxu1 %v17142_v39  ;;  %v17206_v47 = vld [vmem:[#allocation5 + $0x2848] ss:$48 sps:$4 sm:$0xff]   ;;  %v14579_v39 = vmul.f32 -1.442695, %v14975_v35  ;;  %v17269_v35 = vld [vmem:[#allocation8 + $0xa4] ss:$16 sps:$4 sm:$0xff]  }
 0x573   :  { %9869 = vmatmul.mubr.bf16.vlgmr.msra.gmra.mrb[8].mxu0 %v18147_v62  ;;  %10197 = vmatmul.mubr.bf16.vlgmr.msra.gmra.mrb[8].mxu1 %v18147_v62  ;;  %v17160_v62 = vld [vmem:[#allocation5 + $0x254c] ss:$48 sps:$4 sm:$0xff]   ;;  %17813 = vpow2.f32 %v14579_v39  ;;  %v17270_v39 = vld [vmem:[#allocation8 + $0xa8] ss:$16 sps:$4 sm:$0xff]  }
 0x574   :  { %9878 = vmatpush1.bf16.msra.mxu0 %v17137_v40  ;;  %10206 = vmatpush1.bf16.msra.mxu1 %v17140_v41  ;;  %v17211_v40 = vld [vmem:[#allocation5 + $0x28a4] ss:$48 sps:$4 sm:$0xff]   ;;  %v17214_v41 = vld [vmem:[#allocation5 + $0x28ac] ss:$48 sps:$4 sm:$0xff]  }
 0x575   :  { %9879 = vmatprep.subr.bf16.mxu0 %v17145_v42  ;;  %10207 = vmatprep.subr.bf16.mxu1 %v17148_v17  ;;  %v17209_v42 = vld [vmem:[#allocation5 + $0x28a0] ss:$48 sps:$4 sm:$0xff]   ;;  %v17212_v17 = vld [vmem:[#allocation5 + $0x28a8] ss:$48 sps:$4 sm:$0xff]  }
 0x576   :  { %9909 = vmatprep.mubr.bf16.mxu0 %v18149_v3  ;;  %10237 = vmatprep.mubr.bf16.mxu1 %v18149_v3  ;;  %v17164_v3 = vld [vmem:[#allocation5 + $0x25a8] ss:$48 sps:$4 sm:$0xff]  }
 0x578   :  { %9880 = vmatpush1.bf16.msra.mxu0 %v17143_v52  ;;  %10208 = vmatpush1.bf16.msra.mxu1 %v17146_v43  ;;  %v17220_v52 = vld [vmem:[#allocation5 + $0x290c] ss:$48 sps:$4 sm:$0xff]   ;;  %v17215_v43 = vld [vmem:[#allocation5 + $0x2900] ss:$48 sps:$4 sm:$0xff]  }
 0x579   :  { %9881 = vmatprep.subr.bf16.mxu0 %v17151_v44  ;;  %10209 = vmatprep.subr.bf16.mxu1 %v17154_v45  ;;  %v17218_v44 = vld [vmem:[#allocation5 + $0x2908] ss:$48 sps:$4 sm:$0xff]   ;;  %v17223_v45 = vld [vmem:[#allocation5 + $0x2964] ss:$48 sps:$4 sm:$0xff]  }
 0x57c   :  { %9882 = vmatpush1.bf16.msra.mxu0 %v17149_v46  ;;  %10210 = vmatpush1.bf16.msra.mxu1 %v17152_v49  ;;  %v17226_v46 = vld [vmem:[#allocation5 + $0x296c] ss:$48 sps:$4 sm:$0xff]   ;;  %v17221_v49 = vld [vmem:[#allocation5 + $0x2960] ss:$48 sps:$4 sm:$0xff]  }
 0x57d   :  { %9883 = vmatprep.subr.bf16.mxu0 %v17157_v50  ;;  %10211 = vmatprep.subr.bf16.mxu1 %v17160_v62  ;;  %v17224_v50 = vld [vmem:[#allocation5 + $0x2968] ss:$48 sps:$4 sm:$0xff]   ;;  %v17229_v62 = vld [vmem:[#allocation5 + $0x29c4] ss:$48 sps:$4 sm:$0xff]  }
 0x580   :  { %9884 = vmatpush1.bf16.msra.mxu0 %v17155_v51  ;;  %10212 = vmatpush1.bf16.msra.mxu1 %v17158_v53  ;;  %v17232_v51 = vld [vmem:[#allocation5 + $0x29cc] ss:$48 sps:$4 sm:$0xff]   ;;  %v1462_v53 = vld [vmem:[#allocation5 + $0x2a20] sm:$0xff] }
 0x581   :  { %9885 = vmatprep.subr.bf16.mxu0 %v17163_v22  ;;  %10213 = vmatprep.subr.bf16.mxu1 %v17166_v54  ;;  %v1463_v22 = vld [vmem:[#allocation5 + $0x2a28] sm:$0xff]  ;;  %v17814_v54 = vpop.eup %17813 }
 0x584   :  { %9886 = vmatpush1.bf16.msra.mxu0 %v17161_v55  ;;  %10214 = vmatpush1.bf16.msra.mxu1 %v17164_v3  ;;  %v17227_v55 = vld [vmem:[#allocation5 + $0x29c0] ss:$48 sps:$4 sm:$0xff]   ;;  %v17230_v3 = vld [vmem:[#allocation5 + $0x29c8] ss:$48 sps:$4 sm:$0xff]  }
 0x585   :  { %9887 = vmatprep.subr.bf16.mxu0 %v17169_v56  ;;  %10215 = vmatprep.subr.bf16.mxu1 %v17172_v57  ;;  %v14563_v56 = vcombine.high %v1462_v53, %v1462_v53  ;;  %v14565_v57 = vcombine.high %v1463_v22, %v1463_v22 }
 0x588   :  { %9888 = vmatpush1.bf16.msra.mxu0 %v17167_v48  ;;  %10216 = vmatpush1.bf16.msra.mxu1 %v17170_v26  ;;  %v14562_v48 = vcombine.low %v1462_v53, %v1462_v53  ;;  %v14564_v26 = vcombine.low %v1463_v22, %v1463_v22 }
 0x589   :  { %9889 = vmatprep.subr.bf16.mxu0 %v17175_v58  ;;  %10217 = vmatprep.subr.bf16.mxu1 %v17178_v59  ;;  %v10324_v58 = vadd.f32 1.0, %v17814_v54  ;;  %v17285_v54 = vld [vmem:[#allocation8 + $0x100] ss:$16 sps:$4 sm:$0xff]  }
 0x58a   :  { %v8308_v59 = vsel %vm8282_vm0, %v14562_v48, 0  ;;  %v17302_v48 = vld [vmem:[#allocation8 + $0x14c] ss:$16 sps:$4 sm:$0xff]  }
 0x58b   :  { %17815 = vrcp.f32 %v10324_v58  ;;  %v17300_v58 = vld [vmem:[#allocation8 + $0x148] ss:$16 sps:$4 sm:$0xff]  }
 0x58c   :  { %9890 = vmatpush1.bf16.msra.mxu0 %v17173_v60  ;;  %10218 = vmatpush1.bf16.msra.mxu1 %v17176_v2  ;;  %v8314_v60 = vsel %vm8282_vm0, %v14564_v26, 0  ;;  %v17239_v2 = vld [vmem:[#allocation8 + $0x4] ss:$16 sps:$4 sm:$0xff]   ;;  %v17297_v26 = vld [vmem:[#allocation8 + $0x140] ss:$16 sps:$4 sm:$0xff]  }
 0x58d   :  { %9891 = vmatprep.subr.bf16.mxu0 %v17181_v6  ;;  %10219 = vmatprep.subr.bf16.mxu1 %v17184_v11  ;;  %v17237_v11 = vld [vmem:[#allocation8] ss:$16 sps:$4 sm:$0xff]  }
 0x590   :  { %9892 = vmatpush1.bf16.msra.mxu0 %v17179_v12  ;;  %10220 = vmatpush1.bf16.msra.mxu1 %v17182_v5  ;;  %v17240_v12 = vld [vmem:[#allocation8 + $0x8] ss:$16 sps:$4 sm:$0xff]   ;;  %v17245_v5 = vld [vmem:[#allocation8 + $0x24] ss:$16 sps:$4 sm:$0xff]  }
 0x591   :  { %9893 = vmatprep.subr.bf16.mxu0 %v17187_v15  ;;  %10221 = vmatprep.subr.bf16.mxu1 %v17190_v16  ;;  %v17248_v15 = vld [vmem:[#allocation8 + $0x2c] ss:$16 sps:$4 sm:$0xff]   ;;  %v17243_v16 = vld [vmem:[#allocation8 + $0x20] ss:$16 sps:$4 sm:$0xff]  }
 0x594   :  { %9894 = vmatpush1.bf16.msra.mxu0 %v17185_v18  ;;  %10222 = vmatpush1.bf16.msra.mxu1 %v17188_v19  ;;  %v17246_v18 = vld [vmem:[#allocation8 + $0x28] ss:$16 sps:$4 sm:$0xff]   ;;  %v17254_v19 = vld [vmem:[#allocation8 + $0x4c] ss:$16 sps:$4 sm:$0xff]  }
 0x595   :  { %9895 = vmatprep.subr.bf16.mxu0 %v17193_v32  ;;  %10223 = vmatprep.subr.bf16.mxu1 %v17196_v20  ;;  %v17816_v6 = vpop.eup %17815  ;;  %v17249_v32 = vld [vmem:[#allocation8 + $0x40] ss:$16 sps:$4 sm:$0xff]   ;;  %v17252_v20 = vld [vmem:[#allocation8 + $0x48] ss:$16 sps:$4 sm:$0xff]  }
 0x598   :  { %9896 = vmatpush1.bf16.msra.mxu0 %v17191_v24  ;;  %10224 = vmatpush1.bf16.msra.mxu1 %v17194_v25  ;;  %v17257_v24 = vld [vmem:[#allocation8 + $0x64] ss:$16 sps:$4 sm:$0xff]   ;;  %v17260_v25 = vld [vmem:[#allocation8 + $0x6c] ss:$16 sps:$4 sm:$0xff]  }
 0x599   :  { %9897 = vmatprep.subr.bf16.mxu0 %v17199_v27  ;;  %10225 = vmatprep.subr.bf16.mxu1 %v17202_v29  ;;  %v17263_v27 = vld [vmem:[#allocation8 + $0x84] ss:$16 sps:$4 sm:$0xff]   ;;  %v17266_v29 = vld [vmem:[#allocation8 + $0x8c] ss:$16 sps:$4 sm:$0xff]  }
 0x59c   :  { %9898 = vmatpush1.bf16.msra.mxu0 %v17197_v33  ;;  %10226 = vmatpush1.bf16.msra.mxu1 %v17200_v34  ;;  %v17261_v33 = vld [vmem:[#allocation8 + $0x80] ss:$16 sps:$4 sm:$0xff]   ;;  %v17264_v34 = vld [vmem:[#allocation8 + $0x88] ss:$16 sps:$4 sm:$0xff]  }
 0x59d   :  { %9899 = vmatprep.subr.bf16.mxu0 %v17205_v36  ;;  %10227 = vmatprep.subr.bf16.mxu1 %v17208_v13  ;;  %v17272_v36 = vld [vmem:[#allocation8 + $0xac] ss:$16 sps:$4 sm:$0xff]   ;;  %v18274_v13 = vsub.s32 0, %v18251_v14 }
 0x5a0   :  { %9900 = vmatpush1.bf16.msra.mxu0 %v17203_v37  ;;  %10228 = vmatpush1.bf16.msra.mxu1 %v17206_v47  ;;  %v18277_v37 = vsub.s32 3, %v18251_v14  ;;  %v17267_v47 = vld [vmem:[#allocation8 + $0xa0] ss:$16 sps:$4 sm:$0xff]  }
 0x5a1   :  { %9901 = vmatprep.subr.bf16.mxu0 %v17211_v40  ;;  %10229 = vmatprep.subr.bf16.mxu1 %v17214_v41  ;;  %v17275_v40 = vld [vmem:[#allocation8 + $0xc4] ss:$16 sps:$4 sm:$0xff]   ;;  %v17278_v41 = vld [vmem:[#allocation8 + $0xcc] ss:$16 sps:$4 sm:$0xff]  }
 0x5a4   :  { %9902 = vmatpush1.bf16.msra.mxu0 %v17209_v42  ;;  %10230 = vmatpush1.bf16.msra.mxu1 %v17212_v17  ;;  %v1471_v42 = vrot.slane %v18256_v23, %v18274_v13  ;;  %v1483_v17 = vrot.slane %v18256_v23, %v18277_v37 }
 0x5a5   :  { %9903 = vmatprep.subr.bf16.mxu0 %v17217_v0  ;;  %10231 = vmatprep.subr.bf16.mxu1 %v17220_v52  ;;  %v17273_v0 = vld [vmem:[#allocation8 + $0xc0] ss:$16 sps:$4 sm:$0xff]   ;;  %v17276_v52 = vld [vmem:[#allocation8 + $0xc8] ss:$16 sps:$4 sm:$0xff]  }
 0x5a8   :  { %9904 = vmatpush1.bf16.msra.mxu0 %v17215_v43  ;;  %10232 = vmatpush1.bf16.msra.mxu1 %v17218_v44  ;;  %v17281_v43 = vld [vmem:[#allocation8 + $0xe4] ss:$16 sps:$4 sm:$0xff]   ;;  %v17284_v44 = vld [vmem:[#allocation8 + $0xec] ss:$16 sps:$4 sm:$0xff]  }
 0x5a9   :  { %9905 = vmatprep.subr.bf16.mxu0 %v17223_v45  ;;  %10233 = vmatprep.subr.bf16.mxu1 %v17226_v46  ;;  %v14974_v45 = vadd.f32 %v18185_v61, %v1471_v42  ;;  %v14977_v46 = vadd.f32 %v18191_v1, %v1483_v17  ;;  %v17296_v61 = vld [vmem:[#allocation8 + $0x12c] ss:$16 sps:$4 sm:$0xff]   ;;  %v17291_v1 = vld [vmem:[#allocation8 + $0x120] ss:$16 sps:$4 sm:$0xff]   ;;  %v17336_v42 = vld [vmem:[#allocation8 + $0x208] ss:$16 sps:$4 sm:$0xff]  }
 0x5ab   :  { %v14578_v53 = vmul.f32 -1.442695, %v14974_v45  ;;  %v14581_v22 = vmul.f32 -1.442695, %v14977_v46  ;;  %v17347_v45 = vld [vmem:[#allocation8 + $0x244] ss:$16 sps:$4 sm:$0xff]  }
 0x5ac   :  { %9906 = vmatpush1.bf16.msra.mxu0 %v17221_v49  ;;  %10234 = vmatpush1.bf16.msra.mxu1 %v17224_v50  ;;  %v17279_v49 = vld [vmem:[#allocation8 + $0xe0] ss:$16 sps:$4 sm:$0xff]   ;;  %v17282_v50 = vld [vmem:[#allocation8 + $0xe8] ss:$16 sps:$4 sm:$0xff]   ;;  %v17350_v46 = vld [vmem:[#allocation8 + $0x24c] ss:$16 sps:$4 sm:$0xff]  }
 0x5ad   :  { %9907 = vmatprep.subr.bf16.mxu0 %v17229_v62  ;;  %10235 = vmatprep.subr.bf16.mxu1 %v17232_v51  ;;  %v17287_v62 = vld [vmem:[#allocation8 + $0x104] ss:$16 sps:$4 sm:$0xff]   ;;  %v17290_v51 = vld [vmem:[#allocation8 + $0x10c] ss:$16 sps:$4 sm:$0xff]   ;;  %17817 = vpow2.f32 %v14578_v53  ;;  %v17351_v53 = vld [vmem:[#allocation8 + $0x260] ss:$16 sps:$4 sm:$0xff]  }
 0x5ae   :  { %17819 = vpow2.f32 %v14581_v22  ;;  %v17354_v22 = vld [vmem:[#allocation8 + $0x268] ss:$16 sps:$4 sm:$0xff]  }
 0x5b0   :  { %9908 = vmatpush1.bf16.msra.mxu0 %v17227_v55  ;;  %10236 = vmatpush1.bf16.msra.mxu1 %v17230_v3  ;;  %v17288_v55 = vld [vmem:[#allocation8 + $0x108] ss:$16 sps:$4 sm:$0xff]   ;;  %v17293_v3 = vld [vmem:[#allocation8 + $0x124] ss:$16 sps:$4 sm:$0xff]  }
 0x5b1   :  { %14574 = vmatprep.subr.msk.bf16.mxu0 %vm8282_vm0, %v14563_v56  ;;  %14576 = vmatprep.subr.msk.bf16.mxu1 %vm8282_vm0, %v14565_v57  ;;  %v17294_v56 = vld [vmem:[#allocation8 + $0x128] ss:$16 sps:$4 sm:$0xff]   ;;  %v17299_v57 = vld [vmem:[#allocation8 + $0x144] ss:$16 sps:$4 sm:$0xff]  }
 0x5b3   :  { %9910 = vmatmul.mubr.bf16.vlgmr.msra.gmra.mrb[8].mxu0 %v18155_v21  ;;  %10238 = vmatmul.mubr.bf16.vlgmr.msra.gmra.mrb[8].mxu1 %v18155_v21  ;;  %v10360_v21 = vpack.c.bf16 %v17816_v6, %v17816_v6 }
 0x5b4   :  { %9919 = vmatpush1.bf16.msra.mxu0 %v8308_v59  ;;  %10247 = vmatpush1.bf16.msra.mxu1 %v8314_v60  ;;  %v17305_v59 = vld [vmem:[#allocation8 + $0x164] ss:$16 sps:$4 sm:$0xff]   ;;  %v17308_v60 = vld [vmem:[#allocation8 + $0x16c] ss:$16 sps:$4 sm:$0xff]  }
 0x5b5   :  { %9950 = vmatprep.mubr.bf16.mxu0 %v18011_v28  ;;  %10278 = vmatprep.mubr.bf16.mxu1 %v18011_v28  ;;  %v17251_v28 = vld [vmem:[#allocation8 + $0x44] ss:$16 sps:$4 sm:$0xff]  }
 0x5b6   :  { %12697 = vmatprep.subr.bf16.mxu0 %v17239_v2  ;;  %12943 = vmatprep.subr.bf16.mxu1 %v17242_v4  ;;  %v17303_v2 = vld [vmem:[#allocation8 + $0x160] ss:$16 sps:$4 sm:$0xff]   ;;  %v17306_v4 = vld [vmem:[#allocation8 + $0x168] ss:$16 sps:$4 sm:$0xff]  }
 0x5b7   :  { %v17818_v6 = vpop.eup %17817 }
 0x5bf   :  { %14575 = vmatmul.mubr.msk.bf16.vlgmr.msra.gmra.mrb[8].mxu0 %vm8278_vm1, %v18165_v30  ;;  %14577 = vmatmul.mubr.msk.bf16.vlgmr.msra.gmra.mrb[8].mxu1 %vm8278_vm1, %v18165_v30  ;;  %v17255_v30 = vld [vmem:[#allocation8 + $0x60] ss:$16 sps:$4 sm:$0xff]  }
 0x5c0   :  { %12698 = vmatpush1.bf16.msra.mxu0 %v17237_v11  ;;  %12944 = vmatpush1.bf16.msra.mxu1 %v17240_v12  ;;  %v17311_v11 = vld [vmem:[#allocation8 + $0x184] ss:$16 sps:$4 sm:$0xff]   ;;  %v17314_v12 = vld [vmem:[#allocation8 + $0x18c] ss:$16 sps:$4 sm:$0xff]  }
 0x5c1   :  { %12729 = vmatprep.mubr.bf16.mxu0 %v10360_v21  ;;  %12975 = vmatprep.mubr.bf16.mxu1 %v10360_v21  ;;  %v17309_v21 = vld [vmem:[#allocation8 + $0x180] ss:$16 sps:$4 sm:$0xff]  }
 0x5c2   :  { %12699 = vmatprep.subr.bf16.mxu0 %v17245_v5  ;;  %12945 = vmatprep.subr.bf16.mxu1 %v17248_v15  ;;  %v17820_v5 = vpop.eup %17819  ;;  %v10323_v15 = vadd.f32 1.0, %v17818_v6 }
 0x5c4   :  { %12700 = vmatpush1.bf16.msra.mxu0 %v17243_v16  ;;  %12946 = vmatpush1.bf16.msra.mxu1 %v17246_v18  ;;  %v17312_v16 = vld [vmem:[#allocation8 + $0x188] ss:$16 sps:$4 sm:$0xff]   ;;  %v10326_v18 = vadd.f32 1.0, %v17820_v5  ;;  %17821 = vrcp.f32 %v10323_v15  ;;  %v17380_v5 = vld [vmem:[#allocation8 + $0x2ec] ss:$16 sps:$4 sm:$0xff]  }
 0x5c5   :  { %12701 = vmatprep.subr.bf16.mxu0 %v17251_v28  ;;  %12947 = vmatprep.subr.bf16.mxu1 %v17254_v19  ;;  %v17317_v28 = vld [vmem:[#allocation8 + $0x1a4] ss:$16 sps:$4 sm:$0xff]   ;;  %v17320_v19 = vld [vmem:[#allocation8 + $0x1ac] ss:$16 sps:$4 sm:$0xff]  }
 0x5c6   :  { %17823 = vrcp.f32 %v10326_v18  ;;  %v17378_v18 = vld [vmem:[#allocation8 + $0x2e8] ss:$16 sps:$4 sm:$0xff]  }
 0x5c8   :  { %12702 = vmatpush1.bf16.msra.mxu0 %v17249_v32  ;;  %12948 = vmatpush1.bf16.msra.mxu1 %v17252_v20  ;;  %v17315_v32 = vld [vmem:[#allocation8 + $0x1a0] ss:$16 sps:$4 sm:$0xff]   ;;  %v17318_v20 = vld [vmem:[#allocation8 + $0x1a8] ss:$16 sps:$4 sm:$0xff]  }
 0x5c9   :  { %12703 = vmatprep.subr.bf16.mxu0 %v17257_v24  ;;  %12949 = vmatprep.subr.bf16.mxu1 %v17260_v25  ;;  %v17323_v24 = vld [vmem:[#allocation8 + $0x1c4] ss:$16 sps:$4 sm:$0xff]   ;;  %v17326_v25 = vld [vmem:[#allocation8 + $0x1cc] ss:$16 sps:$4 sm:$0xff]  }
 0x5cc   :  { %12704 = vmatpush1.bf16.msra.mxu0 %v17255_v30  ;;  %12950 = vmatpush1.bf16.msra.mxu1 %v17258_v38  ;;  %v17321_v30 = vld [vmem:[#allocation8 + $0x1c0] ss:$16 sps:$4 sm:$0xff]   ;;  %v17324_v38 = vld [vmem:[#allocation8 + $0x1c8] ss:$16 sps:$4 sm:$0xff]  }
 0x5cd   :  { %12705 = vmatprep.subr.bf16.mxu0 %v17263_v27  ;;  %12951 = vmatprep.subr.bf16.mxu1 %v17266_v29  ;;  %v17329_v27 = vld [vmem:[#allocation8 + $0x1e4] ss:$16 sps:$4 sm:$0xff]   ;;  %v17332_v29 = vld [vmem:[#allocation8 + $0x1ec] ss:$16 sps:$4 sm:$0xff]  }
 0x5d0   :  { %12706 = vmatpush1.bf16.msra.mxu0 %v17261_v33  ;;  %12952 = vmatpush1.bf16.msra.mxu1 %v17264_v34  ;;  %v17327_v33 = vld [vmem:[#allocation8 + $0x1e0] ss:$16 sps:$4 sm:$0xff]   ;;  %v17330_v34 = vld [vmem:[#allocation8 + $0x1e8] ss:$16 sps:$4 sm:$0xff]  }
 0x5d1   :  { %12707 = vmatprep.subr.bf16.mxu0 %v17269_v35  ;;  %12953 = vmatprep.subr.bf16.mxu1 %v17272_v36  ;;  %v17335_v35 = vld [vmem:[#allocation8 + $0x204] ss:$16 sps:$4 sm:$0xff]   ;;  %v17338_v36 = vld [vmem:[#allocation8 + $0x20c] ss:$16 sps:$4 sm:$0xff]  }
 0x5d4   :  { %12708 = vmatpush1.bf16.msra.mxu0 %v17267_v47  ;;  %12954 = vmatpush1.bf16.msra.mxu1 %v17270_v39  ;;  %v17822_v47 = vpop.eup %17821 }
 0x5d5   :  { %12709 = vmatprep.subr.bf16.mxu0 %v17275_v40  ;;  %12955 = vmatprep.subr.bf16.mxu1 %v17278_v41  ;;  %v17824_v39 = vpop.eup %17823  ;;  %v17333_v40 = vld [vmem:[#allocation8 + $0x200] ss:$16 sps:$4 sm:$0xff]   ;;  %v10359_v41 = vpack.c.bf16 %v17822_v47, %v17822_v47 }
 0x5d6   :  { %v10362_v17 = vpack.c.bf16 %v17824_v39, %v17824_v39  ;;  %v17399_v47 = vld [vmem:[#allocation8 + $0x360] ss:$16 sps:$4 sm:$0xff]  }
 0x5d8   :  { %12710 = vmatpush1.bf16.msra.mxu0 %v17273_v0  ;;  %12956 = vmatpush1.bf16.msra.mxu1 %v17276_v52  ;;  %v17341_v0 = vld [vmem:[#allocation8 + $0x224] ss:$16 sps:$4 sm:$0xff]   ;;  %v17344_v52 = vld [vmem:[#allocation8 + $0x22c] ss:$16 sps:$4 sm:$0xff]  }
 0x5d9   :  { %12711 = vmatprep.subr.bf16.mxu0 %v17281_v43  ;;  %12957 = vmatprep.subr.bf16.mxu1 %v17284_v44  ;;  %v17339_v43 = vld [vmem:[#allocation8 + $0x220] ss:$16 sps:$4 sm:$0xff]   ;;  %v17342_v44 = vld [vmem:[#allocation8 + $0x228] ss:$16 sps:$4 sm:$0xff]  }
 0x5dc   :  { %12712 = vmatpush1.bf16.msra.mxu0 %v17279_v49  ;;  %12958 = vmatpush1.bf16.msra.mxu1 %v17282_v50  ;;  %v17345_v49 = vld [vmem:[#allocation8 + $0x240] ss:$16 sps:$4 sm:$0xff]   ;;  %v17348_v50 = vld [vmem:[#allocation8 + $0x248] ss:$16 sps:$4 sm:$0xff]  }
 0x5dd   :  { %12713 = vmatprep.subr.bf16.mxu0 %v17287_v62  ;;  %12959 = vmatprep.subr.bf16.mxu1 %v17290_v51  ;;  %v17353_v62 = vld [vmem:[#allocation8 + $0x264] ss:$16 sps:$4 sm:$0xff]   ;;  %v17356_v51 = vld [vmem:[#allocation8 + $0x26c] ss:$16 sps:$4 sm:$0xff]  }
 0x5e0   :  { %12714 = vmatpush1.bf16.msra.mxu0 %v17285_v54  ;;  %12960 = vmatpush1.bf16.msra.mxu1 %v17288_v55  ;;  %v17359_v54 = vld [vmem:[#allocation8 + $0x284] ss:$16 sps:$4 sm:$0xff]   ;;  %v17362_v55 = vld [vmem:[#allocation8 + $0x28c] ss:$16 sps:$4 sm:$0xff]  }
 0x5e1   :  { %12715 = vmatprep.subr.bf16.mxu0 %v17293_v3  ;;  %12961 = vmatprep.subr.bf16.mxu1 %v17296_v61  ;;  %v17357_v3 = vld [vmem:[#allocation8 + $0x280] ss:$16 sps:$4 sm:$0xff]   ;;  %v17360_v61 = vld [vmem:[#allocation8 + $0x288] ss:$16 sps:$4 sm:$0xff]  }
 0x5e4   :  { %12716 = vmatpush1.bf16.msra.mxu0 %v17291_v1  ;;  %12962 = vmatpush1.bf16.msra.mxu1 %v17294_v56  ;;  %v17365_v1 = vld [vmem:[#allocation8 + $0x2a4] ss:$16 sps:$4 sm:$0xff]   ;;  %v17368_v56 = vld [vmem:[#allocation8 + $0x2ac] ss:$16 sps:$4 sm:$0xff]  }
 0x5e5   :  { %12717 = vmatprep.subr.bf16.mxu0 %v17299_v57  ;;  %12963 = vmatprep.subr.bf16.mxu1 %v17302_v48  ;;  %v18286_v57 = vsub.s32 2, %v18251_v14  ;;  %v17363_v48 = vld [vmem:[#allocation8 + $0x2a0] ss:$16 sps:$4 sm:$0xff]  }
 0x5e8   :  { %12718 = vmatpush1.bf16.msra.mxu0 %v17297_v26  ;;  %12964 = vmatpush1.bf16.msra.mxu1 %v17300_v58  ;;  %v1490_v26 = vsub.s32 5, %v18251_v14  ;;  %v17366_v58 = vld [vmem:[#allocation8 + $0x2a8] ss:$16 sps:$4 sm:$0xff]  }
 0x5e9   :  { %12719 = vmatprep.subr.bf16.mxu0 %v17305_v59  ;;  %12965 = vmatprep.subr.bf16.mxu1 %v17308_v60  ;;  %v17371_v59 = vld [vmem:[#allocation8 + $0x2c4] ss:$16 sps:$4 sm:$0xff]   ;;  %v17374_v60 = vld [vmem:[#allocation8 + $0x2cc] ss:$16 sps:$4 sm:$0xff]  }
 0x5ea   :  { %v1491_v6 = vrot.slane %v18256_v23, %v1490_v26 }
 0x5ec   :  { %12720 = vmatpush1.bf16.msra.mxu0 %v17303_v2  ;;  %12966 = vmatpush1.bf16.msra.mxu1 %v17306_v4  ;;  %v1479_v2 = vrot.slane %v18256_v23, %v18286_v57  ;;  %v17369_v4 = vld [vmem:[#allocation8 + $0x2c0] ss:$16 sps:$4 sm:$0xff]  }
 0x5ed   :  { %12721 = vmatprep.subr.bf16.mxu0 %v17311_v11  ;;  %12967 = vmatprep.subr.bf16.mxu1 %v17314_v12  ;;  %v17372_v11 = vld [vmem:[#allocation8 + $0x2c8] ss:$16 sps:$4 sm:$0xff]   ;;  %v17377_v12 = vld [vmem:[#allocation8 + $0x2e4] ss:$16 sps:$4 sm:$0xff]  }
 0x5ee   :  { %v14976_v15 = vadd.f32 %v18187_v63, %v1479_v2  ;;  %v17392_v63 = vld [vmem:[#allocation8 + $0x32c] ss:$16 sps:$4 sm:$0xff]   ;;  %v17437_v2 = vld [vmem:[#allocation8 + $0x424] ss:$16 sps:$4 sm:$0xff]  }
 0x5f0   :  { %12722 = vmatpush1.bf16.msra.mxu0 %v17309_v21  ;;  %12968 = vmatpush1.bf16.msra.mxu1 %v17312_v16  ;;  %v17375_v21 = vld [vmem:[#allocation8 + $0x2e0] ss:$16 sps:$4 sm:$0xff]   ;;  %v14979_v16 = vadd.f32 %v18235_v9, %v1491_v6  ;;  %v17390_v9 = vld [vmem:[#allocation8 + $0x328] ss:$16 sps:$4 sm:$0xff]   ;;  %v17440_v6 = vld [vmem:[#allocation8 + $0x42c] ss:$16 sps:$4 sm:$0xff]  }
 0x5f1   :  { %12723 = vmatprep.subr.bf16.mxu0 %v17317_v28  ;;  %12969 = vmatprep.subr.bf16.mxu1 %v17320_v19  ;;  %v17383_v28 = vld [vmem:[#allocation8 + $0x304] ss:$16 sps:$4 sm:$0xff]   ;;  %v17386_v19 = vld [vmem:[#allocation8 + $0x30c] ss:$16 sps:$4 sm:$0xff]  }
 0x5f4   :  { %12724 = vmatpush1.bf16.msra.mxu0 %v17315_v32  ;;  %12970 = vmatpush1.bf16.msra.mxu1 %v17318_v20  ;;  %v14580_v32 = vmul.f32 -1.442695, %v14976_v15  ;;  %v17381_v20 = vld [vmem:[#allocation8 + $0x300] ss:$16 sps:$4 sm:$0xff]   ;;  %v17446_v15 = vld [vmem:[#allocation8 + $0x44c] ss:$16 sps:$4 sm:$0xff]  }
 0x5f5   :  { %12725 = vmatprep.subr.bf16.mxu0 %v17323_v24  ;;  %12971 = vmatprep.subr.bf16.mxu1 %v17326_v25  ;;  %v14583_v24 = vmul.f32 -1.442695, %v14979_v16  ;;  %v17384_v25 = vld [vmem:[#allocation8 + $0x308] ss:$16 sps:$4 sm:$0xff]  }
 0x5f6   :  { %17825 = vpow2.f32 %v14580_v32  ;;  %v17444_v16 = vld [vmem:[#allocation8 + $0x448] ss:$16 sps:$4 sm:$0xff]  }
 0x5f7   :  { %17827 = vpow2.f32 %v14583_v24  ;;  %v17450_v32 = vld [vmem:[#allocation8 + $0x468] ss:$16 sps:$4 sm:$0xff]   ;;  %v17458_v24 = vld [vmem:[#allocation8 + $0x48c] ss:$16 sps:$4 sm:$0xff]  }
 0x5f8   :  { %12726 = vmatpush1.bf16.msra.mxu0 %v17321_v30  ;;  %12972 = vmatpush1.bf16.msra.mxu1 %v17324_v38  ;;  %v17389_v30 = vld [vmem:[#allocation8 + $0x324] ss:$16 sps:$4 sm:$0xff]   ;;  %v17387_v38 = vld [vmem:[#allocation8 + $0x320] ss:$16 sps:$4 sm:$0xff]  }
 0x5f9   :  { %12727 = vmatprep.subr.bf16.mxu0 %v17329_v27  ;;  %12973 = vmatprep.subr.bf16.mxu1 %v17332_v29  ;;  %v17395_v27 = vld [vmem:[#allocation8 + $0x344] ss:$16 sps:$4 sm:$0xff]   ;;  %v17398_v29 = vld [vmem:[#allocation8 + $0x34c] ss:$16 sps:$4 sm:$0xff]  }
 0x5fc   :  { %12728 = vmatpush1.bf16.msra.mxu0 %v17327_v33  ;;  %12974 = vmatpush1.bf16.msra.mxu1 %v17330_v34  ;;  %v17393_v33 = vld [vmem:[#allocation8 + $0x340] ss:$16 sps:$4 sm:$0xff]   ;;  %v17396_v34 = vld [vmem:[#allocation8 + $0x348] ss:$16 sps:$4 sm:$0xff]  }
 0x5fd   :  { %12738 = vmatprep.subr.bf16.mxu0 %v17335_v35  ;;  %12984 = vmatprep.subr.bf16.mxu1 %v17338_v36  ;;  %v17401_v35 = vld [vmem:[#allocation8 + $0x364] ss:$16 sps:$4 sm:$0xff]   ;;  %v17404_v36 = vld [vmem:[#allocation8 + $0x36c] ss:$16 sps:$4 sm:$0xff]  }
 0x5ff   :  { %12730 = vmatmul.mubr.bf16.vlgmr.msra.gmra.mrb[12].mxu0 %v10359_v41  ;;  %12976 = vmatmul.mubr.bf16.vlgmr.msra.gmra.mrb[12].mxu1 %v10359_v41  ;;  %v17407_v41 = vld [vmem:[#allocation8 + $0x384] ss:$16 sps:$4 sm:$0xff]  }
 0x600   :  { %12739 = vmatpush1.bf16.msra.mxu0 %v17333_v40  ;;  %12770 = vmatprep.mubr.bf16.mxu0 %v10362_v17  ;;  %v17826_v39 = vpop.eup %17825  ;;  %v17402_v40 = vld [vmem:[#allocation8 + $0x368] ss:$16 sps:$4 sm:$0xff]  }
 0x601   :  { %12985 = vmatpush1.bf16.msra.mxu1 %v17336_v42  ;;  %13016 = vmatprep.mubr.bf16.mxu1 %v10362_v17  ;;  %v17410_v42 = vld [vmem:[#allocation8 + $0x38c] ss:$16 sps:$4 sm:$0xff]   ;;  %v17828_v17 = vpop.eup %17827 }
 0x602   :  { %12740 = vmatprep.subr.bf16.mxu0 %v17341_v0  ;;  %12986 = vmatprep.subr.bf16.mxu1 %v17344_v52  ;;  %v10325_v0 = vadd.f32 1.0, %v17826_v39  ;;  %v17405_v52 = vld [vmem:[#allocation8 + $0x380] ss:$16 sps:$4 sm:$0xff]  }
 0x604   :  { %12741 = vmatpush1.bf16.msra.mxu0 %v17339_v43  ;;  %v17408_v43 = vld [vmem:[#allocation8 + $0x388] ss:$16 sps:$4 sm:$0xff]   ;;  %17829 = vrcp.f32 %v10325_v0  ;;  %v17471_v0 = vld [vmem:[#allocation8 + $0x4e0] ss:$16 sps:$4 sm:$0xff]  }
 0x605   :  { %12987 = vmatpush1.bf16.msra.mxu1 %v17342_v44  ;;  %12742 = vmatprep.subr.bf16.mxu0 %v17347_v45  ;;  %v17413_v44 = vld [vmem:[#allocation8 + $0x3a4] ss:$16 sps:$4 sm:$0xff]   ;;  %v10328_v45 = vadd.f32 1.0, %v17828_v17 }
 0x606   :  { %12988 = vmatprep.subr.bf16.mxu1 %v17350_v46  ;;  %v17416_v46 = vld [vmem:[#allocation8 + $0x3ac] ss:$16 sps:$4 sm:$0xff]  }
 0x607   :  { %17831 = vrcp.f32 %v10328_v45  ;;  %v17482_v45 = vld [vmem:[#allocation8 + $0x50c] ss:$16 sps:$4 sm:$0xff]  }
 0x608   :  { %12743 = vmatpush1.bf16.msra.mxu0 %v17345_v49  ;;  %v17411_v49 = vld [vmem:[#allocation8 + $0x3a0] ss:$16 sps:$4 sm:$0xff]  }
 0x609   :  { %12989 = vmatpush1.bf16.msra.mxu1 %v17348_v50  ;;  %12744 = vmatprep.subr.bf16.mxu0 %v17353_v62  ;;  %v17414_v50 = vld [vmem:[#allocation8 + $0x3a8] ss:$16 sps:$4 sm:$0xff]   ;;  %v17419_v62 = vld [vmem:[#allocation8 + $0x3c4] ss:$16 sps:$4 sm:$0xff]  }
 0x60a   :  { %12990 = vmatprep.subr.bf16.mxu1 %v17356_v51  ;;  %v17422_v51 = vld [vmem:[#allocation8 + $0x3cc] ss:$16 sps:$4 sm:$0xff]  }
 0x60c   :  { %12745 = vmatpush1.bf16.msra.mxu0 %v17351_v53  ;;  %v17417_v53 = vld [vmem:[#allocation8 + $0x3c0] ss:$16 sps:$4 sm:$0xff]  }
 0x60d   :  { %12991 = vmatpush1.bf16.msra.mxu1 %v17354_v22  ;;  %12746 = vmatprep.subr.bf16.mxu0 %v17359_v54  ;;  %v17420_v22 = vld [vmem:[#allocation8 + $0x3c8] ss:$16 sps:$4 sm:$0xff]   ;;  %v17425_v54 = vld [vmem:[#allocation8 + $0x3e4] ss:$16 sps:$4 sm:$0xff]  }
 0x60e   :  { %12992 = vmatprep.subr.bf16.mxu1 %v17362_v55  ;;  %v17428_v55 = vld [vmem:[#allocation8 + $0x3ec] ss:$16 sps:$4 sm:$0xff]  }
 0x610   :  { %12747 = vmatpush1.bf16.msra.mxu0 %v17357_v3  ;;  %v17423_v3 = vld [vmem:[#allocation8 + $0x3e0] ss:$16 sps:$4 sm:$0xff]  }
 0x611   :  { %12993 = vmatpush1.bf16.msra.mxu1 %v17360_v61  ;;  %12748 = vmatprep.subr.bf16.mxu0 %v17365_v1  ;;  %v17426_v61 = vld [vmem:[#allocation8 + $0x3e8] ss:$16 sps:$4 sm:$0xff]   ;;  %v17431_v1 = vld [vmem:[#allocation8 + $0x404] ss:$16 sps:$4 sm:$0xff]  }
 0x612   :  { %12994 = vmatprep.subr.bf16.mxu1 %v17368_v56  ;;  %v17830_v56 = vpop.eup %17829 }
 0x613   :  { %v17832_v26 = vpop.eup %17831 }
 0x614   :  { %12749 = vmatpush1.bf16.msra.mxu0 %v17363_v48  ;;  %v17434_v48 = vld [vmem:[#allocation8 + $0x40c] ss:$16 sps:$4 sm:$0xff]  }
 0x615   :  { %12995 = vmatpush1.bf16.msra.mxu1 %v17366_v58  ;;  %12750 = vmatprep.subr.bf16.mxu0 %v17371_v59  ;;  %v17429_v58 = vld [vmem:[#allocation8 + $0x400] ss:$16 sps:$4 sm:$0xff]   ;;  %v10361_v59 = vpack.c.bf16 %v17830_v56, %v17830_v56 }
 0x616   :  { %12996 = vmatprep.subr.bf16.mxu1 %v17374_v60  ;;  %v17432_v60 = vld [vmem:[#allocation8 + $0x408] ss:$16 sps:$4 sm:$0xff]  }
 0x618   :  { %12751 = vmatpush1.bf16.msra.mxu0 %v17369_v4  ;;  %v10364_v4 = vpack.c.bf16 %v17832_v26, %v17832_v26  ;;  %v17503_v26 = vld [vmem:[#allocation8 + $0x584] ss:$16 sps:$4 sm:$0xff]  }
 0x619   :  { %12997 = vmatpush1.bf16.msra.mxu1 %v17372_v11  ;;  %12752 = vmatprep.subr.bf16.mxu0 %v17377_v12  ;;  %v17435_v11 = vld [vmem:[#allocation8 + $0x420] ss:$16 sps:$4 sm:$0xff]   ;;  %v17438_v12 = vld [vmem:[#allocation8 + $0x428] ss:$16 sps:$4 sm:$0xff]  }
 0x61a   :  { %12998 = vmatprep.subr.bf16.mxu1 %v17380_v5  ;;  %v17443_v5 = vld [vmem:[#allocation8 + $0x444] ss:$16 sps:$4 sm:$0xff]  }
 0x61c   :  { %12753 = vmatpush1.bf16.msra.mxu0 %v17375_v21  ;;  %v17441_v21 = vld [vmem:[#allocation8 + $0x440] ss:$16 sps:$4 sm:$0xff]  }
 0x61d   :  { %12999 = vmatpush1.bf16.msra.mxu1 %v17378_v18  ;;  %12754 = vmatprep.subr.bf16.mxu0 %v17383_v28  ;;  %v17449_v18 = vld [vmem:[#allocation8 + $0x464] ss:$16 sps:$4 sm:$0xff]   ;;  %v17452_v28 = vld [vmem:[#allocation8 + $0x46c] ss:$16 sps:$4 sm:$0xff]  }
 0x61e   :  { %13000 = vmatprep.subr.bf16.mxu1 %v17386_v19  ;;  %v17447_v19 = vld [vmem:[#allocation8 + $0x460] ss:$16 sps:$4 sm:$0xff]  }
 0x620   :  { %12755 = vmatpush1.bf16.msra.mxu0 %v17381_v20  ;;  %v17455_v20 = vld [vmem:[#allocation8 + $0x484] ss:$16 sps:$4 sm:$0xff]  }
 0x621   :  { %13001 = vmatpush1.bf16.msra.mxu1 %v17384_v25  ;;  %12756 = vmatprep.subr.bf16.mxu0 %v17389_v30  ;;  %v17453_v25 = vld [vmem:[#allocation8 + $0x480] ss:$16 sps:$4 sm:$0xff]   ;;  %v17456_v30 = vld [vmem:[#allocation8 + $0x488] ss:$16 sps:$4 sm:$0xff]  }
 0x622   :  { %13002 = vmatprep.subr.bf16.mxu1 %v17392_v63  ;;  %v17461_v63 = vld [vmem:[#allocation8 + $0x4a4] ss:$16 sps:$4 sm:$0xff]  }
 0x624   :  { %12757 = vmatpush1.bf16.msra.mxu0 %v17387_v38  ;;  %v17464_v38 = vld [vmem:[#allocation8 + $0x4ac] ss:$16 sps:$4 sm:$0xff]  }
 0x625   :  { %13003 = vmatpush1.bf16.msra.mxu1 %v17390_v9  ;;  %12758 = vmatprep.subr.bf16.mxu0 %v17395_v27  ;;  %v1486_v9 = vsub.s32 4, %v18251_v14  ;;  %v17459_v27 = vld [vmem:[#allocation8 + $0x4a0] ss:$16 sps:$4 sm:$0xff]  }
 0x626   :  { %13004 = vmatprep.subr.bf16.mxu1 %v17398_v29  ;;  %v1498_v29 = vsub.s32 7, %v18251_v14 }
 0x628   :  { %12759 = vmatpush1.bf16.msra.mxu0 %v17393_v33  ;;  %v17462_v33 = vld [vmem:[#allocation8 + $0x4a8] ss:$16 sps:$4 sm:$0xff]   ;;  %v1499_v39 = vrot.slane %v18256_v23, %v1498_v29 }
 0x629   :  { %13005 = vmatpush1.bf16.msra.mxu1 %v17396_v34  ;;  %12760 = vmatprep.subr.bf16.mxu0 %v17401_v35  ;;  %v17467_v34 = vld [vmem:[#allocation8 + $0x4c4] ss:$16 sps:$4 sm:$0xff]   ;;  %v17470_v35 = vld [vmem:[#allocation8 + $0x4cc] ss:$16 sps:$4 sm:$0xff]   ;;  %v17528_v29 = vld [vmem:[#allocation8 + $0x608] ss:$16 sps:$4 sm:$0xff]  }
 0x62a   :  { %13006 = vmatprep.subr.bf16.mxu1 %v17404_v36  ;;  %v1487_v36 = vrot.slane %v18256_v23, %v1486_v9  ;;  %v17477_v23 = vld [vmem:[#allocation8 + $0x500] ss:$16 sps:$4 sm:$0xff]  }
 0x62b   :  { %v17525_v9 = vld [vmem:[#allocation8 + $0x600] ss:$16 sps:$4 sm:$0xff]  }
 0x62c   :  { %12761 = vmatpush1.bf16.msra.mxu0 %v17399_v47  ;;  %v17465_v47 = vld [vmem:[#allocation8 + $0x4c0] ss:$16 sps:$4 sm:$0xff]   ;;  %v14978_v17 = vadd.f32 %v18231_v7, %v1487_v36  ;;  %v17488_v7 = vld [vmem:[#allocation8 + $0x52c] ss:$16 sps:$4 sm:$0xff]  }
 0x62d   :  { %13007 = vmatpush1.bf16.msra.mxu1 %v17402_v40  ;;  %12762 = vmatprep.subr.bf16.mxu0 %v17407_v41  ;;  %v17468_v40 = vld [vmem:[#allocation8 + $0x4c8] ss:$16 sps:$4 sm:$0xff]   ;;  %v17473_v41 = vld [vmem:[#allocation8 + $0x4e4] ss:$16 sps:$4 sm:$0xff]   ;;  %v17531_v36 = vld [vmem:[#allocation8 + $0x620] ss:$16 sps:$4 sm:$0xff]  }
 0x62e   :  { %13008 = vmatprep.subr.bf16.mxu1 %v17410_v42  ;;  %v17476_v42 = vld [vmem:[#allocation8 + $0x4ec] ss:$16 sps:$4 sm:$0xff]  }
 0x630   :  { %12763 = vmatpush1.bf16.msra.mxu0 %v17405_v52  ;;  %v14981_v52 = vadd.f32 %v18237_v10, %v1499_v39  ;;  %v17486_v10 = vld [vmem:[#allocation8 + $0x528] ss:$16 sps:$4 sm:$0xff]   ;;  %v17539_v39 = vld [vmem:[#allocation8 + $0x644] ss:$16 sps:$4 sm:$0xff]  }
 0x631   :  { %13009 = vmatpush1.bf16.msra.mxu1 %v17408_v43  ;;  %12764 = vmatprep.subr.bf16.mxu0 %v17413_v44  ;;  %v17474_v43 = vld [vmem:[#allocation8 + $0x4e8] ss:$16 sps:$4 sm:$0xff]   ;;  %v17479_v44 = vld [vmem:[#allocation8 + $0x504] ss:$16 sps:$4 sm:$0xff]  }
 0x632   :  { %13010 = vmatprep.subr.bf16.mxu1 %v17416_v46  ;;  %v14582_v46 = vmul.f32 -1.442695, %v14978_v17  ;;  %v17545_v17 = vld [vmem:[#allocation8 + $0x664] ss:$16 sps:$4 sm:$0xff]  }
 0x634   :  { %12765 = vmatpush1.bf16.msra.mxu0 %v17411_v49  ;;  %v14585_v49 = vmul.f32 -1.442695, %v14981_v52  ;;  %17833 = vpow2.f32 %v14582_v46  ;;  %v17543_v52 = vld [vmem:[#allocation8 + $0x660] ss:$16 sps:$4 sm:$0xff]  }
 0x635   :  { %13011 = vmatpush1.bf16.msra.mxu1 %v17414_v50  ;;  %12766 = vmatprep.subr.bf16.mxu0 %v17419_v62  ;;  %v17480_v50 = vld [vmem:[#allocation8 + $0x508] ss:$16 sps:$4 sm:$0xff]   ;;  %v17485_v62 = vld [vmem:[#allocation8 + $0x524] ss:$16 sps:$4 sm:$0xff]   ;;  %v17549_v46 = vld [vmem:[#allocation8 + $0x680] ss:$16 sps:$4 sm:$0xff]  }
 0x636   :  { %13012 = vmatprep.subr.bf16.mxu1 %v17422_v51  ;;  %v17483_v51 = vld [vmem:[#allocation8 + $0x520] ss:$16 sps:$4 sm:$0xff]   ;;  %17835 = vpow2.f32 %v14585_v49  ;;  %v17552_v49 = vld [vmem:[#allocation8 + $0x688] ss:$16 sps:$4 sm:$0xff]  }
 0x638   :  { %12767 = vmatpush1.bf16.msra.mxu0 %v17417_v53  ;;  %v17491_v53 = vld [vmem:[#allocation8 + $0x544] ss:$16 sps:$4 sm:$0xff]  }
 0x639   :  { %13013 = vmatpush1.bf16.msra.mxu1 %v17420_v22  ;;  %12768 = vmatprep.subr.bf16.mxu0 %v17425_v54  ;;  %v17494_v22 = vld [vmem:[#allocation8 + $0x54c] ss:$16 sps:$4 sm:$0xff]   ;;  %v17489_v54 = vld [vmem:[#allocation8 + $0x540] ss:$16 sps:$4 sm:$0xff]  }
 0x63a   :  { %13014 = vmatprep.subr.bf16.mxu1 %v17428_v55  ;;  %v17492_v55 = vld [vmem:[#allocation8 + $0x548] ss:$16 sps:$4 sm:$0xff]  }
 0x63c   :  { %12769 = vmatpush1.bf16.msra.mxu0 %v17423_v3  ;;  %v17497_v3 = vld [vmem:[#allocation8 + $0x564] ss:$16 sps:$4 sm:$0xff]  }
 0x63d   :  { %13015 = vmatpush1.bf16.msra.mxu1 %v17426_v61  ;;  %12779 = vmatprep.subr.bf16.mxu0 %v17431_v1  ;;  %v17500_v61 = vld [vmem:[#allocation8 + $0x56c] ss:$16 sps:$4 sm:$0xff]   ;;  %v17495_v1 = vld [vmem:[#allocation8 + $0x560] ss:$16 sps:$4 sm:$0xff]  }
 0x63e   :  { %13025 = vmatprep.subr.bf16.mxu1 %v17434_v48  ;;  %v17834_v56 = vpop.eup %17833  ;;  %v17498_v48 = vld [vmem:[#allocation8 + $0x568] ss:$16 sps:$4 sm:$0xff]  }
 0x63f   :  { %12771 = vmatmul.mubr.bf16.vlgmr.msra.gmra.mrb[12].mxu0 %v10361_v59 }
 0x640   :  { %13017 = vmatmul.mubr.bf16.vlgmr.msra.gmra.mrb[12].mxu1 %v10361_v59  ;;  %12780 = vmatpush1.bf16.msra.mxu0 %v17429_v58  ;;  %v17506_v58 = vld [vmem:[#allocation8 + $0x58c] ss:$16 sps:$4 sm:$0xff]   ;;  %v17836_v59 = vpop.eup %17835 }
 0x641   :  { %12811 = vmatprep.mubr.bf16.mxu0 %v10364_v4  ;;  %13026 = vmatpush1.bf16.msra.mxu1 %v17432_v60  ;;  %v10327_v60 = vadd.f32 1.0, %v17834_v56 }
 0x642   :  { %13057 = vmatprep.mubr.bf16.mxu1 %v10364_v4  ;;  %12781 = vmatprep.subr.bf16.mxu0 %v17437_v2  ;;  %v17501_v2 = vld [vmem:[#allocation8 + $0x580] ss:$16 sps:$4 sm:$0xff]   ;;  %v17504_v4 = vld [vmem:[#allocation8 + $0x588] ss:$16 sps:$4 sm:$0xff]  }
 0x643   :  { %13027 = vmatprep.subr.bf16.mxu1 %v17440_v6  ;;  %v17509_v6 = vld [vmem:[#allocation8 + $0x5a4] ss:$16 sps:$4 sm:$0xff]   ;;  %17837 = vrcp.f32 %v10327_v60 }
 0x644   :  { %12782 = vmatpush1.bf16.msra.mxu0 %v17435_v11  ;;  %v10330_v11 = vadd.f32 1.0, %v17836_v59 }
 0x645   :  { %13028 = vmatpush1.bf16.msra.mxu1 %v17438_v12  ;;  %12783 = vmatprep.subr.bf16.mxu0 %v17443_v5  ;;  %v17512_v12 = vld [vmem:[#allocation8 + $0x5ac] ss:$16 sps:$4 sm:$0xff]   ;;  %v17507_v5 = vld [vmem:[#allocation8 + $0x5a0] ss:$16 sps:$4 sm:$0xff]  }
 0x646   :  { %13029 = vmatprep.subr.bf16.mxu1 %v17446_v15  ;;  %v17510_v15 = vld [vmem:[#allocation8 + $0x5a8] ss:$16 sps:$4 sm:$0xff]   ;;  %17839 = vrcp.f32 %v10330_v11 }
 0x648   :  { %12784 = vmatpush1.bf16.msra.mxu0 %v17441_v21  ;;  %v17515_v21 = vld [vmem:[#allocation8 + $0x5c4] ss:$16 sps:$4 sm:$0xff]  }
 0x649   :  { %13030 = vmatpush1.bf16.msra.mxu1 %v17444_v16  ;;  %12785 = vmatprep.subr.bf16.mxu0 %v17449_v18  ;;  %v17518_v16 = vld [vmem:[#allocation8 + $0x5cc] ss:$16 sps:$4 sm:$0xff]   ;;  %v17513_v18 = vld [vmem:[#allocation8 + $0x5c0] ss:$16 sps:$4 sm:$0xff]  }
 0x64a   :  { %13031 = vmatprep.subr.bf16.mxu1 %v17452_v28  ;;  %v17516_v28 = vld [vmem:[#allocation8 + $0x5c8] ss:$16 sps:$4 sm:$0xff]  }
 0x64c   :  { %12786 = vmatpush1.bf16.msra.mxu0 %v17447_v19  ;;  %v17521_v19 = vld [vmem:[#allocation8 + $0x5e4] ss:$16 sps:$4 sm:$0xff]  }
 0x64d   :  { %13032 = vmatpush1.bf16.msra.mxu1 %v17450_v32  ;;  %12787 = vmatprep.subr.bf16.mxu0 %v17455_v20  ;;  %v17524_v32 = vld [vmem:[#allocation8 + $0x5ec] ss:$16 sps:$4 sm:$0xff]   ;;  %v17519_v20 = vld [vmem:[#allocation8 + $0x5e0] ss:$16 sps:$4 sm:$0xff]  }
 0x64e   :  { %13033 = vmatprep.subr.bf16.mxu1 %v17458_v24  ;;  %v17522_v24 = vld [vmem:[#allocation8 + $0x5e8] ss:$16 sps:$4 sm:$0xff]  }
 0x650   :  { %12788 = vmatpush1.bf16.msra.mxu0 %v17453_v25  ;;  %v17527_v25 = vld [vmem:[#allocation8 + $0x604] ss:$16 sps:$4 sm:$0xff]  }
 0x651   :  { %13034 = vmatpush1.bf16.msra.mxu1 %v17456_v30  ;;  %12789 = vmatprep.subr.bf16.mxu0 %v17461_v63  ;;  %v17838_v30 = vpop.eup %17837  ;;  %v17530_v63 = vld [vmem:[#allocation8 + $0x60c] ss:$16 sps:$4 sm:$0xff]  }
 0x652   :  { %13035 = vmatprep.subr.bf16.mxu1 %v17464_v38  ;;  %v17840_v38 = vpop.eup %17839 }
 0x654   :  { %12790 = vmatpush1.bf16.msra.mxu0 %v17459_v27  ;;  %v10363_v27 = vpack.c.bf16 %v17838_v30, %v17838_v30  ;;  %v17576_v30 = vld [vmem:[#allocation8 + $0x708] ss:$16 sps:$4 sm:$0xff]  }
 0x655   :  { %13036 = vmatpush1.bf16.msra.mxu1 %v17462_v33  ;;  %12791 = vmatprep.subr.bf16.mxu0 %v17467_v34  ;;  %v17533_v33 = vld [vmem:[#allocation8 + $0x624] ss:$16 sps:$4 sm:$0xff]   ;;  %v10366_v34 = vpack.c.bf16 %v17840_v38, %v17840_v38  ;;  %v17584_v38 = vld [vmem:[#allocation8 + $0x72c] ss:$16 sps:$4 sm:$0xff]  }
 0x656   :  { %13037 = vmatprep.subr.bf16.mxu1 %v17470_v35  ;;  %v17536_v35 = vld [vmem:[#allocation8 + $0x62c] ss:$16 sps:$4 sm:$0xff]  }
 0x658   :  { %12792 = vmatpush1.bf16.msra.mxu0 %v17465_v47  ;;  %v17534_v47 = vld [vmem:[#allocation8 + $0x628] ss:$16 sps:$4 sm:$0xff]  }
 0x659   :  { %13038 = vmatpush1.bf16.msra.mxu1 %v17468_v40  ;;  %12793 = vmatprep.subr.bf16.mxu0 %v17473_v41  ;;  %v17542_v40 = vld [vmem:[#allocation8 + $0x64c] ss:$16 sps:$4 sm:$0xff]   ;;  %v17537_v41 = vld [vmem:[#allocation8 + $0x640] ss:$16 sps:$4 sm:$0xff]  }
 0x65a   :  { %13039 = vmatprep.subr.bf16.mxu1 %v17476_v42  ;;  %v17540_v42 = vld [vmem:[#allocation8 + $0x648] ss:$16 sps:$4 sm:$0xff]  }
 0x65c   :  { %12794 = vmatpush1.bf16.msra.mxu0 %v17471_v0  ;;  %v17548_v0 = vld [vmem:[#allocation8 + $0x66c] ss:$16 sps:$4 sm:$0xff]  }
 0x65d   :  { %13040 = vmatpush1.bf16.msra.mxu1 %v17474_v43  ;;  %12795 = vmatprep.subr.bf16.mxu0 %v17479_v44  ;;  %v17546_v43 = vld [vmem:[#allocation8 + $0x668] ss:$16 sps:$4 sm:$0xff]   ;;  %v17551_v44 = vld [vmem:[#allocation8 + $0x684] ss:$16 sps:$4 sm:$0xff]  }
 0x65e   :  { %13041 = vmatprep.subr.bf16.mxu1 %v17482_v45  ;;  %v17554_v45 = vld [vmem:[#allocation8 + $0x68c] ss:$16 sps:$4 sm:$0xff]  }
 0x660   :  { %12796 = vmatpush1.bf16.msra.mxu0 %v17477_v23  ;;  %v18300_v23 = vld [vmem:[#allocation7 + $0x8] sm:$0xf] }
 0x661   :  { %13042 = vmatpush1.bf16.msra.mxu1 %v17480_v50  ;;  %12797 = vmatprep.subr.bf16.mxu0 %v17485_v62  ;;  %v17557_v50 = vld [vmem:[#allocation8 + $0x6a4] ss:$16 sps:$4 sm:$0xff]   ;;  %v17560_v62 = vld [vmem:[#allocation8 + $0x6ac] ss:$16 sps:$4 sm:$0xff]  }
 0x662   :  { %13043 = vmatprep.subr.bf16.mxu1 %v17488_v7  ;;  %v1494_v7 = vsub.s32 6, %v18251_v14 }
 0x664   :  { %12798 = vmatpush1.bf16.msra.mxu0 %v17483_v51  ;;  %v1511_v51 = vrot.slane %v18300_v23, %v18286_v57 }
 0x665   :  { %13044 = vmatpush1.bf16.msra.mxu1 %v17486_v10  ;;  %12799 = vmatprep.subr.bf16.mxu0 %v17491_v53  ;;  %v17555_v10 = vld [vmem:[#allocation8 + $0x6a0] ss:$16 sps:$4 sm:$0xff]   ;;  %v1515_v53 = vrot.slane %v18300_v23, %v18277_v37 }
 0x666   :  { %13045 = vmatprep.subr.bf16.mxu1 %v17494_v22  ;;  %v17558_v22 = vld [vmem:[#allocation8 + $0x6a8] ss:$16 sps:$4 sm:$0xff]  }
 0x668   :  { %12800 = vmatpush1.bf16.msra.mxu0 %v17489_v54  ;;  %v17563_v54 = vld [vmem:[#allocation8 + $0x6c4] ss:$16 sps:$4 sm:$0xff]  }
 0x669   :  { %13046 = vmatpush1.bf16.msra.mxu1 %v17492_v55  ;;  %12801 = vmatprep.subr.bf16.mxu0 %v17497_v3 }
 0x66a   :  { %13047 = vmatprep.subr.bf16.mxu1 %v17500_v61  ;;  %v17566_v61 = vld [vmem:[#allocation8 + $0x6cc] ss:$16 sps:$4 sm:$0xff]  }
 0x66c   :  { %12802 = vmatpush1.bf16.msra.mxu0 %v17495_v1  ;;  %v17861_v1 = vld [vmem:[#allocation7] sm:$0xff] }
 0x66d   :  { %13048 = vmatpush1.bf16.msra.mxu1 %v17498_v48  ;;  %12803 = vmatprep.subr.bf16.mxu0 %v17503_v26  ;;  %v1495_v56 = vrot.slane %v17861_v1, %v1494_v7  ;;  %v17614_v7 = vld [vmem:[#allocation8 + $0x7cc] ss:$16 sps:$4 sm:$0xff]  }
 0x66e   :  { %13049 = vmatprep.subr.bf16.mxu1 %v17506_v58 }
 0x670   :  { %12804 = vmatpush1.bf16.msra.mxu0 %v17501_v2  ;;  %v17561_v2 = vld [vmem:[#allocation8 + $0x6c0] ss:$16 sps:$4 sm:$0xff]  }
 0x671   :  { %13050 = vmatpush1.bf16.msra.mxu1 %v17504_v4  ;;  %12805 = vmatprep.subr.bf16.mxu0 %v17509_v6  ;;  %v1507_v4 = vrot.slane %v18300_v23, %v18254_v31 }
 0x672   :  { %13051 = vmatprep.subr.bf16.mxu1 %v17512_v12  ;;  %v17564_v12 = vld [vmem:[#allocation8 + $0x6c8] ss:$16 sps:$4 sm:$0xff]  }
 0x674   :  { %12806 = vmatpush1.bf16.msra.mxu0 %v17507_v5  ;;  %v17569_v5 = vld [vmem:[#allocation8 + $0x6e4] ss:$16 sps:$4 sm:$0xff]  }
 0x675   :  { %13052 = vmatpush1.bf16.msra.mxu1 %v17510_v15  ;;  %12807 = vmatprep.subr.bf16.mxu0 %v17515_v21  ;;  %v17572_v15 = vld [vmem:[#allocation8 + $0x6ec] ss:$16 sps:$4 sm:$0xff]   ;;  %v14980_v21 = vadd.f32 %v18233_v8, %v1495_v56  ;;  %v17579_v8 = vld [vmem:[#allocation8 + $0x720] ss:$16 sps:$4 sm:$0xff]  }
 0x676   :  { %13053 = vmatprep.subr.bf16.mxu1 %v17518_v16  ;;  %v17567_v16 = vld [vmem:[#allocation8 + $0x6e0] ss:$16 sps:$4 sm:$0xff]   ;;  %v17626_v56 = vld [vmem:[#allocation8 + $0x80c] ss:$16 sps:$4 sm:$0xff]  }
 0x678   :  { %12808 = vmatpush1.bf16.msra.mxu0 %v17513_v18 }
 0x679   :  { %13054 = vmatpush1.bf16.msra.mxu1 %v17516_v28  ;;  %12809 = vmatprep.subr.bf16.mxu0 %v17521_v19  ;;  %v17570_v28 = vld [vmem:[#allocation8 + $0x6e8] ss:$16 sps:$4 sm:$0xff]   ;;  %v17575_v19 = vld [vmem:[#allocation8 + $0x704] ss:$16 sps:$4 sm:$0xff]  }
 0x67a   :  { %13055 = vmatprep.subr.bf16.mxu1 %v17524_v32  ;;  %v17578_v32 = vld [vmem:[#allocation8 + $0x70c] ss:$16 sps:$4 sm:$0xff]  }
 0x67c   :  { %12810 = vmatpush1.bf16.msra.mxu0 %v17519_v20  ;;  %v14584_v20 = vmul.f32 -1.442695, %v14980_v21  ;;  %v17633_v21 = vld [vmem:[#allocation8 + $0x840] ss:$16 sps:$4 sm:$0xff]  }
 0x67d   :  { %13056 = vmatpush1.bf16.msra.mxu1 %v17522_v24  ;;  %12820 = vmatprep.subr.bf16.mxu0 %v17527_v25  ;;  %v17573_v24 = vld [vmem:[#allocation8 + $0x700] ss:$16 sps:$4 sm:$0xff]  }
 0x67e   :  { %13066 = vmatprep.subr.bf16.mxu1 %v17530_v63  ;;  %v17581_v63 = vld [vmem:[#allocation8 + $0x724] ss:$16 sps:$4 sm:$0xff]   ;;  %17841 = vpow2.f32 %v14584_v20 }
 0x67f   :  { %12812 = vmatmul.mubr.bf16.vlgmr.msra.gmra.mrb[12].mxu0 %v10363_v27  ;;  %v17647_v20 = vld [vmem:[#allocation8 + $0x884] ss:$16 sps:$4 sm:$0xff]  }
 0x680   :  { %13058 = vmatmul.mubr.bf16.vlgmr.msra.gmra.mrb[12].mxu1 %v10363_v27  ;;  %12821 = vmatpush1.bf16.msra.mxu0 %v17525_v9  ;;  %v17582_v9 = vld [vmem:[#allocation8 + $0x728] ss:$16 sps:$4 sm:$0xff]   ;;  %v17587_v27 = vld [vmem:[#allocation8 + $0x744] ss:$16 sps:$4 sm:$0xff]  }
 0x681   :  { %12852 = vmatprep.mubr.bf16.mxu0 %v10366_v34  ;;  %13067 = vmatpush1.bf16.msra.mxu1 %v17528_v29  ;;  %v17590_v29 = vld [vmem:[#allocation8 + $0x74c] ss:$16 sps:$4 sm:$0xff]  }
 0x682   :  { %13098 = vmatprep.mubr.bf16.mxu1 %v10366_v34  ;;  %12822 = vmatprep.subr.bf16.mxu0 %v17533_v33  ;;  %v17585_v33 = vld [vmem:[#allocation8 + $0x740] ss:$16 sps:$4 sm:$0xff]   ;;  %v17588_v34 = vld [vmem:[#allocation8 + $0x748] ss:$16 sps:$4 sm:$0xff]  }
 0x683   :  { %13068 = vmatprep.subr.bf16.mxu1 %v17536_v35  ;;  %v17593_v35 = vld [vmem:[#allocation8 + $0x764] ss:$16 sps:$4 sm:$0xff]  }
 0x684   :  { %12823 = vmatpush1.bf16.msra.mxu0 %v17531_v36  ;;  %v17596_v36 = vld [vmem:[#allocation8 + $0x76c] ss:$16 sps:$4 sm:$0xff]  }
 0x685   :  { %13069 = vmatpush1.bf16.msra.mxu1 %v17534_v47  ;;  %12824 = vmatprep.subr.bf16.mxu0 %v17539_v39  ;;  %v17591_v47 = vld [vmem:[#allocation8 + $0x760] ss:$16 sps:$4 sm:$0xff]  }
 0x686   :  { %13070 = vmatprep.subr.bf16.mxu1 %v17542_v40  ;;  %v17594_v40 = vld [vmem:[#allocation8 + $0x768] ss:$16 sps:$4 sm:$0xff]  }
 0x688   :  { %12825 = vmatpush1.bf16.msra.mxu0 %v17537_v41  ;;  %v17842_v39 = vpop.eup %17841  ;;  %v17599_v41 = vld [vmem:[#allocation8 + $0x784] ss:$16 sps:$4 sm:$0xff]  }
 0x689   :  { %13071 = vmatpush1.bf16.msra.mxu1 %v17540_v42  ;;  %12826 = vmatprep.subr.bf16.mxu0 %v17545_v17  ;;  %v17602_v42 = vld [vmem:[#allocation8 + $0x78c] ss:$16 sps:$4 sm:$0xff]  }
 0x68a   :  { %13072 = vmatprep.subr.bf16.mxu1 %v17548_v0  ;;  %v10329_v0 = vadd.f32 1.0, %v17842_v39 }
 0x68c   :  { %12827 = vmatpush1.bf16.msra.mxu0 %v17543_v52  ;;  %v17597_v52 = vld [vmem:[#allocation8 + $0x780] ss:$16 sps:$4 sm:$0xff]  }
 0x68d   :  { %13073 = vmatpush1.bf16.msra.mxu1 %v17546_v43  ;;  %12828 = vmatprep.subr.bf16.mxu0 %v17551_v44  ;;  %v17600_v43 = vld [vmem:[#allocation8 + $0x788] ss:$16 sps:$4 sm:$0xff]   ;;  %v17605_v44 = vld [vmem:[#allocation8 + $0x7a4] ss:$16 sps:$4 sm:$0xff]  }
 0x68e   :  { %13074 = vmatprep.subr.bf16.mxu1 %v17554_v45 }
 0x690   :  { %12829 = vmatpush1.bf16.msra.mxu0 %v17549_v46  ;;  %v17608_v46 = vld [vmem:[#allocation8 + $0x7ac] ss:$16 sps:$4 sm:$0xff]  }
 0x691   :  { %13075 = vmatpush1.bf16.msra.mxu1 %v17552_v49  ;;  %12830 = vmatprep.subr.bf16.mxu0 %v17557_v50  ;;  %v17603_v49 = vld [vmem:[#allocation8 + $0x7a0] ss:$16 sps:$4 sm:$0xff]   ;;  %v17606_v50 = vld [vmem:[#allocation8 + $0x7a8] ss:$16 sps:$4 sm:$0xff]  }
 0x692   :  { %v18307_v55 = vpop.f32.mrb[8].mxu0  ;;  %v10280_v3 = vpop.f32.mrb[8].mxu1  ;;  %13076 = vmatprep.subr.bf16.mxu1 %v17560_v62  ;;  %v17611_v62 = vld [vmem:[#allocation8 + $0x7c4] ss:$16 sps:$4 sm:$0xff]  }
 0x693   :  { %v18309_v14 = vadd.f32 %v10280_v3, %v1511_v51  ;;  %v9954_v48 = vpop.f32.mrb[9].mxu0  ;;  %v10282_v26 = vpop.f32.mrb[9].mxu1  ;;  %v17609_v51 = vld [vmem:[#allocation8 + $0x7c0] ss:$16 sps:$4 sm:$0xff]   ;;  %v17618_v3 = vld [vmem:[#allocation8 + $0x7e8] ss:$16 sps:$4 sm:$0xff]  }
 0x694   :  { %v18311_v58 = vadd.f32 %v10282_v26, %v1515_v53  ;;  %12831 = vmatpush1.bf16.msra.mxu0 %v17555_v10  ;;  %v9956_v59 = vpop.f32.mrb[10].mxu0  ;;  %v10284_v60 = vpop.f32.mrb[10].mxu1  ;;  %v14983_v18 = vadd.f32 %v9954_v48, %v1507_v4  ;;  %v17612_v10 = vld [vmem:[#allocation8 + $0x7c8] ss:$16 sps:$4 sm:$0xff]   ;;  %v17617_v53 = vld [vmem:[#allocation8 + $0x7e4] ss:$16 sps:$4 sm:$0xff]  }
 0x695   :  { %13077 = vmatpush1.bf16.msra.mxu1 %v17558_v22  ;;  %v9957_v6 = vpop.f32.mrb[11].mxu0  ;;  %v10285_v11 = vpop.f32.mrb[11].mxu1  ;;  %12832 = vmatprep.subr.bf16.mxu0 %v17563_v54  ;;  %v17620_v22 = vld [vmem:[#allocation8 + $0x7ec] ss:$16 sps:$4 sm:$0xff]   ;;  %v17615_v54 = vld [vmem:[#allocation8 + $0x7e0] ss:$16 sps:$4 sm:$0xff]  }
 0x696   :  { %13078 = vmatprep.subr.bf16.mxu1 %v17566_v61  ;;  %v14587_v25 = vmul.f32 -1.442695, %v14983_v18  ;;  %v17623_v61 = vld [vmem:[#allocation8 + $0x804] ss:$16 sps:$4 sm:$0xff]   ;;  %v17621_v26 = vld [vmem:[#allocation8 + $0x800] ss:$16 sps:$4 sm:$0xff]  }
 0x697   :  { %v17624_v60 = vld [vmem:[#allocation8 + $0x808] ss:$16 sps:$4 sm:$0xff]   ;;  %v17632_v6 = vld [vmem:[#allocation8 + $0x82c] ss:$16 sps:$4 sm:$0xff]   ;;  %v17627_v11 = vld [vmem:[#allocation8 + $0x820] ss:$16 sps:$4 sm:$0xff]  }
 0x698   :  { %12833 = vmatpush1.bf16.msra.mxu0 %v17561_v2  ;;  %17843 = vpow2.f32 %v14587_v25  ;;  %v17629_v2 = vld [vmem:[#allocation8 + $0x824] ss:$16 sps:$4 sm:$0xff]   ;;  %v17645_v25 = vld [vmem:[#allocation8 + $0x880] ss:$16 sps:$4 sm:$0xff]  }
 0x699   :  { %13079 = vmatpush1.bf16.msra.mxu1 %v17564_v12  ;;  %12834 = vmatprep.subr.bf16.mxu0 %v17569_v5  ;;  %17845 = vrcp.f32 %v10329_v0  ;;  %v17630_v12 = vld [vmem:[#allocation8 + $0x828] ss:$16 sps:$4 sm:$0xff]   ;;  %v17635_v5 = vld [vmem:[#allocation8 + $0x844] ss:$16 sps:$4 sm:$0xff]  }
 0x69a   :  { %13080 = vmatprep.subr.bf16.mxu1 %v17572_v15  ;;  %v17638_v15 = vld [vmem:[#allocation8 + $0x84c] ss:$16 sps:$4 sm:$0xff]   ;;  %v17641_v18 = vld [vmem:[#allocation8 + $0x864] ss:$16 sps:$4 sm:$0xff]  }
 0x69c   :  { %12835 = vmatpush1.bf16.msra.mxu0 %v17567_v16  ;;  %v17636_v16 = vld [vmem:[#allocation8 + $0x848] ss:$16 sps:$4 sm:$0xff]  }
 0x69d   :  { %13081 = vmatpush1.bf16.msra.mxu1 %v17570_v28  ;;  %12836 = vmatprep.subr.bf16.mxu0 %v17575_v19  ;;  %v17644_v28 = vld [vmem:[#allocation8 + $0x86c] ss:$16 sps:$4 sm:$0xff]   ;;  %v17639_v19 = vld [vmem:[#allocation8 + $0x860] ss:$16 sps:$4 sm:$0xff]  }
 0x69e   :  { %13082 = vmatprep.subr.bf16.mxu1 %v17578_v32  ;;  %v17642_v32 = vld [vmem:[#allocation8 + $0x868] ss:$16 sps:$4 sm:$0xff]  }
 0x6a0   :  { %12837 = vmatpush1.bf16.msra.mxu0 %v17573_v24  ;;  %v17650_v24 = vld [vmem:[#allocation8 + $0x88c] ss:$16 sps:$4 sm:$0xff]  }
 0x6a1   :  { %13083 = vmatpush1.bf16.msra.mxu1 %v17576_v30  ;;  %12838 = vmatprep.subr.bf16.mxu0 %v17581_v63  ;;  %v17648_v30 = vld [vmem:[#allocation8 + $0x888] ss:$16 sps:$4 sm:$0xff]   ;;  %v17653_v63 = vld [vmem:[#allocation8 + $0x8a4] ss:$16 sps:$4 sm:$0xff]  }
 0x6a2   :  { %13084 = vmatprep.subr.bf16.mxu1 %v17584_v38  ;;  %v17844_v17 = vpop.eup %17843  ;;  %v17656_v38 = vld [vmem:[#allocation8 + $0x8ac] ss:$16 sps:$4 sm:$0xff]  }
 0x6a3   :  { %v10332_v45 = vadd.f32 1.0, %v17844_v17  ;;  %v17846_v1 = vpop.eup %17845  ;;  %v17674_v17 = vld [vmem:[#allocation8 + $0x90c] ss:$16 sps:$4 sm:$0xff]  }
 0x6a4   :  { %12839 = vmatpush1.bf16.msra.mxu0 %v17579_v8  ;;  %v10365_v59 = vpack.c.bf16 %v17846_v1, %v17846_v1  ;;  %v17651_v8 = vld [vmem:[#allocation8 + $0x8a0] ss:$16 sps:$4 sm:$0xff]  }
 0x6a5   :  { %13085 = vmatpush1.bf16.msra.mxu1 %v17582_v9  ;;  %12840 = vmatprep.subr.bf16.mxu0 %v17587_v27  ;;  %17847 = vrcp.f32 %v10332_v45  ;;  %v17654_v9 = vld [vmem:[#allocation8 + $0x8a8] ss:$16 sps:$4 sm:$0xff]   ;;  %v17659_v27 = vld [vmem:[#allocation8 + $0x8c4] ss:$16 sps:$4 sm:$0xff]   ;;  %v17680_v45 = vld [vmem:[#allocation8 + $0x92c] ss:$16 sps:$4 sm:$0xff]  }
 0x6a6   :  { %13086 = vmatprep.subr.bf16.mxu1 %v17590_v29  ;;  %v17662_v29 = vld [vmem:[#allocation8 + $0x8cc] ss:$16 sps:$4 sm:$0xff]  }
 0x6a8   :  { %12841 = vmatpush1.bf16.msra.mxu0 %v17585_v33  ;;  %v1503_v33 = vrot.slane %v18300_v23, %v18274_v13  ;;  %v17669_v23 = vld [vmem:[#allocation8 + $0x900] ss:$16 sps:$4 sm:$0xff]  }
 0x6a9   :  { %13087 = vmatpush1.bf16.msra.mxu1 %v17588_v34  ;;  %12842 = vmatprep.subr.bf16.mxu0 %v17593_v35  ;;  %v17657_v34 = vld [vmem:[#allocation8 + $0x8c0] ss:$16 sps:$4 sm:$0xff]   ;;  %v17660_v35 = vld [vmem:[#allocation8 + $0x8c8] ss:$16 sps:$4 sm:$0xff]  }
 0x6aa   :  { %13088 = vmatprep.subr.bf16.mxu1 %v17596_v36  ;;  %v17665_v36 = vld [vmem:[#allocation8 + $0x8e4] ss:$16 sps:$4 sm:$0xff]   ;;  %v14982_v39 = vadd.f32 %v18307_v55, %v1503_v33  ;;  %v17675_v55 = vld [vmem:[#allocation8 + $0x920] ss:$16 sps:$4 sm:$0xff]   ;;  %v17734_v33 = vld [vmem:[#allocation8 + $0xa4c] ss:$16 sps:$4 sm:$0xff]  }
 0x6ac   :  { %12843 = vmatpush1.bf16.msra.mxu0 %v17591_v47  ;;  %v17668_v47 = vld [vmem:[#allocation8 + $0x8ec] ss:$16 sps:$4 sm:$0xff]   ;;  %v14586_v0 = vmul.f32 -1.442695, %v14982_v39  ;;  %v17735_v39 = vld [vmem:[#allocation8 + $0xa60] ss:$16 sps:$4 sm:$0xff]  }
 0x6ad   :  { %13089 = vmatpush1.bf16.msra.mxu1 %v17594_v40  ;;  %12844 = vmatprep.subr.bf16.mxu0 %v17599_v41  ;;  %v17663_v40 = vld [vmem:[#allocation8 + $0x8e0] ss:$16 sps:$4 sm:$0xff]   ;;  %v17666_v41 = vld [vmem:[#allocation8 + $0x8e8] ss:$16 sps:$4 sm:$0xff]  }
 0x6ae   :  { %13090 = vmatprep.subr.bf16.mxu1 %v17602_v42  ;;  %v17671_v42 = vld [vmem:[#allocation8 + $0x904] ss:$16 sps:$4 sm:$0xff]   ;;  %17849 = vpow2.f32 %v14586_v0  ;;  %v17744_v0 = vld [vmem:[#allocation8 + $0xa88] ss:$16 sps:$4 sm:$0xff]  }
 0x6af   :  { %v17848_v48 = vpop.eup %17847 }
 0x6b0   :  { %12845 = vmatpush1.bf16.msra.mxu0 %v17597_v52  ;;  %v10368_v4 = vpack.c.bf16 %v17848_v48, %v17848_v48  ;;  %v14589_v52 = vmul.f32 -1.442695, %v18311_v58  ;;  %v17684_v58 = vld [vmem:[#allocation8 + $0x948] ss:$16 sps:$4 sm:$0xff]  }
 0x6b1   :  { %13091 = vmatpush1.bf16.msra.mxu1 %v17600_v43  ;;  %12846 = vmatprep.subr.bf16.mxu0 %v17605_v44  ;;  %v17672_v43 = vld [vmem:[#allocation8 + $0x908] ss:$16 sps:$4 sm:$0xff]   ;;  %v17677_v44 = vld [vmem:[#allocation8 + $0x924] ss:$16 sps:$4 sm:$0xff]  }
 0x6b2   :  { %13092 = vmatprep.subr.bf16.mxu1 %v17608_v46  ;;  %17851 = vpow2.f32 %v14589_v52  ;;  %v17678_v46 = vld [vmem:[#allocation8 + $0x928] ss:$16 sps:$4 sm:$0xff]   ;;  %v17752_v52 = vld [vmem:[#allocation8 + $0xaac] ss:$16 sps:$4 sm:$0xff]  }
 0x6b3   :  { %v17696_v48 = vld [vmem:[#allocation8 + $0x988] ss:$16 sps:$4 sm:$0xff]  }
 0x6b4   :  { %12847 = vmatpush1.bf16.msra.mxu0 %v17603_v49  ;;  %v17683_v49 = vld [vmem:[#allocation8 + $0x944] ss:$16 sps:$4 sm:$0xff]  }
 0x6b5   :  { %13093 = vmatpush1.bf16.msra.mxu1 %v17606_v50  ;;  %12848 = vmatprep.subr.bf16.mxu0 %v17611_v62  ;;  %v17686_v50 = vld [vmem:[#allocation8 + $0x94c] ss:$16 sps:$4 sm:$0xff]   ;;  %v17681_v62 = vld [vmem:[#allocation8 + $0x940] ss:$16 sps:$4 sm:$0xff]  }
 0x6b6   :  { %13094 = vmatprep.subr.bf16.mxu1 %v17614_v7  ;;  %v17689_v7 = vld [vmem:[#allocation8 + $0x964] ss:$16 sps:$4 sm:$0xff]  }
 0x6b8   :  { %12849 = vmatpush1.bf16.msra.mxu0 %v17609_v51  ;;  %v17692_v51 = vld [vmem:[#allocation8 + $0x96c] ss:$16 sps:$4 sm:$0xff]  }
 0x6b9   :  { %13095 = vmatpush1.bf16.msra.mxu1 %v17612_v10  ;;  %12850 = vmatprep.subr.bf16.mxu0 %v17617_v53  ;;  %v17687_v10 = vld [vmem:[#allocation8 + $0x960] ss:$16 sps:$4 sm:$0xff]   ;;  %v17850_v53 = vpop.eup %17849 }
 0x6ba   :  { %13096 = vmatprep.subr.bf16.mxu1 %v17620_v22  ;;  %v17690_v22 = vld [vmem:[#allocation8 + $0x968] ss:$16 sps:$4 sm:$0xff]   ;;  %v10331_v1 = vadd.f32 1.0, %v17850_v53  ;;  %v14588_v53 = vmul.f32 -1.442695, %v18309_v14 }
 0x6bb   :  { %v17780_v14 = vld [vmem:[#allocation8 + $0xb48] ss:$16 sps:$4 sm:$0xff]  }
 0x6bc   :  { %12851 = vmatpush1.bf16.msra.mxu0 %v17615_v54  ;;  %v17695_v54 = vld [vmem:[#allocation8 + $0x984] ss:$16 sps:$4 sm:$0xff]   ;;  %17853 = vrcp.f32 %v10331_v1  ;;  %v17771_v1 = vld [vmem:[#allocation8 + $0xb20] ss:$16 sps:$4 sm:$0xff]  }
 0x6bd   :  { %13097 = vmatpush1.bf16.msra.mxu1 %v17618_v3  ;;  %12861 = vmatprep.subr.bf16.mxu0 %v17623_v61  ;;  %v17698_v3 = vld [vmem:[#allocation8 + $0x98c] ss:$16 sps:$4 sm:$0xff]   ;;  %v17852_v61 = vpop.eup %17851 }
 0x6be   :  { %13107 = vmatprep.subr.bf16.mxu1 %v17626_v56  ;;  %v17693_v56 = vld [vmem:[#allocation8 + $0x980] ss:$16 sps:$4 sm:$0xff]  }
 0x6bf   :  { %12853 = vmatmul.mubr.bf16.vlgmr.msra.gmra.mrb[12].mxu0 %v10365_v59 }
 0x6c0   :  { %13099 = vmatmul.mubr.bf16.vlgmr.msra.gmra.mrb[12].mxu1 %v10365_v59  ;;  %12862 = vmatpush1.bf16.msra.mxu0 %v17621_v26  ;;  %v17701_v26 = vld [vmem:[#allocation8 + $0x9a4] ss:$16 sps:$4 sm:$0xff]   ;;  %v10334_v59 = vadd.f32 1.0, %v17852_v61  ;;  %v17776_v61 = vld [vmem:[#allocation8 + $0xb2c] ss:$16 sps:$4 sm:$0xff]  }
 0x6c1   :  { %12893 = vmatprep.mubr.bf16.mxu0 %v10368_v4  ;;  %13108 = vmatpush1.bf16.msra.mxu1 %v17624_v60  ;;  %v17704_v60 = vld [vmem:[#allocation8 + $0x9ac] ss:$16 sps:$4 sm:$0xff]  }
 0x6c2   :  { %13139 = vmatprep.mubr.bf16.mxu1 %v10368_v4  ;;  %12863 = vmatprep.subr.bf16.mxu0 %v17629_v2  ;;  %v17699_v2 = vld [vmem:[#allocation8 + $0x9a0] ss:$16 sps:$4 sm:$0xff]   ;;  %v17702_v4 = vld [vmem:[#allocation8 + $0x9a8] ss:$16 sps:$4 sm:$0xff]   ;;  %17855 = vrcp.f32 %v10334_v59 }
 0x6c3   :  { %13109 = vmatprep.subr.bf16.mxu1 %v17632_v6  ;;  %v17707_v6 = vld [vmem:[#allocation8 + $0x9c4] ss:$16 sps:$4 sm:$0xff]   ;;  %17857 = vpow2.f32 %v14588_v53  ;;  %v17777_v59 = vld [vmem:[#allocation8 + $0xb40] ss:$16 sps:$4 sm:$0xff]  }
 0x6c4   :  { %12864 = vmatpush1.bf16.msra.mxu0 %v17627_v11  ;;  %v17710_v11 = vld [vmem:[#allocation8 + $0x9cc] ss:$16 sps:$4 sm:$0xff]  }
 0x6c5   :  { %13110 = vmatpush1.bf16.msra.mxu1 %v17630_v12  ;;  %12865 = vmatprep.subr.bf16.mxu0 %v17635_v5  ;;  %v17705_v12 = vld [vmem:[#allocation8 + $0x9c0] ss:$16 sps:$4 sm:$0xff]   ;;  %v17708_v5 = vld [vmem:[#allocation8 + $0x9c8] ss:$16 sps:$4 sm:$0xff]  }
 0x6c6   :  { %13111 = vmatprep.subr.bf16.mxu1 %v17638_v15  ;;  %v17713_v15 = vld [vmem:[#allocation8 + $0x9e4] ss:$16 sps:$4 sm:$0xff]  }
 0x6c8   :  { %12866 = vmatpush1.bf16.msra.mxu0 %v17633_v21  ;;  %v17716_v21 = vld [vmem:[#allocation8 + $0x9ec] ss:$16 sps:$4 sm:$0xff]  }
 0x6c9   :  { %13112 = vmatpush1.bf16.msra.mxu1 %v17636_v16  ;;  %12867 = vmatprep.subr.bf16.mxu0 %v17641_v18  ;;  %v17711_v16 = vld [vmem:[#allocation8 + $0x9e0] ss:$16 sps:$4 sm:$0xff]   ;;  %v17714_v18 = vld [vmem:[#allocation8 + $0x9e8] ss:$16 sps:$4 sm:$0xff]  }
 0x6ca   :  { %13113 = vmatprep.subr.bf16.mxu1 %v17644_v28  ;;  %v17719_v28 = vld [vmem:[#allocation8 + $0xa04] ss:$16 sps:$4 sm:$0xff]  }
 0x6cc   :  { %12868 = vmatpush1.bf16.msra.mxu0 %v17639_v19  ;;  %v17854_v19 = vpop.eup %17853 }
 0x6cd   :  { %13114 = vmatpush1.bf16.msra.mxu1 %v17642_v32  ;;  %12869 = vmatprep.subr.bf16.mxu0 %v17647_v20  ;;  %v17722_v32 = vld [vmem:[#allocation8 + $0xa0c] ss:$16 sps:$4 sm:$0xff]   ;;  %v17856_v20 = vpop.eup %17855 }
 0x6ce   :  { %13115 = vmatprep.subr.bf16.mxu1 %v17650_v24  ;;  %v17717_v24 = vld [vmem:[#allocation8 + $0xa00] ss:$16 sps:$4 sm:$0xff]  }
 0x6d0   :  { %12870 = vmatpush1.bf16.msra.mxu0 %v17645_v25  ;;  %v10367_v25 = vpack.c.bf16 %v17854_v19, %v17854_v19  ;;  %v17795_v19 = vld [vmem:[#allocation8 + $0xba0] ss:$16 sps:$4 sm:$0xff]  }
 0x6d1   :  { %13116 = vmatpush1.bf16.msra.mxu1 %v17648_v30  ;;  %12871 = vmatprep.subr.bf16.mxu0 %v17653_v63  ;;  %v17720_v30 = vld [vmem:[#allocation8 + $0xa08] ss:$16 sps:$4 sm:$0xff]   ;;  %v17725_v63 = vld [vmem:[#allocation8 + $0xa24] ss:$16 sps:$4 sm:$0xff]  }
 0x6d2   :  { %13117 = vmatprep.subr.bf16.mxu1 %v17656_v38  ;;  %v10370_v38 = vpack.c.bf16 %v17856_v20, %v17856_v20  ;;  %v17803_v20 = vld [vmem:[#allocation8 + $0xbc4] ss:$16 sps:$4 sm:$0xff]  }
 0x6d4   :  { %12872 = vmatpush1.bf16.msra.mxu0 %v17651_v8  ;;  %v17728_v8 = vld [vmem:[#allocation8 + $0xa2c] ss:$16 sps:$4 sm:$0xff]  }
 0x6d5   :  { %13118 = vmatpush1.bf16.msra.mxu1 %v17654_v9  ;;  %12873 = vmatprep.subr.bf16.mxu0 %v17659_v27  ;;  %v17723_v9 = vld [vmem:[#allocation8 + $0xa20] ss:$16 sps:$4 sm:$0xff]   ;;  %v17726_v27 = vld [vmem:[#allocation8 + $0xa28] ss:$16 sps:$4 sm:$0xff]  }
 0x6d6   :  { %13119 = vmatprep.subr.bf16.mxu1 %v17662_v29  ;;  %v17731_v29 = vld [vmem:[#allocation8 + $0xa44] ss:$16 sps:$4 sm:$0xff]  }
 0x6d8   :  { %12874 = vmatpush1.bf16.msra.mxu0 %v17657_v34  ;;  %v17729_v34 = vld [vmem:[#allocation8 + $0xa40] ss:$16 sps:$4 sm:$0xff]  }
 0x6d9   :  { %13120 = vmatpush1.bf16.msra.mxu1 %v17660_v35  ;;  %12875 = vmatprep.subr.bf16.mxu0 %v17665_v36  ;;  %v17732_v35 = vld [vmem:[#allocation8 + $0xa48] ss:$16 sps:$4 sm:$0xff]   ;;  %v17737_v36 = vld [vmem:[#allocation8 + $0xa64] ss:$16 sps:$4 sm:$0xff]  }
 0x6da   :  { %13121 = vmatprep.subr.bf16.mxu1 %v17668_v47  ;;  %v17740_v47 = vld [vmem:[#allocation8 + $0xa6c] ss:$16 sps:$4 sm:$0xff]  }
 0x6dc   :  { %12876 = vmatpush1.bf16.msra.mxu0 %v17663_v40  ;;  %v17738_v40 = vld [vmem:[#allocation8 + $0xa68] ss:$16 sps:$4 sm:$0xff]  }
 0x6dd   :  { %13122 = vmatpush1.bf16.msra.mxu1 %v17666_v41  ;;  %12877 = vmatprep.subr.bf16.mxu0 %v17671_v42  ;;  %v17743_v41 = vld [vmem:[#allocation8 + $0xa84] ss:$16 sps:$4 sm:$0xff]   ;;  %v17746_v42 = vld [vmem:[#allocation8 + $0xa8c] ss:$16 sps:$4 sm:$0xff]  }
 0x6de   :  { %13123 = vmatprep.subr.bf16.mxu1 %v17674_v17  ;;  %v17741_v17 = vld [vmem:[#allocation8 + $0xa80] ss:$16 sps:$4 sm:$0xff]  }
 0x6e0   :  { %12878 = vmatpush1.bf16.msra.mxu0 %v17669_v23  ;;  %v17749_v23 = vld [vmem:[#allocation8 + $0xaa4] ss:$16 sps:$4 sm:$0xff]  }
 0x6e1   :  { %13124 = vmatpush1.bf16.msra.mxu1 %v17672_v43  ;;  %12879 = vmatprep.subr.bf16.mxu0 %v17677_v44  ;;  %v17747_v43 = vld [vmem:[#allocation8 + $0xaa0] ss:$16 sps:$4 sm:$0xff]   ;;  %v17750_v44 = vld [vmem:[#allocation8 + $0xaa8] ss:$16 sps:$4 sm:$0xff]  }
 0x6e2   :  { %13125 = vmatprep.subr.bf16.mxu1 %v17680_v45  ;;  %v17755_v45 = vld [vmem:[#allocation8 + $0xac4] ss:$16 sps:$4 sm:$0xff]  }
 0x6e4   :  { %12880 = vmatpush1.bf16.msra.mxu0 %v17675_v55  ;;  %v17758_v55 = vld [vmem:[#allocation8 + $0xacc] ss:$16 sps:$4 sm:$0xff]  }
 0x6e5   :  { %13126 = vmatpush1.bf16.msra.mxu1 %v17678_v46  ;;  %12881 = vmatprep.subr.bf16.mxu0 %v17683_v49  ;;  %v17753_v46 = vld [vmem:[#allocation8 + $0xac0] ss:$16 sps:$4 sm:$0xff]   ;;  %v17756_v49 = vld [vmem:[#allocation8 + $0xac8] ss:$16 sps:$4 sm:$0xff]  }
 0x6e6   :  { %13127 = vmatprep.subr.bf16.mxu1 %v17686_v50  ;;  %v17761_v50 = vld [vmem:[#allocation8 + $0xae4] ss:$16 sps:$4 sm:$0xff]  }
 0x6e8   :  { %12882 = vmatpush1.bf16.msra.mxu0 %v17681_v62  ;;  %v17764_v62 = vld [vmem:[#allocation8 + $0xaec] ss:$16 sps:$4 sm:$0xff]  }
 0x6e9   :  { %13128 = vmatpush1.bf16.msra.mxu1 %v17684_v58  ;;  %12883 = vmatprep.subr.bf16.mxu0 %v17689_v7  ;;  %v17759_v58 = vld [vmem:[#allocation8 + $0xae0] ss:$16 sps:$4 sm:$0xff]   ;;  %v17762_v7 = vld [vmem:[#allocation8 + $0xae8] ss:$16 sps:$4 sm:$0xff]  }
 0x6ea   :  { %13129 = vmatprep.subr.bf16.mxu1 %v17692_v51  ;;  %v17767_v51 = vld [vmem:[#allocation8 + $0xb04] ss:$16 sps:$4 sm:$0xff]  }
 0x6ec   :  { %12884 = vmatpush1.bf16.msra.mxu0 %v17687_v10  ;;  %v17770_v10 = vld [vmem:[#allocation8 + $0xb0c] ss:$16 sps:$4 sm:$0xff]  }
 0x6ed   :  { %13130 = vmatpush1.bf16.msra.mxu1 %v17690_v22  ;;  %12885 = vmatprep.subr.bf16.mxu0 %v17695_v54  ;;  %v17765_v22 = vld [vmem:[#allocation8 + $0xb00] ss:$16 sps:$4 sm:$0xff]   ;;  %v17768_v54 = vld [vmem:[#allocation8 + $0xb08] ss:$16 sps:$4 sm:$0xff]  }
 0x6ee   :  { %13131 = vmatprep.subr.bf16.mxu1 %v17698_v3  ;;  %v17773_v3 = vld [vmem:[#allocation8 + $0xb24] ss:$16 sps:$4 sm:$0xff]  }
 0x6f0   :  { %12886 = vmatpush1.bf16.msra.mxu0 %v17693_v56  ;;  %v17774_v56 = vld [vmem:[#allocation8 + $0xb28] ss:$16 sps:$4 sm:$0xff]  }
 0x6f1   :  { %13132 = vmatpush1.bf16.msra.mxu1 %v17696_v48  ;;  %12887 = vmatprep.subr.bf16.mxu0 %v17701_v26  ;;  %v17779_v48 = vld [vmem:[#allocation8 + $0xb44] ss:$16 sps:$4 sm:$0xff]   ;;  %v17782_v26 = vld [vmem:[#allocation8 + $0xb4c] ss:$16 sps:$4 sm:$0xff]  }
 0x6f2   :  { %13133 = vmatprep.subr.bf16.mxu1 %v17704_v60  ;;  %v17785_v60 = vld [vmem:[#allocation8 + $0xb64] ss:$16 sps:$4 sm:$0xff]  }
 0x6f4   :  { %12888 = vmatpush1.bf16.msra.mxu0 %v17699_v2  ;;  %v17788_v2 = vld [vmem:[#allocation8 + $0xb6c] ss:$16 sps:$4 sm:$0xff]  }
 0x6f5   :  { %13134 = vmatpush1.bf16.msra.mxu1 %v17702_v4  ;;  %12889 = vmatprep.subr.bf16.mxu0 %v17707_v6  ;;  %v17783_v4 = vld [vmem:[#allocation8 + $0xb60] ss:$16 sps:$4 sm:$0xff]   ;;  %v17858_v6 = vpop.eup %17857 }
 0x6f6   :  { %13135 = vmatprep.subr.bf16.mxu1 %v17710_v11  ;;  %v17786_v11 = vld [vmem:[#allocation8 + $0xb68] ss:$16 sps:$4 sm:$0xff]  }
 0x6f8   :  { %12890 = vmatpush1.bf16.msra.mxu0 %v17705_v12  ;;  %v17791_v12 = vld [vmem:[#allocation8 + $0xb84] ss:$16 sps:$4 sm:$0xff]  }
 0x6f9   :  { %13136 = vmatpush1.bf16.msra.mxu1 %v17708_v5  ;;  %12891 = vmatprep.subr.bf16.mxu0 %v17713_v15  ;;  %v17794_v5 = vld [vmem:[#allocation8 + $0xb8c] ss:$16 sps:$4 sm:$0xff]   ;;  %v10333_v15 = vadd.f32 1.0, %v17858_v6 }
 0x6fa   :  { %13137 = vmatprep.subr.bf16.mxu1 %v17716_v21  ;;  %v17789_v21 = vld [vmem:[#allocation8 + $0xb80] ss:$16 sps:$4 sm:$0xff]  }
 0x6fb   :  { %17859 = vrcp.f32 %v10333_v15 }
 0x6fc   :  { %12892 = vmatpush1.bf16.msra.mxu0 %v17711_v16  ;;  %v17792_v16 = vld [vmem:[#allocation8 + $0xb88] ss:$16 sps:$4 sm:$0xff]  }
 0x6fd   :  { %13138 = vmatpush1.bf16.msra.mxu1 %v17714_v18  ;;  %12902 = vmatprep.subr.bf16.mxu0 %v17719_v28  ;;  %v17797_v18 = vld [vmem:[#allocation8 + $0xba4] ss:$16 sps:$4 sm:$0xff]   ;;  %v17800_v28 = vld [vmem:[#allocation8 + $0xbac] ss:$16 sps:$4 sm:$0xff]  }
 0x6fe   :  { %13148 = vmatprep.subr.bf16.mxu1 %v17722_v32  ;;  %v17798_v32 = vld [vmem:[#allocation8 + $0xba8] ss:$16 sps:$4 sm:$0xff]  }
 0x6ff   :  { %12894 = vmatmul.mubr.bf16.vlgmr.msra.gmra.mrb[12].mxu0 %v10367_v25 }
 0x700   :  { %13140 = vmatmul.mubr.bf16.vlgmr.msra.gmra.mrb[12].mxu1 %v10367_v25  ;;  %12903 = vmatpush1.bf16.msra.mxu0 %v17717_v24  ;;  %v17806_v24 = vld [vmem:[#allocation8 + $0xbcc] ss:$16 sps:$4 sm:$0xff]   ;;  %v17801_v25 = vld [vmem:[#allocation8 + $0xbc0] ss:$16 sps:$4 sm:$0xff]  }
 0x701   :  { %12934 = vmatprep.mubr.bf16.mxu0 %v10370_v38  ;;  %13149 = vmatpush1.bf16.msra.mxu1 %v17720_v30  ;;  %v17804_v30 = vld [vmem:[#allocation8 + $0xbc8] ss:$16 sps:$4 sm:$0xff]  }
 0x702   :  { %13180 = vmatprep.mubr.bf16.mxu1 %v10370_v38  ;;  %12904 = vmatprep.subr.bf16.mxu0 %v17725_v63  ;;  %v17809_v63 = vld [vmem:[#allocation8 + $0xbe4] ss:$16 sps:$4 sm:$0xff]   ;;  %v17812_v38 = vld [vmem:[#allocation8 + $0xbec] ss:$16 sps:$4 sm:$0xff]  }
 0x703   :  { %13150 = vmatprep.subr.bf16.mxu1 %v17728_v8  ;;  %v17807_v8 = vld [vmem:[#allocation8 + $0xbe0] ss:$16 sps:$4 sm:$0xff]  }
 0x704   :  { %12905 = vmatpush1.bf16.msra.mxu0 %v17723_v9  ;;  %v17810_v9 = vld [vmem:[#allocation8 + $0xbe8] ss:$16 sps:$4 sm:$0xff]  }
 0x705   :  { %13151 = vmatpush1.bf16.msra.mxu1 %v17726_v27  ;;  %12906 = vmatprep.subr.bf16.mxu0 %v17731_v29  ;;  %v17860_v27 = vpop.eup %17859 }
 0x706   :  { %13152 = vmatprep.subr.bf16.mxu1 %v17734_v33  ;;  %v10369_v29 = vpack.c.bf16 %v17860_v27, %v17860_v27  ;;  %v10755_v33 = vld [vmem:[#allocation10] sm:$0xf] }
 0x708   :  { %12907 = vmatpush1.bf16.msra.mxu0 %v17729_v34  ;;  %v10760_v34 = vrot.slane %v10755_v33, %v18274_v13 }
 0x709   :  { %13153 = vmatpush1.bf16.msra.mxu1 %v17732_v35  ;;  %12908 = vmatprep.subr.bf16.mxu0 %v17737_v36  ;;  %v10768_v35 = vrot.slane %v10755_v33, %v18286_v57  ;;  %v10764_v36 = vrot.slane %v10755_v33, %v18254_v31 }
 0x70a   :  { %13154 = vmatprep.subr.bf16.mxu1 %v17740_v47  ;;  %v10772_v47 = vrot.slane %v10755_v33, %v18277_v37 }
 0x70c   :  { %12909 = vmatpush1.bf16.msra.mxu0 %v17735_v39 }
 0x70d   :  { %13155 = vmatpush1.bf16.msra.mxu1 %v17738_v40  ;;  %12910 = vmatprep.subr.bf16.mxu0 %v17743_v41 }
 0x70e   :  { %13156 = vmatprep.subr.bf16.mxu1 %v17746_v42 }
 0x710   :  { %12911 = vmatpush1.bf16.msra.mxu0 %v17741_v17 }
 0x711   :  { %13157 = vmatpush1.bf16.msra.mxu1 %v17744_v0  ;;  %12912 = vmatprep.subr.bf16.mxu0 %v17749_v23 }
 0x712   :  { %13158 = vmatprep.subr.bf16.mxu1 %v17752_v52 }
 0x714   :  { %12913 = vmatpush1.bf16.msra.mxu0 %v17747_v43 }
 0x715   :  { %13159 = vmatpush1.bf16.msra.mxu1 %v17750_v44  ;;  %12914 = vmatprep.subr.bf16.mxu0 %v17755_v45 }
 0x716   :  { %13160 = vmatprep.subr.bf16.mxu1 %v17758_v55 }
 0x718   :  { %12915 = vmatpush1.bf16.msra.mxu0 %v17753_v46 }
 0x719   :  { %13161 = vmatpush1.bf16.msra.mxu1 %v17756_v49  ;;  %12916 = vmatprep.subr.bf16.mxu0 %v17761_v50 }
 0x71a   :  { %13162 = vmatprep.subr.bf16.mxu1 %v17764_v62 }
 0x71c   :  { %12917 = vmatpush1.bf16.msra.mxu0 %v17759_v58 }
 0x71d   :  { %13163 = vmatpush1.bf16.msra.mxu1 %v17762_v7  ;;  %12918 = vmatprep.subr.bf16.mxu0 %v17767_v51 }
 0x71e   :  { %13164 = vmatprep.subr.bf16.mxu1 %v17770_v10 }
 0x720   :  { %12919 = vmatpush1.bf16.msra.mxu0 %v17765_v22 }
 0x721   :  { %13165 = vmatpush1.bf16.msra.mxu1 %v17768_v54  ;;  %12920 = vmatprep.subr.bf16.mxu0 %v17773_v3 }
 0x722   :  { %13166 = vmatprep.subr.bf16.mxu1 %v17776_v61 }
 0x724   :  { %12921 = vmatpush1.bf16.msra.mxu0 %v17771_v1 }
 0x725   :  { %13167 = vmatpush1.bf16.msra.mxu1 %v17774_v56  ;;  %12922 = vmatprep.subr.bf16.mxu0 %v17779_v48 }
 0x726   :  { %13168 = vmatprep.subr.bf16.mxu1 %v17782_v26 }
 0x728   :  { %12923 = vmatpush1.bf16.msra.mxu0 %v17777_v59 }
 0x729   :  { %13169 = vmatpush1.bf16.msra.mxu1 %v17780_v14  ;;  %12924 = vmatprep.subr.bf16.mxu0 %v17785_v60 }
 0x72a   :  { %13170 = vmatprep.subr.bf16.mxu1 %v17788_v2 }
 0x72c   :  { %12925 = vmatpush1.bf16.msra.mxu0 %v17783_v4 }
 0x72d   :  { %13171 = vmatpush1.bf16.msra.mxu1 %v17786_v11  ;;  %12926 = vmatprep.subr.bf16.mxu0 %v17791_v12 }
 0x72e   :  { %13172 = vmatprep.subr.bf16.mxu1 %v17794_v5 }
 0x730   :  { %12927 = vmatpush1.bf16.msra.mxu0 %v17789_v21 }
 0x731   :  { %13173 = vmatpush1.bf16.msra.mxu1 %v17792_v16  ;;  %12928 = vmatprep.subr.bf16.mxu0 %v17797_v18 }
 0x732   :  { %13174 = vmatprep.subr.bf16.mxu1 %v17800_v28 }
 0x734   :  { %12929 = vmatpush1.bf16.msra.mxu0 %v17795_v19 }
 0x735   :  { %13175 = vmatpush1.bf16.msra.mxu1 %v17798_v32  ;;  %12930 = vmatprep.subr.bf16.mxu0 %v17803_v20 }
 0x736   :  { %13176 = vmatprep.subr.bf16.mxu1 %v17806_v24 }
 0x738   :  { %12931 = vmatpush1.bf16.msra.mxu0 %v17801_v25 }
 0x739   :  { %13177 = vmatpush1.bf16.msra.mxu1 %v17804_v30  ;;  %12932 = vmatprep.subr.bf16.mxu0 %v17809_v63 }
 0x73a   :  { %13178 = vmatprep.subr.bf16.mxu1 %v17812_v38 }
 0x73c   :  { %12933 = vmatpush1.bf16.msra.mxu0 %v17807_v8 }
 0x73d   :  { %13179 = vmatpush1.bf16.msra.mxu1 %v17810_v9 }
 0x73f   :  { %12935 = vmatmul.mubr.bf16.vlgmr.msra.gmra.mrb[12].mxu0 %v10369_v29 }
 0x740   :  { %13181 = vmatmul.mubr.bf16.vlgmr.msra.gmra.mrb[12].mxu1 %v10369_v29 }
 0x812   :  { %v12936_v39 = vpop.f32.mrb[12].mxu0 }
 0x813   :  { %v14986_v40 = vadd.f32 %v12936_v39, %v10760_v34  ;;  %v13182_v41 = vpop.f32.mrb[12].mxu1  ;;  %v12938_v42 = vpop.f32.mrb[13].mxu0 }
 0x814   :  { %v14988_v17 = vadd.f32 %v13182_v41, %v10768_v35  ;;  %v14987_v0 = vadd.f32 %v12938_v42, %v10764_v36  ;;  %v13184_v23 = vpop.f32.mrb[13].mxu1  ;;  %v12940_v52 = vpop.f32.mrb[14].mxu0 }
 0x815   :  { %13189 = vst [vmem:[#allocation11] sm:$0xff] %v14986_v40  ;;  %v14989_v43 = vadd.f32 %v13184_v23, %v10772_v47  ;;  %v13186_v44 = vpop.f32.mrb[14].mxu1  ;;  %v12941_v13 = vpop.f32.mrb[15].mxu0 }
 0x816   :  { %13191 = vst [vmem:[#allocation11 + $0x10] sm:$0xff] %v14988_v17  ;;  %13190 = vst [vmem:[#allocation11 + $0x8] sm:$0xff] %v14987_v0  ;;  %v13187_v31 = vpop.f32.mrb[15].mxu1 }
 0x817   :  { %13192 = vst [vmem:[#allocation11 + $0x18] sm:$0xff] %v14989_v43 }
 0x818   :  { %17983 = shalt.err (!%p17980_p2)
}
 0x819   :  { %s17984_s3 = scalar_lea.hbm %s18342_s5, 512 }
 0x81a   :  { %p17985_p3 = scmp.ne.s32.totalorder %s18342_s5, %s17984_s3  ;;  %p17988_p4 = scmp.lt.u32.totalorder %s17984_s3, %s18342_s5 }
 0x81c   :  { %p17990_p5 = pnand %p17988_p4, %p17985_p3 }
 0x81e   :  { %17993 = shalt.err (!%p17990_p5)
}
 0x81f   :  { %13202 = dma.vmem_to_hbm [thread:$0]  %s13200_s27, 512, %s18342_s5, [#allocation4]  }
 0x820   :  { %18000 = dma.done.wait [#allocation4], 512  }
 0x821   :  { %18001 = vsyncadd [#allocation4], 4294966784 }
 0x822   :  { %13206 = vsyncpa [#allocation3], 1 }
 0x823   :  { %13207 = vsyncpa [#allocation6], 1 }
 0x824   :  { %13208 = vsyncpa [#allocation9], 1 }
 0x825   :  { %13209 = vsyncpa [#allocation4], 1 }

</bundles_post_ra>
